<compile_context>
chip_gen: v7x
topology: tpu7x:2x2x1
jax: 0.10.0
libtpu: 0.0.40
codegen_flags: <defaults>
</compile_context>

<pallas_src>
import functools
from math import exp

import numpy as np
import jax
import jax.numpy as jnp
from jax.experimental import pallas as pl
from jax.experimental.pallas import tpu as pltpu


# ----------------------------------------------------------------------------
# Static helpers (host / trace time only)
# ----------------------------------------------------------------------------
def gaussian_1d(window_size, sigma):
    g = [exp(-(x - window_size // 2) ** 2 / float(2 * sigma ** 2))
         for x in range(window_size)]
    s = sum(g)
    return [v / s for v in g]


def _band(in_len, taps):
    """(in_len, out_len) banded-Toeplitz B with B[j + t, j] = taps[t].

    x (..., in_len) @ B == valid 1D cross-correlation of x with `taps`.
    """
    n = len(taps)
    out_len = in_len - n + 1
    b = np.zeros((in_len, out_len), np.float32)
    for t in range(n):
        for j in range(out_len):
            b[j + t, j] = taps[t]
    return b


# ----------------------------------------------------------------------------
# Pallas kernel: single invocation, planes packed along the sublane axis
# ----------------------------------------------------------------------------
def _mixloss_kernel(x1_ref, x2_ref, brow_ref, wts_ref, out_ref, *,
                    g0, g_last, c1, c2, nc, H, Ho, Ho2, Wo2, n_sig):
    # (NC*H, W) sublane-packed planes; cast in-kernel so bf16 inputs would
    # stay narrow over HBM->VMEM.  All math in f32.
    x1 = x1_ref[...].astype(jnp.float32)
    x2 = x2_ref[...].astype(jnp.float32)

    # L1 term: one full-array reduction.
    out_ref[0, 1] = jnp.sum(jnp.abs(x1 - x2))

    # ---- stage 1: five convs batched -------------------------------------
    # Stack the five conv inputs on the sublane axis -> one big-M MXU matmul
    # against the single shared (W, Wo) Gaussian band (valid row conv).
    S = jnp.concatenate([x1, x2, x1 * x1, x2 * x2, x1 * x2], axis=0)  # (5*NC*H, W)
    R = jnp.dot(S, brow_ref[...], preferred_element_type=jnp.float32)  # (5*NC*H, Wo)

    # Column pass (valid conv along H): static sublane slice-and-add.
    # Reshape splits the sublane dim with an 8-aligned inner factor (H), so it
    # is layout-preserving.
    R5 = R.reshape(5 * nc, H, R.shape[-1])                             # (5*NC, H, Wo)
    C = g0[0] * R5[:, 0:Ho, :]
    for t in range(1, len(g0)):
        C = C + g0[t] * R5[:, t:t + Ho, :]                             # (5*NC, Ho, Wo)

    mu1 = C[0 * nc:1 * nc]
    mu2 = C[1 * nc:2 * nc]
    e11 = C[2 * nc:3 * nc]
    e22 = C[3 * nc:4 * nc]
    e12 = C[4 * nc:5 * nc]

    mu1_sq = mu1 * mu1
    mu2_sq = mu2 * mu2
    mu1_mu2 = mu1 * mu2
    sigma1_sq = e11 - mu1_sq
    sigma2_sq = e22 - mu2_sq
    sigma12 = e12 - mu1_mu2

    # exact f32 divides (only O(NC*Ho*Wo) elements) to stay inside tolerance.
    v1 = 2.0 * sigma12 + c2
    v2 = sigma1_sq + sigma2_sq + c2
    mcs = v1 / v2                                                      # cs_0
    lmap = (2.0 * mu1_mu2 + c1) / (mu1_sq + mu2_sq + c1)               # l_0

    out_ref[0, 0] = jnp.sum(mcs)

    # ---- stage 2a: first n_sig-1 sigmas only need the SUM of the conv -----
    # sum(conv_valid(cs0, g (x) g)) == sum(cs0 * outer(u, v)); outer(u, v) is
    # precomputed on host and shared across planes.
    for i in range(n_sig - 1):
        out_ref[0, 2 + i] = jnp.sum(mcs * wts_ref[i])

    # ---- stage 2b: last sigma needs the real 2D maps ----------------------
    # Separable valid conv of [cs_0 ; l_0] via slice-and-add (H then W).
    X = jnp.concatenate([mcs, lmap], axis=0)                           # (2*NC, Ho, Wo)
    A = g_last[0] * X[:, 0:Ho2, :]
    for t in range(1, len(g_last)):
        A = A + g_last[t] * X[:, t:t + Ho2, :]                         # (2*NC, Ho2, Wo)
    B = g_last[0] * A[:, :, 0:Wo2]
    for t in range(1, len(g_last)):
        B = B + g_last[t] * A[:, :, t:t + Wo2]                         # (2*NC, Ho2, Wo2)
    out_ref[0, 2 + n_sig - 1] = jnp.sum(B[:nc] * B[nc:])


# ----------------------------------------------------------------------------
# Wrapper
# ----------------------------------------------------------------------------
def mix_loss(img1, img2, alpha=0.84, max_val=1.0, window_size=11,
             sigmas=(0.5, 1.0, 2.0, 4.0, 8.0)):
    N, C, H, W = img1.shape
    nc = N * C
    ws = min(H, W, window_size)
    assert ws == window_size and ws % 2 == 1, "spatial dims must be >= 11 (odd window)"
    ho, wo = H - ws + 1, W - ws + 1
    ho2, wo2 = ho - window_size + 1, wo - window_size + 1
    assert ho >= window_size and wo >= window_size, \
        "cs_0 must be at least window_size wide for the second-stage valid conv"
    n_sig = len(sigmas) - 1

    g0 = gaussian_1d(ws, sigmas[0] * ws / window_size)
    g_list = [gaussian_1d(window_size, s) for s in sigmas[1:]]

    c1 = float((0.01 * max_val) ** 2)
    c2 = float((0.03 * max_val) ** 2)

    # Shared stage-1 row-pass band (W, Wo) -- no block-diagonal expansion.
    brow0 = jnp.asarray(_band(W, g0))

    # Bilinear-form weights for the first n_sig-1 stage-2 sigmas:
    #   sum(conv_valid(cs0, g (x) g)) == sum(cs0 * outer(u, v)),
    #   u = Bcol @ 1, v = Brow @ 1  (host precomputed).
    wts = np.zeros((n_sig - 1, ho, wo), np.float32)
    ones_h = np.ones((ho2,), np.float32)
    ones_w = np.ones((wo2,), np.float32)
    for i, g in enumerate(g_list[:-1]):
        u = _band(ho, g) @ ones_h
        v = _band(wo, g) @ ones_w
        wts[i] = np.outer(u, v)
    wts = jnp.asarray(wts)

    # Sublane-pack planes: (N, C, H, W) -> (NC*H, W)   (free reshape).
    x1p = img1.reshape(nc * H, W)
    x2p = img2.reshape(nc * H, W)

    kernel = functools.partial(
        _mixloss_kernel,
        g0=tuple(float(v) for v in g0),
        g_last=tuple(float(v) for v in g_list[-1]),
        c1=c1, c2=c2, nc=nc, H=H, Ho=ho, Ho2=ho2, Wo2=wo2, n_sig=n_sig)

    vmem = pl.BlockSpec(memory_space=pltpu.MemorySpace.VMEM)
    acc = pl.pallas_call(
        kernel,
        out_shape=jax.ShapeDtypeStruct((1, 2 + n_sig), jnp.float32),
        in_specs=[vmem, vmem, vmem, vmem],
        out_specs=pl.BlockSpec(memory_space=pltpu.MemorySpace.SMEM),
    )(x1p, x2p, brow0, wts)

    # tiny scalar algebra in JAX glue (means -> product -> alpha mix)
    cs0_mean = acc[0, 0] / (nc * ho * wo)
    l1 = acc[0, 1] / (nc * H * W)
    result = cs0_mean
    for i in range(n_sig):
        result = result * (acc[0, 2 + i] / (nc * ho2 * wo2))
    return alpha * (1.0 - result) + (1.0 - alpha) * l1


# ----------------------------------------------------------------------------
# Pure-JAX reference (mirrors the PyTorch code literally) for validation
# ----------------------------------------------------------------------------
def _ref_mix_loss(img1, img2, alpha=0.84, max_val=1.0, window_size=11,
                  sigmas=(0.5, 1.0, 2.0, 4.0, 8.0)):
    N, C, H, W = img1.shape

    def gauss2d(n, sigma):
        g = jnp.asarray(gaussian_1d(n, sigma), jnp.float32)
        return jnp.outer(g, g)

    def dconv(x, k2d, padding):
        c = x.shape[1]
        w = jnp.broadcast_to(k2d[None, None], (c, 1, k2d.shape[0], k2d.shape[1]))
        return jax.lax.conv_general_dilated(
            x, w, (1, 1), padding, feature_group_count=c,
            dimension_numbers=('NCHW', 'OIHW', 'NCHW'),
            precision=jax.lax.Precision.HIGHEST)

    ws = min(H, W, window_size)
    win0 = gauss2d(ws, sigmas[0] * ws / window_size)
    pad = [(ws // 2, ws // 2)] * 2
    mu1 = dconv(img1, win0, pad)
    mu2 = dconv(img2, win0, pad)
    mu1_sq, mu2_sq, mu1_mu2 = mu1 ** 2, mu2 ** 2, mu1 * mu2
    s1 = dconv(img1 * img1, win0, pad) - mu1_sq
    s2 = dconv(img2 * img2, win0, pad) - mu2_sq
    s12 = dconv(img1 * img2, win0, pad) - mu1_mu2
    C1 = (0.01 * max_val) ** 2
    C2 = (0.03 * max_val) ** 2
    V1 = 2.0 * s12 + C2
    V2 = s1 + s2 + C2
    l_map = (2 * mu1_mu2 + C1) / (mu1_sq + mu2_sq + C1)
    mcs_map = V1 / V2
    cl = (ws - 1) // 2
    cs_0 = mcs_map[:, :, cl:-cl, cl:-cl]
    l_0 = l_map[:, :, cl:-cl, cl:-cl]
    result = cs_0.mean()
    for i, sigma in enumerate(sigmas[1:]):
        win = gauss2d(window_size, sigma)
        cs_i = dconv(cs_0, win, [(0, 0), (0, 0)])
        if i == len(sigmas[1:]) - 1:
            cs_i = cs_i * dconv(l_0, win, [(0, 0), (0, 0)])
        result = result * cs_i.mean()
    l1 = jnp.mean(jnp.abs(img1 - img2))
    return alpha * (1.0 - result) + (1.0 - alpha) * l1


if __name__ == "__main__":
    key = jax.random.PRNGKey(0)
    k1, k2 = jax.random.split(key)
    # batch=2, channels=3 (MixLoss hardcodes channel=3); spatial=32 so the
    # second-stage valid 11x11 conv on cs_0 has support.
    img1 = jax.random.uniform(k1, (2, 3, 32, 32), dtype=jnp.float32)
    img2 = jax.random.uniform(k2, (2, 3, 32, 32), dtype=jnp.float32)

    out = mix_loss(img1, img2)
    out = jax.block_until_ready(out)

    ref = _ref_mix_loss(img1, img2)
    # slight headroom for MXU f32 matmul rounding in the row pass
    assert jnp.allclose(out, ref, rtol=2e-3, atol=2e-3), (float(out), float(ref))

    print("KERNEL_OK")
</pallas_src>

<mosaic_0001>
module attributes {stable_mosaic.version = 11 : i64} {
  func.func @_mixloss_kernel(%arg0: memref<192x32xf32, #tpu.memory_space<vmem>>, %arg1: memref<192x32xf32, #tpu.memory_space<vmem>>, %arg2: memref<32x22xf32, #tpu.memory_space<vmem>>, %arg3: memref<3x22x22xf32, #tpu.memory_space<vmem>>, %arg4: memref<1x6xf32, #tpu.memory_space<smem>>) attributes {dimension_semantics = [], scalar_prefetch = 0 : i64, scratch_operands = 0 : i64, tpu.core_type = #tpu.core_type<tc>} {
    %c0 = arith.constant 0 : index
    %c0_0 = arith.constant 0 : index
    %0 = vector.load %arg0[%c0, %c0_0] : memref<192x32xf32, #tpu.memory_space<vmem>>, vector<192x32xf32>
    %c0_1 = arith.constant 0 : index
    %c0_2 = arith.constant 0 : index
    %1 = vector.load %arg1[%c0_1, %c0_2] : memref<192x32xf32, #tpu.memory_space<vmem>>, vector<192x32xf32>
    %2 = arith.subf %0, %1 : vector<192x32xf32>
    %3 = math.absf %2 : vector<192x32xf32>
    %4 = vector.shape_cast %3 : vector<192x32xf32> to vector<1x192x32xf32>
    %cst = arith.constant dense<0.000000e+00> : vector<1xf32>
    %5 = vector.multi_reduction <add>, %4, %cst [1, 2] : vector<1x192x32xf32> to vector<1xf32>
    %6 = vector.shape_cast %5 : vector<1xf32> to vector<1x1x1xf32>
    %7 = vector.extract %6[0, 0, 0] : f32 from vector<1x1x1xf32>
    %c0_3 = arith.constant 0 : index
    %c1 = arith.constant 1 : index
    %8 = memref.load %arg4[%c0_3, %c1] : memref<1x6xf32, #tpu.memory_space<smem>>
    memref.store %7, %arg4[%c0_3, %c1] : memref<1x6xf32, #tpu.memory_space<smem>>
    %9 = arith.mulf %0, %0 : vector<192x32xf32>
    %10 = arith.mulf %1, %1 : vector<192x32xf32>
    %11 = arith.mulf %0, %1 : vector<192x32xf32>
    %12 = tpu.concatenate %0, %1, %9, %10, %11 in 0 : vector<192x32xf32>, vector<192x32xf32>, vector<192x32xf32>, vector<192x32xf32>, vector<192x32xf32> -> vector<960x32xf32>
    %c0_4 = arith.constant 0 : index
    %c0_5 = arith.constant 0 : index
    %13 = vector.load %arg2[%c0_4, %c0_5] : memref<32x22xf32, #tpu.memory_space<vmem>>, vector<32x22xf32>
    %cst_6 = arith.constant dense<0.000000e+00> : vector<960x22xf32>
    %14 = tpu.matmul %12, %13, %cst_6 {dimension_numbers = #tpu.dot_dimension_numbers<[1], [0], [0], [1], [0, 0, 1, 1], [], []>} : vector<960x32xf32>, vector<32x22xf32>, vector<960x22xf32> -> vector<960x22xf32>
    %15 = vector.shape_cast %14 : vector<960x22xf32> to vector<30x32x22xf32>
    %16 = vector.extract_strided_slice %15 {offsets = [0, 0, 0], sizes = [30, 22, 22], strides = [1, 1, 1]} : vector<30x32x22xf32> to vector<30x22x22xf32>
    %cst_7 = arith.constant 1.51709817E-22 : f32
    %17 = vector.broadcast %cst_7 : f32 to vector<30x22x22xf32>
    %18 = arith.mulf %17, %16 : vector<30x22x22xf32>
    %19 = vector.extract_strided_slice %15 {offsets = [0, 1, 0], sizes = [30, 22, 22], strides = [1, 1, 1]} : vector<30x32x22xf32> to vector<30x22x22xf32>
    %cst_8 = arith.constant 9.96126161E-15 : f32
    %20 = vector.broadcast %cst_8 : f32 to vector<30x22x22xf32>
    %21 = arith.mulf %20, %19 : vector<30x22x22xf32>
    %22 = arith.addf %18, %21 : vector<30x22x22xf32>
    %23 = vector.extract_strided_slice %15 {offsets = [0, 2, 0], sizes = [30, 22, 22], strides = [1, 1, 1]} : vector<30x32x22xf32> to vector<30x22x22xf32>
    %cst_9 = arith.constant 1.19794556E-8 : f32
    %24 = vector.broadcast %cst_9 : f32 to vector<30x22x22xf32>
    %25 = arith.mulf %24, %23 : vector<30x22x22xf32>
    %26 = arith.addf %22, %25 : vector<30x22x22xf32>
    %27 = vector.extract_strided_slice %15 {offsets = [0, 3, 0], sizes = [30, 22, 22], strides = [1, 1, 1]} : vector<30x32x22xf32> to vector<30x22x22xf32>
    %cst_10 = arith.constant 2.63865077E-4 : f32
    %28 = vector.broadcast %cst_10 : f32 to vector<30x22x22xf32>
    %29 = arith.mulf %28, %27 : vector<30x22x22xf32>
    %30 = arith.addf %26, %29 : vector<30x22x22xf32>
    %31 = vector.extract_strided_slice %15 {offsets = [0, 4, 0], sizes = [30, 22, 22], strides = [1, 1, 1]} : vector<30x32x22xf32> to vector<30x22x22xf32>
    %cst_11 = arith.constant 0.106450766 : f32
    %32 = vector.broadcast %cst_11 : f32 to vector<30x22x22xf32>
    %33 = arith.mulf %32, %31 : vector<30x22x22xf32>
    %34 = arith.addf %30, %33 : vector<30x22x22xf32>
    %35 = vector.extract_strided_slice %15 {offsets = [0, 5, 0], sizes = [30, 22, 22], strides = [1, 1, 1]} : vector<30x32x22xf32> to vector<30x22x22xf32>
    %cst_12 = arith.constant 0.786570727 : f32
    %36 = vector.broadcast %cst_12 : f32 to vector<30x22x22xf32>
    %37 = arith.mulf %36, %35 : vector<30x22x22xf32>
    %38 = arith.addf %34, %37 : vector<30x22x22xf32>
    %39 = vector.extract_strided_slice %15 {offsets = [0, 6, 0], sizes = [30, 22, 22], strides = [1, 1, 1]} : vector<30x32x22xf32> to vector<30x22x22xf32>
    %cst_13 = arith.constant 0.106450766 : f32
    %40 = vector.broadcast %cst_13 : f32 to vector<30x22x22xf32>
    %41 = arith.mulf %40, %39 : vector<30x22x22xf32>
    %42 = arith.addf %38, %41 : vector<30x22x22xf32>
    %43 = vector.extract_strided_slice %15 {offsets = [0, 7, 0], sizes = [30, 22, 22], strides = [1, 1, 1]} : vector<30x32x22xf32> to vector<30x22x22xf32>
    %cst_14 = arith.constant 2.63865077E-4 : f32
    %44 = vector.broadcast %cst_14 : f32 to vector<30x22x22xf32>
    %45 = arith.mulf %44, %43 : vector<30x22x22xf32>
    %46 = arith.addf %42, %45 : vector<30x22x22xf32>
    %47 = vector.extract_strided_slice %15 {offsets = [0, 8, 0], sizes = [30, 22, 22], strides = [1, 1, 1]} : vector<30x32x22xf32> to vector<30x22x22xf32>
    %cst_15 = arith.constant 1.19794556E-8 : f32
    %48 = vector.broadcast %cst_15 : f32 to vector<30x22x22xf32>
    %49 = arith.mulf %48, %47 : vector<30x22x22xf32>
    %50 = arith.addf %46, %49 : vector<30x22x22xf32>
    %51 = vector.extract_strided_slice %15 {offsets = [0, 9, 0], sizes = [30, 22, 22], strides = [1, 1, 1]} : vector<30x32x22xf32> to vector<30x22x22xf32>
    %cst_16 = arith.constant 9.96126161E-15 : f32
    %52 = vector.broadcast %cst_16 : f32 to vector<30x22x22xf32>
    %53 = arith.mulf %52, %51 : vector<30x22x22xf32>
    %54 = arith.addf %50, %53 : vector<30x22x22xf32>
    %55 = vector.extract_strided_slice %15 {offsets = [0, 10, 0], sizes = [30, 22, 22], strides = [1, 1, 1]} : vector<30x32x22xf32> to vector<30x22x22xf32>
    %cst_17 = arith.constant 1.51709817E-22 : f32
    %56 = vector.broadcast %cst_17 : f32 to vector<30x22x22xf32>
    %57 = arith.mulf %56, %55 : vector<30x22x22xf32>
    %58 = arith.addf %54, %57 : vector<30x22x22xf32>
    %59 = vector.extract_strided_slice %58 {offsets = [0, 0, 0], sizes = [6, 22, 22], strides = [1, 1, 1]} : vector<30x22x22xf32> to vector<6x22x22xf32>
    %60 = vector.extract_strided_slice %58 {offsets = [6, 0, 0], sizes = [6, 22, 22], strides = [1, 1, 1]} : vector<30x22x22xf32> to vector<6x22x22xf32>
    %61 = vector.extract_strided_slice %58 {offsets = [12, 0, 0], sizes = [6, 22, 22], strides = [1, 1, 1]} : vector<30x22x22xf32> to vector<6x22x22xf32>
    %62 = vector.extract_strided_slice %58 {offsets = [18, 0, 0], sizes = [6, 22, 22], strides = [1, 1, 1]} : vector<30x22x22xf32> to vector<6x22x22xf32>
    %63 = vector.extract_strided_slice %58 {offsets = [24, 0, 0], sizes = [6, 22, 22], strides = [1, 1, 1]} : vector<30x22x22xf32> to vector<6x22x22xf32>
    %64 = arith.mulf %59, %59 : vector<6x22x22xf32>
    %65 = arith.mulf %60, %60 : vector<6x22x22xf32>
    %66 = arith.mulf %59, %60 : vector<6x22x22xf32>
    %67 = arith.subf %61, %64 : vector<6x22x22xf32>
    %68 = arith.subf %62, %65 : vector<6x22x22xf32>
    %69 = arith.subf %63, %66 : vector<6x22x22xf32>
    %cst_18 = arith.constant 2.000000e+00 : f32
    %70 = vector.broadcast %cst_18 : f32 to vector<6x22x22xf32>
    %71 = arith.mulf %70, %69 : vector<6x22x22xf32>
    %cst_19 = arith.constant 8.99999984E-4 : f32
    %72 = vector.broadcast %cst_19 : f32 to vector<6x22x22xf32>
    %73 = arith.addf %71, %72 : vector<6x22x22xf32>
    %74 = arith.addf %67, %68 : vector<6x22x22xf32>
    %cst_20 = arith.constant 8.99999984E-4 : f32
    %75 = vector.broadcast %cst_20 : f32 to vector<6x22x22xf32>
    %76 = arith.addf %74, %75 : vector<6x22x22xf32>
    %77 = arith.divf %73, %76 : vector<6x22x22xf32>
    %cst_21 = arith.constant 2.000000e+00 : f32
    %78 = vector.broadcast %cst_21 : f32 to vector<6x22x22xf32>
    %79 = arith.mulf %78, %66 : vector<6x22x22xf32>
    %cst_22 = arith.constant 9.99999974E-5 : f32
    %80 = vector.broadcast %cst_22 : f32 to vector<6x22x22xf32>
    %81 = arith.addf %79, %80 : vector<6x22x22xf32>
    %82 = arith.addf %64, %65 : vector<6x22x22xf32>
    %cst_23 = arith.constant 9.99999974E-5 : f32
    %83 = vector.broadcast %cst_23 : f32 to vector<6x22x22xf32>
    %84 = arith.addf %82, %83 : vector<6x22x22xf32>
    %85 = arith.divf %81, %84 : vector<6x22x22xf32>
    %86 = vector.shape_cast %77 : vector<6x22x22xf32> to vector<1x6x22x22xf32>
    %cst_24 = arith.constant dense<0.000000e+00> : vector<1xf32>
    %87 = vector.multi_reduction <add>, %86, %cst_24 [1, 2, 3] : vector<1x6x22x22xf32> to vector<1xf32>
    %88 = vector.shape_cast %87 : vector<1xf32> to vector<1x1x1x1xf32>
    %89 = vector.extract %88[0, 0, 0, 0] : f32 from vector<1x1x1x1xf32>
    %c0_25 = arith.constant 0 : index
    %c0_26 = arith.constant 0 : index
    %90 = memref.load %arg4[%c0_25, %c0_26] : memref<1x6xf32, #tpu.memory_space<smem>>
    memref.store %89, %arg4[%c0_25, %c0_26] : memref<1x6xf32, #tpu.memory_space<smem>>
    %c0_27 = arith.constant 0 : index
    %c0_28 = arith.constant 0 : index
    %c0_29 = arith.constant 0 : index
    %91 = vector.load %arg3[%c0_27, %c0_28, %c0_29] : memref<3x22x22xf32, #tpu.memory_space<vmem>>, vector<1x22x22xf32>
    %92 = vector.shape_cast %91 : vector<1x22x22xf32> to vector<22x22xf32>
    %93 = vector.shape_cast %92 : vector<22x22xf32> to vector<1x22x22xf32>
    %94 = vector.broadcast %93 : vector<1x22x22xf32> to vector<6x22x22xf32>
    %95 = arith.mulf %77, %94 : vector<6x22x22xf32>
    %96 = vector.shape_cast %95 : vector<6x22x22xf32> to vector<1x6x22x22xf32>
    %cst_30 = arith.constant dense<0.000000e+00> : vector<1xf32>
    %97 = vector.multi_reduction <add>, %96, %cst_30 [1, 2, 3] : vector<1x6x22x22xf32> to vector<1xf32>
    %98 = vector.shape_cast %97 : vector<1xf32> to vector<1x1x1x1xf32>
    %99 = vector.extract %98[0, 0, 0, 0] : f32 from vector<1x1x1x1xf32>
    %c0_31 = arith.constant 0 : index
    %c2 = arith.constant 2 : index
    %100 = memref.load %arg4[%c0_31, %c2] : memref<1x6xf32, #tpu.memory_space<smem>>
    memref.store %99, %arg4[%c0_31, %c2] : memref<1x6xf32, #tpu.memory_space<smem>>
    %c1_32 = arith.constant 1 : index
    %c0_33 = arith.constant 0 : index
    %c0_34 = arith.constant 0 : index
    %101 = vector.load %arg3[%c1_32, %c0_33, %c0_34] : memref<3x22x22xf32, #tpu.memory_space<vmem>>, vector<1x22x22xf32>
    %102 = vector.shape_cast %101 : vector<1x22x22xf32> to vector<22x22xf32>
    %103 = vector.shape_cast %102 : vector<22x22xf32> to vector<1x22x22xf32>
    %104 = vector.broadcast %103 : vector<1x22x22xf32> to vector<6x22x22xf32>
    %105 = arith.mulf %77, %104 : vector<6x22x22xf32>
    %106 = vector.shape_cast %105 : vector<6x22x22xf32> to vector<1x6x22x22xf32>
    %cst_35 = arith.constant dense<0.000000e+00> : vector<1xf32>
    %107 = vector.multi_reduction <add>, %106, %cst_35 [1, 2, 3] : vector<1x6x22x22xf32> to vector<1xf32>
    %108 = vector.shape_cast %107 : vector<1xf32> to vector<1x1x1x1xf32>
    %109 = vector.extract %108[0, 0, 0, 0] : f32 from vector<1x1x1x1xf32>
    %c0_36 = arith.constant 0 : index
    %c3 = arith.constant 3 : index
    %110 = memref.load %arg4[%c0_36, %c3] : memref<1x6xf32, #tpu.memory_space<smem>>
    memref.store %109, %arg4[%c0_36, %c3] : memref<1x6xf32, #tpu.memory_space<smem>>
    %c2_37 = arith.constant 2 : index
    %c0_38 = arith.constant 0 : index
    %c0_39 = arith.constant 0 : index
    %111 = vector.load %arg3[%c2_37, %c0_38, %c0_39] : memref<3x22x22xf32, #tpu.memory_space<vmem>>, vector<1x22x22xf32>
    %112 = vector.shape_cast %111 : vector<1x22x22xf32> to vector<22x22xf32>
    %113 = vector.shape_cast %112 : vector<22x22xf32> to vector<1x22x22xf32>
    %114 = vector.broadcast %113 : vector<1x22x22xf32> to vector<6x22x22xf32>
    %115 = arith.mulf %77, %114 : vector<6x22x22xf32>
    %116 = vector.shape_cast %115 : vector<6x22x22xf32> to vector<1x6x22x22xf32>
    %cst_40 = arith.constant dense<0.000000e+00> : vector<1xf32>
    %117 = vector.multi_reduction <add>, %116, %cst_40 [1, 2, 3] : vector<1x6x22x22xf32> to vector<1xf32>
    %118 = vector.shape_cast %117 : vector<1xf32> to vector<1x1x1x1xf32>
    %119 = vector.extract %118[0, 0, 0, 0] : f32 from vector<1x1x1x1xf32>
    %c0_41 = arith.constant 0 : index
    %c4 = arith.constant 4 : index
    %120 = memref.load %arg4[%c0_41, %c4] : memref<1x6xf32, #tpu.memory_space<smem>>
    memref.store %119, %arg4[%c0_41, %c4] : memref<1x6xf32, #tpu.memory_space<smem>>
    %121 = tpu.concatenate %77, %85 in 0 : vector<6x22x22xf32>, vector<6x22x22xf32> -> vector<12x22x22xf32>
    %122 = vector.extract_strided_slice %121 {offsets = [0, 0, 0], sizes = [12, 12, 22], strides = [1, 1, 1]} : vector<12x22x22xf32> to vector<12x12x22xf32>
    %cst_42 = arith.constant 0.080666557 : f32
    %123 = vector.broadcast %cst_42 : f32 to vector<12x12x22xf32>
    %124 = arith.mulf %123, %122 : vector<12x12x22xf32>
    %125 = vector.extract_strided_slice %121 {offsets = [0, 1, 0], sizes = [12, 12, 22], strides = [1, 1, 1]} : vector<12x22x22xf32> to vector<12x12x22xf32>
    %cst_43 = arith.constant 0.086542584 : f32
    %126 = vector.broadcast %cst_43 : f32 to vector<12x12x22xf32>
    %127 = arith.mulf %126, %125 : vector<12x12x22xf32>
    %128 = arith.addf %124, %127 : vector<12x12x22xf32>
    %129 = vector.extract_strided_slice %121 {offsets = [0, 2, 0], sizes = [12, 12, 22], strides = [1, 1, 1]} : vector<12x22x22xf32> to vector<12x12x22xf32>
    %cst_44 = arith.constant 0.0914071872 : f32
    %130 = vector.broadcast %cst_44 : f32 to vector<12x12x22xf32>
    %131 = arith.mulf %130, %129 : vector<12x12x22xf32>
    %132 = arith.addf %128, %131 : vector<12x12x22xf32>
    %133 = vector.extract_strided_slice %121 {offsets = [0, 3, 0], sizes = [12, 12, 22], strides = [1, 1, 1]} : vector<12x22x22xf32> to vector<12x12x22xf32>
    %cst_45 = arith.constant 0.095048435 : f32
    %134 = vector.broadcast %cst_45 : f32 to vector<12x12x22xf32>
    %135 = arith.mulf %134, %133 : vector<12x12x22xf32>
    %136 = arith.addf %132, %135 : vector<12x12x22xf32>
    %137 = vector.extract_strided_slice %121 {offsets = [0, 4, 0], sizes = [12, 12, 22], strides = [1, 1, 1]} : vector<12x22x22xf32> to vector<12x12x22xf32>
    %cst_46 = arith.constant 0.0973024442 : f32
    %138 = vector.broadcast %cst_46 : f32 to vector<12x12x22xf32>
    %139 = arith.mulf %138, %137 : vector<12x12x22xf32>
    %140 = arith.addf %136, %139 : vector<12x12x22xf32>
    %141 = vector.extract_strided_slice %121 {offsets = [0, 5, 0], sizes = [12, 12, 22], strides = [1, 1, 1]} : vector<12x22x22xf32> to vector<12x12x22xf32>
    %cst_47 = arith.constant 0.0980655923 : f32
    %142 = vector.broadcast %cst_47 : f32 to vector<12x12x22xf32>
    %143 = arith.mulf %142, %141 : vector<12x12x22xf32>
    %144 = arith.addf %140, %143 : vector<12x12x22xf32>
    %145 = vector.extract_strided_slice %121 {offsets = [0, 6, 0], sizes = [12, 12, 22], strides = [1, 1, 1]} : vector<12x22x22xf32> to vector<12x12x22xf32>
    %cst_48 = arith.constant 0.0973024442 : f32
    %146 = vector.broadcast %cst_48 : f32 to vector<12x12x22xf32>
    %147 = arith.mulf %146, %145 : vector<12x12x22xf32>
    %148 = arith.addf %144, %147 : vector<12x12x22xf32>
    %149 = vector.extract_strided_slice %121 {offsets = [0, 7, 0], sizes = [12, 12, 22], strides = [1, 1, 1]} : vector<12x22x22xf32> to vector<12x12x22xf32>
    %cst_49 = arith.constant 0.095048435 : f32
    %150 = vector.broadcast %cst_49 : f32 to vector<12x12x22xf32>
    %151 = arith.mulf %150, %149 : vector<12x12x22xf32>
    %152 = arith.addf %148, %151 : vector<12x12x22xf32>
    %153 = vector.extract_strided_slice %121 {offsets = [0, 8, 0], sizes = [12, 12, 22], strides = [1, 1, 1]} : vector<12x22x22xf32> to vector<12x12x22xf32>
    %cst_50 = arith.constant 0.0914071872 : f32
    %154 = vector.broadcast %cst_50 : f32 to vector<12x12x22xf32>
    %155 = arith.mulf %154, %153 : vector<12x12x22xf32>
    %156 = arith.addf %152, %155 : vector<12x12x22xf32>
    %157 = vector.extract_strided_slice %121 {offsets = [0, 9, 0], sizes = [12, 12, 22], strides = [1, 1, 1]} : vector<12x22x22xf32> to vector<12x12x22xf32>
    %cst_51 = arith.constant 0.086542584 : f32
    %158 = vector.broadcast %cst_51 : f32 to vector<12x12x22xf32>
    %159 = arith.mulf %158, %157 : vector<12x12x22xf32>
    %160 = arith.addf %156, %159 : vector<12x12x22xf32>
    %161 = vector.extract_strided_slice %121 {offsets = [0, 10, 0], sizes = [12, 12, 22], strides = [1, 1, 1]} : vector<12x22x22xf32> to vector<12x12x22xf32>
    %cst_52 = arith.constant 0.080666557 : f32
    %162 = vector.broadcast %cst_52 : f32 to vector<12x12x22xf32>
    %163 = arith.mulf %162, %161 : vector<12x12x22xf32>
    %164 = arith.addf %160, %163 : vector<12x12x22xf32>
    %165 = vector.extract_strided_slice %164 {offsets = [0, 0, 0], sizes = [12, 12, 12], strides = [1, 1, 1]} : vector<12x12x22xf32> to vector<12x12x12xf32>
    %cst_53 = arith.constant 0.080666557 : f32
    %166 = vector.broadcast %cst_53 : f32 to vector<12x12x12xf32>
    %167 = arith.mulf %166, %165 : vector<12x12x12xf32>
    %168 = vector.extract_strided_slice %164 {offsets = [0, 0, 1], sizes = [12, 12, 12], strides = [1, 1, 1]} : vector<12x12x22xf32> to vector<12x12x12xf32>
    %cst_54 = arith.constant 0.086542584 : f32
    %169 = vector.broadcast %cst_54 : f32 to vector<12x12x12xf32>
    %170 = arith.mulf %169, %168 : vector<12x12x12xf32>
    %171 = arith.addf %167, %170 : vector<12x12x12xf32>
    %172 = vector.extract_strided_slice %164 {offsets = [0, 0, 2], sizes = [12, 12, 12], strides = [1, 1, 1]} : vector<12x12x22xf32> to vector<12x12x12xf32>
    %cst_55 = arith.constant 0.0914071872 : f32
    %173 = vector.broadcast %cst_55 : f32 to vector<12x12x12xf32>
    %174 = arith.mulf %173, %172 : vector<12x12x12xf32>
    %175 = arith.addf %171, %174 : vector<12x12x12xf32>
    %176 = vector.extract_strided_slice %164 {offsets = [0, 0, 3], sizes = [12, 12, 12], strides = [1, 1, 1]} : vector<12x12x22xf32> to vector<12x12x12xf32>
    %cst_56 = arith.constant 0.095048435 : f32
    %177 = vector.broadcast %cst_56 : f32 to vector<12x12x12xf32>
    %178 = arith.mulf %177, %176 : vector<12x12x12xf32>
    %179 = arith.addf %175, %178 : vector<12x12x12xf32>
    %180 = vector.extract_strided_slice %164 {offsets = [0, 0, 4], sizes = [12, 12, 12], strides = [1, 1, 1]} : vector<12x12x22xf32> to vector<12x12x12xf32>
    %cst_57 = arith.constant 0.0973024442 : f32
    %181 = vector.broadcast %cst_57 : f32 to vector<12x12x12xf32>
    %182 = arith.mulf %181, %180 : vector<12x12x12xf32>
    %183 = arith.addf %179, %182 : vector<12x12x12xf32>
    %184 = vector.extract_strided_slice %164 {offsets = [0, 0, 5], sizes = [12, 12, 12], strides = [1, 1, 1]} : vector<12x12x22xf32> to vector<12x12x12xf32>
    %cst_58 = arith.constant 0.0980655923 : f32
    %185 = vector.broadcast %cst_58 : f32 to vector<12x12x12xf32>
    %186 = arith.mulf %185, %184 : vector<12x12x12xf32>
    %187 = arith.addf %183, %186 : vector<12x12x12xf32>
    %188 = vector.extract_strided_slice %164 {offsets = [0, 0, 6], sizes = [12, 12, 12], strides = [1, 1, 1]} : vector<12x12x22xf32> to vector<12x12x12xf32>
    %cst_59 = arith.constant 0.0973024442 : f32
    %189 = vector.broadcast %cst_59 : f32 to vector<12x12x12xf32>
    %190 = arith.mulf %189, %188 : vector<12x12x12xf32>
    %191 = arith.addf %187, %190 : vector<12x12x12xf32>
    %192 = vector.extract_strided_slice %164 {offsets = [0, 0, 7], sizes = [12, 12, 12], strides = [1, 1, 1]} : vector<12x12x22xf32> to vector<12x12x12xf32>
    %cst_60 = arith.constant 0.095048435 : f32
    %193 = vector.broadcast %cst_60 : f32 to vector<12x12x12xf32>
    %194 = arith.mulf %193, %192 : vector<12x12x12xf32>
    %195 = arith.addf %191, %194 : vector<12x12x12xf32>
    %196 = vector.extract_strided_slice %164 {offsets = [0, 0, 8], sizes = [12, 12, 12], strides = [1, 1, 1]} : vector<12x12x22xf32> to vector<12x12x12xf32>
    %cst_61 = arith.constant 0.0914071872 : f32
    %197 = vector.broadcast %cst_61 : f32 to vector<12x12x12xf32>
    %198 = arith.mulf %197, %196 : vector<12x12x12xf32>
    %199 = arith.addf %195, %198 : vector<12x12x12xf32>
    %200 = vector.extract_strided_slice %164 {offsets = [0, 0, 9], sizes = [12, 12, 12], strides = [1, 1, 1]} : vector<12x12x22xf32> to vector<12x12x12xf32>
    %cst_62 = arith.constant 0.086542584 : f32
    %201 = vector.broadcast %cst_62 : f32 to vector<12x12x12xf32>
    %202 = arith.mulf %201, %200 : vector<12x12x12xf32>
    %203 = arith.addf %199, %202 : vector<12x12x12xf32>
    %204 = vector.extract_strided_slice %164 {offsets = [0, 0, 10], sizes = [12, 12, 12], strides = [1, 1, 1]} : vector<12x12x22xf32> to vector<12x12x12xf32>
    %cst_63 = arith.constant 0.080666557 : f32
    %205 = vector.broadcast %cst_63 : f32 to vector<12x12x12xf32>
    %206 = arith.mulf %205, %204 : vector<12x12x12xf32>
    %207 = arith.addf %203, %206 : vector<12x12x12xf32>
    %208 = vector.extract_strided_slice %207 {offsets = [0, 0, 0], sizes = [6, 12, 12], strides = [1, 1, 1]} : vector<12x12x12xf32> to vector<6x12x12xf32>
    %209 = vector.extract_strided_slice %207 {offsets = [6, 0, 0], sizes = [6, 12, 12], strides = [1, 1, 1]} : vector<12x12x12xf32> to vector<6x12x12xf32>
    %210 = arith.mulf %208, %209 : vector<6x12x12xf32>
    %211 = vector.shape_cast %210 : vector<6x12x12xf32> to vector<1x6x12x12xf32>
    %cst_64 = arith.constant dense<0.000000e+00> : vector<1xf32>
    %212 = vector.multi_reduction <add>, %211, %cst_64 [1, 2, 3] : vector<1x6x12x12xf32> to vector<1xf32>
    %213 = vector.shape_cast %212 : vector<1xf32> to vector<1x1x1x1xf32>
    %214 = vector.extract %213[0, 0, 0, 0] : f32 from vector<1x1x1x1xf32>
    %c0_65 = arith.constant 0 : index
    %c5 = arith.constant 5 : index
    %215 = memref.load %arg4[%c0_65, %c5] : memref<1x6xf32, #tpu.memory_space<smem>>
    memref.store %214, %arg4[%c0_65, %c5] : memref<1x6xf32, #tpu.memory_space<smem>>
    return
  }
}

</mosaic_0001>

<bundles_post_ra>
// kernel: tpu_custom_call.1
= control target key start
LH: loop header
LB: loop body
LE: loop exit
PB: predicated region body
PF: predicated region fallthrough
CT: control target
= control target key end

     0   :  { %vm114_vm0 = vcmask 261120   ;;  %s17548_s0 = inlined_call_operand.vmem [shape: f32[192,32], index: 0, kind: input, shape index: {}]   ;;  %s17549_s1 = inlined_call_operand.vmem [shape: f32[192,32], index: 1, kind: input, shape index: {}]   ;;  %s17550_s2 = inlined_call_operand.vmem [shape: f32[32,22], index: 2, kind: input, shape index: {}]   ;;  %s17551_s3 = inlined_call_operand.vmem [shape: f32[3,22,22], index: 3, kind: input, shape index: {}]   ;;  %s17552_s4 = inlined_call_operand.hbm [shape: f32[1,6], index: 4, kind: output, shape index: {}]  }
   0x1   :  { %v245_v0 = vld [vmem:[%s17550_s2] sm:$0xff]  ;;  %v246_v1 = vld [vmem:[%s17550_s2 + $0x8] sm:$0xff]  ;;  %v247_v2 = vld [vmem:[%s17550_s2 + $0x10] sm:$0xff] }
   0x2   :  { %v9471_v3 = vpack.c.bf16 %v246_v1, %v245_v0  ;;  %v248_v4 = vld [vmem:[%s17550_s2 + $0x18] sm:$0xff]  ;;  %v9661_v5 = vld [vmem:[%s17548_s0] sm:$0xff]  ;;  %v9682_v11 = vld [vmem:[%s17548_s0 + $0x8] sm:$0xff] }
   0x3   :  { %v9666_v6 = vld [vmem:[%s17549_s1] sm:$0xff]  ;;  %v9475_v7 = vpack.c.bf16 %v248_v4, %v247_v2  ;;  %9291 = vmatprep.mubr.msk.f32.mxu0 %vm114_vm0, %v9661_v5  ;;  %v9687_v12 = vld [vmem:[%s17549_s1 + $0x8] sm:$0xff]  ;;  %v9699_v16 = vld [vmem:[%s17548_s0 + $0x10] sm:$0xff] }
   0x4   :  { %v66_v8 = vsub.f32 %v9661_v5, %v9666_v6  ;;  %v9675_v9 = vld [vmem:[%s17548_s0 + $0x60] sm:$0xff]  ;;  %9472 = vmatprep.subr.bf16.mxu0 %v9471_v3  ;;  %9479 = vmatprep.subr.bf16.mxu1 %v9471_v3  ;;  %v67_v14 = vsub.f32 %v9682_v11, %v9687_v12  ;;  %v9694_v15 = vld [vmem:[%s17548_s0 + $0x68] sm:$0xff]  ;;  %v9704_v17 = vld [vmem:[%s17549_s1 + $0x10] sm:$0xff] }
   0x5   :  { %v185_v10 = vmul.f32 %v9675_v9, %v9675_v9  ;;  %9474 = vmatpush3.bf16.msra.mxu0 %v9471_v3  ;;  %9481 = vmatpush3.bf16.msra.mxu1 %v9471_v3  ;;  %v68_v18 = vsub.f32 %v9699_v16, %v9704_v17  ;;  %v9711_v19 = vld [vmem:[%s17548_s0 + $0x70] sm:$0xff]  ;;  %v9716_v20 = vld [vmem:[%s17548_s0 + $0x18] sm:$0xff]  ;;  %v9730_v25 = vld [vmem:[%s17548_s0 + $0x20] sm:$0xff]  ;;  %v186_v27 = vmul.f32 %v9694_v15, %v9694_v15 }
   0x6   :  { %v90_v13 = vand.u32 2147483647, %v66_v8  ;;  %9476 = vmatprep.subr.bf16.mxu0 %v9475_v7  ;;  %9480 = vmatprep.subr.bf16.mxu1 %v9475_v7  ;;  %17908 = vst [vmem:[#allocation5_spill] sm:$0xff] %v9711_v19  ;;  %v9721_v21 = vld [vmem:[%s17549_s1 + $0x18] sm:$0xff]  ;;  %v91_v23 = vand.u32 2147483647, %v67_v14  ;;  %v187_v33 = vmul.f32 %v9711_v19, %v9711_v19 }
   0x7   :  { %9381 = vmatprep.mubr.msk.f32.mxu1 %vm114_vm0, %v185_v10  ;;  %v69_v24 = vsub.f32 %v9716_v20, %v9721_v21  ;;  %v9735_v26 = vld [vmem:[%s17549_s1 + $0x20] sm:$0xff]  ;;  %v92_v28 = vand.u32 2147483647, %v68_v18  ;;  %v9744_v30 = vld [vmem:[%s17548_s0 + $0x28] sm:$0xff]  ;;  %v9757_v35 = vld [vmem:[%s17548_s0 + $0x78] sm:$0xff] }
   0x8   :  { %v115_v22 = vsel %vm114_vm0, %v90_v13, 0.0  ;;  %v70_v29 = vsub.f32 %v9730_v25, %v9735_v26  ;;  %v9749_v31 = vld [vmem:[%s17549_s1 + $0x28] sm:$0xff]  ;;  %v116_v32 = vsel %vm114_vm0, %v91_v23, 0.0  ;;  %v9764_v37 = vld [vmem:[%s17548_s0 + $0x30] sm:$0xff]  ;;  %v9775_v42 = vld [vmem:[%s17548_s0 + $0x80] sm:$0xff]  ;;  %v188_v50 = vmul.f32 %v9757_v35, %v9757_v35 }
   0x9   :  { %9478 = vmatpush3.bf16.msra.mxu0 %v9475_v7  ;;  %9482 = vmatpush3.bf16.msra.mxu1 %v9475_v7  ;;  %v93_v34 = vand.u32 2147483647, %v69_v24  ;;  %v71_v36 = vsub.f32 %v9744_v30, %v9749_v31  ;;  %v9769_v38 = vld [vmem:[%s17549_s1 + $0x30] sm:$0xff]  ;;  %v117_v39 = vadd.f32 %v116_v32, %v115_v22  ;;  %v118_v40 = vsel %vm114_vm0, %v92_v28, 0.0  ;;  %v9782_v44 = vld [vmem:[%s17548_s0 + $0x38] sm:$0xff]  ;;  %v9800_v51 = vld [vmem:[%s17548_s0 + $0x40] sm:$0xff] }
   0xa   :  { %v94_v41 = vand.u32 2147483647, %v70_v29  ;;  %v72_v43 = vsub.f32 %v9764_v37, %v9769_v38  ;;  %v9787_v45 = vld [vmem:[%s17549_s1 + $0x38] sm:$0xff]  ;;  %v9805_v52 = vld [vmem:[%s17549_s1 + $0x40] sm:$0xff]  ;;  %v189_v54 = vmul.f32 %v9775_v42, %v9775_v42  ;;  %v9816_v55 = vld [vmem:[%s17548_s0 + $0x88] sm:$0xff] }
   0xb   :  { %v120_v46 = vsel %vm114_vm0, %v93_v34, 0.0  ;;  %v95_v47 = vand.u32 2147483647, %v71_v36  ;;  %v73_v48 = vsub.f32 %v9782_v44, %v9787_v45  ;;  %v119_v49 = vadd.f32 %v118_v40, %v117_v39  ;;  %v9823_v58 = vld [vmem:[%s17548_s0 + $0x48] sm:$0xff]  ;;  %v9833_v61 = vld [vmem:[%s17548_s0 + $0x90] sm:$0xff]  ;;  %v9853_v4 = vld [vmem:[%s17548_s0 + $0x58] sm:$0xff] }
   0xc   :  { %9292 = vmatmul.mubr.msk.f32.vlgmr.msra.gmra.mrb[0].mxu0 %vm114_vm0, %v9682_v11  ;;  %9382 = vmatmul.mubr.msk.f32.vlgmr.msra.gmra.mrb[0].mxu1 %vm114_vm0, %v186_v27  ;;  %v122_v53 = vsel %vm114_vm0, %v94_v41, 0.0  ;;  %v96_v56 = vand.u32 2147483647, %v72_v43  ;;  %v74_v57 = vsub.f32 %v9800_v51, %v9805_v52  ;;  %v9828_v59 = vld [vmem:[%s17549_s1 + $0x48] sm:$0xff]  ;;  %v9840_v63 = vld [vmem:[%s17548_s0 + $0x50] sm:$0xff]  ;;  %v9858_v7 = vld [vmem:[%s17549_s1 + $0x58] sm:$0xff]  ;;  %v190_v10 = vmul.f32 %v9816_v55, %v9816_v55 }
   0xd   :  { %9294 = vmatprep.mubr.msk.f32.mxu0 %vm114_vm0, %v9699_v16  ;;  %9384 = vmatprep.mubr.msk.f32.mxu1 %vm114_vm0, %v187_v33  ;;  %v121_v60 = vadd.f32 %v120_v46, %v119_v49  ;;  %v75_v62 = vsub.f32 %v9823_v58, %v9828_v59  ;;  %v9845_v0 = vld [vmem:[%s17549_s1 + $0x50] sm:$0xff]  ;;  %v124_v1 = vsel %vm114_vm0, %v95_v47, 0.0  ;;  %v97_v2 = vand.u32 2147483647, %v73_v48  ;;  %v9876_v22 = vld [vmem:[%s17548_s0 + $0x98] sm:$0xff]  ;;  %v9881_v27 = vld [vmem:[%s17548_s0 + $0xa0] sm:$0xff] }
   0xe   :  { %v76_v3 = vsub.f32 %v9840_v63, %v9845_v0  ;;  %v77_v13 = vsub.f32 %v9853_v4, %v9858_v7  ;;  %v126_v14 = vsel %vm114_vm0, %v96_v56, 0.0  ;;  %v191_v18 = vmul.f32 %v9833_v61, %v9833_v61 }
   0xf   :  { %v123_v8 = vadd.f32 %v122_v53, %v121_v60  ;;  %v98_v23 = vand.u32 2147483647, %v74_v57 }
  0x10   :  { %9295 = vmatmul.mubr.msk.f32.gmra.mrb[2].mxu0 %vm114_vm0, %v9716_v20  ;;  %9385 = vmatmul.mubr.msk.f32.gmra.mrb[2].mxu1 %vm114_vm0, %v188_v50 }
  0x11   :  { %9297 = vmatprep.mubr.msk.f32.mxu0 %vm114_vm0, %v9730_v25  ;;  %9387 = vmatprep.mubr.msk.f32.mxu1 %vm114_vm0, %v189_v54  ;;  %v125_v24 = vadd.f32 %v124_v1, %v123_v8 }
  0x12   :  { %9 = vsyncpa [#allocation3], 0  ;;  %v9886_v28 = vld [vmem:[%s17549_s1 + $0x60] sm:$0xff]  ;;  %v128_v29 = vsel %vm114_vm0, %v97_v2, 0.0  ;;  %v99_v32 = vand.u32 2147483647, %v75_v62  ;;  %v192_v36 = vmul.f32 %v9876_v22, %v9876_v22  ;;  %v193_v41 = vmul.f32 %v9881_v27, %v9881_v27 }
  0x13   :  { %v78_v33 = vsub.f32 %v9675_v9, %v9886_v28  ;;  %v127_v34 = vadd.f32 %v126_v14, %v125_v24  ;;  %v9899_v39 = vld [vmem:[%s17549_s1 + $0x68] sm:$0xff]  ;;  %v130_v40 = vsel %vm114_vm0, %v98_v23, 0.0  ;;  %v100_v46 = vand.u32 2147483647, %v76_v3  ;;  %v9917_v48 = vld [vmem:[%s17549_s1 + $0x70] sm:$0xff]  ;;  %v9941_v3 = vld [vmem:[%s17548_s0 + $0xb8] sm:$0xff] }
  0x14   :  { %9298 = vmatmul.mubr.msk.f32.gmra.mrb[4].mxu0 %vm114_vm0, %v9744_v30  ;;  %9388 = vmatmul.mubr.msk.f32.gmra.mrb[4].mxu1 %vm114_vm0, %v190_v10  ;;  %v9910_v43 = vld [vmem:[%s17548_s0 + $0xa8] sm:$0xff]  ;;  %v79_v47 = vsub.f32 %v9694_v15, %v9899_v39  ;;  %17909 = vst [vmem:[#allocation6_spill] sm:$0xff] %v9917_v48  ;;  %v9922_v50 = vld [vmem:[%s17548_s0 + $0xb0] sm:$0xff]  ;;  %v132_v54 = vsel %vm114_vm0, %v99_v32, 0.0  ;;  %v101_v56 = vand.u32 2147483647, %v77_v13  ;;  %v197_v24 = vmul.f32 %v9666_v6, %v9666_v6 }
  0x15   :  { %9300 = vmatprep.mubr.msk.f32.mxu0 %vm114_vm0, %v9764_v37  ;;  %9390 = vmatprep.mubr.msk.f32.mxu1 %vm114_vm0, %v191_v18  ;;  %v129_v49 = vadd.f32 %v128_v29, %v127_v34  ;;  %v194_v60 = vmul.f32 %v9910_v43, %v9910_v43  ;;  %v102_v62 = vand.u32 2147483647, %v78_v33  ;;  %v134_v1 = vsel %vm114_vm0, %v100_v46, 0.0  ;;  %s9612_s20 = smov 119   ;;  %s9613_s21 = smov 126  }
  0x16   :  { %v195_v2 = vmul.f32 %v9922_v50, %v9922_v50  ;;  %v136_v10 = vsel %vm114_vm0, %v101_v56, 0.0  ;;  %v103_v13 = vand.u32 2147483647, %v79_v47  ;;  %v196_v18 = vmul.f32 %v9941_v3, %v9941_v3  ;;  %s9614_s22 = smov 125   ;;  %s9615_s23 = smov 124  }
  0x17   :  { %v131_v57 = vadd.f32 %v130_v40, %v129_v49  ;;  %v138_v23 = vsel %vm114_vm0, %v102_v62, 0.0  ;;  %v198_v34 = vmul.f32 %v9687_v12, %v9687_v12  ;;  %v201_v46 = vmul.f32 %v9735_v26, %v9735_v26  ;;  %s9616_s24 = smov 123   ;;  %s9617_s25 = smov 122  }
  0x18   :  { %9301 = vmatmul.mubr.msk.f32.gmra.mrb[6].mxu0 %vm114_vm0, %v9782_v44  ;;  %9391 = vmatmul.mubr.msk.f32.gmra.mrb[6].mxu1 %vm114_vm0, %v192_v36  ;;  %v140_v32 = vsel %vm114_vm0, %v103_v13, 0.0  ;;  %v199_v36 = vmul.f32 %v9704_v17, %v9704_v17  ;;  %v202_v47 = vmul.f32 %v9749_v31, %v9749_v31  ;;  %v203_v49 = vmul.f32 %v9769_v38, %v9769_v38  ;;  %v10036_v13 = vld [vmem:[%s17549_s1 + $0x80] sm:$0xff]  ;;  %s9618_s26 = smov 120   ;;  %s9619_s27 = smov 118  }
  0x19   :  { %9303 = vmatprep.mubr.msk.f32.mxu0 %vm114_vm0, %v9800_v51  ;;  %9393 = vmatprep.mubr.msk.f32.mxu1 %vm114_vm0, %v193_v41  ;;  %v133_v8 = vadd.f32 %v132_v54, %v131_v57  ;;  %v200_v41 = vmul.f32 %v9721_v21, %v9721_v21  ;;  %v204_v54 = vmul.f32 %v9787_v45, %v9787_v45  ;;  %vm1544_vm1 = vcmask 1046528  }
  0x1a   :  { %v205_v56 = vmul.f32 %v9805_v52, %v9805_v52  ;;  %v206_v57 = vmul.f32 %v9828_v59, %v9828_v59  ;;  %v208_v62 = vmul.f32 %v9858_v7, %v9858_v7  ;;  %vm2055_vm2 = vcmask 1045504  }
  0x1b   :  { %v135_v14 = vadd.f32 %v134_v1, %v133_v8  ;;  %v209_v1 = vmul.f32 %v9886_v28, %v9886_v28  ;;  %v211_v8 = vmul.f32 %v9917_v48, %v9917_v48  ;;  %vm2626_vm3 = vcmask 1044480  }
  0x1c   :  { %9304 = vmatmul.mubr.msk.f32.gmra.mrb[8].mxu0 %vm114_vm0, %v9823_v58  ;;  %9394 = vmatmul.mubr.msk.f32.gmra.mrb[8].mxu1 %vm114_vm0, %v194_v60  ;;  %v207_v60 = vmul.f32 %v9845_v0, %v9845_v0  ;;  %vm3257_vm4 = vcmask 1043456   ;;  %vm3888_vm5 = vcmask 1042432   ;;  %vm4279_vm6 = vcmask 1041408  }
  0x1d   :  { %9306 = vmatprep.mubr.msk.f32.mxu0 %vm114_vm0, %v9840_v63  ;;  %9396 = vmatprep.mubr.msk.f32.mxu1 %vm114_vm0, %v195_v2  ;;  %v137_v29 = vadd.f32 %v136_v10, %v135_v14  ;;  %v210_v2 = vmul.f32 %v9899_v39, %v9899_v39  ;;  %v10031_v10 = vld [vmem:[%s17549_s1 + $0x78] sm:$0xff]  ;;  %vm4670_vm7 = vcmask 1040384   ;;  %vm6225_vm8 = vcmask 179200  }
  0x1e   :  { %v212_v14 = vmul.f32 %v10031_v10, %v10031_v10  ;;  %vm6229_vm9 = vcmask 177152   ;;  %vm8984_vm10 = vcmask 97280   ;;  %vm8986_vm11 = vcmask 93184  }
  0x1f   :  { %v139_v33 = vadd.f32 %v138_v23, %v137_v29  ;;  %v10051_v23 = vld [vmem:[%s17549_s1 + $0x88] sm:$0xff] }
  0x20   :  { %9307 = vmatmul.mubr.msk.f32.gmra.mrb[10].mxu0 %vm114_vm0, %v9853_v4  ;;  %9397 = vmatmul.mubr.msk.f32.gmra.mrb[10].mxu1 %vm114_vm0, %v196_v18  ;;  %v213_v18 = vmul.f32 %v10036_v13, %v10036_v13  ;;  %v214_v29 = vmul.f32 %v10051_v23, %v10051_v23 }
  0x21   :  { %9309 = vmatprep.mubr.msk.f32.mxu0 %vm114_vm0, %v9675_v9  ;;  %9399 = vmatprep.mubr.msk.f32.mxu1 %vm114_vm0, %v197_v24  ;;  %v9966_v40 = vadd.f32 %v140_v32, %v139_v33  ;;  %v10056_v24 = vld [vmem:[%s17549_s1 + $0x90] sm:$0xff]  ;;  %v10071_v33 = vld [vmem:[%s17549_s1 + $0x98] sm:$0xff] }
  0x22   :  { %v215_v32 = vmul.f32 %v10056_v24, %v10056_v24 }
  0x23   :  { %17910 = vst [vmem:[#allocation7_spill] sm:$0xff] %v9966_v40 }
  0x24   :  { %9310 = vmatmul.mubr.msk.f32.gmra.mrb[12].mxu0 %vm114_vm0, %v9694_v15  ;;  %9400 = vmatmul.mubr.msk.f32.gmra.mrb[12].mxu1 %vm114_vm0, %v198_v34  ;;  %v10076_v34 = vld [vmem:[%s17549_s1 + $0xa0] sm:$0xff] }
  0x25   :  { %9312 = vmatprep.mubr.msk.f32.mxu0 %vm114_vm0, %v9711_v19  ;;  %9402 = vmatprep.mubr.msk.f32.mxu1 %vm114_vm0, %v199_v36  ;;  %v216_v36 = vmul.f32 %v10071_v33, %v10071_v33 }
  0x28   :  { %9313 = vmatmul.mubr.msk.f32.gmra.mrb[14].mxu0 %vm114_vm0, %v9757_v35  ;;  %9403 = vmatmul.mubr.msk.f32.gmra.mrb[14].mxu1 %vm114_vm0, %v200_v41  ;;  %v217_v41 = vmul.f32 %v10076_v34, %v10076_v34 }
  0x29   :  { %9315 = vmatprep.mubr.msk.f32.mxu0 %vm114_vm0, %v9775_v42  ;;  %9405 = vmatprep.mubr.msk.f32.mxu1 %vm114_vm0, %v201_v46  ;;  %v10091_v46 = vld [vmem:[%s17549_s1 + $0xa8] sm:$0xff] }
  0x2c   :  { %9316 = vmatmul.mubr.msk.f32.gmra.mrb[16].mxu0 %vm114_vm0, %v9816_v55  ;;  %9406 = vmatmul.mubr.msk.f32.gmra.mrb[16].mxu1 %vm114_vm0, %v202_v47  ;;  %v10096_v47 = vld [vmem:[%s17549_s1 + $0xb0] sm:$0xff] }
  0x2d   :  { %9318 = vmatprep.mubr.msk.f32.mxu0 %vm114_vm0, %v9833_v61  ;;  %9408 = vmatprep.mubr.msk.f32.mxu1 %vm114_vm0, %v203_v49  ;;  %v218_v49 = vmul.f32 %v10091_v46, %v10091_v46 }
  0x30   :  { %9319 = vmatmul.mubr.msk.f32.gmra.mrb[18].mxu0 %vm114_vm0, %v9876_v22  ;;  %9409 = vmatmul.mubr.msk.f32.gmra.mrb[18].mxu1 %vm114_vm0, %v204_v54  ;;  %v219_v54 = vmul.f32 %v10096_v47, %v10096_v47 }
  0x31   :  { %9321 = vmatprep.mubr.msk.f32.mxu0 %vm114_vm0, %v9881_v27  ;;  %9411 = vmatprep.mubr.msk.f32.mxu1 %vm114_vm0, %v205_v56  ;;  %v10111_v56 = vld [vmem:[%s17549_s1 + $0xb8] sm:$0xff] }
  0x34   :  { %9322 = vmatmul.mubr.msk.f32.gmra.mrb[20].mxu0 %vm114_vm0, %v9910_v43  ;;  %9412 = vmatmul.mubr.msk.f32.gmra.mrb[20].mxu1 %vm114_vm0, %v206_v57  ;;  %v220_v57 = vmul.f32 %v10111_v56, %v10111_v56 }
  0x35   :  { %9324 = vmatprep.mubr.msk.f32.mxu0 %vm114_vm0, %v9922_v50  ;;  %9414 = vmatprep.mubr.msk.f32.mxu1 %vm114_vm0, %v207_v60  ;;  %v221_v60 = vmul.f32 %v9666_v6, %v9661_v5 }
  0x38   :  { %9325 = vmatmul.mubr.msk.f32.gmra.mrb[22].mxu0 %vm114_vm0, %v9941_v3  ;;  %9415 = vmatmul.mubr.msk.f32.gmra.mrb[22].mxu1 %vm114_vm0, %v208_v62  ;;  %v222_v62 = vmul.f32 %v9687_v12, %v9682_v11 }
  0x39   :  { %9327 = vmatprep.mubr.msk.f32.mxu0 %vm114_vm0, %v9666_v6  ;;  %9417 = vmatprep.mubr.msk.f32.mxu1 %vm114_vm0, %v209_v1  ;;  %v223_v1 = vmul.f32 %v9704_v17, %v9699_v16  ;;  %v224_v6 = vmul.f32 %v9721_v21, %v9716_v20 }
  0x3c   :  { %9328 = vmatmul.mubr.msk.f32.gmra.mrb[24].mxu0 %vm114_vm0, %v9687_v12  ;;  %9418 = vmatmul.mubr.msk.f32.gmra.mrb[24].mxu1 %vm114_vm0, %v210_v2  ;;  %v225_v12 = vmul.f32 %v9735_v26, %v9730_v25  ;;  %v233_v2 = vmul.f32 %v9886_v28, %v9675_v9  ;;  %v235_v9 = vmul.f32 %v9917_v48, %v9711_v19 }
  0x3d   :  { %9330 = vmatprep.mubr.msk.f32.mxu0 %vm114_vm0, %v9704_v17  ;;  %9420 = vmatprep.mubr.msk.f32.mxu1 %vm114_vm0, %v211_v8  ;;  %v226_v17 = vmul.f32 %v9749_v31, %v9744_v30 }
  0x40   :  { %9331 = vmatmul.mubr.msk.f32.gmra.mrb[26].mxu0 %vm114_vm0, %v9721_v21  ;;  %9421 = vmatmul.mubr.msk.f32.gmra.mrb[26].mxu1 %vm114_vm0, %v212_v14  ;;  %v227_v21 = vmul.f32 %v9769_v38, %v9764_v37 }
  0x41   :  { %9333 = vmatprep.mubr.msk.f32.mxu0 %vm114_vm0, %v9735_v26  ;;  %9423 = vmatprep.mubr.msk.f32.mxu1 %vm114_vm0, %v213_v18  ;;  %v228_v26 = vmul.f32 %v9787_v45, %v9782_v44 }
  0x44   :  { %9334 = vmatmul.mubr.msk.f32.gmra.mrb[28].mxu0 %vm114_vm0, %v9749_v31  ;;  %9424 = vmatmul.mubr.msk.f32.gmra.mrb[28].mxu1 %vm114_vm0, %v214_v29  ;;  %v229_v31 = vmul.f32 %v9805_v52, %v9800_v51 }
  0x45   :  { %9336 = vmatprep.mubr.msk.f32.mxu0 %vm114_vm0, %v9769_v38  ;;  %9426 = vmatprep.mubr.msk.f32.mxu1 %vm114_vm0, %v215_v32  ;;  %v230_v38 = vmul.f32 %v9828_v59, %v9823_v58 }
  0x48   :  { %9337 = vmatmul.mubr.msk.f32.gmra.mrb[30].mxu0 %vm114_vm0, %v9787_v45  ;;  %9427 = vmatmul.mubr.msk.f32.gmra.mrb[30].mxu1 %vm114_vm0, %v216_v36  ;;  %v231_v45 = vmul.f32 %v9845_v0, %v9840_v63 }
  0x49   :  { %9339 = vmatprep.mubr.msk.f32.mxu0 %vm114_vm0, %v9805_v52  ;;  %9429 = vmatprep.mubr.msk.f32.mxu1 %vm114_vm0, %v217_v41  ;;  %v232_v52 = vmul.f32 %v9858_v7, %v9853_v4 }
  0x4c   :  { %9340 = vmatmul.mubr.msk.f32.gmra.mrb[32].mxu0 %vm114_vm0, %v9828_v59  ;;  %9430 = vmatmul.mubr.msk.f32.gmra.mrb[32].mxu1 %vm114_vm0, %v218_v49  ;;  %v173_v59 = vmul.f32 %v9661_v5, %v9661_v5  ;;  %v175_v5 = vmul.f32 %v9699_v16, %v9699_v16  ;;  %v177_v16 = vmul.f32 %v9730_v25, %v9730_v25 }
  0x4d   :  { %9342 = vmatprep.mubr.msk.f32.mxu0 %vm114_vm0, %v9845_v0  ;;  %9432 = vmatprep.mubr.msk.f32.mxu1 %vm114_vm0, %v219_v54  ;;  %v174_v0 = vmul.f32 %v9682_v11, %v9682_v11  ;;  %v176_v11 = vmul.f32 %v9716_v20, %v9716_v20  ;;  %v178_v20 = vmul.f32 %v9744_v30, %v9744_v30 }
  0x4e   :  { %v179_v25 = vmul.f32 %v9764_v37, %v9764_v37  ;;  %v180_v30 = vmul.f32 %v9782_v44, %v9782_v44  ;;  %v181_v37 = vmul.f32 %v9800_v51, %v9800_v51  ;;  %v182_v44 = vmul.f32 %v9823_v58, %v9823_v58 }
  0x4f   :  { %v183_v51 = vmul.f32 %v9840_v63, %v9840_v63  ;;  %v184_v58 = vmul.f32 %v9853_v4, %v9853_v4 }
  0x50   :  { %9343 = vmatmul.mubr.msk.f32.gmra.mrb[34].mxu0 %vm114_vm0, %v9858_v7  ;;  %9433 = vmatmul.mubr.msk.f32.gmra.mrb[34].mxu1 %vm114_vm0, %v220_v57  ;;  %v234_v7 = vmul.f32 %v9899_v39, %v9694_v15  ;;  %v236_v15 = vmul.f32 %v10031_v10, %v9757_v35  ;;  %v238_v35 = vmul.f32 %v10051_v23, %v9816_v55 }
  0x51   :  { %9345 = vmatprep.mubr.msk.f32.mxu0 %vm114_vm0, %v9886_v28  ;;  %9435 = vmatprep.mubr.msk.f32.mxu1 %vm114_vm0, %v221_v60  ;;  %v237_v28 = vmul.f32 %v10036_v13, %v9775_v42  ;;  %v239_v42 = vmul.f32 %v10056_v24, %v9833_v61  ;;  %v240_v55 = vmul.f32 %v10071_v33, %v9876_v22 }
  0x52   :  { %v241_v61 = vmul.f32 %v10076_v34, %v9881_v27  ;;  %v242_v22 = vmul.f32 %v10091_v46, %v9910_v43  ;;  %v243_v27 = vmul.f32 %v10096_v47, %v9922_v50 }
  0x54   :  { %9346 = vmatmul.mubr.msk.f32.gmra.mrb[36].mxu0 %vm114_vm0, %v9899_v39  ;;  %9436 = vmatmul.mubr.msk.f32.gmra.mrb[36].mxu1 %vm114_vm0, %v222_v62  ;;  %v244_v39 = vmul.f32 %v10111_v56, %v9941_v3 }
  0x55   :  { %9348 = vmatprep.mubr.msk.f32.mxu0 %vm114_vm0, %v9917_v48  ;;  %9438 = vmatprep.mubr.msk.f32.mxu1 %vm114_vm0, %v223_v1 }
  0x58   :  { %9349 = vmatmul.mubr.msk.f32.gmra.mrb[38].mxu0 %vm114_vm0, %v10031_v10  ;;  %9439 = vmatmul.mubr.msk.f32.gmra.mrb[38].mxu1 %vm114_vm0, %v224_v6 }
  0x59   :  { %9351 = vmatprep.mubr.msk.f32.mxu0 %vm114_vm0, %v10036_v13  ;;  %9441 = vmatprep.mubr.msk.f32.mxu1 %vm114_vm0, %v225_v12 }
  0x5c   :  { %9352 = vmatmul.mubr.msk.f32.gmra.mrb[40].mxu0 %vm114_vm0, %v10051_v23  ;;  %9442 = vmatmul.mubr.msk.f32.gmra.mrb[40].mxu1 %vm114_vm0, %v226_v17 }
  0x5d   :  { %9354 = vmatprep.mubr.msk.f32.mxu0 %vm114_vm0, %v10056_v24  ;;  %9444 = vmatprep.mubr.msk.f32.mxu1 %vm114_vm0, %v227_v21 }
  0x60   :  { %9355 = vmatmul.mubr.msk.f32.gmra.mrb[42].mxu0 %vm114_vm0, %v10071_v33  ;;  %9445 = vmatmul.mubr.msk.f32.gmra.mrb[42].mxu1 %vm114_vm0, %v228_v26 }
  0x61   :  { %9357 = vmatprep.mubr.msk.f32.mxu0 %vm114_vm0, %v10076_v34  ;;  %9447 = vmatprep.mubr.msk.f32.mxu1 %vm114_vm0, %v229_v31 }
  0x64   :  { %9358 = vmatmul.mubr.msk.f32.gmra.mrb[44].mxu0 %vm114_vm0, %v10091_v46  ;;  %9448 = vmatmul.mubr.msk.f32.gmra.mrb[44].mxu1 %vm114_vm0, %v230_v38 }
  0x65   :  { %9360 = vmatprep.mubr.msk.f32.mxu0 %vm114_vm0, %v10096_v47  ;;  %9450 = vmatprep.mubr.msk.f32.mxu1 %vm114_vm0, %v231_v45 }
  0x68   :  { %9361 = vmatmul.mubr.msk.f32.gmra.mrb[46].mxu0 %vm114_vm0, %v10111_v56  ;;  %9451 = vmatmul.mubr.msk.f32.gmra.mrb[46].mxu1 %vm114_vm0, %v232_v52 }
  0x69   :  { %9363 = vmatprep.mubr.msk.f32.mxu0 %vm114_vm0, %v173_v59  ;;  %9453 = vmatprep.mubr.msk.f32.mxu1 %vm114_vm0, %v233_v2 }
  0x6c   :  { %9364 = vmatmul.mubr.msk.f32.gmra.mrb[48].mxu0 %vm114_vm0, %v174_v0  ;;  %9454 = vmatmul.mubr.msk.f32.gmra.mrb[48].mxu1 %vm114_vm0, %v234_v7 }
  0x6d   :  { %9366 = vmatprep.mubr.msk.f32.mxu0 %vm114_vm0, %v175_v5  ;;  %9456 = vmatprep.mubr.msk.f32.mxu1 %vm114_vm0, %v235_v9 }
  0x70   :  { %9367 = vmatmul.mubr.msk.f32.gmra.mrb[50].mxu0 %vm114_vm0, %v176_v11  ;;  %9457 = vmatmul.mubr.msk.f32.gmra.mrb[50].mxu1 %vm114_vm0, %v236_v15 }
  0x71   :  { %9369 = vmatprep.mubr.msk.f32.mxu0 %vm114_vm0, %v177_v16  ;;  %9459 = vmatprep.mubr.msk.f32.mxu1 %vm114_vm0, %v237_v28 }
  0x74   :  { %9370 = vmatmul.mubr.msk.f32.gmra.mrb[52].mxu0 %vm114_vm0, %v178_v20  ;;  %9460 = vmatmul.mubr.msk.f32.gmra.mrb[52].mxu1 %vm114_vm0, %v238_v35 }
  0x75   :  { %9372 = vmatprep.mubr.msk.f32.mxu0 %vm114_vm0, %v179_v25  ;;  %9462 = vmatprep.mubr.msk.f32.mxu1 %vm114_vm0, %v239_v42 }
  0x78   :  { %9373 = vmatmul.mubr.msk.f32.gmra.mrb[54].mxu0 %vm114_vm0, %v180_v30  ;;  %9463 = vmatmul.mubr.msk.f32.gmra.mrb[54].mxu1 %vm114_vm0, %v240_v55 }
  0x79   :  { %9375 = vmatprep.mubr.msk.f32.mxu0 %vm114_vm0, %v181_v37  ;;  %9465 = vmatprep.mubr.msk.f32.mxu1 %vm114_vm0, %v241_v61 }
  0x7c   :  { %9376 = vmatmul.mubr.msk.f32.gmra.mrb[56].mxu0 %vm114_vm0, %v182_v44  ;;  %9466 = vmatmul.mubr.msk.f32.gmra.mrb[56].mxu1 %vm114_vm0, %v242_v22 }
  0x7d   :  { %9378 = vmatprep.mubr.msk.f32.mxu0 %vm114_vm0, %v183_v51  ;;  %9468 = vmatprep.mubr.msk.f32.mxu1 %vm114_vm0, %v243_v27 }
  0x80   :  { %9379 = vmatmul.mubr.msk.f32.gmra.mrb[58].mxu0 %vm114_vm0, %v184_v58  ;;  %9469 = vmatmul.mubr.msk.f32.gmra.mrb[58].mxu1 %vm114_vm0, %v244_v39 }
  0xdf   :  { %v9293_v63 = vpop.f32.mrb[0].mxu0  ;;  %v10256_v43 = vpop.f32.mrb[0].mxu1 }
  0xe0   :  { %v10258_v50 = vmul.f32 9.961262e-15, %v9293_v63  ;;  %v10260_v4 = vmul.f32 1.1979456e-08, %v9293_v63  ;;  %v10262_v3 = vmul.f32 0.00026386508, %v9293_v63 }
  0xe1   :  { %v10264_v8 = vmul.f32 0.10645077, %v9293_v63  ;;  %v10266_v10 = vmul.f32 0.7865707, %v9293_v63  ;;  %v10268_v13 = vmul.f32 1.5170982e-22, %v9293_v63 }
  0xe2   :  { %v1546_v14 = vrot.slane %v10258_v50, 1  ;;  %v675_v18 = vpop.f32.mrb[1].mxu0  ;;  %v2057_v23 = vrot.slane %v10260_v4, 2  ;;  %v2628_v24 = vrot.slane %v10262_v3, 3  ;;  %v10277_v34 = vpop.f32.mrb[1].mxu1  ;;  %v4672_v57 = vrot.slane %v10262_v3, 7 }
  0xe3   :  { %v3259_v29 = vrot.slane %v10264_v8, 4  ;;  %v3890_v32 = vrot.slane %v10266_v10, 5  ;;  %v10275_v33 = vpop.f32.mrb[2].mxu0  ;;  %v4281_v36 = vrot.slane %v10264_v8, 6  ;;  %v1274_v41 = vmul.f32 1.5170982e-22, %v675_v18 }
  0xe4   :  { %v1364_v46 = vmul.f32 9.961262e-15, %v675_v18  ;;  %v685_v47 = vpop.f32.mrb[3].mxu0  ;;  %v1875_v49 = vmul.f32 1.1979456e-08, %v675_v18  ;;  %v10286_v31 = vpop.f32.mrb[2].mxu1 }
  0xe5   :  { %v2386_v54 = vmul.f32 0.00026386508, %v675_v18  ;;  %v3017_v56 = vmul.f32 0.10645077, %v675_v18  ;;  %v3648_v62 = vmul.f32 0.7865707, %v675_v18 }
  0xe6   :  { %v1545_v60 = vrot.slane %v1364_v46, 1  ;;  %v10282_v1 = vmul.f32 0.00026386508, %v10275_v33  ;;  %v2056_v6 = vrot.slane %v1875_v49, 2  ;;  %v5571_v38 = vrot.slane %v10268_v13, 2  ;;  %v10294_v0 = vpop.f32.mrb[3].mxu1 }
  0xe7   :  { %v2627_v12 = vrot.slane %v2386_v54, 3  ;;  %v3258_v17 = vrot.slane %v3017_v56, 4  ;;  %v4280_v21 = vrot.slane %v3017_v56, 6  ;;  %v10284_v26 = vpop.f32.mrb[4].mxu0  ;;  %v3889_v52 = vrot.slane %v3648_v62, 5 }
  0xe8   :  { %v1547_v45 = vsel %vm1544_vm1, %v1545_v60, %v1546_v14  ;;  %v4671_v59 = vrot.slane %v2386_v54, 7  ;;  %v10292_v2 = vpop.f32.mrb[5].mxu0  ;;  %v2058_v5 = vsel %vm2055_vm2, %v2056_v6, %v2057_v23  ;;  %v3020_v20 = vmul.f32 0.10645077, %v10275_v33 }
  0xe9   :  { %v1785_v7 = vadd.f32 %v1547_v45, %v1274_v41  ;;  %v2629_v9 = vsel %vm2626_vm3, %v2627_v12, %v2628_v24  ;;  %v3260_v11 = vsel %vm3257_vm4, %v3258_v17, %v3259_v29  ;;  %v3891_v15 = vsel %vm3888_vm5, %v3889_v52, %v3890_v32  ;;  %v10337_v52 = vpop.f32.mrb[4].mxu1 }
  0xea   :  { %v4282_v16 = vsel %vm4279_vm6, %v4280_v21, %v4281_v36  ;;  %v4673_v28 = vsel %vm4670_vm7, %v4671_v59, %v4672_v57  ;;  %v2632_v25 = vrot.slane %v10282_v1, 3  ;;  %v3651_v42 = vmul.f32 0.7865707, %v10275_v33 }
  0xeb   :  { %v2296_v35 = vadd.f32 %v2058_v5, %v1785_v7  ;;  %v4676_v30 = vrot.slane %v10282_v1, 7  ;;  %v10318_v55 = vpop.f32.mrb[6].mxu0  ;;  %v3263_v37 = vrot.slane %v3020_v20, 4  ;;  %v4285_v61 = vrot.slane %v3020_v20, 6 }
  0xec   :  { %v10321_v44 = vmul.f32 9.961262e-15, %v10275_v33  ;;  %v10324_v22 = vmul.f32 1.5170982e-22, %v10275_v33  ;;  %v3894_v27 = vrot.slane %v3651_v42, 5  ;;  %v10326_v63 = vpop.f32.mrb[7].mxu0 }
  0xed   :  { %v2927_v51 = vadd.f32 %v2629_v9, %v2296_v35  ;;  %v1276_v58 = vmul.f32 1.5170982e-22, %v685_v47  ;;  %v1366_v39 = vmul.f32 9.961262e-15, %v685_v47  ;;  %v10330_v46 = vmul.f32 1.1979456e-08, %v685_v47 }
  0xee   :  { %v5241_v18 = vrot.slane %v10321_v44, 1  ;;  %v5574_v41 = vrot.slane %v10324_v22, 2  ;;  %v2388_v49 = vmul.f32 0.00026386508, %v685_v47  ;;  %v3019_v60 = vmul.f32 0.10645077, %v685_v47 }
  0xef   :  { %v3558_v54 = vadd.f32 %v3260_v11, %v2927_v51  ;;  %v1548_v56 = vrot.slane %v1366_v39, 1  ;;  %v3650_v62 = vmul.f32 0.7865707, %v685_v47  ;;  %v10332_v1 = vpop.f32.mrb[8].mxu0  ;;  %v2059_v6 = vrot.slane %v10330_v46, 2  ;;  %v10342_v11 = vpop.f32.mrb[5].mxu1 }
  0xf0   :  { %v2630_v12 = vrot.slane %v2388_v49, 3  ;;  %v4674_v17 = vrot.slane %v2388_v49, 7  ;;  %v5572_v21 = vrot.slane %v1276_v58, 2  ;;  %v10335_v45 = vpop.f32.mrb[9].mxu0  ;;  %v3261_v9 = vrot.slane %v3019_v60, 4 }
  0xf1   :  { %v4189_v59 = vadd.f32 %v3891_v15, %v3558_v54  ;;  %v1549_v7 = vsel %vm1544_vm1, %v1546_v14, %v1548_v56  ;;  %v1787_v5 = vadd.f32 %v1548_v56, %v1276_v58  ;;  %v2060_v20 = vsel %vm2055_vm2, %v2057_v23, %v2059_v6 }
  0xf2   :  { %v1786_v47 = vadd.f32 %v1549_v7, %v10268_v13  ;;  %v2631_v35 = vsel %vm2626_vm3, %v2628_v24, %v2630_v12  ;;  %v2633_v15 = vsel %vm2626_vm3, %v2630_v12, %v2632_v25  ;;  %v3262_v14 = vsel %vm3257_vm4, %v3259_v29, %v3261_v9 }
  0xf3   :  { %v4580_v42 = vadd.f32 %v4282_v16, %v4189_v59  ;;  %v2298_v50 = vadd.f32 %v2059_v6, %v1787_v5  ;;  %v3264_v51 = vsel %vm3257_vm4, %v3261_v9, %v3263_v37  ;;  %v10356_v58 = vpop.f32.mrb[10].mxu0  ;;  %v3892_v49 = vrot.slane %v3650_v62, 5 }
  0xf4   :  { %v2297_v39 = vadd.f32 %v2060_v20, %v1786_v47  ;;  %v4283_v54 = vrot.slane %v3019_v60, 6  ;;  %v4675_v23 = vsel %vm4670_vm7, %v4672_v57, %v4674_v17  ;;  %v10361_v24 = vpop.f32.mrb[11].mxu0  ;;  %v4677_v6 = vsel %vm4670_vm7, %v4674_v17, %v4676_v30 }
  0xf5   :  { %v4971_v25 = vadd.f32 %v4673_v28, %v4580_v42  ;;  %v2929_v16 = vadd.f32 %v2633_v15, %v2298_v50  ;;  %v5242_v29 = vsel %vm1544_vm1, %v1548_v56, %v5241_v18  ;;  %v3893_v62 = vsel %vm3888_vm5, %v3890_v32, %v3892_v49 }
  0xf6   :  { %v2928_v37 = vadd.f32 %v2631_v35, %v2297_v39  ;;  %v3895_v60 = vsel %vm3888_vm5, %v3892_v49, %v3894_v27  ;;  %v4284_v3 = vsel %vm4279_vm6, %v4281_v36, %v4283_v54  ;;  %v4286_v28 = vsel %vm4279_vm6, %v4283_v54, %v4285_v61 }
  0xf7   :  { %v3560_v57 = vadd.f32 %v3264_v51, %v2929_v16  ;;  %v5091_v30 = vadd.f32 %v4971_v25, %v10260_v4  ;;  %v5573_v56 = vsel %vm2055_vm2, %v5571_v38, %v5572_v21  ;;  %v10379_v12 = vpop.f32.mrb[12].mxu0  ;;  %v5575_v32 = vsel %vm2055_vm2, %v5572_v21, %v5574_v41 }
  0xf8   :  { %v3559_v10 = vadd.f32 %v3262_v14, %v2928_v37  ;;  %v10385_v8 = vmul.f32 9.961262e-15, %v10284_v26  ;;  %v10387_v36 = vpop.f32.mrb[13].mxu0  ;;  %v10390_v4 = vmul.f32 1.1979456e-08, %v10284_v26 }
  0xf9   :  { %v4191_v27 = vadd.f32 %v3895_v60, %v3560_v57  ;;  %v5361_v61 = vadd.f32 %v5091_v30, %v1549_v7  ;;  %v10393_v13 = vmul.f32 0.00026386508, %v10284_v26  ;;  %v5061_v38 = vmul.f32 1.1979456e-08, %v10275_v33 }
  0xfa   :  { %v4190_v17 = vadd.f32 %v3893_v62, %v3559_v10  ;;  %v10397_v59 = vmul.f32 0.10645077, %v10284_v26  ;;  %v10400_v21 = vmul.f32 0.7865707, %v10284_v26  ;;  %v10405_v7 = vmul.f32 1.5170982e-22, %v10284_v26 }
  0xfb   :  { %v4582_v5 = vadd.f32 %v4286_v28, %v4191_v27  ;;  %v10402_v9 = vadd.f32 %v5573_v56, %v5361_v61  ;;  %v1551_v47 = vrot.slane %v10385_v8, 1  ;;  %v10408_v20 = vpop.f32.mrb[14].mxu0  ;;  %v2062_v33 = vrot.slane %v10390_v4, 2 }
  0xfc   :  { %v4581_v35 = vadd.f32 %v4284_v3, %v4190_v17  ;;  %v17557_v15 = vrot.slane %v10393_v13, 3  ;;  %v17556_v42 = vrot.slane %v10397_v59, 4  ;;  %v10413_v50 = vpop.f32.mrb[15].mxu0  ;;  %v17553_v51 = vrot.slane %v10400_v21, 5 }
  0xfd   :  { %17911 = vst [vmem:[#allocation8_spill] sm:$0xff] %v10402_v9  ;;  %v4973_v14 = vadd.f32 %v4677_v6, %v4582_v5  ;;  %v17555_v39 = vrot.slane %v10397_v59, 6  ;;  %v17554_v26 = vrot.slane %v10393_v13, 7  ;;  %v1277_v54 = vmul.f32 1.5170982e-22, %v10292_v2 }
  0xfe   :  { %v4972_v49 = vadd.f32 %v4675_v23, %v4581_v35  ;;  %v1367_v25 = vmul.f32 9.961262e-15, %v10292_v2  ;;  %v1878_v16 = vmul.f32 1.1979456e-08, %v10292_v2  ;;  %v2390_v62 = vmul.f32 0.00026386508, %v10292_v2 }
  0xff   :  { %v5093_v37 = vadd.f32 %v5061_v38, %v4973_v14  ;;  %v3021_v60 = vmul.f32 0.10645077, %v10292_v2  ;;  %v3652_v6 = vmul.f32 0.7865707, %v10292_v2  ;;  %v10426_v30 = vmul.f32 0.00026386508, %v10318_v55 }
 0x100   :  { %v5092_v3 = vadd.f32 %v4972_v49, %v10330_v46  ;;  %v1550_v57 = vrot.slane %v1367_v25, 1  ;;  %v2061_v28 = vrot.slane %v1878_v16, 2  ;;  %v10428_v23 = vpop.f32.mrb[16].mxu0  ;;  %v2634_v10 = vrot.slane %v2390_v62, 3 }
 0x101   :  { %v5363_v56 = vadd.f32 %v5241_v18, %v5093_v37  ;;  %v3265_v27 = vrot.slane %v3021_v60, 4  ;;  %v3896_v61 = vrot.slane %v3652_v6, 5  ;;  %v10432_v38 = vpop.f32.mrb[17].mxu0  ;;  %v4287_v5 = vrot.slane %v3021_v60, 6 }
 0x102   :  { %v5362_v17 = vadd.f32 %v5242_v29, %v5092_v3  ;;  %v1552_v2 = vsel %vm1544_vm1, %v1550_v57, %v1551_v47  ;;  %v2063_v46 = vsel %vm2055_vm2, %v2061_v28, %v2062_v33  ;;  %v2636_v18 = vsel %vm2626_vm3, %v2634_v10, %v17557_v15  ;;  %v10470_v10 = vpop.f32.mrb[6].mxu1 }
 0x103   :  { %v10442_v35 = vadd.f32 %v5574_v41, %v5363_v56  ;;  %v1788_v44 = vadd.f32 %v1552_v2, %v1277_v54  ;;  %v3267_v29 = vsel %vm3257_vm4, %v3265_v27, %v17556_v42  ;;  %v10450_v14 = vpop.f32.mrb[18].mxu0  ;;  %v3898_v25 = vsel %vm3888_vm5, %v3896_v61, %v17553_v51  ;;  %v10478_v2 = vpop.f32.mrb[7].mxu1 }
 0x104   :  { %v10452_v49 = vadd.f32 %v5575_v32, %v5362_v17  ;;  %v4289_v22 = vsel %vm4279_vm6, %v4287_v5, %v17555_v39  ;;  %v4678_v41 = vrot.slane %v2390_v62, 7  ;;  %v10460_v54 = vpop.f32.mrb[19].mxu0  ;;  %v3024_v37 = vmul.f32 0.10645077, %v10318_v55 }
 0x105   :  { %17912 = vst [vmem:[#allocation9_spill] sm:$0xff] %v10442_v35  ;;  %v2299_v16 = vadd.f32 %v2063_v46, %v1788_v44  ;;  %v5576_v60 = vrot.slane %v10405_v7, 2  ;;  %v2639_v6 = vrot.slane %v10426_v30, 3  ;;  %v3655_v3 = vmul.f32 0.7865707, %v10318_v55 }
 0x106   :  { %17913 = vst [vmem:[#allocation10_spill] sm:$0xff] %v10452_v49  ;;  %v4680_v32 = vsel %vm4670_vm7, %v4678_v41, %v17554_v26  ;;  %v3270_v28 = vrot.slane %v3024_v37, 4  ;;  %v4292_v56 = vrot.slane %v3024_v37, 6  ;;  %v4683_v62 = vrot.slane %v10426_v30, 7 }
 0x107   :  { %v2930_v57 = vadd.f32 %v2636_v18, %v2299_v16  ;;  %v3901_v27 = vrot.slane %v3655_v3, 5  ;;  %v10473_v61 = vmul.f32 9.961262e-15, %v10318_v55  ;;  %v10476_v17 = vmul.f32 1.5170982e-22, %v10318_v55  ;;  %v10506_v35 = vpop.f32.mrb[20].mxu0 }
 0x108   :  { %v1279_v5 = vmul.f32 1.5170982e-22, %v10326_v63  ;;  %v1369_v44 = vmul.f32 9.961262e-15, %v10326_v63  ;;  %v10483_v18 = vmul.f32 1.1979456e-08, %v10326_v63 }
 0x109   :  { %v3561_v46 = vadd.f32 %v3267_v29, %v2930_v57  ;;  %v2392_v16 = vmul.f32 0.00026386508, %v10326_v63  ;;  %v3023_v37 = vmul.f32 0.10645077, %v10326_v63  ;;  %v3654_v29 = vmul.f32 0.7865707, %v10326_v63 }
 0x10a   :  { %v1553_v53 = vrot.slane %v1369_v44, 1  ;;  %v2064_v51 = vrot.slane %v10483_v18, 2 }
 0x10b   :  { %v4192_v3 = vadd.f32 %v3898_v25, %v3561_v46  ;;  %v2637_v57 = vrot.slane %v2392_v16, 3  ;;  %v3268_v26 = vrot.slane %v3023_v37, 4  ;;  %v4290_v39 = vrot.slane %v3023_v37, 6 }
 0x10c   :  { %v4681_v42 = vrot.slane %v2392_v16, 7  ;;  %v1554_v30 = vsel %vm1544_vm1, %v1551_v47, %v1553_v53  ;;  %v1790_v41 = vadd.f32 %v1553_v53, %v1279_v5  ;;  %v2065_v40 = vsel %vm2055_vm2, %v2062_v33, %v2064_v51 }
 0x10d   :  { %v4583_v15 = vadd.f32 %v4289_v22, %v4192_v3  ;;  %v1789_v25 = vadd.f32 %v1554_v30, %v10405_v7  ;;  %v17914_v46 = vrot.slane %v10393_v13, 3  ;;  %v2640_v44 = vsel %vm2626_vm3, %v2637_v57, %v2639_v6 }
 0x10e   :  { %v17915_v16 = vrot.slane %v10397_v59, 4  ;;  %v2301_v37 = vadd.f32 %v2064_v51, %v1790_v41  ;;  %v3271_v47 = vsel %vm3257_vm4, %v3268_v26, %v3270_v28  ;;  %v3899_v3 = vrot.slane %v3654_v29, 5 }
 0x10f   :  { %v2638_v63 = vsel %vm2626_vm3, %v17914_v46, %v2637_v57  ;;  %v4974_v8 = vadd.f32 %v4680_v32, %v4583_v15  ;;  %v2300_v33 = vadd.f32 %v2065_v40, %v1789_v25  ;;  %v17916_v7 = vrot.slane %v10397_v59, 6 }
 0x110   :  { %v3269_v22 = vsel %vm3257_vm4, %v17915_v16, %v3268_v26  ;;  %v4293_v46 = vsel %vm4279_vm6, %v4290_v39, %v4292_v56  ;;  %v17917_v6 = vrot.slane %v10393_v13, 7  ;;  %v2932_v48 = vadd.f32 %v2640_v44, %v2301_v37 }
 0x111   :  { %v4291_v49 = vsel %vm4279_vm6, %v17916_v7, %v4290_v39  ;;  %v17918_v15 = vrot.slane %v10400_v21, 5  ;;  %v3902_v26 = vsel %vm3888_vm5, %v3899_v3, %v3901_v27  ;;  %v4684_v32 = vsel %vm4670_vm7, %v4681_v42, %v4683_v62 }
 0x112   :  { %v4682_v57 = vsel %vm4670_vm7, %v17917_v6, %v4681_v42  ;;  %v2931_v40 = vadd.f32 %v2638_v63, %v2300_v33  ;;  %v5094_v59 = vadd.f32 %v4974_v8, %v10390_v4  ;;  %v17919_v28 = vrot.slane %v10473_v61, 1 }
 0x113   :  { %v3900_v51 = vsel %vm3888_vm5, %v17918_v15, %v3899_v3  ;;  %v5577_v56 = vrot.slane %v1279_v5, 2  ;;  %v3563_v13 = vadd.f32 %v3271_v47, %v2932_v48  ;;  %v10525_v41 = vmul.f32 9.961262e-15, %v10332_v1 }
 0x114   :  { %v5244_v39 = vsel %vm1544_vm1, %v1553_v53, %v17919_v28  ;;  %v10528_v21 = vmul.f32 1.1979456e-08, %v10332_v1  ;;  %v3562_v29 = vadd.f32 %v3269_v22, %v2931_v40  ;;  %v5364_v25 = vadd.f32 %v5094_v59, %v1554_v30 }
 0x115   :  { %v5578_v27 = vsel %vm2055_vm2, %v5576_v60, %v5577_v56  ;;  %v17920_v42 = vrot.slane %v10476_v17, 2  ;;  %v5062_v62 = vmul.f32 1.1979456e-08, %v10318_v55  ;;  %v4194_v63 = vadd.f32 %v3902_v26, %v3563_v13 }
 0x116   :  { %v10536_v53 = vmul.f32 1.5170982e-22, %v10332_v1  ;;  %v10539_v48 = vmul.f32 0.00026386508, %v10332_v1  ;;  %v4193_v5 = vadd.f32 %v3900_v51, %v3562_v29  ;;  %v10541_v44 = vadd.f32 %v5578_v27, %v5364_v25 }
 0x117   :  { %v5580_v4 = vsel %vm2055_vm2, %v5577_v56, %v17920_v42  ;;  %v10544_v30 = vmul.f32 0.10645077, %v10332_v1  ;;  %v10547_v60 = vmul.f32 0.7865707, %v10332_v1  ;;  %v4585_v16 = vadd.f32 %v4293_v46, %v4194_v63 }
 0x118   :  { %17921 = vst [vmem:[#allocation11_spill] sm:$0xff] %v10541_v44  ;;  %v1556_v22 = vrot.slane %v10525_v41, 1  ;;  %v2067_v55 = vrot.slane %v10528_v21, 2  ;;  %v2642_v8 = vrot.slane %v10539_v48, 3  ;;  %v4584_v37 = vadd.f32 %v4291_v49, %v4193_v5 }
 0x119   :  { %v17564_v47 = vrot.slane %v10544_v30, 4  ;;  %v17562_v3 = vrot.slane %v10547_v60, 5  ;;  %v17563_v33 = vrot.slane %v10539_v48, 7  ;;  %v4976_v7 = vadd.f32 %v4684_v32, %v4585_v16 }
 0x11a   :  { %v17561_v6 = vrot.slane %v10544_v30, 6  ;;  %v1280_v1 = vmul.f32 1.5170982e-22, %v10335_v45  ;;  %v1370_v46 = vmul.f32 9.961262e-15, %v10335_v45  ;;  %v4975_v15 = vadd.f32 %v4682_v57, %v4584_v37 }
 0x11b   :  { %v1881_v51 = vmul.f32 1.1979456e-08, %v10335_v45  ;;  %v2394_v26 = vmul.f32 0.00026386508, %v10335_v45  ;;  %v3025_v49 = vmul.f32 0.10645077, %v10335_v45  ;;  %v5096_v40 = vadd.f32 %v5062_v62, %v4976_v7 }
 0x11c   :  { %v1555_v59 = vrot.slane %v1370_v46, 1  ;;  %v3656_v28 = vmul.f32 0.7865707, %v10335_v45  ;;  %v10563_v56 = vmul.f32 0.00026386508, %v10356_v58  ;;  %v5095_v32 = vadd.f32 %v4975_v15, %v10483_v18  ;;  %v10590_v46 = vpop.f32.mrb[21].mxu0 }
 0x11d   :  { %v2066_v13 = vrot.slane %v1881_v51, 2  ;;  %v2641_v29 = vrot.slane %v2394_v26, 3  ;;  %v3272_v25 = vrot.slane %v3025_v49, 4  ;;  %v17922_v57 = vrot.slane %v10473_v61, 1 }
 0x11e   :  { %v1557_v42 = vsel %vm1544_vm1, %v1555_v59, %v1556_v22  ;;  %v3903_v63 = vrot.slane %v3656_v28, 5  ;;  %v4294_v62 = vrot.slane %v3025_v49, 6  ;;  %v5365_v5 = vadd.f32 %v5244_v39, %v5095_v32 }
 0x11f   :  { %v5366_v27 = vadd.f32 %v17922_v57, %v5096_v40  ;;  %v1791_v16 = vadd.f32 %v1557_v42, %v1280_v1  ;;  %v2068_v45 = vsel %vm2055_vm2, %v2066_v13, %v2067_v55  ;;  %v2643_v18 = vsel %vm2626_vm3, %v2641_v29, %v2642_v8 }
 0x120   :  { %v17923_v37 = vrot.slane %v10476_v17, 2  ;;  %v3274_v7 = vsel %vm3257_vm4, %v3272_v25, %v17564_v47  ;;  %v3905_v39 = vsel %vm3888_vm5, %v3903_v63, %v17562_v3  ;;  %v4296_v1 = vsel %vm4279_vm6, %v4294_v62, %v17561_v6 }
 0x121   :  { %v10592_v15 = vadd.f32 %v5580_v4, %v5365_v5  ;;  %v2302_v51 = vadd.f32 %v2068_v45, %v1791_v16  ;;  %v4685_v17 = vrot.slane %v2394_v26, 7  ;;  %v3028_v49 = vmul.f32 0.10645077, %v10356_v58 }
 0x122   :  { %v10579_v61 = vadd.f32 %v17923_v37, %v5366_v27  ;;  %v3659_v40 = vmul.f32 0.7865707, %v10356_v58  ;;  %v10597_v59 = vmul.f32 1.5170982e-22, %v10256_v43  ;;  %v5581_v28 = vrot.slane %v10536_v53, 2 }
 0x123   :  { %17925 = vst [vmem:[#allocation13_spill] sm:$0xff] %v10592_v15  ;;  %v2933_v32 = vadd.f32 %v2643_v18, %v2302_v51  ;;  %v4687_v13 = vsel %vm4670_vm7, %v4685_v17, %v17563_v33  ;;  %v2646_v29 = vrot.slane %v10563_v56, 3  ;;  %v3277_v4 = vrot.slane %v3028_v49, 4  ;;  %v10620_v17 = vpop.f32.mrb[8].mxu1 }
 0x124   :  { %17924 = vst [vmem:[#allocation12_spill] sm:$0xff] %v10579_v61  ;;  %v3908_v25 = vrot.slane %v3659_v40, 5  ;;  %v4690_v26 = vrot.slane %v10563_v56, 7  ;;  %v10606_v57 = vmul.f32 9.961262e-15, %v10356_v58  ;;  %v4299_v5 = vrot.slane %v3028_v49, 6 }
 0x125   :  { %v3564_v27 = vadd.f32 %v3274_v7, %v2933_v32  ;;  %v10609_v42 = vmul.f32 1.5170982e-22, %v10356_v58  ;;  %v1282_v63 = vmul.f32 1.5170982e-22, %v10361_v24  ;;  %v1372_v62 = vmul.f32 9.961262e-15, %v10361_v24 }
 0x126   :  { %v10615_v45 = vmul.f32 1.1979456e-08, %v10361_v24  ;;  %v2396_v18 = vmul.f32 0.00026386508, %v10361_v24  ;;  %v3027_v7 = vmul.f32 0.10645077, %v10361_v24 }
 0x127   :  { %v4195_v56 = vadd.f32 %v3905_v39, %v3564_v27  ;;  %v1558_v51 = vrot.slane %v1372_v62, 1  ;;  %v3658_v49 = vmul.f32 0.7865707, %v10361_v24  ;;  %v10624_v3 = vpop.f32.mrb[9].mxu1  ;;  %v17926_v41 = vrot.slane %v10544_v30, 4 }
 0x128   :  { %v2069_v40 = vrot.slane %v10615_v45, 2  ;;  %v2644_v32 = vrot.slane %v2396_v18, 3  ;;  %v4688_v6 = vrot.slane %v2396_v18, 7  ;;  %v3275_v37 = vrot.slane %v3027_v7, 4 }
 0x129   :  { %v4586_v16 = vadd.f32 %v4296_v1, %v4195_v56  ;;  %v1559_v39 = vsel %vm1544_vm1, %v1556_v22, %v1558_v51  ;;  %v1793_v27 = vadd.f32 %v1558_v51, %v1282_v63  ;;  %v4297_v15 = vrot.slane %v3027_v7, 6 }
 0x12a   :  { %v1792_v62 = vadd.f32 %v1559_v39, %v10536_v53  ;;  %v2070_v33 = vsel %vm2055_vm2, %v2067_v55, %v2069_v40  ;;  %v2645_v24 = vsel %vm2626_vm3, %v2642_v8, %v2644_v32  ;;  %v2647_v18 = vsel %vm2626_vm3, %v2644_v32, %v2646_v29 }
 0x12b   :  { %v4977_v47 = vadd.f32 %v4687_v13, %v4586_v16  ;;  %v2304_v1 = vadd.f32 %v2069_v40, %v1793_v27  ;;  %v3276_v22 = vsel %vm3257_vm4, %v17926_v41, %v3275_v37  ;;  %v3278_v56 = vsel %vm3257_vm4, %v3275_v37, %v3277_v4  ;;  %v10656_v37 = vpop.f32.mrb[22].mxu0 }
 0x12c   :  { %v2303_v61 = vadd.f32 %v2070_v33, %v1792_v62  ;;  %v3906_v53 = vrot.slane %v3658_v49, 5  ;;  %v17927_v44 = vrot.slane %v10539_v48, 7  ;;  %v4691_v8 = vsel %vm4670_vm7, %v4688_v6, %v4690_v26 }
 0x12d   :  { %v2935_v19 = vadd.f32 %v2647_v18, %v2304_v1  ;;  %v5097_v29 = vadd.f32 %v4977_v47, %v10528_v21  ;;  %v17928_v13 = vrot.slane %v10606_v57, 1  ;;  %v17929_v32 = vrot.slane %v10547_v60, 5 }
 0x12e   :  { %v4689_v55 = vsel %vm4670_vm7, %v17927_v44, %v4688_v6  ;;  %v2934_v40 = vadd.f32 %v2645_v24, %v2303_v61  ;;  %v3909_v4 = vsel %vm3888_vm5, %v3906_v53, %v3908_v25  ;;  %v17930_v48 = vrot.slane %v10544_v30, 6 }
 0x12f   :  { %v5246_v16 = vsel %vm1544_vm1, %v1558_v51, %v17928_v13  ;;  %v3907_v33 = vsel %vm3888_vm5, %v17929_v32, %v3906_v53  ;;  %v3566_v6 = vadd.f32 %v3278_v56, %v2935_v19  ;;  %v4300_v21 = vsel %vm4279_vm6, %v4297_v15, %v4299_v5 }
 0x130   :  { %v4298_v44 = vsel %vm4279_vm6, %v17930_v48, %v4297_v15  ;;  %v5367_v47 = vadd.f32 %v5097_v29, %v1559_v39  ;;  %v5582_v26 = vrot.slane %v1282_v63, 2  ;;  %v5063_v51 = vmul.f32 1.1979456e-08, %v10356_v58 }
 0x131   :  { %v3565_v61 = vadd.f32 %v3276_v22, %v2934_v40  ;;  %v10661_v60 = vmul.f32 9.961262e-15, %v10379_v12  ;;  %v10664_v7 = vmul.f32 1.1979456e-08, %v10379_v12  ;;  %v4197_v25 = vadd.f32 %v3909_v4, %v3566_v6 }
 0x132   :  { %v5583_v30 = vsel %vm2055_vm2, %v5581_v28, %v5582_v26  ;;  %v17931_v49 = vrot.slane %v10609_v42, 2  ;;  %v10671_v15 = vmul.f32 0.00026386508, %v10379_v12  ;;  %v10676_v58 = vmul.f32 1.5170982e-22, %v10379_v12 }
 0x133   :  { %v4196_v63 = vadd.f32 %v3907_v33, %v3565_v61  ;;  %v10673_v5 = vadd.f32 %v5583_v30, %v5367_v47  ;;  %v17575_v39 = vrot.slane %v10661_v60, 1  ;;  %v4588_v27 = vadd.f32 %v4300_v21, %v4197_v25 }
 0x134   :  { %v5585_v19 = vsel %vm2055_vm2, %v5582_v26, %v17931_v49  ;;  %v17574_v62 = vrot.slane %v10664_v7, 2  ;;  %v10681_v28 = vmul.f32 0.10645077, %v10379_v12  ;;  %v10684_v24 = vmul.f32 0.7865707, %v10379_v12 }
 0x135   :  { %17932 = vst [vmem:[#allocation14_spill] sm:$0xff] %v10673_v5  ;;  %v4587_v18 = vadd.f32 %v4298_v44, %v4196_v63  ;;  %v17573_v1 = vrot.slane %v10671_v15, 3  ;;  %v17570_v41 = vrot.slane %v10671_v15, 7  ;;  %v1283_v22 = vmul.f32 1.5170982e-22, %v10387_v36 }
 0x136   :  { %v4979_v56 = vadd.f32 %v4691_v8, %v4588_v27  ;;  %v17572_v53 = vrot.slane %v10681_v28, 4  ;;  %v17569_v29 = vrot.slane %v10684_v24, 5  ;;  %v17571_v13 = vrot.slane %v10681_v28, 6 }
 0x137   :  { %v4978_v40 = vadd.f32 %v4689_v55, %v4587_v18  ;;  %v1373_v32 = vmul.f32 9.961262e-15, %v10387_v36  ;;  %v1884_v12 = vmul.f32 1.1979456e-08, %v10387_v36  ;;  %v2398_v33 = vmul.f32 0.00026386508, %v10387_v36 }
 0x138   :  { %v5099_v4 = vadd.f32 %v5063_v51, %v4979_v56  ;;  %v3029_v48 = vmul.f32 0.10645077, %v10387_v36  ;;  %v3660_v44 = vmul.f32 0.7865707, %v10387_v36  ;;  %v10698_v8 = vmul.f32 9.961262e-15, %v10256_v43 }
 0x139   :  { %v5098_v6 = vadd.f32 %v4978_v40, %v10615_v45  ;;  %v1560_v21 = vrot.slane %v1373_v32, 1  ;;  %v2071_v47 = vrot.slane %v1884_v12, 2  ;;  %v2648_v26 = vrot.slane %v2398_v33, 3  ;;  %v10701_v55 = vpop.f32.mrb[23].mxu0 }
 0x13a   :  { %v17933_v61 = vrot.slane %v10606_v57, 1  ;;  %v3279_v30 = vrot.slane %v3029_v48, 4  ;;  %v3910_v49 = vrot.slane %v3660_v44, 5  ;;  %v4301_v51 = vrot.slane %v3029_v48, 6 }
 0x13b   :  { %v5368_v63 = vadd.f32 %v5246_v16, %v5098_v6  ;;  %v1562_v36 = vsel %vm1544_vm1, %v1560_v21, %v17575_v39  ;;  %v2073_v45 = vsel %vm2055_vm2, %v2071_v47, %v17574_v62  ;;  %v2650_v27 = vsel %vm2626_vm3, %v2648_v26, %v17573_v1 }
 0x13c   :  { %v5369_v25 = vadd.f32 %v17933_v61, %v5099_v4  ;;  %v17934_v18 = vrot.slane %v10609_v42, 2  ;;  %v1794_v56 = vadd.f32 %v1562_v36, %v1283_v22  ;;  %v3281_v16 = vsel %vm3257_vm4, %v3279_v30, %v17572_v53 }
 0x13d   :  { %v3912_v40 = vsel %vm3888_vm5, %v3910_v49, %v17569_v29  ;;  %v10724_v32 = vadd.f32 %v5585_v19, %v5368_v63  ;;  %v4303_v12 = vsel %vm4279_vm6, %v4301_v51, %v17571_v13  ;;  %v4692_v4 = vrot.slane %v2398_v33, 7  ;;  %v10750_v49 = vpop.f32.mrb[10].mxu1 }
 0x13e   :  { %v10716_v57 = vadd.f32 %v17934_v18, %v5369_v25  ;;  %v17576_v42 = vrot.slane %v10698_v8, 1  ;;  %v2305_v48 = vadd.f32 %v2073_v45, %v1794_v56  ;;  %v10731_v22 = vmul.f32 1.1979456e-08, %v10256_v43  ;;  %v10755_v45 = vpop.f32.mrb[11].mxu1 }
 0x13f   :  { %17936 = vst [vmem:[#allocation16_spill] sm:$0xff] %v10724_v32  ;;  %v10734_v44 = vmul.f32 0.00026386508, %v10256_v43  ;;  %v10737_v6 = vmul.f32 0.10645077, %v10256_v43  ;;  %v4694_v19 = vsel %vm4670_vm7, %v4692_v4, %v17570_v41  ;;  %17937 = vst [vmem:[#allocation17_spill] sm:$0xff] %v10755_v45 }
 0x140   :  { %17935 = vst [vmem:[#allocation15_spill] sm:$0xff] %v10716_v57  ;;  %v10743_v21 = vmul.f32 0.7865707, %v10256_v43  ;;  %v1319_v33 = vmul.f32 1.5170982e-22, %v10277_v34  ;;  %v2936_v26 = vadd.f32 %v2650_v27, %v2305_v48  ;;  %v17579_v61 = vrot.slane %v10731_v22, 2 }
 0x141   :  { %v1409_v47 = vmul.f32 9.961262e-15, %v10277_v34  ;;  %v17578_v25 = vrot.slane %v10734_v44, 3  ;;  %v17577_v30 = vrot.slane %v10737_v6, 4  ;;  %v1920_v27 = vmul.f32 1.1979456e-08, %v10277_v34 }
 0x142   :  { %v3567_v18 = vadd.f32 %v3281_v16, %v2936_v26  ;;  %v2446_v56 = vmul.f32 0.00026386508, %v10277_v34  ;;  %v3077_v4 = vmul.f32 0.10645077, %v10277_v34  ;;  %v3708_v29 = vmul.f32 0.7865707, %v10277_v34 }
 0x143   :  { %v1620_v36 = vrot.slane %v1409_v47, 1  ;;  %v10765_v41 = vmul.f32 0.00026386508, %v10408_v20  ;;  %v3032_v47 = vmul.f32 0.10645077, %v10408_v20  ;;  %v2131_v16 = vrot.slane %v1920_v27, 2 }
 0x144   :  { %v4198_v13 = vadd.f32 %v3912_v40, %v3567_v18  ;;  %v2732_v26 = vrot.slane %v2446_v56, 3  ;;  %v3363_v1 = vrot.slane %v3077_v4, 4  ;;  %v3994_v62 = vrot.slane %v3708_v29, 5 }
 0x145   :  { %v1622_v48 = vsel %vm1544_vm1, %v1620_v36, %v17576_v42  ;;  %v4385_v39 = vrot.slane %v3077_v4, 6  ;;  %v4776_v43 = vrot.slane %v2446_v56, 7  ;;  %v2133_v34 = vsel %vm2055_vm2, %v2131_v16, %v17579_v61 }
 0x146   :  { %v1830_v53 = vadd.f32 %v1622_v48, %v1319_v33  ;;  %v4589_v51 = vadd.f32 %v4303_v12, %v4198_v13  ;;  %v2734_v36 = vsel %vm2626_vm3, %v2732_v26, %v17578_v25  ;;  %v3365_v40 = vsel %vm3257_vm4, %v3363_v1, %v17577_v30  ;;  %v10789_v48 = vpop.f32.mrb[24].mxu0 }
 0x147   :  { %v17938_v29 = vrot.slane %v10743_v21, 5  ;;  %v17939_v18 = vrot.slane %v10737_v6, 6  ;;  %v17940_v27 = vrot.slane %v10734_v44, 7  ;;  %v2653_v4 = vrot.slane %v10765_v41, 3  ;;  %17941 = vst [vmem:[#allocation18_spill] sm:$0xff] %v10789_v48 }
 0x148   :  { %v2341_v42 = vadd.f32 %v2133_v34, %v1830_v53  ;;  %v4980_v12 = vadd.f32 %v4694_v19, %v4589_v51  ;;  %v3663_v53 = vmul.f32 0.7865707, %v10408_v20  ;;  %v3284_v16 = vrot.slane %v3032_v47, 4 }
 0x149   :  { %v3996_v33 = vsel %vm3888_vm5, %v3994_v62, %v17938_v29  ;;  %v4387_v13 = vsel %vm4279_vm6, %v4385_v39, %v17939_v18  ;;  %v4778_v56 = vsel %vm4670_vm7, %v4776_v43, %v17940_v27  ;;  %v4306_v26 = vrot.slane %v3032_v47, 6 }
 0x14a   :  { %v2972_v1 = vadd.f32 %v2734_v36, %v2341_v42  ;;  %v4697_v62 = vrot.slane %v10765_v41, 7  ;;  %v3915_v34 = vrot.slane %v3663_v53, 5  ;;  %v10793_v29 = vmul.f32 9.961262e-15, %v10408_v20 }
 0x14b   :  { %v10796_v39 = vmul.f32 1.5170982e-22, %v10408_v20  ;;  %v5100_v19 = vadd.f32 %v4980_v12, %v10664_v7  ;;  %v1285_v43 = vmul.f32 1.5170982e-22, %v10413_v50  ;;  %v1375_v18 = vmul.f32 9.961262e-15, %v10413_v50 }
 0x14c   :  { %v3603_v51 = vadd.f32 %v3365_v40, %v2972_v1  ;;  %v10802_v42 = vmul.f32 1.1979456e-08, %v10413_v50  ;;  %v2400_v36 = vmul.f32 0.00026386508, %v10413_v50  ;;  %v3031_v27 = vmul.f32 0.10645077, %v10413_v50 }
 0x14d   :  { %v1563_v30 = vrot.slane %v1375_v18, 1  ;;  %v3662_v40 = vmul.f32 0.7865707, %v10413_v50  ;;  %v17942_v57 = vrot.slane %v10661_v60, 1  ;;  %v17943_v5 = vrot.slane %v10664_v7, 2 }
 0x14e   :  { %v4234_v53 = vadd.f32 %v3996_v33, %v3603_v51  ;;  %v2074_v12 = vrot.slane %v10802_v42, 2  ;;  %v2651_v1 = vrot.slane %v2400_v36, 3  ;;  %v3282_v25 = vrot.slane %v3031_v27, 4 }
 0x14f   :  { %v4304_v61 = vrot.slane %v3031_v27, 6  ;;  %v4695_v63 = vrot.slane %v2400_v36, 7  ;;  %v1564_v47 = vsel %vm1544_vm1, %v17942_v57, %v1563_v30  ;;  %v1796_v41 = vadd.f32 %v1563_v30, %v1285_v43 }
 0x150   :  { %v4625_v32 = vadd.f32 %v4387_v13, %v4234_v53  ;;  %v2075_v9 = vsel %vm2055_vm2, %v17943_v5, %v2074_v12  ;;  %v1795_v33 = vadd.f32 %v1564_v47, %v10676_v58  ;;  %v17944_v51 = vrot.slane %v10671_v15, 3 }
 0x151   :  { %v2654_v18 = vsel %vm2626_vm3, %v2651_v1, %v2653_v4  ;;  %v17945_v36 = vrot.slane %v10681_v28, 4  ;;  %v2307_v57 = vadd.f32 %v2074_v12, %v1796_v41  ;;  %v3285_v27 = vsel %vm3257_vm4, %v3282_v25, %v3284_v16 }
 0x152   :  { %v2652_v50 = vsel %vm2626_vm3, %v17944_v51, %v2651_v1  ;;  %v10824_v60 = vadd.f32 %v4778_v56, %v4625_v32  ;;  %v3913_v7 = vrot.slane %v3662_v40, 5  ;;  %v2306_v53 = vadd.f32 %v2075_v9, %v1795_v33 }
 0x153   :  { %v3283_v13 = vsel %vm3257_vm4, %v17945_v36, %v3282_v25  ;;  %v17946_v5 = vrot.slane %v10681_v28, 6  ;;  %v4307_v45 = vsel %vm4279_vm6, %v4304_v61, %v4306_v26  ;;  %v17947_v51 = vrot.slane %v10671_v15, 7 }
 0x154   :  { %v2938_v1 = vadd.f32 %v2654_v18, %v2307_v57  ;;  %v17948_v36 = vrot.slane %v10684_v24, 5  ;;  %v3916_v56 = vsel %vm3888_vm5, %v3913_v7, %v3915_v34  ;;  %v4698_v25 = vsel %vm4670_vm7, %v4695_v63, %v4697_v62 }
 0x155   :  { %v4305_v48 = vsel %vm4279_vm6, %v17946_v5, %v4304_v61  ;;  %v4696_v4 = vsel %vm4670_vm7, %v17947_v51, %v4695_v63  ;;  %v2937_v9 = vadd.f32 %v2652_v50, %v2306_v53  ;;  %v17949_v28 = vrot.slane %v10793_v29, 1  ;;  %v10859_v50 = vpop.f32.mrb[12].mxu1 }
 0x156   :  { %v3914_v32 = vsel %vm3888_vm5, %v17948_v36, %v3913_v7  ;;  %v5370_v41 = vadd.f32 %v5100_v19, %v1564_v47  ;;  %v5587_v61 = vrot.slane %v1285_v43, 2  ;;  %v3569_v26 = vadd.f32 %v3285_v27, %v2938_v1  ;;  %v10863_v27 = vpop.f32.mrb[25].mxu0 }
 0x157   :  { %v5248_v16 = vsel %vm1544_vm1, %v1563_v30, %v17949_v28  ;;  %v10843_v15 = vmul.f32 0.00026386508, %v10286_v31  ;;  %v10846_v12 = vmul.f32 0.10645077, %v10286_v31  ;;  %v3711_v24 = vmul.f32 0.7865707, %v10286_v31 }
 0x158   :  { %v3568_v40 = vadd.f32 %v3283_v13, %v2937_v9  ;;  %v17950_v34 = vrot.slane %v10676_v58, 2  ;;  %v17951_v62 = vrot.slane %v10796_v39, 2  ;;  %v5064_v43 = vmul.f32 1.1979456e-08, %v10408_v20 }
 0x159   :  { %v4200_v47 = vadd.f32 %v3916_v56, %v3569_v26  ;;  %v2737_v13 = vrot.slane %v10843_v15, 3  ;;  %v3368_v58 = vrot.slane %v10846_v12, 4  ;;  %v3999_v57 = vrot.slane %v3711_v24, 5 }
 0x15a   :  { %v5588_v63 = vsel %vm2055_vm2, %v17950_v34, %v5587_v61  ;;  %v5590_v30 = vsel %vm2055_vm2, %v5587_v61, %v17951_v62  ;;  %v4199_v18 = vadd.f32 %v3914_v32, %v3568_v40  ;;  %v4390_v53 = vrot.slane %v10846_v12, 6 }
 0x15b   :  { %v10857_v33 = vadd.f32 %v5588_v63, %v5370_v41  ;;  %v4591_v7 = vadd.f32 %v4307_v45, %v4200_v47  ;;  %v4781_v5 = vrot.slane %v10843_v15, 7  ;;  %v10868_v20 = vmul.f32 9.961262e-15, %v10286_v31 }
 0x15c   :  { %v4590_v51 = vadd.f32 %v4305_v48, %v4199_v18  ;;  %v10871_v1 = vmul.f32 1.5170982e-22, %v10294_v0  ;;  %v1411_v36 = vmul.f32 9.961262e-15, %v10294_v0  ;;  %v10875_v32 = vmul.f32 1.1979456e-08, %v10294_v0 }
 0x15d   :  { %17952 = vst [vmem:[#allocation19_spill] sm:$0xff] %v10857_v33  ;;  %v4982_v56 = vadd.f32 %v4698_v25, %v4591_v7  ;;  %v10879_v45 = vmul.f32 1.5170982e-22, %v10286_v31  ;;  %v2448_v28 = vmul.f32 0.00026386508, %v10294_v0  ;;  %v17953_v34 = vrot.slane %v10698_v8, 1 }
 0x15e   :  { %v4981_v41 = vadd.f32 %v4696_v4, %v4590_v51  ;;  %v1623_v61 = vrot.slane %v1411_v36, 1  ;;  %v2134_v48 = vrot.slane %v10875_v32, 2  ;;  %v3079_v26 = vmul.f32 0.10645077, %v10294_v0 }
 0x15f   :  { %v5102_v15 = vadd.f32 %v5064_v43, %v4982_v56  ;;  %v2735_v12 = vrot.slane %v2448_v28, 3  ;;  %v3710_v24 = vmul.f32 0.7865707, %v10294_v0  ;;  %v4779_v40 = vrot.slane %v2448_v28, 7 }
 0x160   :  { %v5101_v25 = vadd.f32 %v4981_v41, %v10802_v42  ;;  %v1624_v63 = vsel %vm1544_vm1, %v17953_v34, %v1623_v61  ;;  %v1832_v62 = vadd.f32 %v1623_v61, %v10871_v1  ;;  %v17954_v4 = vrot.slane %v10731_v22, 2  ;;  %v10900_v41 = vpop.f32.mrb[13].mxu1 }
 0x161   :  { %v17955_v18 = vrot.slane %v10793_v29, 1  ;;  %v1831_v43 = vadd.f32 %v1624_v63, %v10597_v59  ;;  %v17956_v0 = vrot.slane %v10734_v44, 3  ;;  %v2738_v42 = vsel %vm2626_vm3, %v2735_v12, %v2737_v13 }
 0x162   :  { %v2135_v47 = vsel %vm2055_vm2, %v17954_v4, %v2134_v48  ;;  %v5371_v8 = vadd.f32 %v5248_v16, %v5101_v25  ;;  %v2343_v36 = vadd.f32 %v2134_v48, %v1832_v62  ;;  %v3366_v56 = vrot.slane %v3079_v26, 4 }
 0x163   :  { %v5372_v7 = vadd.f32 %v17955_v18, %v5102_v15  ;;  %v2736_v51 = vsel %vm2626_vm3, %v17956_v0, %v2735_v12  ;;  %v3997_v28 = vrot.slane %v3710_v24, 5  ;;  %v17957_v34 = vrot.slane %v10796_v39, 2  ;;  %v10915_v12 = vpop.f32.mrb[14].mxu1 }
 0x164   :  { %v2342_v29 = vadd.f32 %v2135_v47, %v1831_v43  ;;  %v4388_v15 = vrot.slane %v3079_v26, 6  ;;  %v17959_v18 = vrot.slane %v10734_v44, 7  ;;  %v10909_v9 = vadd.f32 %v5590_v30, %v5371_v8  ;;  %v10922_v30 = vpop.f32.mrb[15].mxu1 }
 0x165   :  { %v10904_v4 = vadd.f32 %v17957_v34, %v5372_v7  ;;  %v2974_v0 = vadd.f32 %v2738_v42, %v2343_v36  ;;  %v17961_v16 = vrot.slane %v10737_v6, 4  ;;  %v3369_v48 = vsel %vm3257_vm4, %v3366_v56, %v3368_v58 }
 0x166   :  { %v4780_v19 = vsel %vm4670_vm7, %v17959_v18, %v4779_v40  ;;  %17960 = vst [vmem:[#allocation21_spill] sm:$0xff] %v10909_v9  ;;  %v5076_v39 = vmul.f32 1.1979456e-08, %v10286_v31  ;;  %v2973_v24 = vadd.f32 %v2736_v51, %v2342_v29  ;;  %v17962_v26 = vrot.slane %v10743_v21, 5 }
 0x167   :  { %17958 = vst [vmem:[#allocation20_spill] sm:$0xff] %v10904_v4  ;;  %v3367_v13 = vsel %vm3257_vm4, %v17961_v16, %v3366_v56  ;;  %v4000_v25 = vsel %vm3888_vm5, %v3997_v28, %v3999_v57  ;;  %v5649_v62 = vrot.slane %v10879_v45, 2  ;;  %v3605_v47 = vadd.f32 %v3369_v48, %v2974_v0 }
 0x168   :  { %v3998_v44 = vsel %vm3888_vm5, %v17962_v26, %v3997_v28  ;;  %v17963_v7 = vrot.slane %v10737_v6, 6  ;;  %v4391_v43 = vsel %vm4279_vm6, %v4388_v15, %v4390_v53  ;;  %v3604_v42 = vadd.f32 %v3367_v13, %v2973_v24 }
 0x169   :  { %v4782_v31 = vsel %vm4670_vm7, %v4779_v40, %v4781_v5  ;;  %v5136_v21 = vadd.f32 %v10824_v60, %v10731_v22  ;;  %v17964_v51 = vrot.slane %v10868_v20, 1  ;;  %v10937_v45 = vmul.f32 %v10857_v33, %v10857_v33 }
 0x16a   :  { %v4389_v58 = vsel %vm4279_vm6, %v17963_v7, %v4388_v15  ;;  %v4236_v8 = vadd.f32 %v4000_v25, %v3605_v47  ;;  %v5647_v6 = vrot.slane %v10871_v1, 2  ;;  %v10941_v36 = vmul.f32 9.961262e-15, %v10428_v23 }
 0x16b   :  { %v5272_v57 = vsel %vm1544_vm1, %v1623_v61, %v17964_v51  ;;  %17965 = vst [vmem:[#allocation22_spill] sm:$0xff] %v10937_v45  ;;  %v4235_v53 = vadd.f32 %v3998_v44, %v3604_v42  ;;  %v5406_v56 = vadd.f32 %v5136_v21, %v1624_v63  ;;  %v10944_v5 = vmul.f32 1.1979456e-08, %v10428_v23  ;;  %v10975_v44 = vpop.f32.mrb[26].mxu0 }
 0x16c   :  { %v10947_v22 = vmul.f32 0.00026386508, %v10428_v23  ;;  %v10951_v60 = vmul.f32 %v10904_v4, %v10904_v4  ;;  %v4627_v61 = vadd.f32 %v4391_v43, %v4236_v8  ;;  %v17967_v40 = vrot.slane %v10597_v59, 2 }
 0x16d   :  { %v5650_v28 = vsel %vm2055_vm2, %v5647_v6, %v5649_v62  ;;  %v10959_v63 = vmul.f32 %v10909_v9, %v10909_v9  ;;  %v4626_v34 = vadd.f32 %v4389_v58, %v4235_v53  ;;  %v17592_v15 = vrot.slane %v10941_v36, 1 }
 0x16e   :  { %17966 = vst [vmem:[#allocation23_spill] sm:$0xff] %v10951_v60  ;;  %v5648_v1 = vsel %vm2055_vm2, %v17967_v40, %v5647_v6  ;;  %v5018_v18 = vadd.f32 %v4782_v31, %v4627_v61  ;;  %v17591_v0 = vrot.slane %v10944_v5, 2  ;;  %v10966_v16 = vmul.f32 0.10645077, %v10428_v23 }
 0x16f   :  { %17968 = vst [vmem:[#allocation24_spill] sm:$0xff] %v10959_v63  ;;  %v10961_v29 = vadd.f32 %v5648_v1, %v5406_v56  ;;  %v10969_v59 = vmul.f32 0.7865707, %v10428_v23  ;;  %v5017_v13 = vadd.f32 %v4780_v19, %v4626_v34  ;;  %v17590_v24 = vrot.slane %v10947_v22, 3 }
 0x170   :  { %v17588_v26 = vrot.slane %v10947_v22, 7  ;;  %v5138_v25 = vadd.f32 %v5076_v39, %v5018_v18  ;;  %v17589_v47 = vrot.slane %v10966_v16, 4  ;;  %v1286_v58 = vmul.f32 1.5170982e-22, %v10432_v38 }
 0x171   :  { %17969 = vst [vmem:[#allocation25_spill] sm:$0xff] %v10961_v29  ;;  %v17587_v7 = vrot.slane %v10969_v59, 5  ;;  %v5137_v43 = vadd.f32 %v5017_v13, %v10875_v32  ;;  %v1376_v19 = vmul.f32 9.961262e-15, %v10432_v38  ;;  %v1887_v42 = vmul.f32 1.1979456e-08, %v10432_v38 }
 0x172   :  { %v2402_v31 = vmul.f32 0.00026386508, %v10432_v38  ;;  %v17970_v21 = vmov %v17964_v51  ;;  %v17586_v8 = vrot.slane %v10966_v16, 6  ;;  %v3033_v39 = vmul.f32 0.10645077, %v10432_v38 }
 0x173   :  { %v5408_v51 = vadd.f32 %v17970_v21, %v5138_v25  ;;  %v3664_v6 = vmul.f32 0.7865707, %v10432_v38  ;;  %v5407_v53 = vadd.f32 %v5272_v57, %v5137_v43  ;;  %v1565_v56 = vrot.slane %v1376_v19, 1 }
 0x174   :  { %v2076_v61 = vrot.slane %v1887_v42, 2  ;;  %v2655_v40 = vrot.slane %v2402_v31, 3  ;;  %v3286_v1 = vrot.slane %v3033_v39, 4  ;;  %v4308_v18 = vrot.slane %v3033_v39, 6 }
 0x175   :  { %v10989_v32 = vadd.f32 %v5649_v62, %v5408_v51  ;;  %v3917_v34 = vrot.slane %v3664_v6, 5  ;;  %v10991_v13 = vadd.f32 %v5650_v28, %v5407_v53  ;;  %v1567_v20 = vsel %vm1544_vm1, %v1565_v56, %v17592_v15 }
 0x176   :  { %v2078_v25 = vsel %vm2055_vm2, %v2076_v61, %v17591_v0  ;;  %v2657_v38 = vsel %vm2626_vm3, %v2655_v40, %v17590_v24  ;;  %v1797_v57 = vadd.f32 %v1567_v20, %v1286_v58  ;;  %v3288_v28 = vsel %vm3257_vm4, %v3286_v1, %v17589_v47 }
 0x177   :  { %17971 = vst [vmem:[#allocation26_spill] sm:$0xff] %v10989_v32  ;;  %17972 = vst [vmem:[#allocation27_spill] sm:$0xff] %v10991_v13  ;;  %v3919_v43 = vsel %vm3888_vm5, %v3917_v34, %v17587_v7  ;;  %v4310_v42 = vsel %vm4279_vm6, %v4308_v18, %v17586_v8  ;;  %v4699_v21 = vrot.slane %v2402_v31, 7  ;;  %v11016_v51 = vmul.f32 9.961262e-15, %v10337_v52 }
 0x178   :  { %v2308_v58 = vadd.f32 %v2078_v25, %v1797_v57  ;;  %v11019_v39 = vmul.f32 1.1979456e-08, %v10337_v52  ;;  %v11022_v6 = vmul.f32 0.00026386508, %v10337_v52  ;;  %v11025_v53 = vmul.f32 0.10645077, %v10337_v52 }
 0x179   :  { %v11028_v56 = vmul.f32 1.5170982e-22, %v10428_v23  ;;  %v4701_v31 = vsel %vm4670_vm7, %v4699_v21, %v17588_v26  ;;  %v17596_v61 = vrot.slane %v11016_v51, 1  ;;  %v11035_v40 = vmul.f32 0.7865707, %v10337_v52 }
 0x17a   :  { %v2939_v1 = vadd.f32 %v2657_v38, %v2308_v58  ;;  %v17595_v34 = vrot.slane %v11019_v39, 2  ;;  %v17594_v18 = vrot.slane %v11022_v6, 3  ;;  %v17593_v20 = vrot.slane %v11025_v53, 4 }
 0x17b   :  { %v1322_v21 = vmul.f32 1.5170982e-22, %v10342_v11  ;;  %v1412_v62 = vmul.f32 9.961262e-15, %v10342_v11  ;;  %v1923_v48 = vmul.f32 1.1979456e-08, %v10342_v11 }
 0x17c   :  { %v3570_v19 = vadd.f32 %v3288_v28, %v2939_v1  ;;  %v2450_v38 = vmul.f32 0.00026386508, %v10342_v11  ;;  %v3081_v58 = vmul.f32 0.10645077, %v10342_v11  ;;  %v3712_v8 = vmul.f32 0.7865707, %v10342_v11 }
 0x17d   :  { %v11050_v7 = vmul.f32 0.00026386508, %v10450_v14  ;;  %v1625_v47 = vrot.slane %v1412_v62, 1  ;;  %v2136_v24 = vrot.slane %v1923_v48, 2  ;;  %v3035_v13 = vmul.f32 0.10645077, %v10460_v54 }
 0x17e   :  { %v4201_v26 = vadd.f32 %v3919_v43, %v3570_v19  ;;  %v2739_v0 = vrot.slane %v2450_v38, 3  ;;  %v3370_v15 = vrot.slane %v3081_v58, 4  ;;  %v4001_v57 = vrot.slane %v3712_v8, 5 }
 0x17f   :  { %v4392_v28 = vrot.slane %v3081_v58, 6  ;;  %v4783_v1 = vrot.slane %v2450_v38, 7  ;;  %v1627_v25 = vsel %vm1544_vm1, %v1625_v47, %v17596_v61  ;;  %v2138_v11 = vsel %vm2055_vm2, %v2136_v24, %v17595_v34 }
 0x180   :  { %v4592_v23 = vadd.f32 %v4310_v42, %v4201_v26  ;;  %v2741_v43 = vsel %vm2626_vm3, %v2739_v0, %v17594_v18  ;;  %v1833_v62 = vadd.f32 %v1627_v25, %v1322_v21  ;;  %v3372_v48 = vsel %vm3257_vm4, %v3370_v15, %v17593_v20  ;;  %v11070_v42 = vpop.f32.mrb[16].mxu1  ;;  %v11077_v15 = vpop.f32.mrb[27].mxu0 }
 0x181   :  { %v17973_v8 = vrot.slane %v11035_v40, 5  ;;  %v17974_v19 = vrot.slane %v11025_v53, 6  ;;  %17975 = vst [vmem:[#allocation28_spill] sm:$0xff] %v11070_v42  ;;  %v17976_v0 = vrot.slane %v11022_v6, 7  ;;  %v3036_v21 = vmul.f32 0.10645077, %v10450_v14 }
 0x182   :  { %v4983_v38 = vadd.f32 %v4701_v31, %v4592_v23  ;;  %17977 = vst [vmem:[#allocation29_spill] sm:$0xff] %v11077_v15  ;;  %v2344_v58 = vadd.f32 %v2138_v11, %v1833_v62  ;;  %v11083_v18 = vmul.f32 9.961262e-15, %v10450_v14  ;;  %v11086_v31 = vmul.f32 1.5170982e-22, %v10450_v14 }
 0x183   :  { %v4003_v26 = vsel %vm3888_vm5, %v4001_v57, %v17973_v8  ;;  %v4394_v47 = vsel %vm4279_vm6, %v4392_v28, %v17974_v19  ;;  %v4785_v25 = vsel %vm4670_vm7, %v4783_v1, %v17976_v0  ;;  %v2660_v57 = vrot.slane %v11050_v7, 3 }
 0x184   :  { %v3667_v8 = vmul.f32 0.7865707, %v10450_v14  ;;  %v4704_v28 = vrot.slane %v11050_v7, 7  ;;  %v3291_v19 = vrot.slane %v3036_v21, 4  ;;  %v4313_v20 = vrot.slane %v3036_v21, 6 }
 0x185   :  { %v2975_v23 = vadd.f32 %v2741_v43, %v2344_v58  ;;  %v1288_v0 = vmul.f32 1.5170982e-22, %v10460_v54  ;;  %v1378_v11 = vmul.f32 9.961262e-15, %v10460_v54  ;;  %v11093_v7 = vmul.f32 1.1979456e-08, %v10460_v54 }
 0x186   :  { %v3922_v1 = vrot.slane %v3667_v8, 5  ;;  %v2404_v21 = vmul.f32 0.00026386508, %v10460_v54  ;;  %v3666_v43 = vmul.f32 0.7865707, %v10460_v54  ;;  %v5103_v63 = vadd.f32 %v4983_v38, %v10944_v5 }
 0x187   :  { %v3606_v61 = vadd.f32 %v3372_v48, %v2975_v23  ;;  %v1568_v24 = vrot.slane %v1378_v11, 1  ;;  %v2079_v58 = vrot.slane %v11093_v7, 2  ;;  %v17978_v34 = vrot.slane %v10941_v36, 1 }
 0x188   :  { %v2658_v8 = vrot.slane %v2404_v21, 3  ;;  %v4702_v32 = vrot.slane %v2404_v21, 7  ;;  %v3289_v4 = vrot.slane %v3035_v13, 4  ;;  %v17979_v23 = vrot.slane %v10944_v5, 2 }
 0x189   :  { %v4237_v62 = vadd.f32 %v4003_v26, %v3606_v61  ;;  %v1569_v60 = vsel %vm1544_vm1, %v17978_v34, %v1568_v24  ;;  %v1799_v9 = vadd.f32 %v1568_v24, %v1288_v0  ;;  %v17980_v54 = vrot.slane %v10947_v22, 3 }
 0x18a   :  { %v1798_v48 = vadd.f32 %v1569_v60, %v11028_v56  ;;  %v2080_v11 = vsel %vm2055_vm2, %v17979_v23, %v2079_v58  ;;  %v2661_v21 = vsel %vm2626_vm3, %v2658_v8, %v2660_v57  ;;  %v17981_v36 = vrot.slane %v10966_v16, 4 }
 0x18b   :  { %v2659_v29 = vsel %vm2626_vm3, %v17980_v54, %v2658_v8  ;;  %v4628_v38 = vadd.f32 %v4394_v47, %v4237_v62  ;;  %v2310_v61 = vadd.f32 %v2079_v58, %v1799_v9  ;;  %v3292_v26 = vsel %vm3257_vm4, %v3289_v4, %v3291_v19  ;;  %v11124_v62 = vpop.f32.mrb[17].mxu1 }
 0x18c   :  { %v3290_v34 = vsel %vm3257_vm4, %v17981_v36, %v3289_v4  ;;  %v2309_v45 = vadd.f32 %v2080_v11, %v1798_v48  ;;  %v3920_v33 = vrot.slane %v3666_v43, 5  ;;  %v4311_v15 = vrot.slane %v3035_v13, 6  ;;  %v11133_v43 = vpop.f32.mrb[18].mxu1 }
 0x18d   :  { %v17982_v5 = vrot.slane %v10947_v22, 7  ;;  %v11118_v42 = vadd.f32 %v4785_v25, %v4628_v38  ;;  %v2941_v54 = vadd.f32 %v2661_v21, %v2310_v61  ;;  %v4705_v57 = vsel %vm4670_vm7, %v4702_v32, %v4704_v28  ;;  %v11136_v48 = vpop.f32.mrb[19].mxu1 }
 0x18e   :  { %v17983_v9 = vrot.slane %v11083_v18, 1  ;;  %v2940_v58 = vadd.f32 %v2659_v29, %v2309_v45  ;;  %v17984_v4 = vrot.slane %v10969_v59, 5  ;;  %v3923_v22 = vsel %vm3888_vm5, %v3920_v33, %v3922_v1 }
 0x18f   :  { %v4703_v23 = vsel %vm4670_vm7, %v17982_v5, %v4702_v32  ;;  %v17985_v19 = vrot.slane %v10966_v16, 6  ;;  %v3572_v32 = vadd.f32 %v3292_v26, %v2941_v54  ;;  %v4314_v28 = vsel %vm4279_vm6, %v4311_v15, %v4313_v20 }
 0x190   :  { %v5250_v47 = vsel %vm1544_vm1, %v1568_v24, %v17983_v9  ;;  %v3921_v13 = vsel %vm3888_vm5, %v17984_v4, %v3920_v33  ;;  %v5373_v8 = vadd.f32 %v5103_v63, %v1569_v60  ;;  %v5592_v24 = vrot.slane %v1288_v0, 2  ;;  %v11149_v63 = vpop.f32.mrb[28].mxu0 }
 0x191   :  { %v4312_v25 = vsel %vm4279_vm6, %v17985_v19, %v4311_v15  ;;  %v3571_v45 = vadd.f32 %v3290_v34, %v2940_v58  ;;  %v11139_v29 = vmul.f32 0.00026386508, %v10470_v10  ;;  %v3084_v59 = vmul.f32 0.10645077, %v10470_v10 }
 0x192   :  { %v3715_v33 = vmul.f32 0.7865707, %v10470_v10  ;;  %v4203_v16 = vadd.f32 %v3923_v22, %v3572_v32  ;;  %v17986_v1 = vrot.slane %v11028_v56, 2  ;;  %v17987_v21 = vrot.slane %v11086_v31, 2 }
 0x193   :  { %v11152_v20 = vmul.f32 1.5170982e-22, %v10337_v52  ;;  %v5065_v15 = vmul.f32 1.1979456e-08, %v10450_v14  ;;  %v4202_v0 = vadd.f32 %v3921_v13, %v3571_v45  ;;  %v2744_v36 = vrot.slane %v11139_v29, 3 }
 0x194   :  { %v5593_v11 = vsel %vm2055_vm2, %v17986_v1, %v5592_v24  ;;  %v5595_v60 = vsel %vm2055_vm2, %v5592_v24, %v17987_v21  ;;  %v4594_v61 = vadd.f32 %v4314_v28, %v4203_v16  ;;  %v3375_v56 = vrot.slane %v3084_v59, 4 }
 0x195   :  { %v11155_v38 = vadd.f32 %v5593_v11, %v5373_v8  ;;  %v4006_v34 = vrot.slane %v3715_v33, 5  ;;  %v4593_v26 = vadd.f32 %v4312_v25, %v4202_v0  ;;  %v4397_v5 = vrot.slane %v3084_v59, 6 }
 0x196   :  { %v4788_v54 = vrot.slane %v11139_v29, 7  ;;  %v11160_v9 = vmul.f32 9.961262e-15, %v10470_v10  ;;  %v4985_v58 = vadd.f32 %v4705_v57, %v4594_v61  ;;  %v1324_v52 = vmul.f32 1.5170982e-22, %v10478_v2 }
 0x197   :  { %17988 = vst [vmem:[#allocation30_spill] sm:$0xff] %v11155_v38  ;;  %v1414_v14 = vmul.f32 9.961262e-15, %v10478_v2  ;;  %v11165_v4 = vmul.f32 1.1979456e-08, %v10478_v2  ;;  %v4984_v13 = vadd.f32 %v4703_v23, %v4593_v26  ;;  %v17989_v23 = vrot.slane %v11083_v18, 1 }
 0x198   :  { %v5273_v22 = vrot.slane %v11160_v9, 1  ;;  %v11169_v19 = vmul.f32 1.5170982e-22, %v10470_v10  ;;  %v2452_v25 = vmul.f32 0.00026386508, %v10478_v2  ;;  %v5105_v32 = vadd.f32 %v5065_v15, %v4985_v58 }
 0x199   :  { %v1628_v28 = vrot.slane %v1414_v14, 1  ;;  %v2139_v8 = vrot.slane %v11165_v4, 2  ;;  %v3083_v57 = vmul.f32 0.10645077, %v10478_v2  ;;  %v5104_v24 = vadd.f32 %v4984_v13, %v11093_v7 }
 0x19a   :  { %v2742_v45 = vrot.slane %v2452_v25, 3  ;;  %v3714_v29 = vmul.f32 0.7865707, %v10478_v2  ;;  %v4786_v59 = vrot.slane %v2452_v25, 7  ;;  %v5375_v33 = vadd.f32 %v17989_v23, %v5105_v32 }
 0x19b   :  { %v17990_v16 = vrot.slane %v11016_v51, 1  ;;  %v1835_v11 = vadd.f32 %v1628_v28, %v1324_v52  ;;  %v17991_v21 = vrot.slane %v11019_v39, 2  ;;  %v5374_v0 = vadd.f32 %v5250_v47, %v5104_v24 }
 0x19c   :  { %v17992_v7 = vrot.slane %v11022_v6, 3  ;;  %v2745_v26 = vsel %vm2626_vm3, %v2742_v45, %v2744_v36  ;;  %v17993_v18 = vrot.slane %v11086_v31, 2  ;;  %v3373_v14 = vrot.slane %v3083_v57, 4 }
 0x19d   :  { %v1629_v1 = vsel %vm1544_vm1, %v17990_v16, %v1628_v28  ;;  %v2140_v15 = vsel %vm2055_vm2, %v17991_v21, %v2139_v8  ;;  %v2346_v51 = vadd.f32 %v2139_v8, %v1835_v11  ;;  %v4004_v13 = vrot.slane %v3714_v29, 5 }
 0x19e   :  { %v1834_v61 = vadd.f32 %v1629_v1, %v11152_v20  ;;  %v2743_v2 = vsel %vm2626_vm3, %v17992_v7, %v2742_v45  ;;  %v11191_v58 = vadd.f32 %v17993_v18, %v5375_v33  ;;  %v11193_v25 = vadd.f32 %v5595_v60, %v5374_v0 }
 0x19f   :  { %v4395_v23 = vrot.slane %v3083_v57, 6  ;;  %v17996_v47 = vrot.slane %v11022_v6, 7  ;;  %v5651_v16 = vrot.slane %v11152_v20, 2  ;;  %v2977_v21 = vadd.f32 %v2745_v26, %v2346_v51 }
 0x1a0   :  { %17994 = vst [vmem:[#allocation31_spill] sm:$0xff] %v11191_v58  ;;  %17995 = vst [vmem:[#allocation32_spill] sm:$0xff] %v11193_v25  ;;  %v2345_v32 = vadd.f32 %v2140_v15, %v1834_v61  ;;  %v17997_v36 = vrot.slane %v11025_v53, 4  ;;  %v3376_v45 = vsel %vm3257_vm4, %v3373_v14, %v3375_v56  ;;  %v5654_v8 = vrot.slane %v11169_v19, 2 }
 0x1a1   :  { %v4787_v24 = vsel %vm4670_vm7, %v17996_v47, %v4786_v59  ;;  %v17998_v60 = vrot.slane %v11035_v40, 5  ;;  %v4007_v6 = vsel %vm3888_vm5, %v4004_v13, %v4006_v34  ;;  %v3608_v33 = vadd.f32 %v3376_v45, %v2977_v21 }
 0x1a2   :  { %v3374_v31 = vsel %vm3257_vm4, %v17997_v36, %v3373_v14  ;;  %v2976_v29 = vadd.f32 %v2743_v2, %v2345_v32  ;;  %v17999_v11 = vrot.slane %v11025_v53, 6  ;;  %v4398_v15 = vsel %vm4279_vm6, %v4395_v23, %v4397_v5 }
 0x1a3   :  { %v4005_v57 = vsel %vm3888_vm5, %v17998_v60, %v4004_v13  ;;  %v4789_v0 = vsel %vm4670_vm7, %v4786_v59, %v4788_v54  ;;  %v5139_v56 = vadd.f32 %v11118_v42, %v11019_v39  ;;  %v5274_v40 = vsel %vm1544_vm1, %v1628_v28, %v5273_v22 }
 0x1a4   :  { %v4396_v20 = vsel %vm4279_vm6, %v17999_v11, %v4395_v23  ;;  %v3607_v61 = vadd.f32 %v3374_v31, %v2976_v29  ;;  %v5652_v19 = vrot.slane %v1324_v52, 2  ;;  %v4239_v7 = vadd.f32 %v4007_v6, %v3608_v33 }
 0x1a5   :  { %v11219_v34 = vmul.f32 9.961262e-15, %v10506_v35  ;;  %v11222_v53 = vmul.f32 1.1979456e-08, %v10506_v35  ;;  %v5409_v5 = vadd.f32 %v5139_v56, %v1629_v1  ;;  %v5077_v39 = vmul.f32 1.1979456e-08, %v10470_v10 }
 0x1a6   :  { %v4238_v2 = vadd.f32 %v4005_v57, %v3607_v61  ;;  %v5653_v54 = vsel %vm2055_vm2, %v5651_v16, %v5652_v19  ;;  %v5655_v59 = vsel %vm2055_vm2, %v5652_v19, %v5654_v8  ;;  %v4630_v42 = vadd.f32 %v4398_v15, %v4239_v7 }
 0x1a7   :  { %v11228_v26 = vmul.f32 0.00026386508, %v10506_v35  ;;  %v11230_v28 = vadd.f32 %v5653_v54, %v5409_v5  ;;  %v11233_v18 = vmul.f32 0.10645077, %v10506_v35  ;;  %v11236_v51 = vmul.f32 0.7865707, %v10506_v35 }
 0x1a8   :  { %v4629_v52 = vadd.f32 %v4396_v20, %v4238_v2  ;;  %v5021_v1 = vadd.f32 %v4789_v0, %v4630_v42  ;;  %v17624_v14 = vrot.slane %v11219_v34, 1  ;;  %v17623_v13 = vrot.slane %v11222_v53, 2  ;;  %v11279_v42 = vpop.f32.mrb[20].mxu1 }
 0x1a9   :  { %18000 = vst [vmem:[#allocation33_spill] sm:$0xff] %v11230_v28  ;;  %v17615_v10 = vrot.slane %v11228_v26, 3  ;;  %v17614_v23 = vrot.slane %v11233_v18, 4  ;;  %v17611_v47 = vrot.slane %v11228_v26, 7  ;;  %v17613_v21 = vrot.slane %v11236_v51, 5 }
 0x1aa   :  { %v5020_v32 = vadd.f32 %v4787_v24, %v4629_v52  ;;  %v5141_v16 = vadd.f32 %v5077_v39, %v5021_v1  ;;  %v17612_v36 = vrot.slane %v11233_v18, 6  ;;  %v1379_v31 = vmul.f32 9.961262e-15, %v10590_v46 }
 0x1ab   :  { %v1890_v29 = vmul.f32 1.1979456e-08, %v10590_v46  ;;  %v2406_v60 = vmul.f32 0.00026386508, %v10590_v46  ;;  %v3037_v24 = vmul.f32 0.10645077, %v10590_v46 }
 0x1ac   :  { %v5140_v45 = vadd.f32 %v5020_v32, %v11165_v4  ;;  %v5411_v57 = vadd.f32 %v5273_v22, %v5141_v16  ;;  %v1289_v6 = vmul.f32 1.5170982e-22, %v10590_v46  ;;  %v1570_v33 = vrot.slane %v1379_v31, 1 }
 0x1ad   :  { %v3668_v11 = vmul.f32 0.7865707, %v10590_v46  ;;  %v2081_v15 = vrot.slane %v1890_v29, 2  ;;  %v2662_v0 = vrot.slane %v2406_v60, 3  ;;  %v3293_v61 = vrot.slane %v3037_v24, 4 }
 0x1ae   :  { %v5410_v20 = vadd.f32 %v5274_v40, %v5140_v45  ;;  %v11254_v56 = vadd.f32 %v5654_v8, %v5411_v57  ;;  %v1572_v4 = vsel %vm1544_vm1, %v1570_v33, %v17624_v14  ;;  %v4315_v7 = vrot.slane %v3037_v24, 6 }
 0x1af   :  { %v3924_v19 = vrot.slane %v3668_v11, 5  ;;  %v1800_v9 = vadd.f32 %v1572_v4, %v1289_v6  ;;  %v2083_v22 = vsel %vm2055_vm2, %v2081_v15, %v17623_v13  ;;  %v2664_v46 = vsel %vm2626_vm3, %v2662_v0, %v17615_v10 }
 0x1b0   :  { %18001 = vst [vmem:[#allocation34_spill] sm:$0xff] %v11254_v56  ;;  %v11259_v2 = vadd.f32 %v5655_v59, %v5410_v20  ;;  %v3295_v8 = vsel %vm3257_vm4, %v3293_v61, %v17614_v23  ;;  %v4317_v5 = vsel %vm4279_vm6, %v4315_v7, %v17612_v36  ;;  %v4706_v59 = vrot.slane %v2406_v60, 7  ;;  %v11299_v60 = vpop.f32.mrb[29].mxu0 }
 0x1b1   :  { %v3926_v40 = vsel %vm3888_vm5, %v3924_v19, %v17613_v21  ;;  %v2311_v54 = vadd.f32 %v2083_v22, %v1800_v9  ;;  %v11277_v39 = vmul.f32 9.961262e-15, %v10620_v17  ;;  %v11282_v52 = vmul.f32 1.1979456e-08, %v10620_v17  ;;  %18003 = vst [vmem:[#allocation36_spill] sm:$0xff] %v11299_v60 }
 0x1b2   :  { %18002 = vst [vmem:[#allocation35_spill] sm:$0xff] %v11259_v2  ;;  %v11285_v1 = vmul.f32 0.00026386508, %v10620_v17  ;;  %v11288_v32 = vmul.f32 0.10645077, %v10620_v17  ;;  %v4708_v45 = vsel %vm4670_vm7, %v4706_v59, %v17611_v47 }
 0x1b3   :  { %v11291_v16 = vmul.f32 1.5170982e-22, %v10506_v35  ;;  %v2942_v31 = vadd.f32 %v2664_v46, %v2311_v54  ;;  %v11297_v29 = vmul.f32 0.7865707, %v10620_v17  ;;  %v17622_v24 = vrot.slane %v11277_v39, 1 }
 0x1b4   :  { %v17621_v57 = vrot.slane %v11282_v52, 2  ;;  %v17620_v6 = vrot.slane %v11285_v1, 3  ;;  %v17618_v33 = vrot.slane %v11288_v32, 4  ;;  %v17616_v20 = vrot.slane %v11288_v32, 6 }
 0x1b5   :  { %v3573_v35 = vadd.f32 %v3295_v8, %v2942_v31  ;;  %v17617_v11 = vrot.slane %v11297_v29, 5  ;;  %v17619_v15 = vrot.slane %v11285_v1, 7  ;;  %v1325_v0 = vmul.f32 1.5170982e-22, %v10624_v3 }
 0x1b6   :  { %v1415_v61 = vmul.f32 9.961262e-15, %v10624_v3  ;;  %v1926_v4 = vmul.f32 1.1979456e-08, %v10624_v3  ;;  %v2454_v7 = vmul.f32 0.00026386508, %v10624_v3 }
 0x1b7   :  { %v4204_v19 = vadd.f32 %v3926_v40, %v3573_v35  ;;  %v3085_v9 = vmul.f32 0.10645077, %v10624_v3  ;;  %v3716_v22 = vmul.f32 0.7865707, %v10624_v3  ;;  %v11315_v54 = vmul.f32 0.00026386508, %v10656_v37 }
 0x1b8   :  { %v1630_v46 = vrot.slane %v1415_v61, 1  ;;  %v2141_v8 = vrot.slane %v1926_v4, 2  ;;  %v11318_v59 = vmul.f32 0.10645077, %v10656_v37  ;;  %v2746_v47 = vrot.slane %v2454_v7, 3 }
 0x1b9   :  { %v4595_v31 = vadd.f32 %v4317_v5, %v4204_v19  ;;  %v3377_v36 = vrot.slane %v3085_v9, 4  ;;  %v4008_v21 = vrot.slane %v3716_v22, 5  ;;  %v4399_v35 = vrot.slane %v3085_v9, 6 }
 0x1ba   :  { %v1632_v40 = vsel %vm1544_vm1, %v1630_v46, %v17622_v24  ;;  %v2143_v3 = vsel %vm2055_vm2, %v2141_v8, %v17621_v57  ;;  %v4790_v61 = vrot.slane %v2454_v7, 7  ;;  %v2748_v10 = vsel %vm2626_vm3, %v2746_v47, %v17620_v6  ;;  %v11345_v46 = vpop.f32.mrb[21].mxu1 }
 0x1bb   :  { %v4986_v4 = vadd.f32 %v4708_v45, %v4595_v31  ;;  %v1836_v23 = vadd.f32 %v1632_v40, %v1325_v0  ;;  %v3379_v5 = vsel %vm3257_vm4, %v3377_v36, %v17618_v33  ;;  %v5596_v19 = vrot.slane %v11291_v16, 2  ;;  %18004 = vst [vmem:[#allocation37_spill] sm:$0xff] %v11345_v46 }
 0x1bc   :  { %v4010_v22 = vsel %vm3888_vm5, %v4008_v21, %v17617_v11  ;;  %v4401_v7 = vsel %vm4279_vm6, %v4399_v35, %v17616_v20  ;;  %v4792_v45 = vsel %vm4670_vm7, %v4790_v61, %v17619_v15  ;;  %v2667_v47 = vrot.slane %v11315_v54, 3  ;;  %v11353_v35 = vpop.f32.mrb[22].mxu1  ;;  %v11366_v15 = vpop.f32.mrb[30].mxu0 }
 0x1bd   :  { %v2347_v0 = vadd.f32 %v2143_v3, %v1836_v23  ;;  %v3298_v9 = vrot.slane %v11318_v59, 4  ;;  %v3671_v36 = vmul.f32 0.7865707, %v10656_v37  ;;  %v4320_v8 = vrot.slane %v11318_v59, 6  ;;  %18005 = vst [vmem:[#allocation38_spill] sm:$0xff] %v11353_v35  ;;  %v11359_v11 = vpop.f32.mrb[23].mxu1 }
 0x1be   :  { %v4711_v21 = vrot.slane %v11315_v54, 7  ;;  %v11350_v31 = vmul.f32 9.961262e-15, %v10656_v37  ;;  %v5106_v40 = vadd.f32 %v4986_v4, %v11222_v53  ;;  %v11356_v61 = vmul.f32 1.5170982e-22, %v10656_v37  ;;  %18006 = vst [vmem:[#allocation39_spill] sm:$0xff] %v11359_v11 }
 0x1bf   :  { %v2978_v23 = vadd.f32 %v2748_v10, %v2347_v0  ;;  %v3929_v3 = vrot.slane %v3671_v36, 5  ;;  %v1291_v20 = vmul.f32 1.5170982e-22, %v10701_v55  ;;  %v1381_v54 = vmul.f32 9.961262e-15, %v10701_v55  ;;  %18007 = vst [vmem:[#allocation40_spill] sm:$0xff] %v11366_v15 }
 0x1c0   :  { %v11364_v33 = vmul.f32 1.1979456e-08, %v10701_v55  ;;  %v2408_v0 = vmul.f32 0.00026386508, %v10701_v55  ;;  %v3039_v36 = vmul.f32 0.10645077, %v10701_v55 }
 0x1c1   :  { %v3609_v4 = vadd.f32 %v3379_v5, %v2978_v23  ;;  %v1573_v6 = vrot.slane %v1381_v54, 1  ;;  %v3670_v24 = vmul.f32 0.7865707, %v10701_v55  ;;  %v5597_v59 = vrot.slane %v1291_v20, 2 }
 0x1c2   :  { %v2084_v57 = vrot.slane %v11364_v33, 2  ;;  %v2665_v14 = vrot.slane %v2408_v0, 3  ;;  %v3296_v2 = vrot.slane %v3039_v36, 4  ;;  %v4318_v11 = vrot.slane %v3039_v36, 6 }
 0x1c3   :  { %v4240_v13 = vadd.f32 %v4010_v22, %v3609_v4  ;;  %v18008_v35 = vrot.slane %v11219_v34, 1  ;;  %v1802_v23 = vadd.f32 %v1573_v6, %v1291_v20  ;;  %v18009_v10 = vrot.slane %v11222_v53, 2 }
 0x1c4   :  { %v3927_v46 = vrot.slane %v3670_v24, 5  ;;  %v18010_v55 = vrot.slane %v11228_v26, 3  ;;  %v2668_v4 = vsel %vm2626_vm3, %v2665_v14, %v2667_v47  ;;  %v18011_v34 = vrot.slane %v11233_v18, 4 }
 0x1c5   :  { %v1574_v5 = vsel %vm1544_vm1, %v18008_v35, %v1573_v6  ;;  %v2085_v15 = vsel %vm2055_vm2, %v18009_v10, %v2084_v57  ;;  %v4631_v54 = vadd.f32 %v4401_v7, %v4240_v13  ;;  %v2313_v36 = vadd.f32 %v2084_v57, %v1802_v23 }
 0x1c6   :  { %v1801_v60 = vadd.f32 %v1574_v5, %v11291_v16  ;;  %v2666_v22 = vsel %vm2626_vm3, %v18010_v55, %v2665_v14  ;;  %v3297_v35 = vsel %vm3257_vm4, %v18011_v34, %v3296_v2  ;;  %v3299_v20 = vsel %vm3257_vm4, %v3296_v2, %v3298_v9 }
 0x1c7   :  { %v18012_v53 = vrot.slane %v11236_v51, 5  ;;  %v11391_v13 = vadd.f32 %v4792_v45, %v4631_v54  ;;  %v3930_v7 = vsel %vm3888_vm5, %v3927_v46, %v3929_v3  ;;  %v18013_v10 = vrot.slane %v11233_v18, 6 }
 0x1c8   :  { %v2312_v16 = vadd.f32 %v2085_v15, %v1801_v60  ;;  %v2944_v57 = vadd.f32 %v2668_v4, %v2313_v36  ;;  %v4321_v47 = vsel %vm4279_vm6, %v4318_v11, %v4320_v8  ;;  %v4709_v23 = vrot.slane %v2408_v0, 7 }
 0x1c9   :  { %v3928_v24 = vsel %vm3888_vm5, %v18012_v53, %v3927_v46  ;;  %v4319_v14 = vsel %vm4279_vm6, %v18013_v10, %v4318_v11  ;;  %v18014_v55 = vrot.slane %v11350_v31, 1  ;;  %v5376_v9 = vadd.f32 %v5106_v40, %v1574_v5 }
 0x1ca   :  { %v2943_v51 = vadd.f32 %v2666_v22, %v2312_v16  ;;  %v5598_v45 = vsel %vm2055_vm2, %v5596_v19, %v5597_v59  ;;  %v18015_v60 = vrot.slane %v11356_v61, 2  ;;  %v3575_v46 = vadd.f32 %v3299_v20, %v2944_v57  ;;  %v18018_v16 = vld [vmem:[#allocation17_spill] sm:$0xff] }
 0x1cb   :  { %v5252_v2 = vsel %vm1544_vm1, %v1573_v6, %v18014_v55  ;;  %v18016_v18 = vrot.slane %v11228_v26, 7  ;;  %v4712_v11 = vsel %vm4670_vm7, %v4709_v23, %v4711_v21  ;;  %v11410_v8 = vmul.f32 0.00026386508, %v10750_v49 }
 0x1cc   :  { %v5600_v15 = vsel %vm2055_vm2, %v5597_v59, %v18015_v60  ;;  %v3574_v0 = vadd.f32 %v3297_v35, %v2943_v51  ;;  %v11412_v6 = vadd.f32 %v5598_v45, %v5376_v9  ;;  %v3088_v40 = vmul.f32 0.10645077, %v10750_v49 }
 0x1cd   :  { %v4710_v3 = vsel %vm4670_vm7, %v18016_v18, %v4709_v23  ;;  %v3719_v19 = vmul.f32 0.7865707, %v10750_v49  ;;  %v11417_v5 = vmul.f32 1.5170982e-22, %v10620_v17  ;;  %v5066_v59 = vmul.f32 1.1979456e-08, %v10656_v37 }
 0x1ce   :  { %18017 = vst [vmem:[#allocation41_spill] sm:$0xff] %v11412_v6  ;;  %v4206_v26 = vadd.f32 %v3930_v7, %v3575_v46  ;;  %v4205_v54 = vadd.f32 %v3928_v24, %v3574_v0  ;;  %v2751_v22 = vrot.slane %v11410_v8, 3  ;;  %v3382_v21 = vrot.slane %v3088_v40, 4 }
 0x1cf   :  { %v4795_v4 = vrot.slane %v11410_v8, 7  ;;  %v4013_v34 = vrot.slane %v3719_v19, 5  ;;  %v4404_v35 = vrot.slane %v3088_v40, 6  ;;  %v11423_v20 = vmul.f32 9.961262e-15, %v10750_v49  ;;  %v11445_v19 = vpop.f32.mrb[24].mxu1 }
 0x1d0   :  { %v4597_v36 = vadd.f32 %v4321_v47, %v4206_v26  ;;  %v4596_v53 = vadd.f32 %v4319_v14, %v4205_v54  ;;  %v1327_v10 = vmul.f32 1.5170982e-22, %v18018_v16  ;;  %v1417_v17 = vmul.f32 9.961262e-15, %v18018_v16 }
 0x1d1   :  { %v11428_v37 = vmul.f32 1.1979456e-08, %v18018_v16  ;;  %v11432_v57 = vmul.f32 1.5170982e-22, %v10750_v49  ;;  %v2456_v47 = vmul.f32 0.00026386508, %v18018_v16 }
 0x1d2   :  { %v4988_v24 = vadd.f32 %v4712_v11, %v4597_v36  ;;  %v4987_v23 = vadd.f32 %v4710_v3, %v4596_v53  ;;  %v1633_v55 = vrot.slane %v1417_v17, 1  ;;  %v3087_v14 = vmul.f32 0.10645077, %v18018_v16  ;;  %v11454_v53 = vpop.f32.mrb[31].mxu0 }
 0x1d3   :  { %v2144_v51 = vrot.slane %v11428_v37, 2  ;;  %v2749_v45 = vrot.slane %v2456_v47, 3  ;;  %v3718_v60 = vmul.f32 0.7865707, %v18018_v16  ;;  %v4793_v46 = vrot.slane %v2456_v47, 7  ;;  %18023 = vst [vmem:[#allocation17_spill] sm:$0xff] %v11454_v53 }
 0x1d4   :  { %v5108_v9 = vadd.f32 %v5066_v59, %v4988_v24  ;;  %v5107_v18 = vadd.f32 %v4987_v23, %v11364_v33  ;;  %v18019_v11 = vrot.slane %v11277_v39, 1  ;;  %v1838_v0 = vadd.f32 %v1633_v55, %v1327_v10 }
 0x1d5   :  { %v18020_v40 = vrot.slane %v11282_v52, 2  ;;  %v18021_v26 = vrot.slane %v11350_v31, 1  ;;  %v18022_v36 = vrot.slane %v11285_v1, 3  ;;  %v2752_v39 = vsel %vm2626_vm3, %v2749_v45, %v2751_v22 }
 0x1d6   :  { %v1634_v8 = vsel %vm1544_vm1, %v18019_v11, %v1633_v55  ;;  %v5377_v16 = vadd.f32 %v5252_v2, %v5107_v18  ;;  %v2349_v17 = vadd.f32 %v2144_v51, %v1838_v0  ;;  %v3380_v24 = vrot.slane %v3087_v14, 4 }
 0x1d7   :  { %v2145_v3 = vsel %vm2055_vm2, %v18020_v40, %v2144_v51  ;;  %v5378_v59 = vadd.f32 %v18021_v26, %v5108_v9  ;;  %v1837_v54 = vadd.f32 %v1634_v8, %v11417_v5  ;;  %v2750_v33 = vsel %vm2626_vm3, %v18022_v36, %v2749_v45 }
 0x1d8   :  { %v4011_v47 = vrot.slane %v3718_v60, 5  ;;  %v18024_v23 = vrot.slane %v11356_v61, 2  ;;  %v4402_v9 = vrot.slane %v3087_v14, 6  ;;  %v18026_v40 = vrot.slane %v11285_v1, 7 }
 0x1d9   :  { %v2348_v31 = vadd.f32 %v2145_v3, %v1837_v54  ;;  %v11463_v7 = vadd.f32 %v5600_v15, %v5377_v16  ;;  %v2980_v36 = vadd.f32 %v2752_v39, %v2349_v17  ;;  %v18028_v22 = vrot.slane %v11288_v32, 4 }
 0x1da   :  { %v11458_v11 = vadd.f32 %v18024_v23, %v5378_v59  ;;  %v4794_v26 = vsel %vm4670_vm7, %v18026_v40, %v4793_v46  ;;  %v3383_v51 = vsel %vm3257_vm4, %v3380_v24, %v3382_v21  ;;  %v5656_v45 = vrot.slane %v11417_v5, 2 }
 0x1db   :  { %18027 = vst [vmem:[#allocation43_spill] sm:$0xff] %v11463_v7  ;;  %v3381_v2 = vsel %vm3257_vm4, %v18028_v22, %v3380_v24  ;;  %v2979_v61 = vadd.f32 %v2750_v33, %v2348_v31  ;;  %v18029_v60 = vrot.slane %v11297_v29, 5  ;;  %v4014_v1 = vsel %vm3888_vm5, %v4011_v47, %v4013_v34 }
 0x1dc   :  { %18025 = vst [vmem:[#allocation42_spill] sm:$0xff] %v11458_v11  ;;  %v5659_v18 = vrot.slane %v11432_v57, 2  ;;  %v3611_v15 = vadd.f32 %v3383_v51, %v2980_v36  ;;  %v18030_v0 = vrot.slane %v11288_v32, 6  ;;  %v4405_v59 = vsel %vm4279_vm6, %v4402_v9, %v4404_v35  ;;  %v18032_v57 = vld [vmem:[#allocation18_spill] sm:$0xff] }
 0x1dd   :  { %v4012_v14 = vsel %vm3888_vm5, %v18029_v60, %v4011_v47  ;;  %v3610_v54 = vadd.f32 %v3381_v2, %v2979_v61  ;;  %v4796_v21 = vsel %vm4670_vm7, %v4793_v46, %v4795_v4  ;;  %v5142_v5 = vadd.f32 %v11391_v13, %v11282_v52 }
 0x1de   :  { %v4403_v3 = vsel %vm4279_vm6, %v18030_v0, %v4402_v9  ;;  %v18031_v29 = vrot.slane %v11423_v20, 1  ;;  %v4242_v34 = vadd.f32 %v4014_v1, %v3611_v15  ;;  %v5657_v39 = vrot.slane %v1327_v10, 2 }
 0x1df   :  { %v11486_v16 = vmul.f32 9.961262e-15, %v18032_v57  ;;  %v4241_v32 = vadd.f32 %v4012_v14, %v3610_v54  ;;  %v5412_v17 = vadd.f32 %v5142_v5, %v1634_v8  ;;  %v11489_v24 = vmul.f32 1.1979456e-08, %v18032_v57 }
 0x1e0   :  { %v5276_v33 = vsel %vm1544_vm1, %v1633_v55, %v18031_v29  ;;  %v11492_v35 = vmul.f32 0.00026386508, %v18032_v57  ;;  %v5078_v4 = vmul.f32 1.1979456e-08, %v10750_v49  ;;  %v4633_v52 = vadd.f32 %v4405_v59, %v4242_v34 }
 0x1e1   :  { %v5658_v13 = vsel %vm2055_vm2, %v5656_v45, %v5657_v39  ;;  %v5660_v55 = vsel %vm2055_vm2, %v5657_v39, %v5659_v18  ;;  %v4632_v46 = vadd.f32 %v4403_v3, %v4241_v32  ;;  %v11500_v23 = vmul.f32 1.5170982e-22, %v18032_v57 }
 0x1e2   :  { %v11497_v10 = vadd.f32 %v5658_v13, %v5412_v17  ;;  %v5024_v47 = vadd.f32 %v4796_v21, %v4633_v52  ;;  %v11503_v8 = vmul.f32 0.10645077, %v18032_v57  ;;  %v11506_v31 = vmul.f32 0.7865707, %v18032_v57 }
 0x1e3   :  { %v5023_v9 = vadd.f32 %v4794_v26, %v4632_v46  ;;  %v17637_v49 = vrot.slane %v11486_v16, 1  ;;  %v17636_v40 = vrot.slane %v11489_v24, 2  ;;  %v17635_v36 = vrot.slane %v11492_v35, 3 }
 0x1e4   :  { %18033 = vst [vmem:[#allocation18_spill] sm:$0xff] %v11497_v10  ;;  %v5144_v22 = vadd.f32 %v5078_v4, %v5024_v47  ;;  %v17634_v2 = vrot.slane %v11503_v8, 4  ;;  %v17632_v51 = vrot.slane %v11492_v35, 7  ;;  %v11514_v45 = vmul.f32 1.5170982e-22, %v10859_v50 }
 0x1e5   :  { %v5143_v61 = vadd.f32 %v5023_v9, %v11428_v37  ;;  %v11518_v60 = vmul.f32 9.961262e-15, %v10859_v50  ;;  %v11521_v26 = vmul.f32 1.1979456e-08, %v10859_v50  ;;  %v11524_v14 = vmul.f32 0.00026386508, %v10859_v50 }
 0x1e6   :  { %v18034_v1 = vmov %v18031_v29  ;;  %v17633_v0 = vrot.slane %v11506_v31, 5  ;;  %v11530_v3 = vmul.f32 0.10645077, %v10859_v50  ;;  %v11533_v59 = vmul.f32 0.7865707, %v10859_v50  ;;  %v11535_v37 = vpop.f32.mrb[25].mxu1 }
 0x1e7   :  { %v5414_v15 = vadd.f32 %v18034_v1, %v5144_v22  ;;  %18035 = vst [vmem:[#allocation44_spill] sm:$0xff] %v11535_v37  ;;  %v5413_v54 = vadd.f32 %v5276_v33, %v5143_v61  ;;  %v17631_v21 = vrot.slane %v11503_v8, 6  ;;  %v17638_v5 = vrot.slane %v11518_v60, 1  ;;  %v11540_v34 = vpop.f32.mrb[26].mxu1 }
 0x1e8   :  { %18036 = vst [vmem:[#allocation45_spill] sm:$0xff] %v11540_v34  ;;  %v11547_v32 = vpop.f32.mrb[27].mxu1  ;;  %v1292_v4 = vmul.f32 1.5170982e-22, %v10863_v27  ;;  %v1382_v52 = vmul.f32 9.961262e-15, %v10863_v27 }
 0x1e9   :  { %v11542_v20 = vadd.f32 %v5659_v18, %v5414_v15  ;;  %18038 = vst [vmem:[#allocation47_spill] sm:$0xff] %v11547_v32  ;;  %v11549_v17 = vadd.f32 %v5660_v55, %v5413_v54  ;;  %v1893_v13 = vmul.f32 1.1979456e-08, %v10863_v27  ;;  %v2410_v18 = vmul.f32 0.00026386508, %v10863_v27 }
 0x1ea   :  { %v3041_v46 = vmul.f32 0.10645077, %v10863_v27  ;;  %v1575_v9 = vrot.slane %v1382_v52, 1  ;;  %v3672_v22 = vmul.f32 0.7865707, %v10863_v27  ;;  %v18042_v47 = vrot.slane %v11524_v14, 3 }
 0x1eb   :  { %18037 = vst [vmem:[#allocation46_spill] sm:$0xff] %v11542_v20  ;;  %18039 = vst [vmem:[#allocation48_spill] sm:$0xff] %v11549_v17  ;;  %v1328_v55 = vmul.f32 1.5170982e-22, %v10900_v41  ;;  %v2086_v61 = vrot.slane %v1893_v13, 2  ;;  %v2669_v1 = vrot.slane %v2410_v18, 3 }
 0x1ec   :  { %v3300_v15 = vrot.slane %v3041_v46, 4  ;;  %v4322_v54 = vrot.slane %v3041_v46, 6  ;;  %v1577_v33 = vsel %vm1544_vm1, %v1575_v9, %v17637_v49  ;;  %v3931_v50 = vrot.slane %v3672_v22, 5 }
 0x1ed   :  { %v4713_v57 = vrot.slane %v2410_v18, 7  ;;  %v1418_v39 = vmul.f32 9.961262e-15, %v10900_v41  ;;  %v1803_v29 = vadd.f32 %v1577_v33, %v1292_v4  ;;  %v2088_v52 = vsel %vm2055_vm2, %v2086_v61, %v17636_v40  ;;  %v11595_v40 = vpop.f32.mrb[32].mxu0 }
 0x1ee   :  { %v2671_v27 = vsel %vm2626_vm3, %v2669_v1, %v17635_v36  ;;  %v3302_v13 = vsel %vm3257_vm4, %v3300_v15, %v17634_v2  ;;  %v3933_v46 = vsel %vm3888_vm5, %v3931_v50, %v17633_v0  ;;  %v4324_v33 = vsel %vm4279_vm6, %v4322_v54, %v17631_v21  ;;  %18040 = vst [vmem:[#allocation49_spill] sm:$0xff] %v11595_v40 }
 0x1ef   :  { %v4715_v4 = vsel %vm4670_vm7, %v4713_v57, %v17632_v51  ;;  %v1635_v18 = vrot.slane %v1418_v39, 1  ;;  %v2314_v9 = vadd.f32 %v2088_v52, %v1803_v29  ;;  %v1929_v22 = vmul.f32 1.1979456e-08, %v10900_v41 }
 0x1f0   :  { %v2458_v61 = vmul.f32 0.00026386508, %v10900_v41  ;;  %v3089_v1 = vmul.f32 0.10645077, %v10900_v41  ;;  %v3720_v15 = vmul.f32 0.7865707, %v10900_v41 }
 0x1f1   :  { %v1637_v50 = vsel %vm1544_vm1, %v1635_v18, %v17638_v5  ;;  %v11590_v54 = vmul.f32 0.00026386508, %v10915_v12  ;;  %v11593_v21 = vmul.f32 0.10645077, %v10915_v12  ;;  %v2945_v39 = vadd.f32 %v2671_v27, %v2314_v9 }
 0x1f2   :  { %v1839_v29 = vadd.f32 %v1637_v50, %v1328_v55  ;;  %v2146_v57 = vrot.slane %v1929_v22, 2  ;;  %v2753_v52 = vrot.slane %v2458_v61, 3  ;;  %v3384_v51 = vrot.slane %v3089_v1, 4 }
 0x1f3   :  { %v4015_v0 = vrot.slane %v3720_v15, 5  ;;  %v4406_v2 = vrot.slane %v3089_v1, 6  ;;  %v4797_v36 = vrot.slane %v2458_v61, 7  ;;  %v3576_v49 = vadd.f32 %v3302_v13, %v2945_v39 }
 0x1f4   :  { %v18041_v41 = vrot.slane %v11521_v26, 2  ;;  %v2755_v27 = vsel %vm2626_vm3, %v2753_v52, %v18042_v47  ;;  %v18043_v9 = vrot.slane %v11530_v3, 4  ;;  %v18044_v61 = vrot.slane %v11533_v59, 5 }
 0x1f5   :  { %v18045_v50 = vrot.slane %v11530_v3, 6  ;;  %v4207_v15 = vadd.f32 %v3933_v46, %v3576_v49  ;;  %v18046_v39 = vrot.slane %v11524_v14, 7  ;;  %v2758_v47 = vrot.slane %v11590_v54, 3 }
 0x1f6   :  { %v2148_v5 = vsel %vm2055_vm2, %v2146_v57, %v18041_v41  ;;  %v3386_v22 = vsel %vm3257_vm4, %v3384_v51, %v18043_v9  ;;  %v4017_v1 = vsel %vm3888_vm5, %v4015_v0, %v18044_v61  ;;  %v3389_v51 = vrot.slane %v11593_v21, 4 }
 0x1f7   :  { %v2350_v55 = vadd.f32 %v2148_v5, %v1839_v29  ;;  %v4408_v13 = vsel %vm4279_vm6, %v4406_v2, %v18045_v50  ;;  %v4799_v57 = vsel %vm4670_vm7, %v4797_v36, %v18046_v39  ;;  %v3723_v5 = vmul.f32 0.7865707, %v10915_v12 }
 0x1f8   :  { %v4411_v52 = vrot.slane %v11593_v21, 6  ;;  %v4802_v0 = vrot.slane %v11590_v54, 7  ;;  %v4598_v41 = vadd.f32 %v4324_v33, %v4207_v15  ;;  %v11622_v2 = vmul.f32 9.961262e-15, %v10915_v12 }
 0x1f9   :  { %v2981_v29 = vadd.f32 %v2755_v27, %v2350_v55  ;;  %v4020_v9 = vrot.slane %v3723_v5, 5  ;;  %v11625_v49 = vmul.f32 1.5170982e-22, %v10915_v12  ;;  %v1330_v46 = vmul.f32 1.5170982e-22, %v10922_v30 }
 0x1fa   :  { %v1420_v61 = vmul.f32 9.961262e-15, %v10922_v30  ;;  %v11630_v27 = vmul.f32 1.1979456e-08, %v10922_v30  ;;  %v11632_v55 = vadd.f32 %v4715_v4, %v4598_v41  ;;  %v2460_v54 = vmul.f32 0.00026386508, %v10922_v30 }
 0x1fb   :  { %v3612_v36 = vadd.f32 %v3386_v22, %v2981_v29  ;;  %v3091_v22 = vmul.f32 0.10645077, %v10922_v30  ;;  %v3722_v29 = vmul.f32 0.7865707, %v10922_v30  ;;  %v5662_v40 = vrot.slane %v1330_v46, 2 }
 0x1fc   :  { %v1638_v15 = vrot.slane %v1420_v61, 1  ;;  %v2149_v39 = vrot.slane %v11630_v27, 2  ;;  %v2756_v5 = vrot.slane %v2460_v54, 3  ;;  %v4800_v18 = vrot.slane %v2460_v54, 7 }
 0x1fd   :  { %v4243_v50 = vadd.f32 %v4017_v1, %v3612_v36  ;;  %v18047_v4 = vrot.slane %v11518_v60, 1  ;;  %v18048_v33 = vrot.slane %v11521_v26, 2  ;;  %v18049_v61 = vrot.slane %v11524_v14, 3 }
 0x1fe   :  { %v1841_v21 = vadd.f32 %v1638_v15, %v1330_v46  ;;  %v2759_v30 = vsel %vm2626_vm3, %v2756_v5, %v2758_v47  ;;  %v3387_v54 = vrot.slane %v3091_v22, 4  ;;  %v4409_v60 = vrot.slane %v3091_v22, 6 }
 0x1ff   :  { %v4634_v32 = vadd.f32 %v4408_v13, %v4243_v50  ;;  %v1639_v41 = vsel %vm1544_vm1, %v18047_v4, %v1638_v15  ;;  %v2150_v1 = vsel %vm2055_vm2, %v18048_v33, %v2149_v39  ;;  %v2757_v34 = vsel %vm2626_vm3, %v18049_v61, %v2756_v5 }
 0x200   :  { %v1840_v36 = vadd.f32 %v1639_v41, %v11514_v45  ;;  %v2352_v13 = vadd.f32 %v2149_v39, %v1841_v21  ;;  %v4018_v50 = vrot.slane %v3722_v29, 5  ;;  %v18050_v46 = vrot.slane %v11530_v3, 4 }
 0x201   :  { %v5025_v17 = vadd.f32 %v4799_v57, %v4634_v32  ;;  %v3390_v33 = vsel %vm3257_vm4, %v3387_v54, %v3389_v51  ;;  %v18051_v10 = vrot.slane %v11524_v14, 7  ;;  %v18052_v61 = vrot.slane %v11533_v59, 5 }
 0x202   :  { %v2351_v20 = vadd.f32 %v2150_v1, %v1840_v36  ;;  %v3388_v4 = vsel %vm3257_vm4, %v18050_v46, %v3387_v54  ;;  %v2983_v37 = vadd.f32 %v2759_v30, %v2352_v13  ;;  %v4021_v32 = vsel %vm3888_vm5, %v4018_v50, %v4020_v9 }
 0x203   :  { %v4801_v7 = vsel %vm4670_vm7, %v18051_v10, %v4800_v18  ;;  %v4019_v47 = vsel %vm3888_vm5, %v18052_v61, %v4018_v50  ;;  %v18053_v57 = vrot.slane %v11530_v3, 6  ;;  %v4412_v22 = vsel %vm4279_vm6, %v4409_v60, %v4411_v52 }
 0x204   :  { %v2982_v39 = vadd.f32 %v2757_v34, %v2351_v20  ;;  %v4803_v51 = vsel %vm4670_vm7, %v4800_v18, %v4802_v0  ;;  %v5145_v14 = vadd.f32 %v5025_v17, %v11521_v26  ;;  %v3614_v5 = vadd.f32 %v3390_v33, %v2983_v37  ;;  %v11686_v37 = vld [vmem:[%s17548_s0 + $0x78] sm:$0xff]  ;;  %v11701_v0 = vld [vmem:[%s17548_s0 + $0x80] sm:$0xff] }
 0x205   :  { %v4410_v21 = vsel %vm4279_vm6, %v18053_v57, %v4409_v60  ;;  %v18054_v10 = vrot.slane %v11622_v2, 1  ;;  %v18055_v29 = vrot.slane %v11514_v45, 2  ;;  %v18056_v3 = vrot.slane %v11625_v49, 2  ;;  %v11691_v45 = vld [vmem:[%s17549_s1 + $0x78] sm:$0xff] }
 0x206   :  { %v3613_v34 = vadd.f32 %v3388_v4, %v2982_v39  ;;  %v5415_v20 = vadd.f32 %v5145_v14, %v1639_v41  ;;  %v11678_v52 = vmul.f32 0.00026386508, %v10975_v44  ;;  %v11681_v26 = vmul.f32 0.10645077, %v10975_v44 }
 0x207   :  { %v5278_v59 = vsel %vm1544_vm1, %v1638_v15, %v18054_v10  ;;  %v5663_v9 = vsel %vm2055_vm2, %v18055_v29, %v5662_v40  ;;  %v5665_v1 = vsel %vm2055_vm2, %v5662_v40, %v18056_v3  ;;  %v4245_v17 = vadd.f32 %v4021_v32, %v3614_v5  ;;  %v11706_v15 = vld [vmem:[%s17549_s1 + $0x80] sm:$0xff] }
 0x208   :  { %v11696_v18 = vmul.f32 0.7865707, %v10975_v44  ;;  %v4244_v30 = vadd.f32 %v4019_v47, %v3613_v34  ;;  %v11711_v54 = vadd.f32 %v5663_v9, %v5415_v20  ;;  %v5079_v13 = vmul.f32 1.1979456e-08, %v10915_v12  ;;  %v18058_v47 = vld [vmem:[#allocation28_spill] sm:$0xff] }
 0x209   :  { %v4636_v50 = vadd.f32 %v4412_v22, %v4245_v17  ;;  %v2674_v60 = vrot.slane %v11678_v52, 3  ;;  %v11716_v46 = vmul.f32 9.961262e-15, %v10975_v44  ;;  %v3305_v33 = vrot.slane %v11681_v26, 4  ;;  %v11746_v17 = vpop.f32.mrb[28].mxu1 }
 0x20a   :  { %18057 = vst [vmem:[#allocation50_spill] sm:$0xff] %v11711_v54  ;;  %v4635_v4 = vadd.f32 %v4410_v21, %v4244_v30  ;;  %v3936_v61 = vrot.slane %v11696_v18, 5  ;;  %v11721_v32 = vmul.f32 1.5170982e-22, %v10975_v44  ;;  %v11724_v39 = vmul.f32 9.961262e-15, %v18058_v47 }
 0x20b   :  { %v5027_v57 = vadd.f32 %v4803_v51, %v4636_v50  ;;  %v11727_v12 = vmul.f32 1.1979456e-08, %v18058_v47  ;;  %v11730_v22 = vmul.f32 0.00026386508, %v18058_v47  ;;  %v4327_v21 = vrot.slane %v11681_v26, 6  ;;  %18059 = vst [vmem:[#allocation28_spill] sm:$0xff] %v11746_v17 }
 0x20c   :  { %v5026_v14 = vadd.f32 %v4801_v7, %v4635_v4  ;;  %v11734_v5 = vmul.f32 0.10645077, %v18058_v47  ;;  %v11737_v10 = vmul.f32 0.7865707, %v18058_v47  ;;  %v4718_v51 = vrot.slane %v11678_v52, 7  ;;  %v18061_v50 = vld [vmem:[#allocation29_spill] sm:$0xff] }
 0x20d   :  { %v5147_v29 = vadd.f32 %v5079_v13, %v5027_v57  ;;  %v18060_v18 = vrot.slane %v11622_v2, 1  ;;  %v1294_v4 = vmul.f32 1.5170982e-22, %v18061_v50  ;;  %v11753_v57 = vpop.f32.mrb[33].mxu0  ;;  %v11757_v41 = vmul.f32 1.1979456e-08, %v18061_v50 }
 0x20e   :  { %v5146_v34 = vadd.f32 %v5026_v14, %v11630_v27  ;;  %18062 = vst [vmem:[#allocation29_spill] sm:$0xff] %v11753_v57  ;;  %v1384_v14 = vmul.f32 9.961262e-15, %v18061_v50  ;;  %v2412_v40 = vmul.f32 0.00026386508, %v18061_v50  ;;  %v18063_v26 = vmov %v18056_v3 }
 0x20f   :  { %v5417_v30 = vadd.f32 %v18060_v18, %v5147_v29  ;;  %v3043_v29 = vmul.f32 0.10645077, %v18061_v50  ;;  %v3674_v18 = vmul.f32 0.7865707, %v18061_v50  ;;  %v5109_v52 = vadd.f32 %v11632_v55, %v11489_v24 }
 0x210   :  { %v5416_v27 = vadd.f32 %v5278_v59, %v5146_v34  ;;  %v1578_v59 = vrot.slane %v1384_v14, 1  ;;  %v2089_v34 = vrot.slane %v11757_v41, 2  ;;  %v2672_v7 = vrot.slane %v2412_v40, 3 }
 0x211   :  { %v11762_v2 = vadd.f32 %v18063_v26, %v5417_v30  ;;  %v3303_v20 = vrot.slane %v3043_v29, 4  ;;  %v3934_v3 = vrot.slane %v3674_v18, 5  ;;  %v4325_v36 = vrot.slane %v3043_v29, 6 }
 0x212   :  { %v11768_v13 = vadd.f32 %v5665_v1, %v5416_v27  ;;  %v4716_v9 = vrot.slane %v2412_v40, 7  ;;  %v18066_v49 = vrot.slane %v11486_v16, 1  ;;  %v1805_v30 = vadd.f32 %v1578_v59, %v1294_v4 }
 0x213   :  { %18064 = vst [vmem:[#allocation51_spill] sm:$0xff] %v11762_v2  ;;  %v18067_v50 = vrot.slane %v11489_v24, 2  ;;  %v18068_v55 = vrot.slane %v11492_v35, 3  ;;  %v2675_v14 = vsel %vm2626_vm3, %v2672_v7, %v2674_v60  ;;  %v18069_v29 = vrot.slane %v11503_v8, 4 }
 0x214   :  { %18065 = vst [vmem:[#allocation52_spill] sm:$0xff] %v11768_v13  ;;  %v1579_v26 = vsel %vm1544_vm1, %v18066_v49, %v1578_v59  ;;  %v3306_v16 = vsel %vm3257_vm4, %v3303_v20, %v3305_v33  ;;  %v2316_v18 = vadd.f32 %v2089_v34, %v1805_v30  ;;  %v18070_v49 = vrot.slane %v11506_v31, 5 }
 0x215   :  { %v2090_v57 = vsel %vm2055_vm2, %v18067_v50, %v2089_v34  ;;  %v2673_v1 = vsel %vm2626_vm3, %v18068_v55, %v2672_v7  ;;  %v1804_v27 = vadd.f32 %v1579_v26, %v11500_v23  ;;  %v3304_v40 = vsel %vm3257_vm4, %v18069_v29, %v3303_v20 }
 0x216   :  { %v3935_v24 = vsel %vm3888_vm5, %v18070_v49, %v3934_v3  ;;  %v3937_v50 = vsel %vm3888_vm5, %v3934_v3, %v3936_v61  ;;  %v18071_v17 = vrot.slane %v11503_v8, 6  ;;  %v4328_v60 = vsel %vm4279_vm6, %v4325_v36, %v4327_v21 }
 0x217   :  { %v2315_v53 = vadd.f32 %v2090_v57, %v1804_v27  ;;  %v18072_v7 = vrot.slane %v11492_v35, 7  ;;  %v4719_v33 = vsel %vm4670_vm7, %v4716_v9, %v4718_v51  ;;  %v2947_v20 = vadd.f32 %v2675_v14, %v2316_v18 }
 0x218   :  { %v4326_v55 = vsel %vm4279_vm6, %v18071_v17, %v4325_v36  ;;  %v18073_v31 = vrot.slane %v11716_v46, 1  ;;  %v5379_v30 = vadd.f32 %v5109_v52, %v1579_v26  ;;  %v5602_v61 = vrot.slane %v1294_v4, 2  ;;  %v11811_v52 = vpop.f32.mrb[29].mxu1 }
 0x219   :  { %v4717_v29 = vsel %vm4670_vm7, %v18072_v7, %v4716_v9  ;;  %v2946_v3 = vadd.f32 %v2673_v1, %v2315_v53  ;;  %v1331_v8 = vmul.f32 1.5170982e-22, %v11124_v62  ;;  %v1421_v17 = vmul.f32 9.961262e-15, %v11124_v62  ;;  %18076 = vst [vmem:[#allocation53_spill] sm:$0xff] %v11811_v52  ;;  %v11813_v27 = vpop.f32.mrb[30].mxu1 }
 0x21a   :  { %v5254_v34 = vsel %vm1544_vm1, %v1578_v59, %v18073_v31  ;;  %v1932_v36 = vmul.f32 1.1979456e-08, %v11124_v62  ;;  %v3578_v21 = vadd.f32 %v3306_v16, %v2947_v20  ;;  %v18074_v35 = vrot.slane %v11500_v23, 2  ;;  %18077 = vst [vmem:[#allocation54_spill] sm:$0xff] %v11813_v27  ;;  %v11817_v49 = vpop.f32.mrb[31].mxu1  ;;  %v18080_v31 = vld [vmem:[#allocation8_spill] sm:$0xff] }
 0x21b   :  { %v18075_v51 = vrot.slane %v11721_v32, 2  ;;  %v2462_v59 = vmul.f32 0.00026386508, %v11124_v62  ;;  %v3577_v53 = vadd.f32 %v3304_v40, %v2946_v3  ;;  %v1640_v26 = vrot.slane %v1421_v17, 1  ;;  %18078 = vst [vmem:[#allocation55_spill] sm:$0xff] %v11817_v49  ;;  %v11827_v3 = vpop.f32.mrb[34].mxu0 }
 0x21c   :  { %v5603_v57 = vsel %vm2055_vm2, %v18074_v35, %v5602_v61  ;;  %v2151_v1 = vrot.slane %v1932_v36, 2  ;;  %v4209_v14 = vadd.f32 %v3937_v50, %v3578_v21  ;;  %v3093_v23 = vmul.f32 0.10645077, %v11124_v62  ;;  %18083 = vst [vmem:[#allocation57_spill] sm:$0xff] %v11827_v3 }
 0x21d   :  { %v5605_v9 = vsel %vm2055_vm2, %v5602_v61, %v18075_v51  ;;  %v5829_v4 = vadd.f32 %v5603_v57, %v5379_v30  ;;  %v2760_v16 = vrot.slane %v2462_v59, 3  ;;  %v3724_v18 = vmul.f32 0.7865707, %v11124_v62 }
 0x21e   :  { %v4208_v7 = vadd.f32 %v3935_v24, %v3577_v53  ;;  %v18082_v40 = vrot.slane %v11724_v39, 1  ;;  %v4600_v50 = vadd.f32 %v4328_v60, %v4209_v14  ;;  %v18084_v36 = vrot.slane %v11727_v12, 2  ;;  %v18086_v14 = vld [vmem:[#allocation5_spill] sm:$0xff] }
 0x21f   :  { %v11819_v20 = vmul.f32 %v5829_v4, %v5829_v4  ;;  %v11822_v61 = vmul.f32 %v5829_v4, %v18080_v31  ;;  %v18085_v21 = vrot.slane %v11730_v22, 3  ;;  %v5067_v35 = vmul.f32 1.1979456e-08, %v10975_v44 }
 0x220   :  { %v1642_v30 = vsel %vm1544_vm1, %v1640_v26, %v18082_v40  ;;  %v2153_v62 = vsel %vm2055_vm2, %v2151_v1, %v18084_v36  ;;  %v4599_v51 = vadd.f32 %v4326_v55, %v4208_v7  ;;  %v4991_v4 = vadd.f32 %v4719_v33, %v4600_v50  ;;  %v18087_v40 = vld [vmem:[#allocation6_spill] sm:$0xff] }
 0x221   :  { %18079 = vst [vmem:[#allocation56_spill] sm:$0xff] %v11819_v20  ;;  %18081 = vst [vmem:[#allocation8_spill] sm:$0xff] %v11822_v61  ;;  %v1842_v17 = vadd.f32 %v1642_v30, %v1331_v8  ;;  %v2762_v24 = vsel %vm2626_vm3, %v2760_v16, %v18085_v21  ;;  %v3391_v60 = vrot.slane %v3093_v23, 4  ;;  %v4022_v8 = vrot.slane %v3724_v18, 5 }
 0x222   :  { %v18088_v30 = vsub.f32 %v18086_v14, %v18087_v40  ;;  %v17651_v36 = vrot.slane %v11730_v22, 7  ;;  %v4990_v3 = vadd.f32 %v4717_v29, %v4599_v51  ;;  %v4413_v16 = vrot.slane %v3093_v23, 6 }
 0x223   :  { %v2353_v26 = vadd.f32 %v2153_v62, %v1842_v17  ;;  %v5111_v21 = vadd.f32 %v5067_v35, %v4991_v4  ;;  %v18089_v57 = vrot.slane %v11734_v5, 4  ;;  %v18090_v7 = vrot.slane %v11737_v10, 5 }
 0x224   :  { %v104_v1 = vand.u32 2147483647, %v18088_v30  ;;  %v5110_v18 = vadd.f32 %v4990_v3, %v11757_v41  ;;  %v18091_v50 = vrot.slane %v11734_v5, 6  ;;  %v4804_v62 = vrot.slane %v2462_v59, 7 }
 0x225   :  { %v2984_v44 = vadd.f32 %v2762_v24, %v2353_v26  ;;  %v3393_v55 = vsel %vm3257_vm4, %v3391_v60, %v18089_v57  ;;  %v4024_v33 = vsel %vm3888_vm5, %v4022_v8, %v18090_v7  ;;  %v18092_v29 = vrot.slane %v11716_v46, 1  ;;  %v18102_v8 = vld [vmem:[#allocation9_spill] sm:$0xff] }
 0x226   :  { %v4415_v17 = vsel %vm4279_vm6, %v4413_v16, %v18091_v50  ;;  %v18093_v24 = vsub.f32 %v11686_v37, %v11691_v45  ;;  %v5380_v57 = vadd.f32 %v5254_v34, %v5110_v18  ;;  %v4806_v4 = vsel %vm4670_vm7, %v4804_v62, %v17651_v36  ;;  %v18100_v45 = vld [vmem:[#allocation10_spill] sm:$0xff]  ;;  %v18110_v18 = vld [vmem:[#allocation13_spill] sm:$0xff] }
 0x227   :  { %v5381_v23 = vadd.f32 %v18092_v29, %v5111_v21  ;;  %v3615_v35 = vadd.f32 %v3393_v55, %v2984_v44  ;;  %v11864_v41 = vsel %vm114_vm0, %v104_v1, 0.0  ;;  %v18096_v59 = vsub.f32 %v11701_v0, %v11706_v15  ;;  %v18108_v44 = vld [vmem:[#allocation11_spill] sm:$0xff] }
 0x228   :  { %v11858_v51 = vand.u32 2147483647, %v18093_v24  ;;  %18095 = vst [vmem:[#allocation6_spill] sm:$0xff] %v11864_v41  ;;  %v18098_v46 = vrot.slane %v11721_v32, 2  ;;  %v11875_v37 = vmul.f32 %v18080_v31, %v18080_v31  ;;  %v11879_v34 = vmul.f32 %v18100_v45, %v18100_v45 }
 0x229   :  { %v11869_v3 = vand.u32 2147483647, %v18096_v59  ;;  %v4246_v60 = vadd.f32 %v4024_v33, %v3615_v35  ;;  %v11883_v14 = vmul.f32 %v18102_v8, %v18102_v8  ;;  %v5830_v40 = vadd.f32 %v5605_v9, %v5380_v57 }
 0x22a   :  { %18094 = vst [vmem:[#allocation5_spill] sm:$0xff] %v11858_v51  ;;  %v5831_v26 = vadd.f32 %v18098_v46, %v5381_v23  ;;  %18099 = vst [vmem:[#allocation59_spill] sm:$0xff] %v11875_v37  ;;  %v11891_v30 = vmul.f32 0.00026386508, %v11133_v43  ;;  %v3096_v16 = vmul.f32 0.10645077, %v11133_v43  ;;  %v11902_v9 = vmul.f32 %v18108_v44, %v18108_v44 }
 0x22b   :  { %18097 = vst [vmem:[#allocation58_spill] sm:$0xff] %v11869_v3  ;;  %18101 = vst [vmem:[#allocation10_spill] sm:$0xff] %v11879_v34  ;;  %v4637_v32 = vadd.f32 %v4415_v17, %v4246_v60  ;;  %v11893_v31 = vmul.f32 %v5830_v40, %v5830_v40  ;;  %v11896_v1 = vmul.f32 %v5830_v40, %v18100_v45  ;;  %v3727_v21 = vmul.f32 0.7865707, %v11133_v43  ;;  %v18112_v17 = vld [vmem:[#allocation12_spill] sm:$0xff] }
 0x22c   :  { %18103 = vst [vmem:[#allocation9_spill] sm:$0xff] %v11883_v14  ;;  %v11885_v0 = vmul.f32 %v5831_v26, %v5831_v26  ;;  %v11888_v15 = vmul.f32 %v5831_v26, %v18102_v8  ;;  %18109 = vst [vmem:[#allocation11_spill] sm:$0xff] %v11902_v9  ;;  %v1332_v55 = vmul.f32 1.5170982e-22, %v18058_v47  ;;  %v11909_v50 = vmul.f32 %v18110_v18, %v18110_v18 }
 0x22d   :  { %18106 = vst [vmem:[#allocation62_spill] sm:$0xff] %v11893_v31  ;;  %18107 = vst [vmem:[#allocation63_spill] sm:$0xff] %v11896_v1  ;;  %v5028_v33 = vadd.f32 %v4806_v4, %v4637_v32  ;;  %v11913_v62 = vmul.f32 %v18112_v17, %v18112_v17  ;;  %v11917_v29 = vmul.f32 %v11155_v38, %v11155_v38  ;;  %v2765_v35 = vrot.slane %v11891_v30, 3 }
 0x22e   :  { %18104 = vst [vmem:[#allocation60_spill] sm:$0xff] %v11885_v0  ;;  %18105 = vst [vmem:[#allocation61_spill] sm:$0xff] %v11888_v15  ;;  %v5666_v47 = vrot.slane %v1332_v55, 2  ;;  %v11923_v24 = vmul.f32 9.961262e-15, %v11133_v43  ;;  %v3396_v4 = vrot.slane %v3096_v16, 4  ;;  %v11930_v60 = vmul.f32 %v11191_v58, %v11191_v58 }
 0x22f   :  { %18111 = vst [vmem:[#allocation13_spill] sm:$0xff] %v11909_v50  ;;  %18113 = vst [vmem:[#allocation12_spill] sm:$0xff] %v11913_v62  ;;  %v5148_v57 = vadd.f32 %v5028_v33, %v11727_v12  ;;  %v4027_v59 = vrot.slane %v3727_v21, 5  ;;  %v1333_v46 = vmul.f32 1.5170982e-22, %v11136_v48  ;;  %v4418_v32 = vrot.slane %v3096_v16, 6 }
 0x230   :  { %18114 = vst [vmem:[#allocation64_spill] sm:$0xff] %v11917_v29  ;;  %v1423_v26 = vmul.f32 9.961262e-15, %v11136_v48  ;;  %18115 = vst [vmem:[#allocation65_spill] sm:$0xff] %v11930_v60  ;;  %v11933_v45 = vmul.f32 1.5170982e-22, %v11133_v43 }
 0x231   :  { %v11936_v8 = vmul.f32 1.1979456e-08, %v11136_v48  ;;  %v2464_v40 = vmul.f32 0.00026386508, %v11136_v48  ;;  %v3095_v21 = vmul.f32 0.10645077, %v11136_v48 }
 0x232   :  { %v1643_v33 = vrot.slane %v1423_v26, 1  ;;  %v3726_v23 = vmul.f32 0.7865707, %v11136_v48  ;;  %v4809_v7 = vrot.slane %v11891_v30, 7  ;;  %v18116_v2 = vrot.slane %v11724_v39, 1  ;;  %v11947_v16 = vpop.f32.mrb[32].mxu1 }
 0x233   :  { %v2154_v36 = vrot.slane %v11936_v8, 2  ;;  %v2763_v13 = vrot.slane %v2464_v40, 3  ;;  %v3394_v51 = vrot.slane %v3095_v21, 4  ;;  %18117 = vst [vmem:[#allocation66_spill] sm:$0xff] %v11947_v16  ;;  %v18118_v48 = vrot.slane %v11727_v12, 2  ;;  %v11956_v62 = vpop.f32.mrb[35].mxu0 }
 0x234   :  { %v1644_v54 = vsel %vm1544_vm1, %v18116_v2, %v1643_v33  ;;  %v1844_v3 = vadd.f32 %v1643_v33, %v1333_v46  ;;  %v4025_v41 = vrot.slane %v3726_v23, 5  ;;  %v18119_v53 = vrot.slane %v11730_v22, 3  ;;  %18120 = vst [vmem:[#allocation67_spill] sm:$0xff] %v11956_v62 }
 0x235   :  { %v1843_v58 = vadd.f32 %v1644_v54, %v1332_v55  ;;  %v2155_v30 = vsel %vm2055_vm2, %v18118_v48, %v2154_v36  ;;  %v2766_v2 = vsel %vm2626_vm3, %v2763_v13, %v2765_v35  ;;  %v18121_v23 = vrot.slane %v11734_v5, 4 }
 0x236   :  { %v2764_v38 = vsel %vm2626_vm3, %v18119_v53, %v2763_v13  ;;  %v2355_v39 = vadd.f32 %v2154_v36, %v1844_v3  ;;  %v3397_v26 = vsel %vm3257_vm4, %v3394_v51, %v3396_v4  ;;  %v18122_v12 = vrot.slane %v11737_v10, 5 }
 0x237   :  { %v3395_v50 = vsel %vm3257_vm4, %v18121_v23, %v3394_v51  ;;  %v2354_v55 = vadd.f32 %v2155_v30, %v1843_v58  ;;  %v4028_v16 = vsel %vm3888_vm5, %v4025_v41, %v4027_v59  ;;  %v4416_v9 = vrot.slane %v3095_v21, 6 }
 0x238   :  { %v4026_v48 = vsel %vm3888_vm5, %v18122_v12, %v4025_v41  ;;  %v2986_v53 = vadd.f32 %v2766_v2, %v2355_v39  ;;  %v4807_v49 = vrot.slane %v2464_v40, 7  ;;  %v18123_v36 = vrot.slane %v11923_v24, 1 }
 0x239   :  { %v5418_v3 = vadd.f32 %v5148_v57, %v1644_v54  ;;  %v2985_v35 = vadd.f32 %v2764_v38, %v2354_v55  ;;  %v18124_v23 = vrot.slane %v11734_v5, 6  ;;  %v4419_v58 = vsel %vm4279_vm6, %v4416_v9, %v4418_v32 }
 0x23a   :  { %v5280_v13 = vsel %vm1544_vm1, %v1643_v33, %v18123_v36  ;;  %v5667_v10 = vrot.slane %v1333_v46, 2  ;;  %v11976_v4 = vmul.f32 %v11193_v25, %v11193_v25  ;;  %v3617_v41 = vadd.f32 %v3397_v26, %v2986_v53 }
 0x23b   :  { %v4417_v51 = vsel %vm4279_vm6, %v18124_v23, %v4416_v9  ;;  %v18126_v59 = vrot.slane %v11730_v22, 7  ;;  %v4810_v33 = vsel %vm4670_vm7, %v4807_v49, %v4809_v7  ;;  %v6153_v38 = vadd.f32 %v11819_v20, %v11875_v37 }
 0x23c   :  { %18125 = vst [vmem:[#allocation68_spill] sm:$0xff] %v11976_v4  ;;  %v3616_v54 = vadd.f32 %v3395_v50, %v2985_v35  ;;  %v5668_v5 = vsel %vm2055_vm2, %v5666_v47, %v5667_v10  ;;  %v18127_v9 = vrot.slane %v11933_v45, 2  ;;  %v4248_v46 = vadd.f32 %v4028_v16, %v3617_v41 }
 0x23d   :  { %v4808_v40 = vsel %vm4670_vm7, %v18126_v59, %v4807_v49  ;;  %v11988_v32 = vadd.f32 %v5668_v5, %v5418_v3  ;;  %v11991_v21 = vmul.f32 9.961262e-15, %v11149_v63  ;;  %v11994_v22 = vmul.f32 1.1979456e-08, %v11149_v63  ;;  %v12042_v5 = vpop.f32.mrb[33].mxu1 }
 0x23e   :  { %v5670_v57 = vsel %vm2055_vm2, %v5667_v10, %v18127_v9  ;;  %v4247_v50 = vadd.f32 %v4026_v48, %v3616_v54  ;;  %v12001_v47 = vmul.f32 0.00026386508, %v11149_v63  ;;  %v12005_v16 = vmul.f32 %v11412_v6, %v11412_v6  ;;  %18130 = vst [vmem:[#allocation71_spill] sm:$0xff] %v12042_v5 }
 0x23f   :  { %18128 = vst [vmem:[#allocation69_spill] sm:$0xff] %v11988_v32  ;;  %v5080_v26 = vmul.f32 1.1979456e-08, %v11133_v43  ;;  %v4639_v30 = vadd.f32 %v4419_v58, %v4248_v46  ;;  %v12009_v39 = vmul.f32 0.10645077, %v11149_v63  ;;  %v17668_v36 = vrot.slane %v11991_v21, 1 }
 0x240   :  { %18129 = vst [vmem:[#allocation70_spill] sm:$0xff] %v12005_v16  ;;  %v12011_v2 = vadd.f32 0.0001, %v6153_v38  ;;  %v4638_v55 = vadd.f32 %v4417_v51, %v4247_v50  ;;  %v12014_v12 = vmul.f32 1.5170982e-22, %v11149_v63  ;;  %v18131_v9 = vrot.slane %v11923_v24, 1 }
 0x241   :  { %v12017_v48 = vmul.f32 0.7865707, %v11149_v63  ;;  %v5030_v53 = vadd.f32 %v4810_v33, %v4639_v30  ;;  %v12025_v51 = vmul.f32 9.961262e-15, %v11279_v42  ;;  %v12028_v41 = vmul.f32 1.1979456e-08, %v11279_v42 }
 0x242   :  { %v5029_v35 = vadd.f32 %v4808_v40, %v4638_v55  ;;  %v12031_v63 = vmul.f32 0.00026386508, %v11279_v42  ;;  %v12034_v59 = vmul.f32 0.10645077, %v11279_v42  ;;  %v12040_v54 = vmul.f32 0.7865707, %v11279_v42 }
 0x243   :  { %v5150_v10 = vadd.f32 %v5080_v26, %v5030_v53  ;;  %v12047_v50 = vmul.f32 1.5170982e-22, %v11279_v42  ;;  %v12058_v24 = vpop.f32.mrb[36].mxu0  ;;  %v18135_v42 = vrot.slane %v11933_v45, 2  ;;  %v18139_v40 = vld [vmem:[#allocation37_spill] sm:$0xff]  ;;  %v18142_v60 = vrot.slane %v12009_v39, 4 }
 0x244   :  { %v5149_v33 = vadd.f32 %v5029_v35, %v11936_v8  ;;  %v12051_v8 = vpop.f32.mrb[34].mxu1  ;;  %18134 = vst [vmem:[#allocation74_spill] sm:$0xff] %v12058_v24  ;;  %v1334_v45 = vmul.f32 1.5170982e-22, %v18139_v40  ;;  %v18157_v27 = vrot.slane %v12028_v41, 2  ;;  %9506 = vrcp.f32 %v12011_v2 }
 0x245   :  { %v5420_v46 = vadd.f32 %v18131_v9, %v5150_v10  ;;  %18132 = vst [vmem:[#allocation72_spill] sm:$0xff] %v12051_v8  ;;  %v12056_v49 = vpop.f32.mrb[35].mxu1  ;;  %v18137_v9 = vld [vmem:[#allocation36_spill] sm:$0xff] }
 0x246   :  { %v5419_v55 = vadd.f32 %v5280_v13, %v5149_v33  ;;  %18133 = vst [vmem:[#allocation73_spill] sm:$0xff] %v12056_v49  ;;  %v1295_v26 = vmul.f32 1.5170982e-22, %v18137_v9  ;;  %v1385_v30 = vmul.f32 9.961262e-15, %v18137_v9  ;;  %v18155_v8 = vld [vmem:[#allocation40_spill] sm:$0xff] }
 0x247   :  { %v12062_v10 = vadd.f32 %v18135_v42, %v5420_v46  ;;  %v1896_v13 = vmul.f32 1.1979456e-08, %v18137_v9  ;;  %v2414_v35 = vmul.f32 0.00026386508, %v18137_v9  ;;  %v3045_v7 = vmul.f32 0.10645077, %v18137_v9 }
 0x248   :  { %v12067_v33 = vadd.f32 %v5670_v57, %v5419_v55  ;;  %v3676_v53 = vmul.f32 0.7865707, %v18137_v9  ;;  %v1580_v58 = vrot.slane %v1385_v30, 1  ;;  %v1424_v46 = vmul.f32 9.961262e-15, %v18139_v40 }
 0x249   :  { %18136 = vst [vmem:[#allocation75_spill] sm:$0xff] %v12062_v10  ;;  %v2091_v38 = vrot.slane %v1896_v13, 2  ;;  %v2676_v42 = vrot.slane %v2414_v35, 3  ;;  %v3307_v23 = vrot.slane %v3045_v7, 4  ;;  %v4329_v3 = vrot.slane %v3045_v7, 6 }
 0x24a   :  { %18138 = vst [vmem:[#allocation36_spill] sm:$0xff] %v12067_v33  ;;  %v3938_v43 = vrot.slane %v3676_v53, 5  ;;  %v1582_v57 = vsel %vm1544_vm1, %v1580_v58, %v17668_v36  ;;  %v18140_v55 = vrot.slane %v11994_v22, 2  ;;  %v4720_v20 = vrot.slane %v2414_v35, 7 }
 0x24b   :  { %v1645_v9 = vrot.slane %v1424_v46, 1  ;;  %v1806_v30 = vadd.f32 %v1582_v57, %v1295_v26  ;;  %v18141_v13 = vrot.slane %v12001_v47, 3  ;;  %v3309_v53 = vsel %vm3257_vm4, %v3307_v23, %v18142_v60 }
 0x24c   :  { %v2093_v6 = vsel %vm2055_vm2, %v2091_v38, %v18140_v55  ;;  %v18143_v7 = vrot.slane %v12017_v48, 5  ;;  %v18144_v58 = vrot.slane %v12009_v39, 6  ;;  %v18145_v38 = vrot.slane %v12001_v47, 7 }
 0x24d   :  { %v2678_v37 = vsel %vm2626_vm3, %v2676_v42, %v18141_v13  ;;  %v18146_v35 = vrot.slane %v12025_v51, 1  ;;  %v1935_v42 = vmul.f32 1.1979456e-08, %v18139_v40  ;;  %v2317_v57 = vadd.f32 %v2093_v6, %v1806_v30 }
 0x24e   :  { %v3940_v56 = vsel %vm3888_vm5, %v3938_v43, %v18143_v7  ;;  %v4331_v36 = vsel %vm4279_vm6, %v4329_v3, %v18144_v58  ;;  %v4722_v26 = vsel %vm4670_vm7, %v4720_v20, %v18145_v38  ;;  %v2466_v23 = vmul.f32 0.00026386508, %v18139_v40 }
 0x24f   :  { %v1647_v46 = vsel %vm1544_vm1, %v1645_v9, %v18146_v35  ;;  %v3097_v43 = vmul.f32 0.10645077, %v18139_v40  ;;  %v2156_v13 = vrot.slane %v1935_v42, 2  ;;  %v3728_v7 = vmul.f32 0.7865707, %v18139_v40  ;;  %v18148_v35 = vld [vmem:[#allocation38_spill] sm:$0xff] }
 0x250   :  { %v1845_v60 = vadd.f32 %v1647_v46, %v1334_v45  ;;  %v2948_v20 = vadd.f32 %v2678_v37, %v2317_v57  ;;  %v2767_v58 = vrot.slane %v2466_v23, 3  ;;  %v18147_v9 = vrot.slane %v12028_v41, 2 }
 0x251   :  { %v3398_v38 = vrot.slane %v3097_v43, 4  ;;  %v4420_v25 = vrot.slane %v3097_v43, 6  ;;  %v4029_v45 = vrot.slane %v3728_v7, 5  ;;  %v4811_v30 = vrot.slane %v2466_v23, 7 }
 0x252   :  { %v2158_v6 = vsel %vm2055_vm2, %v2156_v13, %v18147_v9  ;;  %v12108_v46 = vmul.f32 0.00026386508, %v18148_v35  ;;  %v3579_v29 = vadd.f32 %v3309_v53, %v2948_v20  ;;  %v18149_v3 = vrot.slane %v12031_v63, 3 }
 0x253   :  { %v2356_v55 = vadd.f32 %v2158_v6, %v1845_v60  ;;  %v18150_v37 = vrot.slane %v12034_v59, 4  ;;  %v18151_v57 = vrot.slane %v12040_v54, 5  ;;  %v18152_v13 = vrot.slane %v12034_v59, 6 }
 0x254   :  { %v2769_v42 = vsel %vm2626_vm3, %v2767_v58, %v18149_v3  ;;  %v18153_v7 = vrot.slane %v12031_v63, 7  ;;  %v3100_v60 = vmul.f32 0.10645077, %v18148_v35  ;;  %v5671_v3 = vrot.slane %v12047_v50, 2 }
 0x255   :  { %v3400_v40 = vsel %vm3257_vm4, %v3398_v38, %v18150_v37  ;;  %v4031_v43 = vsel %vm3888_vm5, %v4029_v45, %v18151_v57  ;;  %v4422_v23 = vsel %vm4279_vm6, %v4420_v25, %v18152_v13  ;;  %v4210_v20 = vadd.f32 %v3940_v56, %v3579_v29  ;;  %v18154_v29 = vld [vmem:[#allocation39_spill] sm:$0xff] }
 0x256   :  { %v4813_v53 = vsel %vm4670_vm7, %v4811_v30, %v18153_v7  ;;  %v2987_v58 = vadd.f32 %v2769_v42, %v2356_v55  ;;  %v3731_v38 = vmul.f32 0.7865707, %v18148_v35  ;;  %v2772_v9 = vrot.slane %v12108_v46, 3 }
 0x257   :  { %v3403_v6 = vrot.slane %v3100_v60, 4  ;;  %v4816_v45 = vrot.slane %v12108_v46, 7  ;;  %v12131_v37 = vmul.f32 9.961262e-15, %v18148_v35  ;;  %v4601_v25 = vadd.f32 %v4331_v36, %v4210_v20 }
 0x258   :  { %v3618_v57 = vadd.f32 %v3400_v40, %v2987_v58  ;;  %v4425_v13 = vrot.slane %v3100_v60, 6  ;;  %v12134_v30 = vmul.f32 1.5170982e-22, %v18148_v35  ;;  %v4034_v7 = vrot.slane %v3731_v38, 5 }
 0x259   :  { %v1336_v55 = vmul.f32 1.5170982e-22, %v18154_v29  ;;  %v1426_v42 = vmul.f32 9.961262e-15, %v18154_v29  ;;  %v12139_v28 = vadd.f32 %v4722_v26, %v4601_v25  ;;  %v12143_v49 = vmul.f32 1.1979456e-08, %v18154_v29 }
 0x25a   :  { %v4249_v24 = vadd.f32 %v4031_v43, %v3618_v57  ;;  %v2468_v40 = vmul.f32 0.00026386508, %v18154_v29  ;;  %v3099_v60 = vmul.f32 0.10645077, %v18154_v29  ;;  %v3730_v56 = vmul.f32 0.7865707, %v18154_v29 }
 0x25b   :  { %v1648_v36 = vrot.slane %v1426_v42, 1  ;;  %v5672_v20 = vrot.slane %v1336_v55, 2  ;;  %v2159_v38 = vrot.slane %v12143_v49, 2  ;;  %v12150_v26 = vmul.f32 0.00026386508, %v18155_v8 }
 0x25c   :  { %v4640_v58 = vadd.f32 %v4422_v23, %v4249_v24  ;;  %v18156_v43 = vrot.slane %v12025_v51, 1  ;;  %v2770_v46 = vrot.slane %v2468_v40, 3  ;;  %v3401_v42 = vrot.slane %v3099_v60, 4 }
 0x25d   :  { %v1847_v57 = vadd.f32 %v1648_v36, %v1336_v55  ;;  %v2160_v24 = vsel %vm2055_vm2, %v18157_v27, %v2159_v38  ;;  %v4032_v23 = vrot.slane %v3730_v56, 5  ;;  %v18158_v29 = vrot.slane %v12031_v63, 3 }
 0x25e   :  { %v1649_v25 = vsel %vm1544_vm1, %v18156_v43, %v1648_v36  ;;  %v5031_v5 = vadd.f32 %v4813_v53, %v4640_v58  ;;  %v2773_v51 = vsel %vm2626_vm3, %v2770_v46, %v2772_v9  ;;  %v18159_v43 = vrot.slane %v12034_v59, 4 }
 0x25f   :  { %v1846_v62 = vadd.f32 %v1649_v25, %v12047_v50  ;;  %v2358_v52 = vadd.f32 %v2159_v38, %v1847_v57  ;;  %v2771_v33 = vsel %vm2626_vm3, %v18158_v29, %v2770_v46  ;;  %v3404_v53 = vsel %vm3257_vm4, %v3401_v42, %v3403_v6 }
 0x260   :  { %v3402_v55 = vsel %vm3257_vm4, %v18159_v43, %v3401_v42  ;;  %v18160_v50 = vrot.slane %v12040_v54, 5  ;;  %v4035_v27 = vsel %vm3888_vm5, %v4032_v23, %v4034_v7  ;;  %v4423_v38 = vrot.slane %v3099_v60, 6 }
 0x261   :  { %v2357_v1 = vadd.f32 %v2160_v24, %v1846_v62  ;;  %v2989_v56 = vadd.f32 %v2773_v51, %v2358_v52  ;;  %v4814_v57 = vrot.slane %v2468_v40, 7  ;;  %v5151_v29 = vadd.f32 %v5031_v5, %v12028_v41 }
 0x262   :  { %v4033_v58 = vsel %vm3888_vm5, %v18160_v50, %v4032_v23  ;;  %v18161_v9 = vrot.slane %v12131_v37, 1  ;;  %v5673_v62 = vsel %vm2055_vm2, %v5671_v3, %v5672_v20  ;;  %v18162_v6 = vrot.slane %v12134_v30, 2 }
 0x263   :  { %v2988_v10 = vadd.f32 %v2771_v33, %v2357_v1  ;;  %v3620_v42 = vadd.f32 %v3404_v53, %v2989_v56  ;;  %v18163_v24 = vrot.slane %v12034_v59, 6  ;;  %v4426_v7 = vsel %vm4279_vm6, %v4423_v38, %v4425_v13  ;;  %v12212_v53 = vpop.f32.mrb[36].mxu1 }
 0x264   :  { %v5282_v46 = vsel %vm1544_vm1, %v1648_v36, %v18161_v9  ;;  %v5675_v54 = vsel %vm2055_vm2, %v5672_v20, %v18162_v6  ;;  %v18164_v41 = vrot.slane %v12031_v63, 7  ;;  %v12188_v5 = vmul.f32 %v11458_v11, %v11458_v11 }
 0x265   :  { %v4424_v52 = vsel %vm4279_vm6, %v18163_v24, %v4423_v38  ;;  %v3619_v33 = vadd.f32 %v3402_v55, %v2988_v10  ;;  %v4817_v3 = vsel %vm4670_vm7, %v4814_v57, %v4816_v45  ;;  %v5421_v36 = vadd.f32 %v5151_v29, %v1649_v25 }
 0x266   :  { %v4815_v1 = vsel %vm4670_vm7, %v18164_v41, %v4814_v57  ;;  %18165 = vst [vmem:[#allocation37_spill] sm:$0xff] %v12188_v5  ;;  %v4251_v40 = vadd.f32 %v4035_v27, %v3620_v42  ;;  %v12194_v60 = vmul.f32 0.10645077, %v18155_v8  ;;  %v5081_v63 = vmul.f32 1.1979456e-08, %v18148_v35 }
 0x267   :  { %v4250_v13 = vadd.f32 %v4033_v58, %v3619_v33  ;;  %v12197_v20 = vadd.f32 %v5673_v62, %v5421_v36  ;;  %v3679_v23 = vmul.f32 0.7865707, %v18155_v8  ;;  %v2681_v10 = vrot.slane %v12150_v26, 3  ;;  %v18168_v36 = vld [vmem:[#allocation17_spill] sm:$0xff] }
 0x268   :  { %v4642_v51 = vadd.f32 %v4426_v7, %v4251_v40  ;;  %v4725_v45 = vrot.slane %v12150_v26, 7  ;;  %v12203_v2 = vmul.f32 9.961262e-15, %v18155_v8  ;;  %v3312_v43 = vrot.slane %v12194_v60, 4 }
 0x269   :  { %18166 = vst [vmem:[#allocation38_spill] sm:$0xff] %v12197_v20  ;;  %v4641_v25 = vadd.f32 %v4424_v52, %v4250_v13  ;;  %v12207_v55 = vmul.f32 1.1979456e-08, %v18155_v8  ;;  %v12210_v35 = vmul.f32 1.5170982e-22, %v18155_v8  ;;  %v3943_v38 = vrot.slane %v3679_v23, 5  ;;  %v12246_v23 = vpop.eup %9506 }
 0x26a   :  { %v5033_v50 = vadd.f32 %v4817_v3, %v4642_v51  ;;  %v12215_v58 = vmul.f32 9.961262e-15, %v11445_v19  ;;  %v12218_v26 = vmul.f32 1.1979456e-08, %v11445_v19  ;;  %v12221_v27 = vmul.f32 0.00026386508, %v11445_v19 }
 0x26b   :  { %v5032_v56 = vadd.f32 %v4815_v1, %v4641_v25  ;;  %v12224_v57 = vmul.f32 0.10645077, %v11445_v19  ;;  %v12227_v8 = vmul.f32 0.7865707, %v11445_v19  ;;  %v4334_v9 = vrot.slane %v12194_v60, 6 }
 0x26c   :  { %v5153_v29 = vadd.f32 %v5081_v63, %v5033_v50  ;;  %v18167_v41 = vrot.slane %v12131_v37, 1  ;;  %v1297_v40 = vmul.f32 1.5170982e-22, %v18168_v36  ;;  %v1387_v63 = vmul.f32 9.961262e-15, %v18168_v36 }
 0x26d   :  { %v5152_v42 = vadd.f32 %v5032_v56, %v12143_v49  ;;  %v12243_v49 = vmul.f32 1.1979456e-08, %v18168_v36  ;;  %v2416_v13 = vmul.f32 0.00026386508, %v18168_v36  ;;  %v18169_v51 = vmov %v18162_v6  ;;  %v12256_v56 = vpop.f32.mrb[37].mxu0 }
 0x26e   :  { %v5423_v1 = vadd.f32 %v18167_v41, %v5153_v29  ;;  %v3047_v25 = vmul.f32 0.10645077, %v18168_v36  ;;  %v3678_v50 = vmul.f32 0.7865707, %v18168_v36  ;;  %v18173_v24 = vrot.slane %v11994_v22, 2 }
 0x26f   :  { %v5422_v60 = vadd.f32 %v5282_v46, %v5152_v42  ;;  %v5112_v46 = vadd.f32 %v12139_v28, %v11994_v22  ;;  %v1583_v42 = vrot.slane %v1387_v63, 1  ;;  %v2094_v41 = vrot.slane %v12243_v49, 2 }
 0x270   :  { %v12250_v37 = vadd.f32 %v18169_v51, %v5423_v1  ;;  %v2679_v3 = vrot.slane %v2416_v13, 3  ;;  %v3310_v33 = vrot.slane %v3047_v25, 4  ;;  %v3941_v7 = vrot.slane %v3678_v50, 5  ;;  %v12276_v50 = vpop.f32.mrb[37].mxu1 }
 0x271   :  { %v12258_v29 = vadd.f32 %v5675_v54, %v5422_v60  ;;  %v4332_v30 = vrot.slane %v3047_v25, 6  ;;  %v4723_v1 = vrot.slane %v2416_v13, 7  ;;  %v18172_v51 = vrot.slane %v11991_v21, 1 }
 0x272   :  { %18170 = vst [vmem:[#allocation39_spill] sm:$0xff] %v12250_v37  ;;  %v1808_v36 = vadd.f32 %v1583_v42, %v1297_v40  ;;  %v2095_v28 = vsel %vm2055_vm2, %v18173_v24, %v2094_v41  ;;  %v18174_v54 = vrot.slane %v12001_v47, 3  ;;  %v2682_v6 = vsel %vm2626_vm3, %v2679_v3, %v2681_v10 }
 0x273   :  { %18171 = vst [vmem:[#allocation40_spill] sm:$0xff] %v12258_v29  ;;  %v1584_v52 = vsel %vm1544_vm1, %v18172_v51, %v1583_v42  ;;  %v18175_v25 = vrot.slane %v12009_v39, 4  ;;  %v3313_v21 = vsel %vm3257_vm4, %v3310_v33, %v3312_v43  ;;  %v18176_v22 = vrot.slane %v12017_v48, 5 }
 0x274   :  { %v2680_v60 = vsel %vm2626_vm3, %v18174_v54, %v2679_v3  ;;  %v1807_v63 = vadd.f32 %v1584_v52, %v12014_v12  ;;  %v2319_v51 = vadd.f32 %v2094_v41, %v1808_v36  ;;  %v3944_v59 = vsel %vm3888_vm5, %v3941_v7, %v3943_v38 }
 0x275   :  { %v3311_v13 = vsel %vm3257_vm4, %v18175_v25, %v3310_v33  ;;  %v3942_v24 = vsel %vm3888_vm5, %v18176_v22, %v3941_v7  ;;  %v18177_v54 = vrot.slane %v12009_v39, 6  ;;  %v4335_v3 = vsel %vm4279_vm6, %v4332_v30, %v4334_v9  ;;  %v18180_v39 = vld [vmem:[#allocation44_spill] sm:$0xff] }
 0x276   :  { %v2318_v10 = vadd.f32 %v2095_v28, %v1807_v63  ;;  %v18178_v25 = vrot.slane %v12001_v47, 7  ;;  %v4726_v33 = vsel %vm4670_vm7, %v4723_v1, %v4725_v45  ;;  %v2950_v41 = vadd.f32 %v2682_v6, %v2319_v51 }
 0x277   :  { %v4333_v62 = vsel %vm4279_vm6, %v18177_v54, %v4332_v30  ;;  %v18179_v48 = vrot.slane %v12203_v2, 1  ;;  %v5382_v22 = vadd.f32 %v5112_v46, %v1584_v52  ;;  %v5607_v38 = vrot.slane %v1297_v40, 2 }
 0x278   :  { %v4724_v43 = vsel %vm4670_vm7, %v18178_v25, %v4723_v1  ;;  %v2949_v7 = vadd.f32 %v2680_v60, %v2318_v10  ;;  %v1337_v11 = vmul.f32 1.5170982e-22, %v18180_v39  ;;  %v1427_v28 = vmul.f32 9.961262e-15, %v18180_v39  ;;  %v12305_v10 = vpop.f32.mrb[38].mxu0 }
 0x279   :  { %v5256_v36 = vsel %vm1544_vm1, %v1583_v42, %v18179_v48  ;;  %v1938_v9 = vmul.f32 1.1979456e-08, %v18180_v39  ;;  %v3581_v30 = vadd.f32 %v3313_v21, %v2950_v41  ;;  %v18181_v47 = vrot.slane %v12014_v12, 2 }
 0x27a   :  { %v18182_v45 = vrot.slane %v12210_v35, 2  ;;  %v2470_v42 = vmul.f32 0.00026386508, %v18180_v39  ;;  %v3580_v52 = vadd.f32 %v3311_v13, %v2949_v7  ;;  %v1650_v46 = vrot.slane %v1427_v28, 1 }
 0x27b   :  { %v5608_v63 = vsel %vm2055_vm2, %v18181_v47, %v5607_v38  ;;  %v2161_v1 = vrot.slane %v1938_v9, 2  ;;  %v4212_v60 = vadd.f32 %v3944_v59, %v3581_v30  ;;  %v3101_v54 = vmul.f32 0.10645077, %v18180_v39  ;;  %v18188_v9 = vld [vmem:[#allocation43_spill] sm:$0xff] }
 0x27c   :  { %v5610_v6 = vsel %vm2055_vm2, %v5607_v38, %v18182_v45  ;;  %v5832_v40 = vadd.f32 %v5608_v63, %v5382_v22  ;;  %v2774_v51 = vrot.slane %v2470_v42, 3  ;;  %v3732_v21 = vmul.f32 0.7865707, %v18180_v39  ;;  %v12315_v22 = vpop.f32.mrb[38].mxu1  ;;  %v18201_v63 = vld [vmem:[#allocation45_spill] sm:$0xff] }
 0x27d   :  { %v4211_v12 = vadd.f32 %v3942_v24, %v3580_v52  ;;  %v18185_v48 = vrot.slane %v12215_v58, 1  ;;  %v4603_v59 = vadd.f32 %v4335_v3, %v4212_v60  ;;  %v18186_v7 = vrot.slane %v12218_v26, 2 }
 0x27e   :  { %v12307_v25 = vmul.f32 %v5832_v40, %v5832_v40  ;;  %v12310_v41 = vmul.f32 %v5832_v40, %v18108_v44  ;;  %v18187_v28 = vrot.slane %v12221_v27, 3  ;;  %v12325_v44 = vmul.f32 %v18188_v9, %v18188_v9 }
 0x27f   :  { %v1652_v13 = vsel %vm1544_vm1, %v1650_v46, %v18185_v48  ;;  %v2163_v39 = vsel %vm2055_vm2, %v2161_v1, %v18186_v7  ;;  %v17685_v30 = vrot.slane %v12224_v57, 6  ;;  %v4602_v47 = vadd.f32 %v4333_v62, %v4211_v12 }
 0x280   :  { %18183 = vst [vmem:[#allocation17_spill] sm:$0xff] %v12307_v25  ;;  %18184 = vst [vmem:[#allocation44_spill] sm:$0xff] %v12310_v41  ;;  %v1848_v38 = vadd.f32 %v1652_v13, %v1337_v11  ;;  %v2776_v24 = vsel %vm2626_vm3, %v2774_v51, %v18187_v28  ;;  %v4994_v3 = vadd.f32 %v4726_v33, %v4603_v59  ;;  %v3405_v45 = vrot.slane %v3101_v54, 4  ;;  %v12339_v59 = vpop.f32.mrb[39].mxu0 }
 0x281   :  { %18189 = vst [vmem:[#allocation76_spill] sm:$0xff] %v12325_v44  ;;  %v4036_v52 = vrot.slane %v3732_v21, 5  ;;  %v6117_v40 = vmul.f32 2.0, %v11822_v61  ;;  %v17684_v46 = vrot.slane %v12221_v27, 7  ;;  %v4993_v1 = vadd.f32 %v4724_v43, %v4602_v47 }
 0x282   :  { %v2359_v11 = vadd.f32 %v2163_v39, %v1848_v38  ;;  %v4427_v60 = vrot.slane %v3101_v54, 6  ;;  %v5114_v51 = vadd.f32 %v12207_v55, %v4994_v3  ;;  %v18190_v13 = vrot.slane %v12224_v57, 4 }
 0x283   :  { %v18191_v12 = vrot.slane %v12227_v8, 5  ;;  %v6155_v21 = vadd.f32 %v11885_v0, %v11883_v14  ;;  %v5113_v38 = vadd.f32 %v4993_v1, %v12243_v49  ;;  %v4818_v43 = vrot.slane %v2470_v42, 7 }
 0x284   :  { %v2990_v48 = vadd.f32 %v2776_v24, %v2359_v11  ;;  %v3407_v62 = vsel %vm3257_vm4, %v3405_v45, %v18190_v13  ;;  %v4429_v55 = vsel %vm4279_vm6, %v4427_v60, %v17685_v30  ;;  %v18194_v24 = vrot.slane %v12203_v2, 1 }
 0x285   :  { %v4038_v33 = vsel %vm3888_vm5, %v4036_v52, %v18191_v12  ;;  %v6135_v52 = vadd.f32 0.0001, %v6117_v40  ;;  %v5383_v49 = vadd.f32 %v5256_v36, %v5113_v38  ;;  %v4820_v1 = vsel %vm4670_vm7, %v4818_v43, %v17684_v46 }
 0x286   :  { %v5384_v47 = vadd.f32 %v18194_v24, %v5114_v51  ;;  %v3621_v3 = vadd.f32 %v3407_v62, %v2990_v48  ;;  %v6154_v13 = vadd.f32 %v11893_v31, %v11879_v34  ;;  %v18197_v12 = vrot.slane %v12210_v35, 2 }
 0x287   :  { %v12365_v48 = vmul.f32 2.0, %v11888_v15  ;;  %v6173_v62 = vadd.f32 0.0001, %v6155_v21  ;;  %v12368_v36 = vmul.f32 %v12246_v23, %v6135_v52  ;;  %v5833_v40 = vadd.f32 %v5610_v6, %v5383_v49  ;;  %v18205_v49 = vld [vmem:[#allocation63_spill] sm:$0xff] }
 0x288   :  { %v5834_v2 = vadd.f32 %v18197_v12, %v5384_v47  ;;  %v4252_v51 = vadd.f32 %v4038_v33, %v3621_v3  ;;  %v12376_v60 = vmul.f32 0.00026386508, %v18201_v63  ;;  %v3104_v21 = vmul.f32 0.10645077, %v18201_v63  ;;  %v12385_v47 = vpop.f32.mrb[39].mxu1 }
 0x289   :  { %18198 = vst [vmem:[#allocation77_spill] sm:$0xff] %v12368_v36  ;;  %v12378_v35 = vmul.f32 %v5833_v40, %v5833_v40  ;;  %v12381_v33 = vmul.f32 %v5833_v40, %v18110_v18  ;;  %v3735_v23 = vmul.f32 0.7865707, %v18201_v63  ;;  %v6172_v6 = vadd.f32 0.0001, %v6154_v13 }
 0x28a   :  { %v12370_v38 = vmul.f32 %v5834_v2, %v5834_v2  ;;  %v12373_v43 = vmul.f32 %v5834_v2, %v18112_v17  ;;  %v4643_v24 = vadd.f32 %v4429_v55, %v4252_v51  ;;  %v1338_v3 = vmul.f32 1.5170982e-22, %v11445_v19 }
 0x28b   :  { %18202 = vst [vmem:[#allocation45_spill] sm:$0xff] %v12378_v35  ;;  %18203 = vst [vmem:[#allocation80_spill] sm:$0xff] %v12381_v33  ;;  %v6118_v12 = vmul.f32 2.0, %v18205_v49  ;;  %9508 = vrcp.f32 %v6173_v62  ;;  %v12392_v2 = vmul.f32 0.086542584, %v12368_v36  ;;  %v2779_v45 = vrot.slane %v12376_v60, 3 }
 0x28c   :  { %18199 = vst [vmem:[#allocation78_spill] sm:$0xff] %v12370_v38  ;;  %18200 = vst [vmem:[#allocation79_spill] sm:$0xff] %v12373_v43  ;;  %v5034_v52 = vadd.f32 %v4820_v1, %v4643_v24  ;;  %v5676_v40 = vrot.slane %v1338_v3, 2  ;;  %v12398_v13 = vmul.f32 9.961262e-15, %v18201_v63  ;;  %v3410_v28 = vrot.slane %v3104_v21, 4 }
 0x28d   :  { %18206 = vst [vmem:[#allocation81_spill] sm:$0xff] %v12392_v2  ;;  %v4041_v55 = vrot.slane %v3735_v23, 5  ;;  %v18208_v1 = vld [vmem:[#allocation47_spill] sm:$0xff]  ;;  %9510 = vrcp.f32 %v6172_v6  ;;  %v12404_v7 = vmul.f32 1.5170982e-22, %v18201_v63  ;;  %v4432_v30 = vrot.slane %v3104_v21, 6 }
 0x28e   :  { %v5154_v19 = vadd.f32 %v5034_v52, %v12218_v26  ;;  %v1339_v24 = vmul.f32 1.5170982e-22, %v18208_v1  ;;  %v1429_v62 = vmul.f32 9.961262e-15, %v18208_v1  ;;  %v12407_v51 = vmul.f32 1.1979456e-08, %v18208_v1 }
 0x28f   :  { %v2472_v46 = vmul.f32 0.00026386508, %v18208_v1  ;;  %v3103_v29 = vmul.f32 0.10645077, %v18208_v1  ;;  %v3734_v52 = vmul.f32 0.7865707, %v18208_v1 }
 0x290   :  { %v1653_v9 = vrot.slane %v1429_v62, 1  ;;  %v4823_v23 = vrot.slane %v12376_v60, 7  ;;  %v2164_v6 = vrot.slane %v12407_v51, 2  ;;  %v18209_v17 = vrot.slane %v12215_v58, 1 }
 0x291   :  { %v2777_v18 = vrot.slane %v2472_v46, 3  ;;  %v3408_v31 = vrot.slane %v3103_v29, 4  ;;  %v4039_v0 = vrot.slane %v3734_v52, 5  ;;  %v18210_v34 = vrot.slane %v12218_v26, 2 }
 0x292   :  { %v1654_v32 = vsel %vm1544_vm1, %v18209_v17, %v1653_v9  ;;  %v1850_v37 = vadd.f32 %v1653_v9, %v1339_v24  ;;  %v18211_v60 = vrot.slane %v12221_v27, 3  ;;  %v18212_v58 = vrot.slane %v12224_v57, 4 }
 0x293   :  { %v1849_v62 = vadd.f32 %v1654_v32, %v1338_v3  ;;  %v2165_v1 = vsel %vm2055_vm2, %v18210_v34, %v2164_v6  ;;  %v2780_v44 = vsel %vm2626_vm3, %v2777_v18, %v2779_v45  ;;  %v3411_v52 = vsel %vm3257_vm4, %v3408_v31, %v3410_v28 }
 0x294   :  { %v2778_v20 = vsel %vm2626_vm3, %v18211_v60, %v2777_v18  ;;  %v2361_v14 = vadd.f32 %v2164_v6, %v1850_v37  ;;  %v3409_v17 = vsel %vm3257_vm4, %v18212_v58, %v3408_v31  ;;  %v18213_v3 = vrot.slane %v12227_v8, 5 }
 0x295   :  { %v2360_v42 = vadd.f32 %v2165_v1, %v1849_v62  ;;  %v4042_v34 = vsel %vm3888_vm5, %v4039_v0, %v4041_v55  ;;  %v4430_v21 = vrot.slane %v3103_v29, 6  ;;  %v9509_v5 = vpop.eup %9508  ;;  %v4821_v60 = vrot.slane %v2472_v46, 7 }
 0x296   :  { %v4040_v26 = vsel %vm3888_vm5, %v18213_v3, %v4039_v0  ;;  %v2992_v11 = vadd.f32 %v2780_v44, %v2361_v14  ;;  %v18214_v37 = vrot.slane %v12398_v13, 1  ;;  %v5424_v18 = vadd.f32 %v5154_v19, %v1654_v32 }
 0x297   :  { %v2991_v6 = vadd.f32 %v2778_v20, %v2360_v42  ;;  %v18215_v58 = vrot.slane %v12224_v57, 6  ;;  %v4433_v8 = vsel %vm4279_vm6, %v4430_v21, %v4432_v30  ;;  %v5677_v28 = vrot.slane %v1339_v24, 2  ;;  %v9511_v46 = vpop.eup %9510 }
 0x298   :  { %v5284_v45 = vsel %vm1544_vm1, %v1653_v9, %v18214_v37  ;;  %v6137_v62 = vadd.f32 0.0001, %v12365_v48  ;;  %v3623_v0 = vadd.f32 %v3411_v52, %v2992_v11  ;;  %v18216_v29 = vrot.slane %v12221_v27, 7  ;;  %v18218_v48 = vld [vmem:[#allocation49_spill] sm:$0xff] }
 0x299   :  { %v4431_v31 = vsel %vm4279_vm6, %v18215_v58, %v4430_v21  ;;  %v4824_v44 = vsel %vm4670_vm7, %v4821_v60, %v4823_v23  ;;  %v6136_v9 = vadd.f32 0.0001, %v6118_v12  ;;  %v3622_v32 = vadd.f32 %v3409_v17, %v2991_v6  ;;  %v12482_v6 = vpop.f32.mrb[40].mxu0 }
 0x29a   :  { %v4822_v14 = vsel %vm4670_vm7, %v18216_v29, %v4821_v60  ;;  %v5678_v20 = vsel %vm2055_vm2, %v5676_v40, %v5677_v28  ;;  %v18217_v57 = vrot.slane %v12404_v7, 2  ;;  %v4254_v30 = vadd.f32 %v4042_v34, %v3623_v0  ;;  %18222 = vst [vmem:[#allocation83_spill] sm:$0xff] %v12482_v6 }
 0x29b   :  { %v12450_v55 = vadd.f32 %v5678_v20, %v5424_v18  ;;  %v12453_v11 = vmul.f32 9.961262e-15, %v18218_v48  ;;  %v12456_v27 = vmul.f32 1.1979456e-08, %v18218_v48  ;;  %v12460_v12 = vmul.f32 0.09140719, %v12368_v36 }
 0x29c   :  { %v5680_v42 = vsel %vm2055_vm2, %v5677_v28, %v18217_v57  ;;  %v4253_v24 = vadd.f32 %v4040_v26, %v3622_v32  ;;  %v12463_v40 = vmul.f32 0.00026386508, %v18218_v48  ;;  %v5082_v23 = vmul.f32 1.1979456e-08, %v18201_v63 }
 0x29d   :  { %18219 = vst [vmem:[#allocation47_spill] sm:$0xff] %v12460_v12  ;;  %v4645_v21 = vadd.f32 %v4433_v8, %v4254_v30  ;;  %v12467_v1 = vmul.f32 0.10645077, %v18218_v48  ;;  %v12470_v17 = vmul.f32 0.7865707, %v18218_v48  ;;  %v12472_v52 = vmul.f32 %v9511_v46, %v6136_v9 }
 0x29e   :  { %v12474_v3 = vmul.f32 %v9509_v5, %v6137_v62  ;;  %v4644_v34 = vadd.f32 %v4431_v31, %v4253_v24  ;;  %v12477_v60 = vmul.f32 1.5170982e-22, %v18218_v48  ;;  %v17700_v37 = vrot.slane %v12453_v11, 1  ;;  %v18223_v62 = vld [vmem:[#allocation28_spill] sm:$0xff] }
 0x29f   :  { %18220 = vst [vmem:[#allocation49_spill] sm:$0xff] %v12472_v52  ;;  %v5036_v26 = vadd.f32 %v4824_v44, %v4645_v21  ;;  %v17698_v63 = vrot.slane %v12456_v27, 2  ;;  %v17699_v18 = vrot.slane %v12463_v40, 3  ;;  %v12488_v0 = vmul.f32 9.961262e-15, %v18223_v62 }
 0x2a0   :  { %18221 = vst [vmem:[#allocation82_spill] sm:$0xff] %v12474_v3  ;;  %v5035_v58 = vadd.f32 %v4822_v14, %v4644_v34  ;;  %v12491_v29 = vmul.f32 1.1979456e-08, %v18223_v62  ;;  %v12494_v44 = vmul.f32 0.00026386508, %v18223_v62  ;;  %v18224_v20 = vrot.slane %v12398_v13, 1 }
 0x2a1   :  { %v5156_v31 = vadd.f32 %v5082_v23, %v5036_v26  ;;  %v12499_v9 = vmul.f32 0.10645077, %v18223_v62  ;;  %v12502_v32 = vmul.f32 0.7865707, %v18223_v62  ;;  %v12507_v30 = vmul.f32 1.5170982e-22, %v18223_v62 }
 0x2a2   :  { %v5155_v46 = vadd.f32 %v5035_v58, %v12407_v51  ;;  %v18225_v26 = vrot.slane %v12404_v7, 2  ;;  %v18231_v34 = vrot.slane %v12470_v17, 5  ;;  %v18238_v39 = vrot.slane %v12494_v44, 3 }
 0x2a3   :  { %v5426_v57 = vadd.f32 %v18224_v20, %v5156_v31  ;;  %v18227_v31 = vld [vmem:[#allocation29_spill] sm:$0xff] }
 0x2a4   :  { %v5425_v23 = vadd.f32 %v5284_v45, %v5155_v46  ;;  %v1298_v62 = vmul.f32 1.5170982e-22, %v18227_v31  ;;  %v1388_v20 = vmul.f32 9.961262e-15, %v18227_v31  ;;  %v1899_v45 = vmul.f32 1.1979456e-08, %v18227_v31 }
 0x2a5   :  { %v12516_v58 = vadd.f32 %v18225_v26, %v5426_v57  ;;  %v2418_v46 = vmul.f32 0.00026386508, %v18227_v31  ;;  %v3049_v21 = vmul.f32 0.10645077, %v18227_v31  ;;  %v3680_v7 = vmul.f32 0.7865707, %v18227_v31 }
 0x2a6   :  { %v12521_v19 = vadd.f32 %v5680_v42, %v5425_v23  ;;  %v1585_v51 = vrot.slane %v1388_v20, 1  ;;  %v18229_v57 = vld [vmem:[#allocation53_spill] sm:$0xff]  ;;  %v2096_v13 = vrot.slane %v1899_v45, 2  ;;  %v18230_v45 = vrot.slane %v12467_v1, 4 }
 0x2a7   :  { %18226 = vst [vmem:[#allocation28_spill] sm:$0xff] %v12516_v58  ;;  %v1340_v26 = vmul.f32 1.5170982e-22, %v18229_v57  ;;  %v2683_v24 = vrot.slane %v2418_v46, 3  ;;  %v3314_v48 = vrot.slane %v3049_v21, 4  ;;  %v4336_v5 = vrot.slane %v3049_v21, 6 }
 0x2a8   :  { %18228 = vst [vmem:[#allocation29_spill] sm:$0xff] %v12521_v19  ;;  %v1587_v42 = vsel %vm1544_vm1, %v1585_v51, %v17700_v37  ;;  %v3945_v23 = vrot.slane %v3680_v7, 5  ;;  %v4727_v14 = vrot.slane %v2418_v46, 7  ;;  %v1430_v28 = vmul.f32 9.961262e-15, %v18229_v57  ;;  %v18235_v37 = vld [vmem:[#allocation54_spill] sm:$0xff] }
 0x2a9   :  { %v1809_v8 = vadd.f32 %v1587_v42, %v1298_v62  ;;  %v2098_v20 = vsel %vm2055_vm2, %v2096_v13, %v17698_v63  ;;  %v2685_v31 = vsel %vm2626_vm3, %v2683_v24, %v17699_v18  ;;  %v3316_v21 = vsel %vm3257_vm4, %v3314_v48, %v18230_v45 }
 0x2aa   :  { %v3947_v51 = vsel %vm3888_vm5, %v3945_v23, %v18231_v34  ;;  %v18232_v46 = vrot.slane %v12467_v1, 6  ;;  %v18233_v7 = vrot.slane %v12463_v40, 7  ;;  %v1655_v42 = vrot.slane %v1430_v28, 1 }
 0x2ab   :  { %v2320_v63 = vadd.f32 %v2098_v20, %v1809_v8  ;;  %v1941_v24 = vmul.f32 1.1979456e-08, %v18229_v57  ;;  %v2474_v18 = vmul.f32 0.00026386508, %v18229_v57  ;;  %v3105_v48 = vmul.f32 0.10645077, %v18229_v57 }
 0x2ac   :  { %v4338_v62 = vsel %vm4279_vm6, %v4336_v5, %v18232_v46  ;;  %v4729_v13 = vsel %vm4670_vm7, %v4727_v14, %v18233_v7  ;;  %v18234_v45 = vrot.slane %v12488_v0, 1  ;;  %v3736_v23 = vmul.f32 0.7865707, %v18229_v57  ;;  %v12564_v7 = vpop.f32.mrb[40].mxu1 }
 0x2ad   :  { %v12559_v5 = vmul.f32 0.00026386508, %v18235_v37  ;;  %v12562_v46 = vmul.f32 0.10645077, %v18235_v37  ;;  %v2951_v28 = vadd.f32 %v2685_v31, %v2320_v63  ;;  %v2166_v14 = vrot.slane %v1941_v24, 2  ;;  %18236 = vst [vmem:[#allocation53_spill] sm:$0xff] %v12564_v7 }
 0x2ae   :  { %v1657_v34 = vsel %vm1544_vm1, %v1655_v42, %v18234_v45  ;;  %v2781_v20 = vrot.slane %v2474_v18, 3  ;;  %v3412_v12 = vrot.slane %v3105_v48, 4  ;;  %v4043_v36 = vrot.slane %v3736_v23, 5 }
 0x2af   :  { %v1851_v8 = vadd.f32 %v1657_v34, %v1340_v26  ;;  %v4434_v2 = vrot.slane %v3105_v48, 6  ;;  %v4825_v3 = vrot.slane %v2474_v18, 7  ;;  %v3582_v45 = vadd.f32 %v3316_v21, %v2951_v28 }
 0x2b0   :  { %v18237_v57 = vrot.slane %v12491_v29, 2  ;;  %v2783_v63 = vsel %vm2626_vm3, %v2781_v20, %v18238_v39  ;;  %v18239_v31 = vrot.slane %v12499_v9, 4  ;;  %v18240_v34 = vrot.slane %v12502_v32, 5 }
 0x2b1   :  { %v18241_v48 = vrot.slane %v12499_v9, 6  ;;  %v4213_v23 = vadd.f32 %v3947_v51, %v3582_v45  ;;  %v18242_v28 = vrot.slane %v12494_v44, 7  ;;  %v2786_v39 = vrot.slane %v12559_v5, 3 }
 0x2b2   :  { %v2168_v16 = vsel %vm2055_vm2, %v2166_v14, %v18237_v57  ;;  %v3414_v24 = vsel %vm3257_vm4, %v3412_v12, %v18239_v31  ;;  %v4045_v18 = vsel %vm3888_vm5, %v4043_v36, %v18240_v34  ;;  %v3417_v12 = vrot.slane %v12562_v46, 4  ;;  %v18244_v34 = vld [vmem:[#allocation55_spill] sm:$0xff] }
 0x2b3   :  { %v2362_v26 = vadd.f32 %v2168_v16, %v1851_v8  ;;  %v4436_v21 = vsel %vm4279_vm6, %v4434_v2, %v18241_v48  ;;  %v4827_v14 = vsel %vm4670_vm7, %v4825_v3, %v18242_v28  ;;  %v3739_v16 = vmul.f32 0.7865707, %v18235_v37  ;;  %v12596_v3 = vpop.f32.mrb[41].mxu0 }
 0x2b4   :  { %v4439_v20 = vrot.slane %v12562_v46, 6  ;;  %v4830_v36 = vrot.slane %v12559_v5, 7  ;;  %v4604_v57 = vadd.f32 %v4338_v62, %v4213_v23  ;;  %v12591_v2 = vmul.f32 9.961262e-15, %v18235_v37  ;;  %18243 = vst [vmem:[#allocation54_spill] sm:$0xff] %v12596_v3  ;;  %v12622_v3 = vpop.f32.mrb[41].mxu1 }
 0x2b5   :  { %v2993_v8 = vadd.f32 %v2783_v63, %v2362_v26  ;;  %v4048_v31 = vrot.slane %v3739_v16, 5  ;;  %v12594_v51 = vmul.f32 1.5170982e-22, %v18235_v37  ;;  %v1342_v48 = vmul.f32 1.5170982e-22, %v18244_v34 }
 0x2b6   :  { %v1432_v63 = vmul.f32 9.961262e-15, %v18244_v34  ;;  %v12601_v26 = vmul.f32 1.1979456e-08, %v18244_v34  ;;  %v12603_v46 = vadd.f32 %v4729_v13, %v4604_v57  ;;  %v2476_v23 = vmul.f32 0.00026386508, %v18244_v34 }
 0x2b7   :  { %v3624_v45 = vadd.f32 %v3414_v24, %v2993_v8  ;;  %v3107_v24 = vmul.f32 0.10645077, %v18244_v34  ;;  %v3738_v4 = vmul.f32 0.7865707, %v18244_v34  ;;  %v5682_v15 = vrot.slane %v1342_v48, 2 }
 0x2b8   :  { %v1658_v16 = vrot.slane %v1432_v63, 1  ;;  %v2169_v42 = vrot.slane %v12601_v26, 2  ;;  %v2784_v8 = vrot.slane %v2476_v23, 3  ;;  %v4828_v54 = vrot.slane %v2476_v23, 7 }
 0x2b9   :  { %v4255_v28 = vadd.f32 %v4045_v18, %v3624_v45  ;;  %v18245_v13 = vrot.slane %v12488_v0, 1  ;;  %v18246_v5 = vrot.slane %v12491_v29, 2  ;;  %v18247_v63 = vrot.slane %v12494_v44, 3 }
 0x2ba   :  { %v1853_v62 = vadd.f32 %v1658_v16, %v1342_v48  ;;  %v2787_v34 = vsel %vm2626_vm3, %v2784_v8, %v2786_v39  ;;  %v3415_v23 = vrot.slane %v3107_v24, 4  ;;  %v18248_v7 = vrot.slane %v12499_v9, 4 }
 0x2bb   :  { %v4646_v49 = vadd.f32 %v4436_v21, %v4255_v28  ;;  %v1659_v57 = vsel %vm1544_vm1, %v18245_v13, %v1658_v16  ;;  %v2170_v18 = vsel %vm2055_vm2, %v18246_v5, %v2169_v42  ;;  %v2785_v61 = vsel %vm2626_vm3, %v18247_v63, %v2784_v8 }
 0x2bc   :  { %v1852_v45 = vadd.f32 %v1659_v57, %v12507_v30  ;;  %v2364_v0 = vadd.f32 %v2169_v42, %v1853_v62  ;;  %v4046_v28 = vrot.slane %v3738_v4, 5  ;;  %v4437_v13 = vrot.slane %v3107_v24, 6 }
 0x2bd   :  { %v5037_v21 = vadd.f32 %v4827_v14, %v4646_v49  ;;  %v3416_v5 = vsel %vm3257_vm4, %v18248_v7, %v3415_v23  ;;  %v3418_v6 = vsel %vm3257_vm4, %v3415_v23, %v3417_v12  ;;  %v18249_v19 = vrot.slane %v12494_v44, 7 }
 0x2be   :  { %v2363_v48 = vadd.f32 %v2170_v18, %v1852_v45  ;;  %v2995_v58 = vadd.f32 %v2787_v34, %v2364_v0  ;;  %v18250_v39 = vrot.slane %v12502_v32, 5  ;;  %v4049_v49 = vsel %vm3888_vm5, %v4046_v28, %v4048_v31  ;;  %v12672_v0 = vpop.f32.mrb[42].mxu1 }
 0x2bf   :  { %v4829_v63 = vsel %vm4670_vm7, %v18249_v19, %v4828_v54  ;;  %v18251_v4 = vrot.slane %v12499_v9, 6  ;;  %v4440_v7 = vsel %vm4279_vm6, %v4437_v13, %v4439_v20  ;;  %v4831_v12 = vsel %vm4670_vm7, %v4828_v54, %v4830_v36  ;;  %v18255_v20 = vld [vmem:[#allocation57_spill] sm:$0xff] }
 0x2c0   :  { %v4047_v8 = vsel %vm3888_vm5, %v18250_v39, %v4046_v28  ;;  %v2994_v14 = vadd.f32 %v2785_v61, %v2363_v48  ;;  %v5157_v44 = vadd.f32 %v5037_v21, %v12491_v29  ;;  %v3626_v62 = vadd.f32 %v3418_v6, %v2995_v58  ;;  %v18256_v6 = vld [vmem:[#allocation11_spill] sm:$0xff]  ;;  %v12670_v21 = vpop.f32.mrb[42].mxu0 }
 0x2c1   :  { %v4438_v42 = vsel %vm4279_vm6, %v18251_v4, %v4437_v13  ;;  %v18252_v19 = vrot.slane %v12591_v2, 1  ;;  %v18253_v24 = vrot.slane %v12507_v30, 2  ;;  %v18254_v9 = vrot.slane %v12594_v51, 2 }
 0x2c2   :  { %v3625_v61 = vadd.f32 %v3416_v5, %v2994_v14  ;;  %v5427_v45 = vadd.f32 %v5157_v44, %v1659_v57  ;;  %v12651_v34 = vmul.f32 0.00026386508, %v18255_v20  ;;  %v12654_v54 = vmul.f32 0.10645077, %v18255_v20  ;;  %v18258_v14 = vld [vmem:[#allocation66_spill] sm:$0xff] }
 0x2c3   :  { %v5286_v32 = vsel %vm1544_vm1, %v1658_v16, %v18252_v19  ;;  %v5683_v31 = vsel %vm2055_vm2, %v18253_v24, %v5682_v15  ;;  %v5685_v18 = vsel %vm2055_vm2, %v5682_v15, %v18254_v9  ;;  %v12658_v29 = vadd.f32 %v12307_v25, %v18256_v6  ;;  %v12700_v9 = vpop.f32.mrb[43].mxu0 }
 0x2c4   :  { %v4257_v58 = vadd.f32 %v4049_v49, %v3626_v62  ;;  %v12662_v36 = vmul.f32 0.7865707, %v18255_v20  ;;  %v5083_v15 = vmul.f32 1.1979456e-08, %v18235_v37  ;;  %v4256_v16 = vadd.f32 %v4047_v8, %v3625_v61  ;;  %18259 = vst [vmem:[#allocation57_spill] sm:$0xff] %v12700_v9 }
 0x2c5   :  { %v12665_v57 = vadd.f32 %v5683_v31, %v5427_v45  ;;  %v12668_v23 = vmul.f32 1.1979456e-08, %v18255_v20  ;;  %v2688_v13 = vrot.slane %v12651_v34, 3  ;;  %v3319_v48 = vrot.slane %v12654_v54, 4 }
 0x2c6   :  { %v4648_v28 = vadd.f32 %v4440_v7, %v4257_v58  ;;  %v12677_v5 = vmul.f32 9.961262e-15, %v18255_v20  ;;  %v4647_v39 = vadd.f32 %v4438_v42, %v4256_v16  ;;  %v3950_v37 = vrot.slane %v12662_v36, 5 }
 0x2c7   :  { %18257 = vst [vmem:[#allocation55_spill] sm:$0xff] %v12665_v57  ;;  %v4341_v8 = vrot.slane %v12654_v54, 6  ;;  %v12682_v49 = vmul.f32 1.5170982e-22, %v18255_v20  ;;  %v12685_v44 = vmul.f32 9.961262e-15, %v18258_v14 }
 0x2c8   :  { %v5039_v4 = vadd.f32 %v4831_v12, %v4648_v28  ;;  %v12688_v7 = vmul.f32 1.1979456e-08, %v18258_v14  ;;  %v12691_v62 = vmul.f32 0.00026386508, %v18258_v14  ;;  %v5038_v19 = vadd.f32 %v4829_v63, %v4647_v39  ;;  %v18261_v39 = vld [vmem:[#allocation67_spill] sm:$0xff] }
 0x2c9   :  { %v4732_v42 = vrot.slane %v12651_v34, 7  ;;  %v12695_v24 = vmul.f32 0.10645077, %v18258_v14  ;;  %v12698_v31 = vmul.f32 0.7865707, %v18258_v14  ;;  %v18260_v36 = vrot.slane %v12591_v2, 1 }
 0x2ca   :  { %v5159_v12 = vadd.f32 %v5083_v15, %v5039_v4  ;;  %v5158_v54 = vadd.f32 %v5038_v19, %v12601_v26  ;;  %v1300_v4 = vmul.f32 1.5170982e-22, %v18261_v39  ;;  %v1390_v20 = vmul.f32 9.961262e-15, %v18261_v39 }
 0x2cb   :  { %v12716_v26 = vmul.f32 1.1979456e-08, %v18261_v39  ;;  %v2420_v19 = vmul.f32 0.00026386508, %v18261_v39  ;;  %v18262_v34 = vrot.slane %v12594_v51, 2  ;;  %v18265_v51 = vrot.slane %v12453_v11, 1 }
 0x2cc   :  { %v5429_v16 = vadd.f32 %v18260_v36, %v5159_v12  ;;  %v5428_v45 = vadd.f32 %v5286_v32, %v5158_v54  ;;  %v3051_v2 = vmul.f32 0.10645077, %v18261_v39  ;;  %v3682_v12 = vmul.f32 0.7865707, %v18261_v39 }
 0x2cd   :  { %v5115_v36 = vadd.f32 %v12603_v46, %v12456_v27  ;;  %v1588_v32 = vrot.slane %v1390_v20, 1  ;;  %v2099_v54 = vrot.slane %v12716_v26, 2  ;;  %v2686_v28 = vrot.slane %v2420_v19, 3 }
 0x2ce   :  { %v12721_v58 = vadd.f32 %v18262_v34, %v5429_v16  ;;  %v12727_v15 = vadd.f32 %v5685_v18, %v5428_v45  ;;  %v3317_v63 = vrot.slane %v3051_v2, 4  ;;  %v3948_v30 = vrot.slane %v3682_v12, 5  ;;  %v12739_v45 = vpop.f32.mrb[43].mxu1 }
 0x2cf   :  { %v4339_v61 = vrot.slane %v3051_v2, 6  ;;  %v4730_v25 = vrot.slane %v2420_v19, 7  ;;  %v1589_v34 = vsel %vm1544_vm1, %v18265_v51, %v1588_v32  ;;  %v1811_v16 = vadd.f32 %v1588_v32, %v1300_v4  ;;  %18268 = vst [vmem:[#allocation84_spill] sm:$0xff] %v12739_v45 }
 0x2d0   :  { %18263 = vst [vmem:[#allocation66_spill] sm:$0xff] %v12721_v58  ;;  %18264 = vst [vmem:[#allocation67_spill] sm:$0xff] %v12727_v15  ;;  %v18266_v39 = vrot.slane %v12456_v27, 2  ;;  %v18267_v46 = vrot.slane %v12463_v40, 3  ;;  %v1810_v20 = vadd.f32 %v1589_v34, %v12477_v60  ;;  %v2689_v2 = vsel %vm2626_vm3, %v2686_v28, %v2688_v13 }
 0x2d1   :  { %v18269_v19 = vrot.slane %v12467_v1, 4  ;;  %v3320_v12 = vsel %vm3257_vm4, %v3317_v63, %v3319_v48  ;;  %v2322_v51 = vadd.f32 %v2099_v54, %v1811_v16  ;;  %v18270_v27 = vrot.slane %v12470_v17, 5 }
 0x2d2   :  { %v2100_v6 = vsel %vm2055_vm2, %v18266_v39, %v2099_v54  ;;  %v2687_v18 = vsel %vm2626_vm3, %v18267_v46, %v2686_v28  ;;  %v3951_v15 = vsel %vm3888_vm5, %v3948_v30, %v3950_v37  ;;  %v18271_v46 = vrot.slane %v12467_v1, 6  ;;  %v18274_v1 = vld [vmem:[#allocation71_spill] sm:$0xff] }
 0x2d3   :  { %v3318_v11 = vsel %vm3257_vm4, %v18269_v19, %v3317_v63  ;;  %v3949_v39 = vsel %vm3888_vm5, %v18270_v27, %v3948_v30  ;;  %v2321_v57 = vadd.f32 %v2100_v6, %v1810_v20  ;;  %v4342_v13 = vsel %vm4279_vm6, %v4339_v61, %v4341_v8 }
 0x2d4   :  { %v4340_v58 = vsel %vm4279_vm6, %v18271_v46, %v4339_v61  ;;  %v18272_v28 = vrot.slane %v12463_v40, 7  ;;  %v4733_v48 = vsel %vm4670_vm7, %v4730_v25, %v4732_v42  ;;  %v2953_v63 = vadd.f32 %v2689_v2, %v2322_v51 }
 0x2d5   :  { %v18273_v17 = vrot.slane %v12677_v5, 1  ;;  %v5385_v16 = vadd.f32 %v5115_v36, %v1589_v34  ;;  %v5612_v30 = vrot.slane %v1300_v4, 2  ;;  %v2952_v37 = vadd.f32 %v2687_v18, %v2321_v57 }
 0x2d6   :  { %v4731_v19 = vsel %vm4670_vm7, %v18272_v28, %v4730_v25  ;;  %v1343_v27 = vmul.f32 1.5170982e-22, %v18274_v1  ;;  %v1433_v6 = vmul.f32 9.961262e-15, %v18274_v1  ;;  %v1944_v8 = vmul.f32 1.1979456e-08, %v18274_v1 }
 0x2d7   :  { %v5258_v54 = vsel %vm1544_vm1, %v1588_v32, %v18273_v17  ;;  %v3584_v61 = vadd.f32 %v3320_v12, %v2953_v63  ;;  %v18275_v40 = vrot.slane %v12477_v60, 2  ;;  %v18276_v25 = vrot.slane %v12682_v49, 2  ;;  %v18277_v28 = vld [vmem:[#allocation14_spill] sm:$0xff] }
 0x2d8   :  { %v2478_v32 = vmul.f32 0.00026386508, %v18274_v1  ;;  %v3583_v36 = vadd.f32 %v3318_v11, %v2952_v37  ;;  %v1660_v57 = vrot.slane %v1433_v6, 1  ;;  %v2171_v34 = vrot.slane %v1944_v8, 2 }
 0x2d9   :  { %v5613_v20 = vsel %vm2055_vm2, %v18275_v40, %v5612_v30  ;;  %v5615_v42 = vsel %vm2055_vm2, %v5612_v30, %v18276_v25  ;;  %v4215_v18 = vadd.f32 %v3951_v15, %v3584_v61  ;;  %v3109_v51 = vmul.f32 0.10645077, %v18274_v1 }
 0x2da   :  { %v12772_v4 = vadd.f32 %v5613_v20, %v5385_v16  ;;  %v2788_v2 = vrot.slane %v2478_v32, 3  ;;  %v3740_v12 = vmul.f32 0.7865707, %v18274_v1  ;;  %v4214_v46 = vadd.f32 %v3949_v39, %v3583_v36 }
 0x2db   :  { %v18279_v17 = vrot.slane %v12685_v44, 1  ;;  %v4606_v16 = vadd.f32 %v4342_v13, %v4215_v18  ;;  %v18280_v15 = vrot.slane %v12688_v7, 2  ;;  %v18281_v6 = vrot.slane %v12691_v62, 3 }
 0x2dc   :  { %v12779_v63 = vmul.f32 %v12772_v4, %v18277_v28  ;;  %v6120_v39 = vmul.f32 2.0, %v12310_v41  ;;  %v4605_v8 = vadd.f32 %v4340_v58, %v4214_v46  ;;  %v3419_v61 = vrot.slane %v3109_v51, 4  ;;  %v18287_v46 = vld [vmem:[#allocation72_spill] sm:$0xff] }
 0x2dd   :  { %v1662_v11 = vsel %vm1544_vm1, %v1660_v57, %v18279_v17  ;;  %v2173_v37 = vsel %vm2055_vm2, %v2171_v34, %v18280_v15  ;;  %v2790_v1 = vsel %vm2626_vm3, %v2788_v2, %v18281_v6  ;;  %v4050_v40 = vrot.slane %v3740_v12, 5 }
 0x2de   :  { %18278 = vst [vmem:[#allocation71_spill] sm:$0xff] %v12779_v63  ;;  %v1854_v30 = vadd.f32 %v1662_v11, %v1343_v27  ;;  %v4997_v20 = vadd.f32 %v4733_v48, %v4606_v16  ;;  %v4441_v36 = vrot.slane %v3109_v51, 6  ;;  %v4832_v60 = vrot.slane %v2478_v32, 7 }
 0x2df   :  { %v6174_v13 = vadd.f32 0.0001, %v12658_v29  ;;  %v4996_v27 = vadd.f32 %v4731_v19, %v4605_v8  ;;  %v18282_v57 = vrot.slane %v12695_v24, 4  ;;  %v18283_v18 = vrot.slane %v12698_v31, 5  ;;  %v18289_v8 = vld [vmem:[#allocation13_spill] sm:$0xff] }
 0x2e0   :  { %v2365_v25 = vadd.f32 %v2173_v37, %v1854_v30  ;;  %v5117_v17 = vadd.f32 %v12668_v23, %v4997_v20  ;;  %v18284_v12 = vrot.slane %v12695_v24, 6  ;;  %v18285_v32 = vrot.slane %v12691_v62, 7 }
 0x2e1   :  { %v3421_v34 = vsel %vm3257_vm4, %v3419_v61, %v18282_v57  ;;  %v4052_v2 = vsel %vm3888_vm5, %v4050_v40, %v18283_v18  ;;  %v12806_v19 = vmul.f32 0.086542584, %v12472_v52  ;;  %v5116_v51 = vadd.f32 %v4996_v27, %v12716_v26 }
 0x2e2   :  { %v2996_v58 = vadd.f32 %v2790_v1, %v2365_v25  ;;  %v4443_v48 = vsel %vm4279_vm6, %v4441_v36, %v18284_v12  ;;  %v4834_v29 = vsel %vm4670_vm7, %v4832_v60, %v18285_v32  ;;  %v12810_v11 = vmul.f32 0.00026386508, %v18287_v46 }
 0x2e3   :  { %18286 = vst [vmem:[#allocation85_spill] sm:$0xff] %v12806_v19  ;;  %v3112_v16 = vmul.f32 0.10645077, %v18287_v46  ;;  %v12813_v23 = vadd.f32 0.0001, %v6120_v39  ;;  %v18288_v15 = vrot.slane %v12677_v5, 1  ;;  %9512 = vrcp.f32 %v6174_v13 }
 0x2e4   :  { %v12816_v30 = vmul.f32 1.5170982e-22, %v18258_v14  ;;  %v3627_v6 = vadd.f32 %v3421_v34, %v2996_v58  ;;  %v12821_v60 = vmul.f32 2.0, %v12373_v43  ;;  %v5386_v1 = vadd.f32 %v5258_v54, %v5116_v51  ;;  %v18291_v54 = vld [vmem:[#allocation15_spill] sm:$0xff]  ;;  %v18293_v34 = vld [vmem:[#allocation73_spill] sm:$0xff] }
 0x2e5   :  { %v5387_v37 = vadd.f32 %v18288_v15, %v5117_v17  ;;  %v3743_v26 = vmul.f32 0.7865707, %v18287_v46  ;;  %v6157_v61 = vadd.f32 %v12378_v35, %v18289_v8  ;;  %v18290_v40 = vrot.slane %v12682_v49, 2  ;;  %v12843_v17 = vpop.f32.mrb[44].mxu0 }
 0x2e6   :  { %v4258_v20 = vadd.f32 %v4052_v2, %v3627_v6  ;;  %v12831_v5 = vadd.f32 %v5615_v42, %v5386_v1  ;;  %v2793_v25 = vrot.slane %v12810_v11, 3  ;;  %v3424_v36 = vrot.slane %v3112_v16, 4  ;;  %18294 = vst [vmem:[#allocation73_spill] sm:$0xff] %v12843_v17  ;;  %v18295_v2 = vld [vmem:[#allocation16_spill] sm:$0xff] }
 0x2e7   :  { %v12829_v14 = vadd.f32 %v18290_v40, %v5387_v37  ;;  %v12835_v13 = vmul.f32 9.961262e-15, %v18287_v46  ;;  %v1345_v18 = vmul.f32 1.5170982e-22, %v18293_v34  ;;  %v1435_v49 = vmul.f32 9.961262e-15, %v18293_v34 }
 0x2e8   :  { %v4649_v57 = vadd.f32 %v4443_v48, %v4258_v20  ;;  %v12847_v42 = vmul.f32 %v12831_v5, %v18295_v2  ;;  %v4055_v58 = vrot.slane %v3743_v26, 5  ;;  %v12850_v12 = vmul.f32 1.5170982e-22, %v18287_v46 }
 0x2e9   :  { %v12839_v27 = vmul.f32 %v12829_v14, %v18291_v54  ;;  %v12853_v32 = vmul.f32 1.1979456e-08, %v18293_v34  ;;  %v4446_v15 = vrot.slane %v3112_v16, 6  ;;  %v1663_v48 = vrot.slane %v1435_v49, 1 }
 0x2ea   :  { %18296 = vst [vmem:[#allocation86_spill] sm:$0xff] %v12847_v42  ;;  %v5040_v51 = vadd.f32 %v4834_v29, %v4649_v57  ;;  %v2480_v37 = vmul.f32 0.00026386508, %v18293_v34  ;;  %v4837_v6 = vrot.slane %v12810_v11, 7  ;;  %v3111_v40 = vmul.f32 0.10645077, %v18293_v34 }
 0x2eb   :  { %18292 = vst [vmem:[#allocation72_spill] sm:$0xff] %v12839_v27  ;;  %v2174_v1 = vrot.slane %v12853_v32, 2  ;;  %v3742_v20 = vmul.f32 0.7865707, %v18293_v34  ;;  %v18297_v39 = vrot.slane %v12685_v44, 1  ;;  %v1856_v52 = vadd.f32 %v1663_v48, %v1345_v18 }
 0x2ec   :  { %v2791_v29 = vrot.slane %v2480_v37, 3  ;;  %v18298_v11 = vrot.slane %v12688_v7, 2  ;;  %v3422_v54 = vrot.slane %v3111_v40, 4  ;;  %v18299_v34 = vrot.slane %v12691_v62, 3 }
 0x2ed   :  { %v1664_v19 = vsel %vm1544_vm1, %v18297_v39, %v1663_v48  ;;  %v2367_v2 = vadd.f32 %v2174_v1, %v1856_v52  ;;  %v4053_v28 = vrot.slane %v3742_v20, 5  ;;  %v12873_v39 = vpop.eup %9512  ;;  %v18300_v16 = vrot.slane %v12695_v24, 4 }
 0x2ee   :  { %v1855_v57 = vadd.f32 %v1664_v19, %v12816_v30  ;;  %v2175_v49 = vsel %vm2055_vm2, %v18298_v11, %v2174_v1  ;;  %v2792_v26 = vsel %vm2626_vm3, %v18299_v34, %v2791_v29  ;;  %v2794_v44 = vsel %vm2626_vm3, %v2791_v29, %v2793_v25 }
 0x2ef   :  { %v3423_v8 = vsel %vm3257_vm4, %v18300_v16, %v3422_v54  ;;  %v3425_v43 = vsel %vm3257_vm4, %v3422_v54, %v3424_v36  ;;  %v4444_v41 = vrot.slane %v3111_v40, 6  ;;  %v2998_v11 = vadd.f32 %v2794_v44, %v2367_v2 }
 0x2f0   :  { %v2366_v35 = vadd.f32 %v2175_v49, %v1855_v57  ;;  %v18301_v52 = vrot.slane %v12698_v31, 5  ;;  %v4056_v34 = vsel %vm3888_vm5, %v4053_v28, %v4055_v58  ;;  %v4835_v17 = vrot.slane %v2480_v37, 7 }
 0x2f1   :  { %v18302_v20 = vrot.slane %v12695_v24, 6  ;;  %v4447_v57 = vsel %vm4279_vm6, %v4444_v41, %v4446_v15  ;;  %v5160_v16 = vadd.f32 %v5040_v51, %v12688_v7  ;;  %v3629_v49 = vadd.f32 %v3425_v43, %v2998_v11  ;;  %v18309_v15 = vld [vmem:[#allocation12_spill] sm:$0xff] }
 0x2f2   :  { %v4054_v1 = vsel %vm3888_vm5, %v18301_v52, %v4053_v28  ;;  %v2997_v25 = vadd.f32 %v2792_v26, %v2366_v35  ;;  %v18303_v36 = vrot.slane %v12691_v62, 7  ;;  %v4838_v31 = vsel %vm4670_vm7, %v4835_v17, %v4837_v6  ;;  %v18305_v26 = vld [vmem:[#allocation74_spill] sm:$0xff] }
 0x2f3   :  { %v4445_v29 = vsel %vm4279_vm6, %v18302_v20, %v4444_v41  ;;  %v18304_v2 = vrot.slane %v12835_v13, 1  ;;  %v6175_v35 = vadd.f32 0.0001, %v6157_v61  ;;  %v5430_v24 = vadd.f32 %v5160_v16, %v1664_v19 }
 0x2f4   :  { %v4836_v54 = vsel %vm4670_vm7, %v18303_v36, %v4835_v17  ;;  %v3628_v58 = vadd.f32 %v3423_v8, %v2997_v25  ;;  %v5687_v37 = vrot.slane %v1345_v18, 2  ;;  %v4260_v40 = vadd.f32 %v4056_v34, %v3629_v49  ;;  %v12913_v18 = vpop.f32.mrb[44].mxu1 }
 0x2f5   :  { %v5288_v28 = vsel %vm1544_vm1, %v1663_v48, %v18304_v2  ;;  %v12896_v41 = vmul.f32 9.961262e-15, %v18305_v26  ;;  %v12899_v43 = vmul.f32 1.1979456e-08, %v18305_v26  ;;  %v12902_v7 = vmul.f32 0.00026386508, %v18305_v26 }
 0x2f6   :  { %v4259_v62 = vadd.f32 %v4054_v1, %v3628_v58  ;;  %v18306_v17 = vrot.slane %v12816_v30, 2  ;;  %v18307_v61 = vrot.slane %v12850_v12, 2  ;;  %v12911_v8 = vmul.f32 0.10645077, %v18305_v26  ;;  %18308 = vst [vmem:[#allocation74_spill] sm:$0xff] %v12913_v18 }
 0x2f7   :  { %v12917_v48 = vadd.f32 %v12370_v38, %v18309_v15  ;;  %v5084_v6 = vmul.f32 1.1979456e-08, %v18287_v46  ;;  %v4651_v44 = vadd.f32 %v4447_v57, %v4260_v40  ;;  %v12923_v30 = vmul.f32 2.0, %v12381_v33 }
 0x2f8   :  { %v5688_v51 = vsel %vm2055_vm2, %v18306_v17, %v5687_v37  ;;  %v5690_v19 = vsel %vm2055_vm2, %v5687_v37, %v18307_v61  ;;  %v12926_v52 = vadd.f32 0.0001, %v12821_v60  ;;  %9514 = vrcp.f32 %v6175_v35 }
 0x2f9   :  { %v12920_v11 = vadd.f32 %v5688_v51, %v5430_v24  ;;  %v4650_v1 = vadd.f32 %v4445_v29, %v4259_v62  ;;  %v5042_v34 = vadd.f32 %v4838_v31, %v4651_v44  ;;  %v17724_v25 = vrot.slane %v12896_v41, 1 }
 0x2fa   :  { %18311 = vst [vmem:[#allocation88_spill] sm:$0xff] %v12926_v52  ;;  %v17726_v20 = vrot.slane %v12899_v43, 2  ;;  %v12931_v16 = vmul.f32 0.7865707, %v18305_v26  ;;  %v17725_v57 = vrot.slane %v12902_v7, 3  ;;  %v18312_v37 = vrot.slane %v12835_v13, 1 }
 0x2fb   :  { %18310 = vst [vmem:[#allocation87_spill] sm:$0xff] %v12920_v11  ;;  %v5041_v46 = vadd.f32 %v4836_v54, %v4650_v1  ;;  %v12936_v36 = vmul.f32 9.961262e-15, %v12212_v53  ;;  %v5162_v60 = vadd.f32 %v5084_v6, %v5042_v34  ;;  %v12939_v2 = vmul.f32 1.1979456e-08, %v12212_v53  ;;  %v12961_v1 = vpop.f32.mrb[45].mxu0 }
 0x2fc   :  { %v12942_v29 = vmul.f32 0.00026386508, %v12212_v53  ;;  %v12945_v31 = vmul.f32 0.10645077, %v12212_v53  ;;  %v12951_v24 = vmul.f32 0.7865707, %v12212_v53 }
 0x2fd   :  { %v5161_v35 = vadd.f32 %v5041_v46, %v12853_v32  ;;  %v5432_v40 = vadd.f32 %v18312_v37, %v5162_v60  ;;  %18313 = vst [vmem:[#allocation89_spill] sm:$0xff] %v12961_v1  ;;  %v18314_v34 = vrot.slane %v12850_v12, 2  ;;  %v1301_v13 = vmul.f32 1.5170982e-22, %v12256_v56 }
 0x2fe   :  { %v1391_v60 = vmul.f32 9.961262e-15, %v12256_v56  ;;  %v1902_v37 = vmul.f32 1.1979456e-08, %v12256_v56  ;;  %v3684_v44 = vmul.f32 0.7865707, %v12256_v56 }
 0x2ff   :  { %v5431_v61 = vadd.f32 %v5288_v28, %v5161_v35  ;;  %v12965_v46 = vadd.f32 %v18314_v34, %v5432_v40  ;;  %v2422_v28 = vmul.f32 0.00026386508, %v12256_v56  ;;  %v3053_v35 = vmul.f32 0.10645077, %v12256_v56 }
 0x300   :  { %v1590_v32 = vrot.slane %v1391_v60, 1  ;;  %v2101_v6 = vrot.slane %v1902_v37, 2  ;;  %v1346_v12 = vmul.f32 1.5170982e-22, %v12276_v50  ;;  %v1436_v40 = vmul.f32 9.961262e-15, %v12276_v50 }
 0x301   :  { %18315 = vst [vmem:[#allocation90_spill] sm:$0xff] %v12965_v46  ;;  %v12970_v51 = vadd.f32 %v5690_v19, %v5431_v61  ;;  %v2690_v17 = vrot.slane %v2422_v28, 3  ;;  %v3321_v58 = vrot.slane %v3053_v35, 4  ;;  %v3952_v54 = vrot.slane %v3684_v44, 5  ;;  %v12983_v37 = vpop.f32.mrb[45].mxu1 }
 0x302   :  { %v9515_v34 = vpop.eup %9514  ;;  %v4343_v62 = vrot.slane %v3053_v35, 6  ;;  %v1592_v19 = vsel %vm1544_vm1, %v1590_v32, %v17724_v25  ;;  %v2103_v61 = vsel %vm2055_vm2, %v2101_v6, %v17726_v20  ;;  %v4734_v56 = vrot.slane %v2422_v28, 7  ;;  %18317 = vst [vmem:[#allocation92_spill] sm:$0xff] %v12983_v37 }
 0x303   :  { %18316 = vst [vmem:[#allocation91_spill] sm:$0xff] %v12970_v51  ;;  %v1665_v60 = vrot.slane %v1436_v40, 1  ;;  %v1812_v49 = vadd.f32 %v1592_v19, %v1301_v13  ;;  %v2692_v52 = vsel %vm2626_vm3, %v2690_v17, %v17725_v57  ;;  %v18318_v44 = vrot.slane %v12911_v8, 4 }
 0x304   :  { %v18319_v38 = vrot.slane %v12931_v16, 5  ;;  %v18320_v25 = vrot.slane %v12911_v8, 6  ;;  %v18321_v28 = vrot.slane %v12902_v7, 7  ;;  %v18322_v40 = vrot.slane %v12936_v36, 1 }
 0x305   :  { %v3323_v35 = vsel %vm3257_vm4, %v3321_v58, %v18318_v44  ;;  %v1947_v19 = vmul.f32 1.1979456e-08, %v12276_v50  ;;  %v2323_v57 = vadd.f32 %v2103_v61, %v1812_v49  ;;  %v2482_v44 = vmul.f32 0.00026386508, %v12276_v50 }
 0x306   :  { %v3954_v32 = vsel %vm3888_vm5, %v3952_v54, %v18319_v38  ;;  %v4345_v6 = vsel %vm4279_vm6, %v4343_v62, %v18320_v25  ;;  %v4736_v13 = vsel %vm4670_vm7, %v4734_v56, %v18321_v28  ;;  %v1667_v17 = vsel %vm1544_vm1, %v1665_v60, %v18322_v40 }
 0x307   :  { %v1857_v58 = vadd.f32 %v1667_v17, %v1346_v12  ;;  %v3113_v38 = vmul.f32 0.10645077, %v12276_v50  ;;  %v17727_v25 = vrot.slane %v12942_v29, 7  ;;  %v2176_v62 = vrot.slane %v1947_v19, 2 }
 0x308   :  { %v3744_v20 = vmul.f32 0.7865707, %v12276_v50  ;;  %v2954_v56 = vadd.f32 %v2692_v52, %v2323_v57  ;;  %v2795_v28 = vrot.slane %v2482_v44, 3  ;;  %v6139_v60 = vadd.f32 0.0001, %v12923_v30  ;;  %v13019_v57 = vpop.f32.mrb[46].mxu0 }
 0x309   :  { %v3426_v15 = vrot.slane %v3113_v38, 4  ;;  %v4448_v51 = vrot.slane %v3113_v38, 6  ;;  %v18323_v49 = vrot.slane %v12939_v2, 2  ;;  %v4839_v40 = vrot.slane %v2482_v44, 7  ;;  %18326 = vst [vmem:[#allocation93_spill] sm:$0xff] %v13019_v57  ;;  %v13021_v38 = vpop.f32.mrb[46].mxu1 }
 0x30a   :  { %v4057_v61 = vrot.slane %v3744_v20, 5  ;;  %v3585_v17 = vadd.f32 %v3323_v35, %v2954_v56  ;;  %v18324_v54 = vrot.slane %v12942_v29, 3  ;;  %v18325_v50 = vrot.slane %v12945_v31, 4  ;;  %18327 = vst [vmem:[#allocation94_spill] sm:$0xff] %v13021_v38  ;;  %v13099_v33 = vpop.f32.mrb[47].mxu1 }
 0x30b   :  { %v2178_v12 = vsel %vm2055_vm2, %v2176_v62, %v18323_v49  ;;  %v18328_v30 = vrot.slane %v12951_v24, 5  ;;  %v18329_v20 = vrot.slane %v12945_v31, 6  ;;  %v13033_v44 = vmul.f32 0.00026386508, %v12305_v10  ;;  %18334 = vst [vmem:[#allocation98_spill] sm:$0xff] %v13099_v33 }
 0x30c   :  { %v2368_v46 = vadd.f32 %v2178_v12, %v1857_v58  ;;  %v2797_v19 = vsel %vm2626_vm3, %v2795_v28, %v18324_v54  ;;  %v3428_v52 = vsel %vm3257_vm4, %v3426_v15, %v18325_v50  ;;  %v4841_v58 = vsel %vm4670_vm7, %v4839_v40, %v17727_v25 }
 0x30d   :  { %v4059_v62 = vsel %vm3888_vm5, %v4057_v61, %v18328_v30  ;;  %v4450_v35 = vsel %vm4279_vm6, %v4448_v51, %v18329_v20  ;;  %v13036_v15 = vadd.f32 0.0001, %v12917_v48  ;;  %v13040_v54 = vmul.f32 %v12873_v39, %v12813_v23 }
 0x30e   :  { %v4216_v56 = vadd.f32 %v3954_v32, %v3585_v17  ;;  %v2999_v28 = vadd.f32 %v2797_v19, %v2368_v46  ;;  %v13042_v49 = vmul.f32 %v9515_v34, %v6139_v60  ;;  %v13045_v51 = vmul.f32 1.5170982e-22, %v18305_v26  ;;  %v13069_v19 = vpop.f32.mrb[47].mxu0 }
 0x30f   :  { %18330 = vst [vmem:[#allocation95_spill] sm:$0xff] %v13040_v54  ;;  %v13048_v12 = vmul.f32 0.10645077, %v12305_v10  ;;  %v3687_v61 = vmul.f32 0.7865707, %v12305_v10  ;;  %v2695_v26 = vrot.slane %v13033_v44, 3 }
 0x310   :  { %18331 = vst [vmem:[#allocation96_spill] sm:$0xff] %v13042_v49  ;;  %v4607_v40 = vadd.f32 %v4345_v6, %v4216_v56  ;;  %v3630_v50 = vadd.f32 %v3428_v52, %v2999_v28  ;;  %v13052_v48 = vmul.f32 9.961262e-15, %v12305_v10  ;;  %v13055_v23 = vmul.f32 1.5170982e-22, %v12305_v10  ;;  %18332 = vst [vmem:[#allocation97_spill] sm:$0xff] %v13069_v19 }
 0x311   :  { %v5616_v39 = vrot.slane %v13045_v51, 2  ;;  %v13059_v46 = vmul.f32 1.5170982e-22, %v12212_v53  ;;  %v13063_v34 = vmul.f32 0.00026386508, %v12315_v22  ;;  %v4739_v6 = vrot.slane %v13033_v44, 7 }
 0x312   :  { %v4998_v32 = vadd.f32 %v4736_v13, %v4607_v40  ;;  %v4261_v60 = vadd.f32 %v4059_v62, %v3630_v50  ;;  %v13067_v17 = vmul.f32 0.10645077, %v12315_v22  ;;  %v3326_v52 = vrot.slane %v13048_v12, 4 }
 0x313   :  { %v3957_v30 = vrot.slane %v3687_v61, 5  ;;  %v4348_v53 = vrot.slane %v13048_v12, 6  ;;  %v13074_v20 = vmul.f32 1.1979456e-08, %v12305_v10  ;;  %v13079_v62 = vmul.f32 0.7865707, %v12315_v22 }
 0x314   :  { %v4652_v56 = vadd.f32 %v4450_v35, %v4261_v60  ;;  %v1303_v40 = vmul.f32 1.5170982e-22, %v12339_v59  ;;  %v1393_v50 = vmul.f32 9.961262e-15, %v12339_v59  ;;  %v5118_v61 = vadd.f32 %v4998_v32, %v12899_v43 }
 0x315   :  { %v13089_v35 = vmul.f32 1.1979456e-08, %v12339_v59  ;;  %v2424_v60 = vmul.f32 0.00026386508, %v12339_v59  ;;  %v3055_v44 = vmul.f32 0.10645077, %v12339_v59 }
 0x316   :  { %v13085_v12 = vadd.f32 %v4841_v58, %v4652_v56  ;;  %v1593_v13 = vrot.slane %v1393_v50, 1  ;;  %v3686_v28 = vmul.f32 0.7865707, %v12339_v59  ;;  %v5617_v58 = vrot.slane %v1303_v40, 2 }
 0x317   :  { %v2104_v11 = vrot.slane %v13089_v35, 2  ;;  %v2693_v19 = vrot.slane %v2424_v60, 3  ;;  %v4737_v32 = vrot.slane %v2424_v60, 7  ;;  %v18333_v56 = vrot.slane %v12896_v41, 1 }
 0x318   :  { %v1814_v38 = vadd.f32 %v1593_v13, %v1303_v40  ;;  %v3324_v57 = vrot.slane %v3055_v44, 4  ;;  %v3955_v37 = vrot.slane %v3686_v28, 5  ;;  %v18335_v25 = vrot.slane %v12899_v43, 2 }
 0x319   :  { %v1594_v10 = vsel %vm1544_vm1, %v18333_v56, %v1593_v13  ;;  %v18336_v1 = vrot.slane %v12902_v7, 3  ;;  %v2696_v18 = vsel %vm2626_vm3, %v2693_v19, %v2695_v26  ;;  %v18337_v56 = vrot.slane %v12911_v8, 4 }
 0x31a   :  { %v1813_v50 = vadd.f32 %v1594_v10, %v13045_v51  ;;  %v2105_v59 = vsel %vm2055_vm2, %v18335_v25, %v2104_v11  ;;  %v2325_v41 = vadd.f32 %v2104_v11, %v1814_v38  ;;  %v3327_v28 = vsel %vm3257_vm4, %v3324_v57, %v3326_v52 }
 0x31b   :  { %v2694_v60 = vsel %vm2626_vm3, %v18336_v1, %v2693_v19  ;;  %v3325_v40 = vsel %vm3257_vm4, %v18337_v56, %v3324_v57  ;;  %v18338_v33 = vrot.slane %v12931_v16, 5  ;;  %v3958_v25 = vsel %vm3888_vm5, %v3955_v37, %v3957_v30 }
 0x31c   :  { %v2324_v43 = vadd.f32 %v2105_v59, %v1813_v50  ;;  %v4346_v45 = vrot.slane %v3055_v44, 6  ;;  %v18339_v9 = vrot.slane %v12902_v7, 7  ;;  %v2956_v26 = vadd.f32 %v2696_v18, %v2325_v41 }
 0x31d   :  { %v3956_v51 = vsel %vm3888_vm5, %v18338_v33, %v3955_v37  ;;  %v4740_v11 = vsel %vm4670_vm7, %v4737_v32, %v4739_v6  ;;  %v18340_v38 = vrot.slane %v13052_v48, 1  ;;  %v5388_v57 = vadd.f32 %v5118_v61, %v1594_v10 }
 0x31e   :  { %v4738_v1 = vsel %vm4670_vm7, %v18339_v9, %v4737_v32  ;;  %v2955_v52 = vadd.f32 %v2694_v60, %v2324_v43  ;;  %v18341_v16 = vrot.slane %v12911_v8, 6  ;;  %v4349_v37 = vsel %vm4279_vm6, %v4346_v45, %v4348_v53  ;;  %v18343_v32 = vld [vmem:[#allocation19_spill] sm:$0xff] }
 0x31f   :  { %v5260_v19 = vsel %vm1544_vm1, %v1593_v13, %v18340_v38  ;;  %v5618_v30 = vsel %vm2055_vm2, %v5616_v39, %v5617_v58  ;;  %v3587_v7 = vadd.f32 %v3327_v28, %v2956_v26  ;;  %v18342_v9 = vrot.slane %v13055_v23, 2  ;;  %v18345_v28 = vld [vmem:[#allocation22_spill] sm:$0xff] }
 0x320   :  { %v4347_v33 = vsel %vm4279_vm6, %v18341_v16, %v4346_v45  ;;  %v5838_v6 = vadd.f32 %v5618_v30, %v5388_v57  ;;  %v13133_v44 = vmul.f32 1.5170982e-22, %v12385_v47  ;;  %v3586_v13 = vadd.f32 %v3325_v40, %v2955_v52  ;;  %v18348_v30 = vld [vmem:[#allocation25_spill] sm:$0xff] }
 0x321   :  { %v5620_v18 = vsel %vm2055_vm2, %v5617_v58, %v18342_v9  ;;  %v1438_v61 = vmul.f32 9.961262e-15, %v12385_v47  ;;  %v13137_v8 = vmul.f32 1.1979456e-08, %v12385_v47  ;;  %v13140_v10 = vmul.f32 0.00026386508, %v12385_v47 }
 0x322   :  { %v4844_v45 = vrot.slane %v13063_v34, 7  ;;  %v4218_v39 = vadd.f32 %v3958_v25, %v3587_v7  ;;  %v5928_v53 = vmul.f32 %v5838_v6, %v5838_v6  ;;  %v13144_v50 = vmul.f32 %v5838_v6, %v18343_v32 }
 0x323   :  { %v4217_v58 = vadd.f32 %v3956_v51, %v3586_v13  ;;  %v13146_v59 = vrot.slane %v1438_v61, 1  ;;  %v2179_v60 = vrot.slane %v13137_v8, 2  ;;  %v2798_v41 = vrot.slane %v13140_v10, 3 }
 0x324   :  { %18344 = vst [vmem:[#allocation19_spill] sm:$0xff] %v13144_v50  ;;  %v4609_v56 = vadd.f32 %v4349_v37, %v4218_v39  ;;  %v5982_v40 = vsub.f32 %v12450_v55, %v5928_v53  ;;  %v6162_v43 = vadd.f32 %v5928_v53, %v18345_v28  ;;  %v3115_v26 = vmul.f32 0.10645077, %v12385_v47 }
 0x325   :  { %v4608_v38 = vadd.f32 %v4347_v33, %v4217_v58  ;;  %v18346_v25 = vrot.slane %v12936_v36, 1  ;;  %v1859_v51 = vadd.f32 %v13146_v59, %v13133_v44  ;;  %v18347_v52 = vrot.slane %v12939_v2, 2 }
 0x326   :  { %v4062_v55 = vrot.slane %v13079_v62, 5  ;;  %v5000_v37 = vadd.f32 %v4740_v11, %v4609_v56  ;;  %v18349_v7 = vsub.f32 %v18348_v30, %v18345_v28  ;;  %v6180_v9 = vadd.f32 0.0001, %v6162_v43 }
 0x327   :  { %v13157_v57 = vsel %vm1544_vm1, %v18346_v25, %v13146_v59  ;;  %v2180_v16 = vsel %vm2055_vm2, %v18347_v52, %v2179_v60  ;;  %v4999_v36 = vadd.f32 %v4738_v1, %v4608_v38  ;;  %v2370_v13 = vadd.f32 %v2179_v60, %v1859_v51 }
 0x328   :  { %v13168_v33 = vadd.f32 %v5982_v40, %v18349_v7  ;;  %v1858_v6 = vadd.f32 %v13157_v57, %v13059_v46  ;;  %v18350_v61 = vrot.slane %v12942_v29, 3  ;;  %v13176_v53 = vmul.f32 9.961262e-15, %v12315_v22 }
 0x329   :  { %v5120_v62 = vadd.f32 %v13074_v20, %v5000_v37  ;;  %9516 = vrcp.f32 %v6180_v9  ;;  %v18351_v11 = vrot.slane %v13063_v34, 3  ;;  %v5119_v1 = vadd.f32 %v4999_v36, %v13089_v35 }
 0x32a   :  { %v2799_v39 = vsel %vm2626_vm3, %v18350_v61, %v2798_v41  ;;  %v2369_v58 = vadd.f32 %v2180_v16, %v1858_v6  ;;  %v3429_v40 = vrot.slane %v3115_v26, 4  ;;  %v18352_v60 = vrot.slane %v13052_v48, 1 }
 0x32b   :  { %v2801_v32 = vsel %vm2626_vm3, %v2798_v41, %v18351_v11  ;;  %v6126_v43 = vmul.f32 2.0, %v13144_v50  ;;  %v3746_v38 = vmul.f32 0.7865707, %v12385_v47  ;;  %v4451_v25 = vrot.slane %v3115_v26, 6 }
 0x32c   :  { %v3001_v56 = vadd.f32 %v2801_v32, %v2370_v13  ;;  %v5390_v28 = vadd.f32 %v18352_v60, %v5120_v62  ;;  %v5389_v51 = vadd.f32 %v5260_v19, %v5119_v1  ;;  %v3000_v20 = vadd.f32 %v2799_v39, %v2369_v58  ;;  %v18358_v39 = vld [vmem:[#allocation20_spill] sm:$0xff]  ;;  %v18361_v1 = vld [vmem:[#allocation21_spill] sm:$0xff]  ;;  %v18364_v60 = vld [vmem:[#allocation23_spill] sm:$0xff] }
 0x32d   :  { %v18353_v52 = vrot.slane %v12945_v31, 4  ;;  %v18354_v41 = vrot.slane %v13067_v17, 4  ;;  %v18355_v16 = vrot.slane %v13055_v23, 2  ;;  %v4060_v7 = vrot.slane %v3746_v38, 5 }
 0x32e   :  { %v18356_v9 = vrot.slane %v12945_v31, 6  ;;  %v5839_v26 = vadd.f32 %v5620_v18, %v5389_v51  ;;  %v18357_v36 = vrot.slane %v13067_v17, 6  ;;  %v4842_v13 = vrot.slane %v13140_v10, 7 }
 0x32f   :  { %v3430_v37 = vsel %vm3257_vm4, %v18353_v52, %v3429_v40  ;;  %v3432_v35 = vsel %vm3257_vm4, %v3429_v40, %v18354_v41  ;;  %v5840_v30 = vadd.f32 %v18355_v16, %v5390_v28  ;;  %v18360_v23 = vrot.slane %v12951_v24, 5  ;;  %v18363_v40 = vld [vmem:[#allocation28_spill] sm:$0xff]  ;;  %v18369_v16 = vld [vmem:[#allocation26_spill] sm:$0xff] }
 0x330   :  { %v3632_v48 = vadd.f32 %v3432_v35, %v3001_v56  ;;  %v4452_v47 = vsel %vm4279_vm6, %v18356_v9, %v4451_v25  ;;  %v3631_v19 = vadd.f32 %v3430_v37, %v3000_v20  ;;  %v4454_v6 = vsel %vm4279_vm6, %v4451_v25, %v18357_v36  ;;  %v18366_v25 = vld [vmem:[#allocation29_spill] sm:$0xff] }
 0x331   :  { %v5930_v61 = vmul.f32 %v5840_v30, %v5840_v30  ;;  %v13203_v62 = vmul.f32 %v5840_v30, %v18358_v39  ;;  %v4061_v11 = vsel %vm3888_vm5, %v18360_v23, %v4060_v7  ;;  %v4063_v31 = vsel %vm3888_vm5, %v4060_v7, %v4062_v55  ;;  %v18367_v55 = vld [vmem:[#allocation24_spill] sm:$0xff] }
 0x332   :  { %v5929_v32 = vmul.f32 %v5839_v26, %v5839_v26  ;;  %v13210_v18 = vmul.f32 %v5839_v26, %v18361_v1  ;;  %v4262_v58 = vadd.f32 %v4061_v11, %v3631_v19  ;;  %v4263_v17 = vadd.f32 %v4063_v31, %v3632_v48  ;;  %v18371_v26 = vld [vmem:[#allocation27_spill] sm:$0xff] }
 0x333   :  { %18359 = vst [vmem:[#allocation22_spill] sm:$0xff] %v13203_v62  ;;  %v5475_v56 = vmul.f32 1.5170982e-22, %v12315_v22  ;;  %v5984_v10 = vsub.f32 %v18363_v40, %v5930_v61  ;;  %v6164_v28 = vadd.f32 %v5930_v61, %v18364_v60  ;;  %v18365_v38 = vrot.slane %v12942_v29, 7  ;;  %v9517_v41 = vpop.eup %9516 }
 0x334   :  { %18362 = vst [vmem:[#allocation25_spill] sm:$0xff] %v13210_v18  ;;  %v5983_v51 = vsub.f32 %v18366_v25, %v5929_v32  ;;  %v6144_v20 = vadd.f32 0.0001, %v6126_v43  ;;  %v6163_v52 = vadd.f32 %v5929_v32, %v18367_v55  ;;  %v4653_v37 = vadd.f32 %v4452_v47, %v4262_v58 }
 0x335   :  { %v4843_v24 = vsel %vm4670_vm7, %v18365_v38, %v4842_v13  ;;  %v13221_v35 = vmul.f32 0.086542584, %v13040_v54  ;;  %v18370_v30 = vsub.f32 %v18369_v16, %v18364_v60  ;;  %v6182_v7 = vadd.f32 0.0001, %v6164_v28 }
 0x336   :  { %v4654_v9 = vadd.f32 %v4454_v6, %v4263_v17  ;;  %v5289_v29 = vrot.slane %v13176_v53, 1  ;;  %v18372_v19 = vsub.f32 %v18371_v26, %v18367_v55  ;;  %v6181_v43 = vadd.f32 0.0001, %v6163_v52 }
 0x337   :  { %18368 = vst [vmem:[#allocation20_spill] sm:$0xff] %v13221_v35  ;;  %v6056_v48 = vadd.f32 %v5984_v10, %v18370_v30  ;;  %v13230_v61 = vmul.f32 %v9517_v41, %v6144_v20  ;;  %v5085_v47 = vmul.f32 1.1979456e-08, %v12315_v22  ;;  %9518 = vrcp.f32 %v6182_v7 }
 0x338   :  { %v6055_v36 = vadd.f32 %v5983_v51, %v18372_v19  ;;  %v4845_v39 = vsel %vm4670_vm7, %v4842_v13, %v4844_v45  ;;  %v5044_v23 = vadd.f32 %v4843_v24, %v4653_v37  ;;  %v6515_v11 = vmul.f32 0.086542584, %v13042_v49  ;;  %v18381_v37 = vld [vmem:[#allocation83_spill] sm:$0xff] }
 0x339   :  { %18373 = vst [vmem:[#allocation21_spill] sm:$0xff] %v13230_v61  ;;  %v5691_v6 = vrot.slane %v13059_v46, 2  ;;  %v5694_v53 = vrot.slane %v5475_v56, 2  ;;  %9520 = vrcp.f32 %v6181_v43  ;;  %v6123_v31 = vmul.f32 2.0, %v12779_v63  ;;  %v18384_v43 = vld [vmem:[#allocation53_spill] sm:$0xff] }
 0x33a   :  { %v5045_v32 = vadd.f32 %v4845_v39, %v4654_v9  ;;  %v5163_v1 = vadd.f32 %v13085_v12, %v12939_v2  ;;  %v5164_v22 = vadd.f32 %v5044_v23, %v13137_v8  ;;  %v6124_v58 = vmul.f32 2.0, %v12847_v42 }
 0x33b   :  { %v6125_v34 = vmul.f32 2.0, %v12839_v27  ;;  %v5290_v45 = vsel %vm1544_vm1, %v13146_v59, %v5289_v29  ;;  %v5692_v13 = vrot.slane %v13133_v44, 2  ;;  %v6128_v46 = vmul.f32 2.0, %v13203_v62  ;;  %v18416_v27 = vld [vmem:[#allocation84_spill] sm:$0xff] }
 0x33c   :  { %v5165_v17 = vadd.f32 %v5085_v47, %v5045_v32  ;;  %v5433_v56 = vadd.f32 %v5163_v1, %v13157_v57  ;;  %v5434_v40 = vadd.f32 %v5290_v45, %v5164_v22  ;;  %9522 = vrcp.f32 %v13036_v15 }
 0x33d   :  { %v6127_v2 = vmul.f32 2.0, %v13210_v18  ;;  %v5693_v12 = vsel %vm2055_vm2, %v5691_v6, %v5692_v13  ;;  %v5695_v8 = vsel %vm2055_vm2, %v5692_v13, %v5694_v53  ;;  %v13254_v10 = vmul.f32 0.09140719, %v13040_v54 }
 0x33e   :  { %v5435_v59 = vadd.f32 %v5289_v29, %v5165_v17  ;;  %v13256_v60 = vadd.f32 %v5693_v12, %v5433_v56  ;;  %v13258_v44 = vadd.f32 %v5695_v8, %v5434_v40  ;;  %v13261_v57 = vrot.slane %v6515_v11, 1 }
 0x33f   :  { %18374 = vst [vmem:[#allocation28_spill] sm:$0xff] %v13254_v10  ;;  %v13265_v15 = vmul.f32 %v12772_v4, %v12772_v4  ;;  %v13267_v38 = vadd.f32 0.0001, %v6123_v31  ;;  %v13269_v24 = vadd.f32 0.0001, %v6124_v58  ;;  %v13277_v55 = vmul.f32 %v12829_v14, %v12829_v14 }
 0x340   :  { %18375 = vst [vmem:[#allocation23_spill] sm:$0xff] %v13261_v57  ;;  %v13271_v25 = vadd.f32 0.0001, %v6125_v34  ;;  %v6146_v51 = vadd.f32 0.0001, %v6128_v46  ;;  %v13273_v20 = vadd.f32 %v5694_v53, %v5435_v59  ;;  %v13287_v30 = vmul.f32 %v12831_v5, %v12831_v5 }
 0x341   :  { %18376 = vst [vmem:[#allocation29_spill] sm:$0xff] %v13265_v15  ;;  %18377 = vst [vmem:[#allocation24_spill] sm:$0xff] %v13267_v38  ;;  %v6145_v52 = vadd.f32 0.0001, %v6127_v2  ;;  %v13280_v41 = vmul.f32 9.961262e-15, %v18381_v37  ;;  %v9519_v16 = vpop.eup %9518 }
 0x342   :  { %18378 = vst [vmem:[#allocation26_spill] sm:$0xff] %v13269_v24  ;;  %18379 = vst [vmem:[#allocation27_spill] sm:$0xff] %v13271_v25  ;;  %v13283_v4 = vmul.f32 1.1979456e-08, %v18381_v37  ;;  %v13290_v7 = vmul.f32 0.00026386508, %v18381_v37  ;;  %v13299_v19 = vmul.f32 %v9519_v16, %v6146_v51 }
 0x343   :  { %18380 = vst [vmem:[#allocation99_spill] sm:$0xff] %v13277_v55  ;;  %18382 = vst [vmem:[#allocation83_spill] sm:$0xff] %v13287_v30  ;;  %v13293_v9 = vmul.f32 0.10645077, %v18381_v37  ;;  %v13296_v14 = vmul.f32 0.7865707, %v18381_v37  ;;  %v9521_v29 = vpop.eup %9520 }
 0x344   :  { %v6072_v26 = vadd.f32 0.0009, %v13168_v33  ;;  %18383 = vst [vmem:[#allocation100_spill] sm:$0xff] %v13299_v19  ;;  %v13302_v47 = vmul.f32 9.961262e-15, %v18384_v43  ;;  %v13311_v11 = vmul.f32 %v9521_v29, %v6145_v52  ;;  %v17740_v53 = vrot.slane %v13280_v41, 1 }
 0x345   :  { %v13305_v5 = vmul.f32 1.1979456e-08, %v18384_v43  ;;  %v13307_v39 = vadd.f32 0.0009, %v6055_v36  ;;  %v13309_v23 = vadd.f32 0.0009, %v6056_v48 }
 0x346   :  { %18385 = vst [vmem:[#allocation53_spill] sm:$0xff] %v13311_v11  ;;  %v13314_v6 = vmul.f32 0.086542584, %v13230_v61  ;;  %v17741_v33 = vrot.slane %v13283_v4, 2  ;;  %v13319_v31 = vmul.f32 0.00026386508, %v18384_v43  ;;  %v13328_v58 = vpop.eup %9522  ;;  %9524 = vrcp.f32 %v6072_v26 }
 0x347   :  { %v13322_v32 = vmul.f32 0.10645077, %v18384_v43  ;;  %18387 = vst [vmem:[#allocation102_spill] sm:$0xff] %v13328_v58  ;;  %v13334_v46 = vmul.f32 0.7865707, %v18384_v43  ;;  %v18388_v2 = vld [vmem:[#allocation54_spill] sm:$0xff]  ;;  %9526 = vrcp.f32 %v13309_v23 }
 0x348   :  { %18386 = vst [vmem:[#allocation101_spill] sm:$0xff] %v13314_v6  ;;  %v1304_v12 = vmul.f32 1.5170982e-22, %v18388_v2  ;;  %v1394_v8 = vmul.f32 9.961262e-15, %v18388_v2  ;;  %v13346_v52 = vld [vmem:[%s17548_s0 + $0x88] sm:$0xff]  ;;  %9528 = vrcp.f32 %v13307_v39 }
 0x349   :  { %v1905_v59 = vmul.f32 1.1979456e-08, %v18388_v2  ;;  %v2426_v51 = vmul.f32 0.00026386508, %v18388_v2  ;;  %v13351_v16 = vld [vmem:[%s17549_s1 + $0x88] sm:$0xff]  ;;  %v18392_v38 = vrot.slane %v13296_v14, 5 }
 0x34a   :  { %v3057_v28 = vmul.f32 0.10645077, %v18388_v2  ;;  %v3688_v40 = vmul.f32 0.7865707, %v18388_v2  ;;  %v1349_v56 = vmul.f32 1.5170982e-22, %v12622_v3 }
 0x34b   :  { %v1595_v17 = vrot.slane %v1394_v8, 1  ;;  %v2106_v13 = vrot.slane %v1905_v59, 2  ;;  %v2697_v45 = vrot.slane %v2426_v51, 3  ;;  %v4741_v22 = vrot.slane %v2426_v51, 7  ;;  %v18407_v23 = vld [vmem:[#allocation63_spill] sm:$0xff] }
 0x34c   :  { %v3328_v1 = vrot.slane %v3057_v28, 4  ;;  %v3959_v48 = vrot.slane %v3688_v40, 5  ;;  %v4350_v34 = vrot.slane %v3057_v28, 6  ;;  %v1439_v36 = vmul.f32 9.961262e-15, %v12622_v3 }
 0x34d   :  { %v1597_v29 = vsel %vm1544_vm1, %v1595_v17, %v17740_v53  ;;  %v2108_v26 = vsel %vm2055_vm2, %v2106_v13, %v17741_v33  ;;  %v18389_v2 = vrot.slane %v13290_v7, 3  ;;  %v18390_v59 = vrot.slane %v13290_v7, 7 }
 0x34e   :  { %v1815_v40 = vadd.f32 %v1597_v29, %v1304_v12  ;;  %v18391_v28 = vrot.slane %v13293_v9, 4  ;;  %v3961_v17 = vsel %vm3888_vm5, %v3959_v48, %v18392_v38  ;;  %v18393_v53 = vrot.slane %v13293_v9, 6 }
 0x34f   :  { %v2699_v8 = vsel %vm2626_vm3, %v2697_v45, %v18389_v2  ;;  %v4743_v51 = vsel %vm4670_vm7, %v4741_v22, %v18390_v59  ;;  %v1670_v45 = vrot.slane %v1439_v36, 1  ;;  %v1950_v2 = vmul.f32 1.1979456e-08, %v12622_v3 }
 0x350   :  { %v3330_v19 = vsel %vm3257_vm4, %v3328_v1, %v18391_v28  ;;  %v4352_v13 = vsel %vm4279_vm6, %v4350_v34, %v18393_v53  ;;  %v2486_v22 = vmul.f32 0.00026386508, %v12622_v3  ;;  %v2326_v29 = vadd.f32 %v2108_v26, %v1815_v40 }
 0x351   :  { %v3117_v1 = vmul.f32 0.10645077, %v12622_v3  ;;  %v3748_v59 = vmul.f32 0.7865707, %v12622_v3  ;;  %v18394_v38 = vrot.slane %v13302_v47, 1  ;;  %v2181_v28 = vrot.slane %v1950_v2, 2  ;;  %v13398_v2 = vpop.eup %9524 }
 0x352   :  { %v2802_v53 = vrot.slane %v2486_v22, 3  ;;  %v4846_v34 = vrot.slane %v2486_v22, 7  ;;  %v2957_v33 = vadd.f32 %v2699_v8, %v2326_v29  ;;  %v18395_v10 = vrot.slane %v13305_v5, 2  ;;  %18398 = vst [vmem:[#allocation54_spill] sm:$0xff] %v13398_v2  ;;  %v13483_v49 = vpop.eup %9526 }
 0x353   :  { %v1672_v48 = vsel %vm1544_vm1, %v1670_v45, %v18394_v38  ;;  %v3433_v25 = vrot.slane %v3117_v1, 4  ;;  %v4064_v24 = vrot.slane %v3748_v59, 5  ;;  %v18396_v26 = vrot.slane %v13319_v31, 3  ;;  %v13406_v38 = vpop.f32.mrb[48].mxu0  ;;  %18414 = vst [vmem:[#allocation107_spill] sm:$0xff] %v13483_v49 }
 0x354   :  { %v1860_v36 = vadd.f32 %v1672_v48, %v1349_v56  ;;  %v2183_v12 = vsel %vm2055_vm2, %v2181_v28, %v18395_v10  ;;  %v4455_v3 = vrot.slane %v3117_v1, 6  ;;  %v18397_v35 = vrot.slane %v13319_v31, 7  ;;  %18401 = vst [vmem:[#allocation103_spill] sm:$0xff] %v13406_v38  ;;  %v13408_v48 = vpop.f32.mrb[48].mxu1  ;;  %v18403_v1 = vld [vmem:[#allocation8_spill] sm:$0xff] }
 0x355   :  { %v2804_v40 = vsel %vm2626_vm3, %v2802_v53, %v18396_v26  ;;  %v3588_v22 = vadd.f32 %v3330_v19, %v2957_v33  ;;  %v18399_v56 = vrot.slane %v13322_v32, 4  ;;  %v18400_v59 = vrot.slane %v13334_v46, 5  ;;  %18402 = vst [vmem:[#allocation104_spill] sm:$0xff] %v13408_v48 }
 0x356   :  { %v4848_v45 = vsel %vm4670_vm7, %v4846_v34, %v18397_v35  ;;  %v2371_v8 = vadd.f32 %v2183_v12, %v1860_v36  ;;  %v5991_v35 = vsub.f32 %v13256_v60, %v18403_v1  ;;  %v18404_v19 = vrot.slane %v13322_v32, 6 }
 0x357   :  { %v3435_v29 = vsel %vm3257_vm4, %v3433_v25, %v18399_v56  ;;  %v4066_v10 = vsel %vm3888_vm5, %v4064_v24, %v18400_v59  ;;  %v13417_v12 = vmul.f32 0.00026386508, %v12670_v21  ;;  %v13419_v25 = vpop.f32.mrb[49].mxu0  ;;  %v13423_v24 = vmul.f32 0.09140719, %v13230_v61 }
 0x358   :  { %v4457_v33 = vsel %vm4279_vm6, %v4455_v3, %v18404_v19  ;;  %18405 = vst [vmem:[#allocation8_spill] sm:$0xff] %v13419_v25  ;;  %v4219_v28 = vadd.f32 %v3961_v17, %v3588_v22  ;;  %v3002_v53 = vadd.f32 %v2804_v40, %v2371_v8  ;;  %v13428_v60 = vmul.f32 1.5170982e-22, %v18381_v37  ;;  %v18408_v3 = vld [vmem:[#allocation61_spill] sm:$0xff]  ;;  %v13439_v17 = vpop.f32.mrb[49].mxu1 }
 0x359   :  { %18406 = vst [vmem:[#allocation105_spill] sm:$0xff] %v13423_v24  ;;  %v13431_v36 = vmul.f32 0.10645077, %v12670_v21  ;;  %v3691_v26 = vmul.f32 0.7865707, %v12670_v21  ;;  %18409 = vst [vmem:[#allocation63_spill] sm:$0xff] %v13439_v17 }
 0x35a   :  { %v4610_v39 = vadd.f32 %v4352_v13, %v4219_v28  ;;  %v3633_v59 = vadd.f32 %v3435_v29, %v3002_v53  ;;  %v13437_v1 = vmul.f32 9.961262e-15, %v12670_v21  ;;  %v13441_v40 = vmul.f32 2.0, %v5991_v35  ;;  %v13457_v24 = vpop.f32.mrb[50].mxu0 }
 0x35b   :  { %v5621_v37 = vrot.slane %v13428_v60, 2  ;;  %v13445_v22 = vmul.f32 1.5170982e-22, %v18384_v43  ;;  %v2702_v8 = vrot.slane %v13417_v12, 3  ;;  %v13449_v56 = vmul.f32 1.1979456e-08, %v12670_v21 }
 0x35c   :  { %v5001_v19 = vadd.f32 %v4743_v51, %v4610_v39  ;;  %v4264_v34 = vadd.f32 %v4066_v10, %v3633_v59  ;;  %v13452_v13 = vmul.f32 1.5170982e-22, %v12670_v21  ;;  %v3333_v29 = vrot.slane %v13431_v36, 4  ;;  %18410 = vst [vmem:[#allocation61_spill] sm:$0xff] %v13457_v24  ;;  %v13459_v43 = vpop.f32.mrb[50].mxu1  ;;  %v18412_v39 = vld [vmem:[#allocation57_spill] sm:$0xff] }
 0x35d   :  { %v3964_v28 = vrot.slane %v3691_v26, 5  ;;  %v4355_v35 = vrot.slane %v13431_v36, 6  ;;  %v4746_v53 = vrot.slane %v13417_v12, 7  ;;  %18411 = vst [vmem:[#allocation106_spill] sm:$0xff] %v13459_v43  ;;  %v13463_v10 = vmul.f32 0.00026386508, %v12672_v0 }
 0x35e   :  { %v4655_v61 = vadd.f32 %v4457_v33, %v4264_v34  ;;  %v13466_v21 = vmul.f32 0.10645077, %v12672_v0  ;;  %v1306_v59 = vmul.f32 1.5170982e-22, %v18412_v39  ;;  %v1396_v26 = vmul.f32 9.961262e-15, %v18412_v39 }
 0x35f   :  { %v13471_v36 = vmul.f32 1.1979456e-08, %v18412_v39  ;;  %v5121_v12 = vadd.f32 %v5001_v19, %v13283_v4  ;;  %v13478_v34 = vmul.f32 0.7865707, %v12672_v0  ;;  %v2428_v51 = vmul.f32 0.00026386508, %v18412_v39 }
 0x360   :  { %v13474_v54 = vadd.f32 %v4848_v45, %v4655_v61  ;;  %v13481_v57 = vpop.f32.mrb[51].mxu0  ;;  %v1598_v58 = vrot.slane %v1396_v26, 1  ;;  %v3059_v15 = vmul.f32 0.10645077, %v18412_v39  ;;  %v3690_v19 = vmul.f32 0.7865707, %v18412_v39  ;;  %v13488_v61 = vpop.eup %9528 }
 0x361   :  { %18413 = vst [vmem:[#allocation57_spill] sm:$0xff] %v13481_v57  ;;  %v2109_v30 = vrot.slane %v13471_v36, 2  ;;  %18415 = vst [vmem:[#allocation108_spill] sm:$0xff] %v13488_v61  ;;  %v2700_v45 = vrot.slane %v2428_v51, 3  ;;  %v4744_v33 = vrot.slane %v2428_v51, 7  ;;  %v5622_v42 = vrot.slane %v1306_v59, 2 }
 0x362   :  { %v13491_v55 = vmul.f32 1.5170982e-22, %v18416_v27  ;;  %v18417_v18 = vrot.slane %v13280_v41, 1  ;;  %v1817_v49 = vadd.f32 %v1598_v58, %v1306_v59  ;;  %v18418_v26 = vrot.slane %v13283_v4, 2  ;;  %v13504_v24 = vpop.f32.mrb[51].mxu1 }
 0x363   :  { %v3331_v50 = vrot.slane %v3059_v15, 4  ;;  %v18419_v61 = vrot.slane %v13290_v7, 3  ;;  %v2703_v57 = vsel %vm2626_vm3, %v2700_v45, %v2702_v8  ;;  %v3962_v43 = vrot.slane %v3690_v19, 5  ;;  %18420 = vst [vmem:[#allocation84_spill] sm:$0xff] %v13504_v24 }
 0x364   :  { %v1599_v2 = vsel %vm1544_vm1, %v18417_v18, %v1598_v58  ;;  %v2110_v62 = vsel %vm2055_vm2, %v18418_v26, %v2109_v30  ;;  %v2328_v41 = vadd.f32 %v2109_v30, %v1817_v49  ;;  %v18421_v18 = vrot.slane %v13293_v9, 4 }
 0x365   :  { %v1816_v39 = vadd.f32 %v1599_v2, %v13428_v60  ;;  %v2701_v51 = vsel %vm2626_vm3, %v18419_v61, %v2700_v45  ;;  %v3334_v4 = vsel %vm3257_vm4, %v3331_v50, %v3333_v29  ;;  %v4353_v26 = vrot.slane %v3059_v15, 6 }
 0x366   :  { %v3332_v59 = vsel %vm3257_vm4, %v18421_v18, %v3331_v50  ;;  %v18422_v60 = vrot.slane %v13296_v14, 5  ;;  %v3965_v61 = vsel %vm3888_vm5, %v3962_v43, %v3964_v28  ;;  %v18423_v8 = vrot.slane %v13290_v7, 7 }
 0x367   :  { %v2327_v17 = vadd.f32 %v2110_v62, %v1816_v39  ;;  %v2959_v45 = vadd.f32 %v2703_v57, %v2328_v41  ;;  %v18424_v49 = vrot.slane %v13293_v9, 6  ;;  %v4356_v18 = vsel %vm4279_vm6, %v4353_v26, %v4355_v35  ;;  %v18427_v41 = vld [vmem:[#allocation30_spill] sm:$0xff] }
 0x368   :  { %v3963_v25 = vsel %vm3888_vm5, %v18422_v60, %v3962_v43  ;;  %v4745_v19 = vsel %vm4670_vm7, %v18423_v8, %v4744_v33  ;;  %v4747_v50 = vsel %vm4670_vm7, %v4744_v33, %v4746_v53  ;;  %v18425_v15 = vrot.slane %v13437_v1, 1 }
 0x369   :  { %v4354_v30 = vsel %vm4279_vm6, %v18424_v49, %v4353_v26  ;;  %v2958_v62 = vadd.f32 %v2701_v51, %v2327_v17  ;;  %v5391_v29 = vadd.f32 %v5121_v12, %v1599_v2  ;;  %v5623_v28 = vsel %vm2055_vm2, %v5621_v37, %v5622_v42 }
 0x36a   :  { %v5262_v14 = vsel %vm1544_vm1, %v1598_v58, %v18425_v15  ;;  %v3590_v7 = vadd.f32 %v3334_v4, %v2959_v45  ;;  %v18426_v43 = vrot.slane %v13452_v13, 2  ;;  %v1441_v9 = vmul.f32 9.961262e-15, %v18416_v27 }
 0x36b   :  { %v13531_v39 = vmul.f32 1.1979456e-08, %v18416_v27  ;;  %v2807_v35 = vrot.slane %v13463_v10, 3  ;;  %v3589_v17 = vadd.f32 %v3332_v59, %v2958_v62  ;;  %v5841_v53 = vadd.f32 %v5623_v28, %v5391_v29  ;;  %v18432_v29 = vld [vmem:[#allocation55_spill] sm:$0xff] }
 0x36c   :  { %v5625_v57 = vsel %vm2055_vm2, %v5622_v42, %v18426_v43  ;;  %v13535_v33 = vmul.f32 0.00026386508, %v18416_v27  ;;  %v4221_v58 = vadd.f32 %v3965_v61, %v3590_v7  ;;  %v13537_v2 = vrot.slane %v1441_v9, 1 }
 0x36d   :  { %v2184_v37 = vrot.slane %v13531_v39, 2  ;;  %v3119_v12 = vmul.f32 0.10645077, %v18416_v27  ;;  %v4220_v42 = vadd.f32 %v3963_v25, %v3589_v17  ;;  %v13541_v51 = vmul.f32 %v5841_v53, %v5841_v53 }
 0x36e   :  { %v13544_v4 = vmul.f32 %v5841_v53, %v18427_v41  ;;  %v2805_v26 = vrot.slane %v13535_v33, 3  ;;  %v4612_v59 = vadd.f32 %v4356_v18, %v4221_v58  ;;  %v18429_v60 = vrot.slane %v13302_v47, 1 }
 0x36f   :  { %v1862_v8 = vadd.f32 %v13537_v2, %v13491_v55  ;;  %v18430_v45 = vrot.slane %v13305_v5, 2  ;;  %v18431_v49 = vsub.f32 %v13258_v44, %v18407_v23  ;;  %v3438_v15 = vrot.slane %v13466_v21, 4  ;;  %v18434_v44 = vld [vmem:[#allocation33_spill] sm:$0xff]  ;;  %v18435_v23 = vld [vmem:[#allocation64_spill] sm:$0xff] }
 0x370   :  { %18428 = vst [vmem:[#allocation30_spill] sm:$0xff] %v13544_v4  ;;  %v13551_v61 = vsel %vm1544_vm1, %v18429_v60, %v13537_v2  ;;  %v4611_v18 = vadd.f32 %v4354_v30, %v4220_v42  ;;  %v5985_v47 = vsub.f32 %v18432_v29, %v13541_v51  ;;  %v5003_v28 = vadd.f32 %v4747_v50, %v4612_v59 }
 0x371   :  { %v2185_v25 = vsel %vm2055_vm2, %v18430_v45, %v2184_v37  ;;  %v6010_v62 = vmul.f32 2.0, %v18431_v49  ;;  %v1861_v7 = vadd.f32 %v13551_v61, %v13445_v22  ;;  %v2373_v43 = vadd.f32 %v2184_v37, %v1862_v8  ;;  %v13581_v49 = vpop.f32.mrb[52].mxu0 }
 0x372   :  { %v18433_v9 = vrot.slane %v13319_v31, 3  ;;  %v4069_v53 = vrot.slane %v13478_v34, 5  ;;  %v5002_v58 = vadd.f32 %v4745_v19, %v4611_v18  ;;  %v18436_v41 = vsub.f32 %v18434_v44, %v18435_v23  ;;  %18437 = vst [vmem:[#allocation55_spill] sm:$0xff] %v13581_v49 }
 0x373   :  { %v3750_v30 = vmul.f32 0.7865707, %v18416_v27  ;;  %v5123_v50 = vadd.f32 %v13449_v56, %v5003_v28  ;;  %v2372_v42 = vadd.f32 %v2185_v25, %v1861_v7  ;;  %v2808_v59 = vsel %vm2626_vm3, %v2805_v26, %v2807_v35 }
 0x374   :  { %v2806_v17 = vsel %vm2626_vm3, %v18433_v9, %v2805_v26  ;;  %v13573_v60 = vadd.f32 %v5985_v47, %v18436_v41  ;;  %v3436_v37 = vrot.slane %v3119_v12, 4  ;;  %v4460_v8 = vrot.slane %v13466_v21, 6  ;;  %v18442_v41 = vld [vmem:[#allocation31_spill] sm:$0xff] }
 0x375   :  { %v4851_v45 = vrot.slane %v13463_v10, 7  ;;  %v5122_v34 = vadd.f32 %v5002_v58, %v13471_v36  ;;  %v3004_v19 = vadd.f32 %v2808_v59, %v2373_v43  ;;  %v18438_v18 = vrot.slane %v13437_v1, 1 }
 0x376   :  { %v3003_v47 = vadd.f32 %v2806_v17, %v2372_v42  ;;  %v18439_v27 = vrot.slane %v13322_v32, 4  ;;  %v3439_v35 = vsel %vm3257_vm4, %v3436_v37, %v3438_v15  ;;  %v13590_v26 = vmul.f32 9.961262e-15, %v12672_v0  ;;  %v18444_v42 = vld [vmem:[#allocation32_spill] sm:$0xff] }
 0x377   :  { %v5393_v29 = vadd.f32 %v18438_v18, %v5123_v50  ;;  %v5392_v21 = vadd.f32 %v5262_v14, %v5122_v34  ;;  %v3635_v10 = vadd.f32 %v3439_v35, %v3004_v19  ;;  %v4067_v25 = vrot.slane %v3750_v30, 5  ;;  %v18451_v35 = vld [vmem:[#allocation34_spill] sm:$0xff] }
 0x378   :  { %v3437_v56 = vsel %vm3257_vm4, %v18439_v27, %v3436_v37  ;;  %v18440_v36 = vrot.slane %v13452_v13, 2  ;;  %v4458_v43 = vrot.slane %v3119_v12, 6  ;;  %v4849_v1 = vrot.slane %v13535_v33, 7  ;;  %v18448_v37 = vld [vmem:[#allocation66_spill] sm:$0xff] }
 0x379   :  { %v3634_v7 = vadd.f32 %v3437_v56, %v3003_v47  ;;  %v5842_v9 = vadd.f32 %v5625_v57, %v5392_v21  ;;  %v18441_v17 = vrot.slane %v13334_v46, 5  ;;  %v4070_v15 = vsel %vm3888_vm5, %v4067_v25, %v4069_v53  ;;  %v18449_v47 = vld [vmem:[#allocation67_spill] sm:$0xff]  ;;  %v18452_v21 = vld [vmem:[#allocation65_spill] sm:$0xff] }
 0x37a   :  { %v5843_v28 = vadd.f32 %v18440_v36, %v5393_v29  ;;  %v5166_v44 = vadd.f32 %v13474_v54, %v13305_v5  ;;  %v4266_v50 = vadd.f32 %v4070_v15, %v3635_v10  ;;  %v18446_v46 = vrot.slane %v13322_v32, 6 }
 0x37b   :  { %v4068_v58 = vsel %vm3888_vm5, %v18441_v17, %v4067_v25  ;;  %v5932_v12 = vmul.f32 %v5842_v9, %v5842_v9  ;;  %v13607_v33 = vmul.f32 %v5842_v9, %v18444_v42  ;;  %v4461_v53 = vsel %vm4279_vm6, %v4458_v43, %v4460_v8 }
 0x37c   :  { %v13601_v14 = vmul.f32 %v5843_v28, %v5843_v28  ;;  %v13604_v30 = vmul.f32 %v5843_v28, %v18442_v41  ;;  %v4265_v13 = vadd.f32 %v4068_v58, %v3634_v7  ;;  %v4459_v57 = vsel %vm4279_vm6, %v18446_v46, %v4458_v43  ;;  %v18456_v28 = vld [vmem:[#allocation35_spill] sm:$0xff]  ;;  %v18457_v7 = vld [vmem:[#allocation68_spill] sm:$0xff] }
 0x37d   :  { %18445 = vst [vmem:[#allocation64_spill] sm:$0xff] %v13607_v33  ;;  %v18447_v54 = vsub.f32 %v13273_v20, %v18408_v3  ;;  %v5291_v18 = vrot.slane %v13590_v26, 1  ;;  %v5476_v29 = vmul.f32 1.5170982e-22, %v12672_v0  ;;  %v5986_v32 = vsub.f32 %v18449_v47, %v5932_v12  ;;  %v13667_v46 = vld [vmem:[%s17548_s0 + $0x98] sm:$0xff] }
 0x37e   :  { %18443 = vst [vmem:[#allocation33_spill] sm:$0xff] %v13604_v30  ;;  %v5987_v34 = vsub.f32 %v18448_v37, %v13601_v14  ;;  %v4656_v19 = vadd.f32 %v4459_v57, %v4265_v13  ;;  %v4657_v27 = vadd.f32 %v4461_v53, %v4266_v50  ;;  %v6519_v56 = vmul.f32 0.086542584, %v13311_v11  ;;  %v13682_v37 = vld [vmem:[%s17548_s0 + $0xa0] sm:$0xff]  ;;  %v18475_v57 = vld [vmem:[#allocation44_spill] sm:$0xff] }
 0x37f   :  { %v6011_v5 = vmul.f32 2.0, %v18447_v54  ;;  %v13624_v8 = vadd.f32 0.0009, %v13441_v40  ;;  %v18453_v20 = vsub.f32 %v18451_v35, %v18452_v21  ;;  %v18454_v10 = vrot.slane %v13319_v31, 7  ;;  %v13646_v31 = vld [vmem:[%s17548_s0 + $0x90] sm:$0xff] }
 0x380   :  { %v13632_v36 = vadd.f32 0.0009, %v6010_v62  ;;  %v5086_v26 = vmul.f32 1.1979456e-08, %v12672_v0  ;;  %v18458_v43 = vsub.f32 %v18456_v28, %v18457_v7  ;;  %v4852_v17 = vsel %vm4670_vm7, %v4849_v1, %v4851_v45  ;;  %v13651_v0 = vld [vmem:[%s17549_s1 + $0x90] sm:$0xff]  ;;  %v13655_v45 = vpop.f32.mrb[52].mxu1 }
 0x381   :  { %18450 = vst [vmem:[#allocation31_spill] sm:$0xff] %v13624_v8  ;;  %v6059_v3 = vadd.f32 %v5987_v34, %v18453_v20  ;;  %v4850_v25 = vsel %vm4670_vm7, %v18454_v10, %v4849_v1  ;;  %v13639_v40 = vadd.f32 0.0009, %v6011_v5  ;;  %v6165_v58 = vadd.f32 %v13541_v51, %v18435_v23  ;;  %18460 = vst [vmem:[#allocation67_spill] sm:$0xff] %v13655_v45  ;;  %v13687_v34 = vld [vmem:[%s17549_s1 + $0xa0] sm:$0xff] }
 0x382   :  { %18455 = vst [vmem:[#allocation32_spill] sm:$0xff] %v13632_v36  ;;  %v6058_v9 = vadd.f32 %v5986_v32, %v18458_v43  ;;  %v5047_v15 = vadd.f32 %v4850_v25, %v4656_v19  ;;  %v5696_v1 = vrot.slane %v13445_v22, 2  ;;  %v5699_v41 = vrot.slane %v5476_v29, 2  ;;  %v13672_v22 = vld [vmem:[%s17549_s1 + $0x98] sm:$0xff]  ;;  %18462 = vst [vmem:[#allocation65_spill] sm:$0xff] %v13687_v34  ;;  %v18468_v43 = vld [vmem:[#allocation73_spill] sm:$0xff] }
 0x383   :  { %18459 = vst [vmem:[#allocation66_spill] sm:$0xff] %v13639_v40  ;;  %v5048_v51 = vadd.f32 %v4852_v17, %v4657_v27  ;;  %v5292_v23 = vsel %vm1544_vm1, %v13537_v2, %v5291_v18  ;;  %v13660_v13 = vrot.slane %v6519_v56, 1  ;;  %v6166_v50 = vadd.f32 %v5932_v12, %v18457_v7  ;;  %v13786_v19 = vpop.f32.mrb[53].mxu1 }
 0x384   :  { %v5167_v42 = vadd.f32 %v5047_v15, %v13531_v39  ;;  %v6129_v2 = vmul.f32 2.0, %v13544_v4  ;;  %v5436_v12 = vadd.f32 %v5166_v44, %v13551_v61  ;;  %v5697_v39 = vrot.slane %v13491_v55, 2  ;;  %v13694_v61 = vld [vmem:[%s17548_s0 + $0xa8] sm:$0xff] }
 0x385   :  { %18461 = vst [vmem:[#allocation34_spill] sm:$0xff] %v13660_v13  ;;  %v5168_v53 = vadd.f32 %v5086_v26, %v5048_v51  ;;  %v6183_v54 = vadd.f32 0.0001, %v6165_v58  ;;  %18463 = vst [vmem:[#allocation35_spill] sm:$0xff] %v13694_v61  ;;  %v13699_v55 = vld [vmem:[%s17549_s1 + $0xa8] sm:$0xff]  ;;  %v6131_v56 = vmul.f32 2.0, %v13604_v30  ;;  %v13738_v15 = vadd.f32 %v13601_v14, %v18452_v21 }
 0x386   :  { %v5437_v5 = vadd.f32 %v5292_v23, %v5167_v42  ;;  %18464 = vst [vmem:[#allocation68_spill] sm:$0xff] %v13699_v55  ;;  %v6075_v29 = vadd.f32 0.0009, %v13573_v60  ;;  %v5698_v32 = vsel %vm2055_vm2, %v5696_v1, %v5697_v39  ;;  %v5700_v27 = vsel %vm2055_vm2, %v5697_v39, %v5699_v41  ;;  %v13718_v60 = vld [vmem:[%s17548_s0 + $0xb0] sm:$0xff]  ;;  %v13746_v51 = vpop.f32.mrb[53].mxu0  ;;  %v18473_v21 = vld [vmem:[#allocation74_spill] sm:$0xff] }
 0x387   :  { %v5438_v47 = vadd.f32 %v5291_v18, %v5168_v53  ;;  %v6184_v35 = vadd.f32 0.0001, %v6166_v50  ;;  %v13707_v20 = vadd.f32 %v5698_v32, %v5436_v12  ;;  %v6077_v25 = vadd.f32 0.0009, %v6059_v3  ;;  %18466 = vst [vmem:[#allocation110_spill] sm:$0xff] %v13718_v60  ;;  %v13723_v18 = vld [vmem:[%s17549_s1 + $0xb0] sm:$0xff] }
 0x388   :  { %v13709_v10 = vadd.f32 %v5700_v27, %v5437_v5  ;;  %v13711_v26 = vadd.f32 0.0001, %v6129_v2  ;;  %18467 = vst [vmem:[#allocation111_spill] sm:$0xff] %v13723_v18  ;;  %9530 = vrcp.f32 %v6183_v54  ;;  %v13728_v3 = vmul.f32 9.961262e-15, %v18468_v43  ;;  %18469 = vst [vmem:[#allocation73_spill] sm:$0xff] %v13738_v15 }
 0x389   :  { %v13713_v28 = vadd.f32 %v5699_v41, %v5438_v47  ;;  %v13731_v17 = vmul.f32 1.1979456e-08, %v18468_v43  ;;  %v13734_v58 = vmul.f32 0.00026386508, %v18468_v43  ;;  %9532 = vrcp.f32 %v6075_v29  ;;  %18470 = vst [vmem:[#allocation112_spill] sm:$0xff] %v13746_v51  ;;  %18474 = vst [vmem:[#allocation74_spill] sm:$0xff] %v13786_v19 }
 0x38a   :  { %18465 = vst [vmem:[#allocation109_spill] sm:$0xff] %v13711_v26  ;;  %v13741_v1 = vmul.f32 0.10645077, %v18468_v43  ;;  %v13744_v41 = vmul.f32 0.7865707, %v18468_v43  ;;  %v13751_v50 = vmul.f32 2.0, %v13607_v33  ;;  %9534 = vrcp.f32 %v6184_v35 }
 0x38b   :  { %v13748_v23 = vadd.f32 0.0009, %v6058_v9  ;;  %v13753_v42 = vadd.f32 0.0001, %v6131_v56  ;;  %9536 = vrcp.f32 %v6077_v25  ;;  %v13756_v14 = vmul.f32 1.5170982e-22, %v18468_v43 }
 0x38c   :  { %18471 = vst [vmem:[#allocation113_spill] sm:$0xff] %v13751_v50  ;;  %v13759_v2 = vmul.f32 9.961262e-15, %v18473_v21  ;;  %v13762_v53 = vmul.f32 1.1979456e-08, %v18473_v21  ;;  %v5994_v62 = vsub.f32 %v13707_v20, %v18475_v57  ;;  %v18476_v47 = vld [vmem:[#allocation89_spill] sm:$0xff] }
 0x38d   :  { %18472 = vst [vmem:[#allocation114_spill] sm:$0xff] %v13753_v42  ;;  %v13768_v54 = vmul.f32 0.00026386508, %v18473_v21  ;;  %v13774_v32 = vmul.f32 0.10645077, %v18473_v21  ;;  %v18477_v27 = vld [vmem:[#allocation80_spill] sm:$0xff]  ;;  %9538 = vrcp.f32 %v13748_v23 }
 0x38e   :  { %v13782_v59 = vmul.f32 0.7865707, %v18473_v21  ;;  %v1307_v56 = vmul.f32 1.5170982e-22, %v18476_v47  ;;  %v1397_v35 = vmul.f32 9.961262e-15, %v18476_v47 }
 0x38f   :  { %v1908_v25 = vmul.f32 1.1979456e-08, %v18476_v47  ;;  %v2430_v29 = vmul.f32 0.00026386508, %v18476_v47  ;;  %v3061_v7 = vmul.f32 0.10645077, %v18476_v47 }
 0x390   :  { %v3692_v44 = vmul.f32 0.7865707, %v18476_v47  ;;  %v1600_v39 = vrot.slane %v1397_v35, 1  ;;  %v18479_v57 = vld [vmem:[#allocation92_spill] sm:$0xff]  ;;  %v18482_v15 = vrot.slane %v13728_v3, 1  ;;  %v18487_v4 = vrot.slane %v13744_v41, 5 }
 0x391   :  { %v2111_v9 = vrot.slane %v1908_v25, 2  ;;  %v1352_v20 = vmul.f32 1.5170982e-22, %v18479_v57  ;;  %v1442_v12 = vmul.f32 9.961262e-15, %v18479_v57  ;;  %v2704_v11 = vrot.slane %v2430_v29, 3 }
 0x392   :  { %v13798_v5 = vpop.eup %9530  ;;  %v3335_v6 = vrot.slane %v3061_v7, 4  ;;  %v3966_v13 = vrot.slane %v3692_v44, 5  ;;  %v4357_v43 = vrot.slane %v3061_v7, 6  ;;  %v1602_v47 = vsel %vm1544_vm1, %v1600_v39, %v18482_v15 }
 0x393   :  { %18478 = vst [vmem:[#allocation44_spill] sm:$0xff] %v13798_v5  ;;  %v13802_v42 = vpop.eup %9532  ;;  %v18483_v5 = vrot.slane %v13731_v17, 2  ;;  %v4748_v25 = vrot.slane %v2430_v29, 7  ;;  %v1675_v50 = vrot.slane %v1442_v12, 1  ;;  %v1818_v30 = vadd.f32 %v1602_v47, %v1307_v56 }
 0x394   :  { %18480 = vst [vmem:[#allocation89_spill] sm:$0xff] %v13802_v42  ;;  %v13804_v26 = vpop.eup %9534  ;;  %v18485_v42 = vrot.slane %v13734_v58, 3  ;;  %v18486_v7 = vrot.slane %v13741_v1, 4  ;;  %v3968_v15 = vsel %vm3888_vm5, %v3966_v13, %v18487_v4  ;;  %v18488_v39 = vrot.slane %v13741_v1, 6 }
 0x395   :  { %18481 = vst [vmem:[#allocation80_spill] sm:$0xff] %v13804_v26  ;;  %v2113_v35 = vsel %vm2055_vm2, %v2111_v9, %v18483_v5  ;;  %v13812_v33 = vpop.eup %9536  ;;  %v18489_v12 = vrot.slane %v13734_v58, 7  ;;  %v18490_v29 = vrot.slane %v13759_v2, 1  ;;  %v2490_v47 = vmul.f32 0.00026386508, %v18479_v57 }
 0x396   :  { %18484 = vst [vmem:[#allocation92_spill] sm:$0xff] %v13812_v33  ;;  %v2706_v44 = vsel %vm2626_vm3, %v2704_v11, %v18485_v42  ;;  %v3337_v26 = vsel %vm3257_vm4, %v3335_v6, %v18486_v7  ;;  %v4359_v9 = vsel %vm4279_vm6, %v4357_v43, %v18488_v39  ;;  %v1953_v42 = vmul.f32 1.1979456e-08, %v18479_v57  ;;  %v18491_v39 = vld [vmem:[#allocation7_spill] sm:$0xff]  ;;  %v18492_v33 = vld [vmem:[#allocation6_spill] sm:$0xff] }
 0x397   :  { %v4750_v5 = vsel %vm4670_vm7, %v4748_v25, %v18489_v12  ;;  %v1677_v11 = vsel %vm1544_vm1, %v1675_v50, %v18490_v29  ;;  %v2329_v56 = vadd.f32 %v2113_v35, %v1818_v30  ;;  %v3121_v4 = vmul.f32 0.10645077, %v18479_v57  ;;  %v13841_v12 = vpop.f32.mrb[54].mxu0  ;;  %v18495_v35 = vld [vmem:[#allocation79_spill] sm:$0xff] }
 0x398   :  { %v1863_v6 = vadd.f32 %v1677_v11, %v1352_v20  ;;  %v2186_v7 = vrot.slane %v1953_v42, 2  ;;  %v3752_v43 = vmul.f32 0.7865707, %v18479_v57  ;;  %v13839_v25 = vadd.f32 %v18492_v33, %v18491_v39  ;;  %18493 = vst [vmem:[#allocation7_spill] sm:$0xff] %v13841_v12  ;;  %v13843_v20 = vpop.f32.mrb[54].mxu1 }
 0x399   :  { %v2960_v50 = vadd.f32 %v2706_v44, %v2329_v56  ;;  %v2809_v29 = vrot.slane %v2490_v47, 3  ;;  %v3440_v19 = vrot.slane %v3121_v4, 4  ;;  %v4462_v30 = vrot.slane %v3121_v4, 6  ;;  %18494 = vst [vmem:[#allocation6_spill] sm:$0xff] %v13843_v20  ;;  %v13918_v45 = vpop.f32.mrb[55].mxu1 }
 0x39a   :  { %v18496_v13 = vrot.slane %v13762_v53, 2  ;;  %v4071_v57 = vrot.slane %v3752_v43, 5  ;;  %v4853_v36 = vrot.slane %v2490_v47, 7  ;;  %v18497_v39 = vrot.slane %v13768_v54, 3  ;;  %v13868_v43 = vpop.f32.mrb[55].mxu0 }
 0x39b   :  { %v3591_v40 = vadd.f32 %v3337_v26, %v2960_v50  ;;  %v18498_v56 = vrot.slane %v13774_v32, 4  ;;  %v18499_v20 = vrot.slane %v13782_v59, 5  ;;  %v18500_v12 = vrot.slane %v13774_v32, 6  ;;  %18503 = vst [vmem:[#allocation79_spill] sm:$0xff] %v13868_v43 }
 0x39c   :  { %v2188_v42 = vsel %vm2055_vm2, %v2186_v7, %v18496_v13  ;;  %v2811_v44 = vsel %vm2626_vm3, %v2809_v29, %v18497_v39  ;;  %v18501_v47 = vrot.slane %v13768_v54, 7  ;;  %v13871_v50 = vmul.f32 1.5170982e-22, %v18473_v21 }
 0x39d   :  { %v2374_v33 = vadd.f32 %v2188_v42, %v1863_v6  ;;  %v3442_v4 = vsel %vm3257_vm4, %v3440_v19, %v18498_v56  ;;  %v4073_v11 = vsel %vm3888_vm5, %v4071_v57, %v18499_v20  ;;  %v4464_v13 = vsel %vm4279_vm6, %v4462_v30, %v18500_v12  ;;  %v18502_v6 = vld [vmem:[#allocation93_spill] sm:$0xff] }
 0x39e   :  { %v4855_v26 = vsel %vm4670_vm7, %v4853_v36, %v18501_v47  ;;  %v13866_v7 = vmul.f32 0.00026386508, %v18502_v6  ;;  %v4222_v19 = vadd.f32 %v3968_v15, %v3591_v40  ;;  %v13874_v20 = vmul.f32 0.10645077, %v18502_v6  ;;  %18506 = vst [vmem:[#allocation93_spill] sm:$0xff] %v13918_v45 }
 0x39f   :  { %v3005_v29 = vadd.f32 %v2811_v44, %v2374_v33  ;;  %v13876_v42 = vmul.f32 2.0, %v5994_v62  ;;  %v3695_v30 = vmul.f32 0.7865707, %v18502_v6  ;;  %v13881_v36 = vmul.f32 9.961262e-15, %v18502_v6  ;;  %v18504_v62 = vld [vmem:[#allocation94_spill] sm:$0xff] }
 0x3a0   :  { %v4613_v39 = vadd.f32 %v4359_v9, %v4222_v19  ;;  %v13885_v21 = vmul.f32 1.5170982e-22, %v18502_v6  ;;  %v2709_v40 = vrot.slane %v13866_v7, 3  ;;  %v4753_v15 = vrot.slane %v13866_v7, 7 }
 0x3a1   :  { %v3636_v56 = vadd.f32 %v3442_v4, %v3005_v29  ;;  %v13890_v33 = vmul.f32 0.00026386508, %v18504_v62  ;;  %v13893_v44 = vmul.f32 0.10645077, %v18504_v62  ;;  %v3340_v43 = vrot.slane %v13874_v20, 4 }
 0x3a2   :  { %v5004_v47 = vadd.f32 %v4750_v5, %v4613_v39  ;;  %v4362_v9 = vrot.slane %v13874_v20, 6  ;;  %v3971_v4 = vrot.slane %v3695_v30, 5  ;;  %v13898_v19 = vmul.f32 1.1979456e-08, %v18502_v6  ;;  %v18505_v39 = vld [vmem:[#allocation97_spill] sm:$0xff] }
 0x3a3   :  { %v4267_v12 = vadd.f32 %v4073_v11, %v3636_v56  ;;  %v13902_v7 = vmul.f32 0.7865707, %v18504_v62  ;;  %v1309_v20 = vmul.f32 1.5170982e-22, %v18505_v39  ;;  %v1399_v30 = vmul.f32 9.961262e-15, %v18505_v39 }
 0x3a4   :  { %v5124_v6 = vadd.f32 %v5004_v47, %v13731_v17  ;;  %v3063_v51 = vmul.f32 0.10645077, %v18505_v39  ;;  %v3694_v8 = vmul.f32 0.7865707, %v18505_v39  ;;  %v18507_v29 = vrot.slane %v13728_v3, 1 }
 0x3a5   :  { %v4658_v57 = vadd.f32 %v4464_v13, %v4267_v12  ;;  %v13915_v13 = vmul.f32 1.1979456e-08, %v18505_v39  ;;  %v2432_v12 = vmul.f32 0.00026386508, %v18505_v39  ;;  %v1603_v11 = vrot.slane %v1399_v30, 1 }
 0x3a6   :  { %v5627_v49 = vrot.slane %v1309_v20, 2  ;;  %v3338_v38 = vrot.slane %v3063_v51, 4  ;;  %v3969_v63 = vrot.slane %v3694_v8, 5  ;;  %v18508_v30 = vrot.slane %v13731_v17, 2 }
 0x3a7   :  { %v13911_v56 = vadd.f32 %v4855_v26, %v4658_v57  ;;  %v2114_v47 = vrot.slane %v13915_v13, 2  ;;  %v2707_v26 = vrot.slane %v2432_v12, 3  ;;  %v4751_v57 = vrot.slane %v2432_v12, 7 }
 0x3a8   :  { %v1604_v24 = vsel %vm1544_vm1, %v18507_v29, %v1603_v11  ;;  %v1820_v48 = vadd.f32 %v1603_v11, %v1309_v20  ;;  %v18509_v39 = vrot.slane %v13734_v58, 3  ;;  %v18510_v3 = vrot.slane %v13741_v1, 4 }
 0x3a9   :  { %v1819_v45 = vadd.f32 %v1604_v24, %v13756_v14  ;;  %v2115_v5 = vsel %vm2055_vm2, %v18508_v30, %v2114_v47  ;;  %v2710_v12 = vsel %vm2626_vm3, %v2707_v26, %v2709_v40  ;;  %v3341_v20 = vsel %vm3257_vm4, %v3338_v38, %v3340_v43 }
 0x3aa   :  { %v2708_v18 = vsel %vm2626_vm3, %v18509_v39, %v2707_v26  ;;  %v2331_v60 = vadd.f32 %v2114_v47, %v1820_v48  ;;  %v3339_v29 = vsel %vm3257_vm4, %v18510_v3, %v3338_v38  ;;  %v18511_v8 = vrot.slane %v13744_v41, 5 }
 0x3ab   :  { %v2330_v17 = vadd.f32 %v2115_v5, %v1819_v45  ;;  %v3972_v30 = vsel %vm3888_vm5, %v3969_v63, %v3971_v4  ;;  %v4360_v61 = vrot.slane %v3063_v51, 6  ;;  %v18512_v34 = vrot.slane %v13734_v58, 7  ;;  %v18518_v5 = vld [vmem:[#allocation98_spill] sm:$0xff] }
 0x3ac   :  { %v3970_v55 = vsel %vm3888_vm5, %v18511_v8, %v3969_v63  ;;  %v2962_v40 = vadd.f32 %v2710_v12, %v2331_v60  ;;  %v4754_v48 = vsel %vm4670_vm7, %v4751_v57, %v4753_v15  ;;  %v18513_v47 = vrot.slane %v13881_v36, 1 }
 0x3ad   :  { %v4752_v39 = vsel %vm4670_vm7, %v18512_v34, %v4751_v57  ;;  %v5394_v38 = vadd.f32 %v5124_v6, %v1604_v24  ;;  %v2961_v43 = vadd.f32 %v2708_v18, %v2330_v17  ;;  %v18514_v41 = vrot.slane %v13741_v1, 6  ;;  %v13976_v57 = vpop.f32.mrb[56].mxu0 }
 0x3ae   :  { %v5264_v26 = vsel %vm1544_vm1, %v1603_v11, %v18513_v47  ;;  %v4363_v63 = vsel %vm4279_vm6, %v4360_v61, %v4362_v9  ;;  %v18515_v51 = vrot.slane %v13756_v14, 2  ;;  %v3593_v34 = vadd.f32 %v3341_v20, %v2962_v40  ;;  %18519 = vst [vmem:[#allocation97_spill] sm:$0xff] %v13976_v57  ;;  %v18520_v40 = vld [vmem:[#allocation87_spill] sm:$0xff] }
 0x3af   :  { %v4361_v45 = vsel %vm4279_vm6, %v18514_v41, %v4360_v61  ;;  %v18516_v60 = vrot.slane %v13885_v21, 2  ;;  %v13963_v24 = vmul.f32 1.5170982e-22, %v18518_v5  ;;  %v3592_v18 = vadd.f32 %v3339_v29, %v2961_v43 }
 0x3b0   :  { %v5628_v58 = vsel %vm2055_vm2, %v18515_v51, %v5627_v49  ;;  %v1444_v1 = vmul.f32 9.961262e-15, %v18518_v5  ;;  %v13967_v11 = vmul.f32 1.1979456e-08, %v18518_v5  ;;  %v2492_v61 = vmul.f32 0.00026386508, %v18518_v5 }
 0x3b1   :  { %v5630_v15 = vsel %vm2055_vm2, %v5627_v49, %v18516_v60  ;;  %v13960_v4 = vadd.f32 %v5628_v58, %v5394_v38  ;;  %v13971_v14 = vmul.f32 9.961262e-15, %v18504_v62  ;;  %v4224_v9 = vadd.f32 %v3972_v30, %v3593_v34  ;;  %v18523_v60 = vld [vmem:[#allocation18_spill] sm:$0xff] }
 0x3b2   :  { %v3123_v6 = vmul.f32 0.10645077, %v18518_v5  ;;  %v4223_v12 = vadd.f32 %v3970_v55, %v3592_v18  ;;  %v1678_v3 = vrot.slane %v1444_v1, 1  ;;  %v2189_v29 = vrot.slane %v13967_v11, 2  ;;  %v18524_v18 = vld [vmem:[#allocation70_spill] sm:$0xff] }
 0x3b3   :  { %18517 = vst [vmem:[#allocation94_spill] sm:$0xff] %v13960_v4  ;;  %v5934_v49 = vmul.f32 %v13960_v4, %v13960_v4  ;;  %v2812_v20 = vrot.slane %v2492_v61, 3  ;;  %v13980_v8 = vmul.f32 1.5170982e-22, %v18504_v62  ;;  %v4615_v17 = vadd.f32 %v4363_v63, %v4224_v9 }
 0x3b4   :  { %v3443_v38 = vrot.slane %v3123_v6, 4  ;;  %v4614_v30 = vadd.f32 %v4361_v45, %v4223_v12  ;;  %v18521_v43 = vrot.slane %v13759_v2, 1  ;;  %v1865_v51 = vadd.f32 %v1678_v3, %v13963_v24 }
 0x3b5   :  { %v5988_v47 = vsub.f32 %v18520_v40, %v5934_v49  ;;  %v18522_v55 = vrot.slane %v13762_v53, 2  ;;  %v5006_v34 = vadd.f32 %v4754_v48, %v4615_v17  ;;  %v18525_v1 = vsub.f32 %v18523_v60, %v18524_v18 }
 0x3b6   :  { %v1679_v41 = vsel %vm1544_vm1, %v18521_v43, %v1678_v3  ;;  %v3754_v9 = vmul.f32 0.7865707, %v18518_v5  ;;  %v5005_v45 = vadd.f32 %v4752_v39, %v4614_v30  ;;  %v2376_v12 = vadd.f32 %v2189_v29, %v1865_v51 }
 0x3b7   :  { %v2190_v58 = vsel %vm2055_vm2, %v18522_v55, %v2189_v29  ;;  %v6060_v4 = vadd.f32 %v5988_v47, %v18525_v1  ;;  %v1864_v63 = vadd.f32 %v1679_v41, %v13871_v50  ;;  %v18526_v2 = vrot.slane %v13768_v54, 3 }
 0x3b8   :  { %v18527_v43 = vrot.slane %v13890_v33, 3  ;;  %v5087_v48 = vmul.f32 1.1979456e-08, %v18504_v62  ;;  %v5293_v17 = vrot.slane %v13971_v14, 1  ;;  %v5126_v47 = vadd.f32 %v13898_v19, %v5006_v34 }
 0x3b9   :  { %v2813_v40 = vsel %vm2626_vm3, %v18526_v2, %v2812_v20  ;;  %v2375_v55 = vadd.f32 %v2190_v58, %v1864_v63  ;;  %v5125_v60 = vadd.f32 %v5005_v45, %v13915_v13  ;;  %v18528_v39 = vrot.slane %v13774_v32, 4 }
 0x3ba   :  { %v2815_v57 = vsel %vm2626_vm3, %v2812_v20, %v18527_v43  ;;  %v18529_v30 = vrot.slane %v13893_v44, 4  ;;  %v5704_v20 = vrot.slane %v13980_v8, 2  ;;  %v18530_v62 = vrot.slane %v13881_v36, 1 }
 0x3bb   :  { %v3007_v5 = vadd.f32 %v2815_v57, %v2376_v12  ;;  %v3444_v29 = vsel %vm3257_vm4, %v18528_v39, %v3443_v38  ;;  %v3006_v14 = vadd.f32 %v2813_v40, %v2375_v55  ;;  %v4074_v2 = vrot.slane %v3754_v9, 5  ;;  %v14045_v39 = vpop.f32.mrb[56].mxu1 }
 0x3bc   :  { %v3446_v51 = vsel %vm3257_vm4, %v3443_v38, %v18529_v30  ;;  %v5396_v1 = vadd.f32 %v18530_v62, %v5126_v47  ;;  %v5395_v19 = vadd.f32 %v5264_v26, %v5125_v60  ;;  %v4465_v34 = vrot.slane %v3123_v6, 6 }
 0x3bd   :  { %v3638_v58 = vadd.f32 %v3446_v51, %v3007_v5  ;;  %v4856_v13 = vrot.slane %v2492_v61, 7  ;;  %v18531_v57 = vrot.slane %v13885_v21, 2  ;;  %v3637_v45 = vadd.f32 %v3444_v29, %v3006_v14  ;;  %v18540_v29 = vld [vmem:[#allocation90_spill] sm:$0xff]  ;;  %v18542_v14 = vld [vmem:[#allocation91_spill] sm:$0xff] }
 0x3be   :  { %v18533_v12 = vrot.slane %v13782_v59, 5  ;;  %v18534_v8 = vrot.slane %v13902_v7, 5  ;;  %v14024_v43 = vadd.f32 %v5630_v15, %v5395_v19  ;;  %v18536_v26 = vrot.slane %v13774_v32, 6 }
 0x3bf   :  { %v14016_v63 = vadd.f32 %v18531_v57, %v5396_v1  ;;  %v18537_v21 = vrot.slane %v13893_v44, 6  ;;  %v18538_v47 = vrot.slane %v13768_v54, 7  ;;  %v18539_v15 = vrot.slane %v13890_v33, 7 }
 0x3c0   :  { %v4075_v38 = vsel %vm3888_vm5, %v18533_v12, %v4074_v2  ;;  %v4077_v36 = vsel %vm3888_vm5, %v4074_v2, %v18534_v8  ;;  %18535 = vst [vmem:[#allocation87_spill] sm:$0xff] %v14024_v43  ;;  %v4466_v61 = vsel %vm4279_vm6, %v18536_v26, %v4465_v34  ;;  %v5935_v32 = vmul.f32 %v14024_v43, %v14024_v43 }
 0x3c1   :  { %18532 = vst [vmem:[#allocation98_spill] sm:$0xff] %v14016_v63  ;;  %v4269_v9 = vadd.f32 %v4077_v36, %v3638_v58  ;;  %v4468_v6 = vsel %vm4279_vm6, %v4465_v34, %v18537_v21  ;;  %v5936_v59 = vmul.f32 %v14016_v63, %v14016_v63  ;;  %v4268_v40 = vadd.f32 %v4075_v38, %v3637_v45  ;;  %v18548_v45 = vld [vmem:[#allocation76_spill] sm:$0xff] }
 0x3c2   :  { %v4857_v7 = vsel %vm4670_vm7, %v18538_v47, %v4856_v13  ;;  %v4859_v55 = vsel %vm4670_vm7, %v4856_v13, %v18539_v15  ;;  %v5169_v44 = vadd.f32 %v13911_v56, %v13762_v53  ;;  %v5294_v5 = vsel %vm1544_vm1, %v1678_v3, %v5293_v17  ;;  %v18543_v53 = vld [vmem:[#allocation46_spill] sm:$0xff]  ;;  %v18544_v56 = vld [vmem:[#allocation37_spill] sm:$0xff] }
 0x3c3   :  { %v4660_v60 = vadd.f32 %v4468_v6, %v4269_v9  ;;  %v5990_v30 = vsub.f32 %v18540_v29, %v5936_v59  ;;  %v6168_v54 = vadd.f32 %v5934_v49, %v18524_v18  ;;  %v4659_v51 = vadd.f32 %v4466_v61, %v4268_v40  ;;  %v18552_v47 = vld [vmem:[#allocation5_spill] sm:$0xff] }
 0x3c4   :  { %v5702_v33 = vrot.slane %v13963_v24, 2  ;;  %v18541_v62 = vsub.f32 %v13709_v10, %v18477_v27  ;;  %v5989_v2 = vsub.f32 %v18542_v14, %v5935_v32  ;;  %v5439_v58 = vadd.f32 %v5169_v44, %v1679_v41  ;;  %v18547_v24 = vld [vmem:[#allocation48_spill] sm:$0xff] }
 0x3c5   :  { %v5051_v19 = vadd.f32 %v4859_v55, %v4660_v60  ;;  %v18545_v3 = vsub.f32 %v18543_v53, %v18544_v56  ;;  %v6170_v13 = vadd.f32 %v5936_v59, %v18544_v56  ;;  %v5050_v57 = vadd.f32 %v4857_v7, %v4659_v51  ;;  %v18565_v56 = vld [vmem:[#allocation71_spill] sm:$0xff] }
 0x3c6   :  { %v6013_v1 = vmul.f32 2.0, %v18541_v62  ;;  %v18546_v49 = vrot.slane %v13871_v50, 2  ;;  %v18549_v12 = vsub.f32 %v18547_v24, %v18548_v45  ;;  %v6169_v27 = vadd.f32 %v5935_v32, %v18548_v45  ;;  %v14096_v32 = vpop.f32.mrb[57].mxu0 }
 0x3c7   :  { %v6062_v34 = vadd.f32 %v5990_v30, %v18545_v3  ;;  %v5171_v38 = vadd.f32 %v5087_v48, %v5051_v19  ;;  %v5705_v41 = vsel %vm2055_vm2, %v5702_v33, %v5704_v20  ;;  %v6186_v8 = vadd.f32 0.0001, %v6168_v54  ;;  %v18557_v30 = vld [vmem:[#allocation65_spill] sm:$0xff] }
 0x3c8   :  { %v5703_v18 = vsel %vm2055_vm2, %v18546_v49, %v5702_v33  ;;  %v6061_v10 = vadd.f32 %v5989_v2, %v18549_v12  ;;  %v5170_v36 = vadd.f32 %v5050_v57, %v13967_v11  ;;  %v18550_v50 = vsub.f32 %v13713_v28, %v18495_v35  ;;  %v9594_v28 = vld [vmem:[%s17548_s0 + $0xb8] sm:$0xff]  ;;  %v18559_v33 = vld [vmem:[#allocation35_spill] sm:$0xff]  ;;  %s9610_s0 = smov 121  }
 0x3c9   :  { %v14068_v9 = vadd.f32 %v5703_v18, %v5439_v58  ;;  %v14074_v61 = vadd.f32 0.0009, %v13876_v42  ;;  %v6078_v21 = vadd.f32 0.0009, %v6060_v4  ;;  %v5441_v6 = vadd.f32 %v5293_v17, %v5171_v38  ;;  %v9595_v35 = vld [vmem:[%s17549_s1 + $0xb8] sm:$0xff]  ;;  %v18566_v57 = vld [vmem:[#allocation103_spill] sm:$0xff]  ;;  %v14125_v18 = vpop.eup %9538 }
 0x3ca   :  { %v6014_v26 = vmul.f32 2.0, %v18550_v50  ;;  %v6188_v59 = vadd.f32 0.0001, %v6170_v13  ;;  %v5440_v48 = vadd.f32 %v5294_v5, %v5170_v36  ;;  %v18551_v40 = vsub.f32 %v13346_v52, %v13351_v16  ;;  %v18556_v5 = vld [vmem:[#allocation58_spill] sm:$0xff]  ;;  %v14142_v36 = vpop.f32.mrb[57].mxu1  ;;  %s9611_s1 = smov 127  }
 0x3cb   :  { %v144_v11 = vsel %vm114_vm0, %v18552_v47, 0.0  ;;  %v14081_v7 = vadd.f32 0.0009, %v6013_v1  ;;  %v6187_v15 = vadd.f32 0.0001, %v6169_v27  ;;  %v14083_v55 = vadd.f32 %v5704_v20, %v5441_v6 }
 0x3cc   :  { %v107_v23 = vand.u32 2147483647, %v18551_v40  ;;  %v89_v42 = vsub.f32 %v9594_v28, %v9595_v35  ;;  %v6080_v4 = vadd.f32 0.0009, %v6062_v34  ;;  %9540 = vrcp.f32 %v6186_v8  ;;  %v18568_v28 = vld [vmem:[#allocation104_spill] sm:$0xff] }
 0x3cd   :  { %18553 = vst [vmem:[#allocation18_spill] sm:$0xff] %v14081_v7  ;;  %v14091_v52 = vadd.f32 %v5705_v41, %v5440_v48  ;;  %v18554_v16 = vsub.f32 %v13646_v31, %v13651_v0  ;;  %9542 = vrcp.f32 %v6078_v21  ;;  %v18555_v20 = vsub.f32 %v13667_v46, %v13672_v22  ;;  %v18560_v31 = vld [vmem:[#allocation68_spill] sm:$0xff]  ;;  %v18562_v46 = vld [vmem:[#allocation110_spill] sm:$0xff]  ;;  %v18563_v22 = vld [vmem:[#allocation111_spill] sm:$0xff] }
 0x3ce   :  { %v145_v44 = vadd.f32 %v144_v11, %v13839_v25  ;;  %v146_v29 = vsel %vm114_vm0, %v18556_v5, 0.0  ;;  %9544 = vrcp.f32 %v6188_v59  ;;  %v18558_v54 = vsub.f32 %v13682_v37, %v18557_v30 }
 0x3cf   :  { %v108_v17 = vand.u32 2147483647, %v18554_v16  ;;  %v109_v60 = vand.u32 2147483647, %v18555_v20  ;;  %v18561_v0 = vsub.f32 %v18559_v33, %v18560_v31  ;;  %v148_v1 = vsel %vm114_vm0, %v107_v23, 0.0 }
 0x3d0   :  { %v110_v51 = vand.u32 2147483647, %v18558_v54  ;;  %v14111_v14 = vadd.f32 0.0009, %v6014_v26  ;;  %9546 = vrcp.f32 %v6187_v15  ;;  %v18564_v25 = vsub.f32 %v18562_v46, %v18563_v22  ;;  %v18571_v54 = vld [vmem:[#allocation8_spill] sm:$0xff]  ;;  %v14198_v22 = vpop.f32.mrb[58].mxu0 }
 0x3d1   :  { %v111_v62 = vand.u32 2147483647, %v18561_v0  ;;  %v147_v19 = vadd.f32 %v146_v29, %v145_v44  ;;  %v14116_v58 = vadd.f32 0.0009, %v6061_v10  ;;  %9548 = vrcp.f32 %v6080_v4  ;;  %18575 = vst [vmem:[#allocation48_spill] sm:$0xff] %v14198_v22 }
 0x3d2   :  { %v112_v2 = vand.u32 2147483647, %v18564_v25  ;;  %v113_v53 = vand.u32 2147483647, %v89_v42  ;;  %v150_v37 = vsel %vm114_vm0, %v108_v17, 0.0  ;;  %v152_v13 = vsel %vm114_vm0, %v109_v60, 0.0 }
 0x3d3   :  { %v149_v34 = vadd.f32 %v148_v1, %v147_v19  ;;  %v14123_v49 = vmul.f32 9.961262e-15, %v18566_v57  ;;  %v154_v24 = vsel %vm114_vm0, %v110_v51, 0.0  ;;  %v156_v45 = vsel %vm114_vm0, %v111_v62, 0.0  ;;  %v14200_v1 = vpop.f32.mrb[58].mxu1 }
 0x3d4   :  { %v14130_v12 = vmul.f32 1.1979456e-08, %v18566_v57  ;;  %v14133_v10 = vmul.f32 0.00026386508, %v18566_v57  ;;  %v158_v38 = vsel %vm114_vm0, %v112_v2, 0.0  ;;  %v160_v50 = vsel %vm114_vm0, %v113_v53, 0.0 }
 0x3d5   :  { %v151_v27 = vadd.f32 %v150_v37, %v149_v34  ;;  %v14137_v41 = vmul.f32 0.10645077, %v18566_v57  ;;  %v14140_v8 = vmul.f32 0.7865707, %v18566_v57  ;;  %v14146_v26 = vmul.f32 1.5170982e-22, %v18566_v57 }
 0x3d6   :  { %v17796_v21 = vrot.slane %v14123_v49, 1  ;;  %v17795_v6 = vrot.slane %v14130_v12, 2  ;;  %v17794_v48 = vrot.slane %v14133_v10, 3  ;;  %v17792_v23 = vrot.slane %v14133_v10, 7  ;;  %v14153_v47 = vpop.eup %9540  ;;  %18576 = vst [vmem:[#allocation76_spill] sm:$0xff] %v14200_v1 }
 0x3d7   :  { %v153_v59 = vadd.f32 %v152_v13, %v151_v27  ;;  %v17793_v40 = vrot.slane %v14137_v41, 4  ;;  %18567 = vst [vmem:[#allocation70_spill] sm:$0xff] %v14153_v47  ;;  %v17790_v11 = vrot.slane %v14140_v8, 5  ;;  %v17791_v15 = vrot.slane %v14137_v41, 6  ;;  %v14163_v4 = vpop.eup %9542 }
 0x3d8   :  { %v14158_v35 = vmul.f32 9.961262e-15, %v18568_v28  ;;  %v14161_v42 = vmul.f32 1.1979456e-08, %v18568_v28  ;;  %18569 = vst [vmem:[#allocation90_spill] sm:$0xff] %v14163_v4  ;;  %v14174_v44 = vpop.eup %9544  ;;  %v18589_v22 = vrot.slane %v14133_v10, 7 }
 0x3d9   :  { %v155_v16 = vadd.f32 %v154_v24, %v153_v59  ;;  %v14166_v17 = vmul.f32 0.00026386508, %v18568_v28  ;;  %v14169_v20 = vmul.f32 0.10645077, %v18568_v28  ;;  %v14172_v60 = vmul.f32 0.7865707, %v18568_v28 }
 0x3da   :  { %18570 = vst [vmem:[#allocation91_spill] sm:$0xff] %v14174_v44  ;;  %v14177_v5 = vmul.f32 1.5170982e-22, %v18568_v28  ;;  %v17800_v29 = vrot.slane %v14158_v35, 1  ;;  %v17799_v30 = vrot.slane %v14161_v42, 2  ;;  %v14182_v33 = vpop.eup %9546 }
 0x3db   :  { %v1310_v51 = vmul.f32 1.5170982e-22, %v18571_v54  ;;  %18572 = vst [vmem:[#allocation46_spill] sm:$0xff] %v14182_v33  ;;  %v157_v31 = vadd.f32 %v156_v45, %v155_v16  ;;  %v17798_v0 = vrot.slane %v14166_v17, 3  ;;  %v17797_v62 = vrot.slane %v14169_v20, 4  ;;  %v14187_v46 = vpop.eup %9548  ;;  %v18574_v45 = vld [vmem:[#allocation63_spill] sm:$0xff] }
 0x3dc   :  { %18573 = vst [vmem:[#allocation37_spill] sm:$0xff] %v14187_v46  ;;  %v1400_v2 = vmul.f32 9.961262e-15, %v18571_v54  ;;  %v1911_v19 = vmul.f32 1.1979456e-08, %v18571_v54 }
 0x3dd   :  { %v159_v53 = vadd.f32 %v158_v38, %v157_v31  ;;  %v2434_v37 = vmul.f32 0.00026386508, %v18571_v54  ;;  %v3065_v34 = vmul.f32 0.10645077, %v18571_v54  ;;  %v3696_v13 = vmul.f32 0.7865707, %v18571_v54 }
 0x3de   :  { %v1605_v57 = vrot.slane %v1400_v2, 1  ;;  %v2116_v24 = vrot.slane %v1911_v19, 2  ;;  %v1355_v27 = vmul.f32 1.5170982e-22, %v18574_v45  ;;  %v1445_v59 = vmul.f32 9.961262e-15, %v18574_v45 }
 0x3df   :  { %v161_v28 = vadd.f32 %v160_v50, %v159_v53  ;;  %v2711_v16 = vrot.slane %v2434_v37, 3  ;;  %v3342_v3 = vrot.slane %v3065_v34, 4  ;;  %v3973_v25 = vrot.slane %v3696_v13, 5 }
 0x3e0   :  { %v1607_v38 = vsel %vm1544_vm1, %v1605_v57, %v17796_v21  ;;  %v2118_v54 = vsel %vm2055_vm2, %v2116_v24, %v17795_v6  ;;  %v4364_v31 = vrot.slane %v3065_v34, 6  ;;  %v4755_v2 = vrot.slane %v2434_v37, 7  ;;  %v14217_v57 = vpop.f32.mrb[59].mxu0 }
 0x3e1   :  { %162 = vadd.xlane.f32.xlu0 %v161_v28  ;;  %v1821_v19 = vadd.f32 %v1607_v38, %v1310_v51  ;;  %v2713_v50 = vsel %vm2626_vm3, %v2711_v16, %v17794_v48  ;;  %v3344_v53 = vsel %vm3257_vm4, %v3342_v3, %v17793_v40  ;;  %v3975_v13 = vsel %vm3888_vm5, %v3973_v25, %v17790_v11 }
 0x3e2   :  { %18577 = vst [vmem:[#allocation5_spill] sm:$0xff] %v14217_v57  ;;  %v4366_v37 = vsel %vm4279_vm6, %v4364_v31, %v17791_v15  ;;  %v4757_v51 = vsel %vm4670_vm7, %v4755_v2, %v17792_v23  ;;  %v1680_v34 = vrot.slane %v1445_v59, 1  ;;  %v1956_v24 = vmul.f32 1.1979456e-08, %v18574_v45  ;;  %v18578_v31 = vld [vmem:[#allocation61_spill] sm:$0xff] }
 0x3e3   :  { %v2332_v28 = vadd.f32 %v2118_v54, %v1821_v19  ;;  %v2494_v3 = vmul.f32 0.00026386508, %v18574_v45  ;;  %v3125_v16 = vmul.f32 0.10645077, %v18574_v45  ;;  %v3756_v25 = vmul.f32 0.7865707, %v18574_v45 }
 0x3e4   :  { %v1682_v38 = vsel %vm1544_vm1, %v1680_v34, %v17800_v29  ;;  %v2191_v11 = vrot.slane %v1956_v24, 2  ;;  %v14233_v15 = vmul.f32 0.00026386508, %v18578_v31  ;;  %v14236_v2 = vmul.f32 0.10645077, %v18578_v31 }
 0x3e5   :  { %v2963_v59 = vadd.f32 %v2713_v50, %v2332_v28  ;;  %v1866_v23 = vadd.f32 %v1682_v38, %v1355_v27  ;;  %v2816_v54 = vrot.slane %v2494_v3, 3  ;;  %v3447_v19 = vrot.slane %v3125_v16, 4 }
 0x3e6   :  { %v2193_v40 = vsel %vm2055_vm2, %v2191_v11, %v17799_v30  ;;  %v4078_v45 = vrot.slane %v3756_v25, 5  ;;  %v4469_v48 = vrot.slane %v3125_v16, 6  ;;  %v4860_v6 = vrot.slane %v2494_v3, 7 }
 0x3e7   :  { %v3594_v21 = vadd.f32 %v3344_v53, %v2963_v59  ;;  %v2377_v34 = vadd.f32 %v2193_v40, %v1866_v23  ;;  %v2818_v24 = vsel %vm2626_vm3, %v2816_v54, %v17798_v0  ;;  %v3449_v50 = vsel %vm3257_vm4, %v3447_v19, %v17797_v62 }
 0x3e8   :  { %v18579_v28 = vrot.slane %v14172_v60, 5  ;;  %v18580_v11 = vrot.slane %v14169_v20, 6  ;;  %v18581_v40 = vrot.slane %v14166_v17, 7  ;;  %v3699_v59 = vmul.f32 0.7865707, %v18578_v31 }
 0x3e9   :  { %v4225_v16 = vadd.f32 %v3975_v13, %v3594_v21  ;;  %v3008_v25 = vadd.f32 %v2818_v24, %v2377_v34  ;;  %v2716_v54 = vrot.slane %v14233_v15, 3  ;;  %v3347_v19 = vrot.slane %v14236_v2, 4  ;;  %v18582_v34 = vld [vmem:[#allocation106_spill] sm:$0xff] }
 0x3ea   :  { %v4080_v38 = vsel %vm3888_vm5, %v4078_v45, %v18579_v28  ;;  %v4471_v3 = vsel %vm4279_vm6, %v4469_v48, %v18580_v11  ;;  %v4862_v23 = vsel %vm4670_vm7, %v4860_v6, %v18581_v40  ;;  %v4369_v45 = vrot.slane %v14236_v2, 6 }
 0x3eb   :  { %v14263_v28 = vmul.f32 9.961262e-15, %v18578_v31  ;;  %v4616_v48 = vadd.f32 %v4366_v37, %v4225_v16  ;;  %v3639_v11 = vadd.f32 %v3449_v50, %v3008_v25  ;;  %v14266_v62 = vmul.f32 1.1979456e-08, %v18578_v31 }
 0x3ec   :  { %v14269_v6 = vmul.f32 1.5170982e-22, %v18578_v31  ;;  %v3978_v21 = vrot.slane %v3699_v59, 5  ;;  %v4760_v13 = vrot.slane %v14233_v15, 7  ;;  %v14273_v24 = vmul.f32 0.00026386508, %v18582_v34 }
 0x3ed   :  { %v14276_v40 = vmul.f32 0.10645077, %v18582_v34  ;;  %v5007_v2 = vadd.f32 %v4757_v51, %v4616_v48  ;;  %v4270_v53 = vadd.f32 %v4080_v38, %v3639_v11  ;;  %v14280_v50 = vmul.f32 0.7865707, %v18582_v34  ;;  %v18583_v48 = vld [vmem:[#allocation57_spill] sm:$0xff] }
 0x3ee   :  { %v14289_v51 = vmul.f32 9.961262e-15, %v18582_v34  ;;  %v14292_v38 = vmul.f32 1.5170982e-22, %v18582_v34  ;;  %v1312_v11 = vmul.f32 1.5170982e-22, %v18583_v48 }
 0x3ef   :  { %v4661_v59 = vadd.f32 %v4471_v3, %v4270_v53  ;;  %v1402_v29 = vmul.f32 9.961262e-15, %v18583_v48  ;;  %v5127_v31 = vadd.f32 %v5007_v2, %v14130_v12  ;;  %v14301_v53 = vmul.f32 1.1979456e-08, %v18583_v48 }
 0x3f0   :  { %v2436_v30 = vmul.f32 0.00026386508, %v18583_v48  ;;  %v3067_v16 = vmul.f32 0.10645077, %v18583_v48  ;;  %v3698_v27 = vmul.f32 0.7865707, %v18583_v48 }
 0x3f1   :  { %v14297_v25 = vadd.f32 %v4862_v23, %v4661_v59  ;;  %v1608_v0 = vrot.slane %v1402_v29, 1  ;;  %v2119_v37 = vrot.slane %v14301_v53, 2  ;;  %v5632_v23 = vrot.slane %v1312_v11, 2 }
 0x3f2   :  { %v2714_v46 = vrot.slane %v2436_v30, 3  ;;  %v4758_v2 = vrot.slane %v2436_v30, 7  ;;  %v18584_v59 = vrot.slane %v14123_v49, 1  ;;  %v3345_v44 = vrot.slane %v3067_v16, 4 }
 0x3f3   :  { %v1823_v4 = vadd.f32 %v1608_v0, %v1312_v11  ;;  %v3976_v33 = vrot.slane %v3698_v27, 5  ;;  %v18585_v29 = vrot.slane %v14130_v12, 2  ;;  %v18586_v48 = vrot.slane %v14133_v10, 3 }
 0x3f4   :  { %v1609_v3 = vsel %vm1544_vm1, %v18584_v59, %v1608_v0  ;;  %v2717_v30 = vsel %vm2626_vm3, %v2714_v46, %v2716_v54  ;;  %v18587_v49 = vrot.slane %v14137_v41, 4  ;;  %v3348_v11 = vsel %vm3257_vm4, %v3345_v44, %v3347_v19 }
 0x3f5   :  { %v1822_v47 = vadd.f32 %v1609_v3, %v14146_v26  ;;  %v2120_v15 = vsel %vm2055_vm2, %v18585_v29, %v2119_v37  ;;  %v2715_v63 = vsel %vm2626_vm3, %v18586_v48, %v2714_v46  ;;  %v2334_v43 = vadd.f32 %v2119_v37, %v1823_v4 }
 0x3f6   :  { %v3346_v59 = vsel %vm3257_vm4, %v18587_v49, %v3345_v44  ;;  %v18588_v27 = vrot.slane %v14140_v8, 5  ;;  %v3979_v29 = vsel %vm3888_vm5, %v3976_v33, %v3978_v21  ;;  %v4367_v1 = vrot.slane %v3067_v16, 6 }
 0x3f7   :  { %v2333_v12 = vadd.f32 %v2120_v15, %v1822_v47  ;;  %v4759_v48 = vsel %vm4670_vm7, %v18589_v22, %v4758_v2  ;;  %v2965_v46 = vadd.f32 %v2717_v30, %v2334_v43  ;;  %v4761_v4 = vsel %vm4670_vm7, %v4758_v2, %v4760_v13  ;;  %v18594_v15 = vld [vmem:[#allocation84_spill] sm:$0xff] }
 0x3f8   :  { %v3977_v57 = vsel %vm3888_vm5, %v18588_v27, %v3976_v33  ;;  %v18590_v54 = vrot.slane %v14263_v28, 1  ;;  %v5397_v44 = vadd.f32 %v5127_v31, %v1609_v3  ;;  %v18591_v8 = vrot.slane %v14137_v41, 6 }
 0x3f9   :  { %v2964_v19 = vadd.f32 %v2715_v63, %v2333_v12  ;;  %v4370_v33 = vsel %vm4279_vm6, %v4367_v1, %v4369_v45  ;;  %v18592_v21 = vrot.slane %v14146_v26, 2  ;;  %v3596_v22 = vadd.f32 %v3348_v11, %v2965_v46  ;;  %v18595_v45 = vld [vmem:[#allocation59_spill] sm:$0xff]  ;;  %v18596_v12 = vld [vmem:[#allocation50_spill] sm:$0xff]  ;;  %v18597_v46 = vld [vmem:[#allocation56_spill] sm:$0xff] }
 0x3fa   :  { %v5266_v37 = vsel %vm1544_vm1, %v1608_v0, %v18590_v54  ;;  %v4368_v47 = vsel %vm4279_vm6, %v18591_v8, %v4367_v1  ;;  %v18593_v43 = vrot.slane %v14269_v6, 2  ;;  %v14345_v0 = vmul.f32 1.5170982e-22, %v18594_v15 }
 0x3fb   :  { %v5633_v10 = vsel %vm2055_vm2, %v18592_v21, %v5632_v23  ;;  %v3595_v63 = vadd.f32 %v3346_v59, %v2964_v19  ;;  %v1447_v41 = vmul.f32 9.961262e-15, %v18594_v15  ;;  %v14349_v31 = vmul.f32 1.1979456e-08, %v18594_v15 }
 0x3fc   :  { %v5635_v13 = vsel %vm2055_vm2, %v5632_v23, %v18593_v43  ;;  %v5847_v16 = vadd.f32 %v5633_v10, %v5397_v44  ;;  %v2496_v1 = vmul.f32 0.00026386508, %v18594_v15  ;;  %v4227_v26 = vadd.f32 %v3979_v29, %v3596_v22 }
 0x3fd   :  { %v3127_v2 = vmul.f32 0.10645077, %v18594_v15  ;;  %v3758_v30 = vmul.f32 0.7865707, %v18594_v15  ;;  %v4226_v23 = vadd.f32 %v3977_v57, %v3595_v63  ;;  %v1683_v49 = vrot.slane %v1447_v41, 1 }
 0x3fe   :  { %v5955_v3 = vsub.f32 %v5847_v16, %v18595_v45  ;;  %v2194_v11 = vrot.slane %v14349_v31, 2  ;;  %v2819_v27 = vrot.slane %v2496_v1, 3  ;;  %v4618_v59 = vadd.f32 %v4370_v33, %v4227_v26 }
 0x3ff   :  { %v18598_v54 = vsub.f32 %v18596_v12, %v18597_v46  ;;  %v3450_v19 = vrot.slane %v3127_v2, 4  ;;  %v4081_v8 = vrot.slane %v3758_v30, 5  ;;  %v4617_v21 = vadd.f32 %v4368_v47, %v4226_v23 }
 0x400   :  { %v18599_v29 = vrot.slane %v14158_v35, 1  ;;  %v1868_v22 = vadd.f32 %v1683_v49, %v14345_v0  ;;  %v18600_v57 = vrot.slane %v14161_v42, 2  ;;  %v5009_v16 = vadd.f32 %v4761_v4, %v4618_v59 }
 0x401   :  { %v6045_v44 = vadd.f32 %v18598_v54, %v5955_v3  ;;  %v18601_v63 = vrot.slane %v14166_v17, 3  ;;  %v5008_v26 = vadd.f32 %v4759_v48, %v4617_v21  ;;  %v18602_v35 = vrot.slane %v14273_v24, 3 }
 0x402   :  { %v1684_v10 = vsel %vm1544_vm1, %v18599_v29, %v1683_v49  ;;  %v2195_v43 = vsel %vm2055_vm2, %v18600_v57, %v2194_v11  ;;  %v2379_v47 = vadd.f32 %v2194_v11, %v1868_v22  ;;  %v18603_v3 = vrot.slane %v14169_v20, 4 }
 0x403   :  { %v6063_v15 = vadd.f32 0.0009, %v6045_v44  ;;  %v1867_v33 = vadd.f32 %v1684_v10, %v14177_v5  ;;  %v2820_v41 = vsel %vm2626_vm3, %v18601_v63, %v2819_v27  ;;  %v2822_v45 = vsel %vm2626_vm3, %v2819_v27, %v18602_v35 }
 0x404   :  { %v3451_v30 = vsel %vm3257_vm4, %v18603_v3, %v3450_v19  ;;  %v5129_v23 = vadd.f32 %v14266_v62, %v5009_v16  ;;  %v18604_v59 = vrot.slane %v14276_v40, 4  ;;  %v5128_v46 = vadd.f32 %v5008_v26, %v14301_v53 }
 0x405   :  { %9550 = vrcp.f32 %v6063_v15  ;;  %v2378_v4 = vadd.f32 %v2195_v43, %v1867_v33  ;;  %v3010_v48 = vadd.f32 %v2822_v45, %v2379_v47  ;;  %v18605_v11 = vrot.slane %v14172_v60, 5  ;;  %v14410_v45 = vpop.f32.mrb[59].mxu1 }
 0x406   :  { %v3453_v12 = vsel %vm3257_vm4, %v3450_v19, %v18604_v59  ;;  %v18606_v27 = vrot.slane %v14280_v50, 5  ;;  %v18607_v21 = vrot.slane %v14263_v28, 1  ;;  %v4472_v22 = vrot.slane %v3127_v2, 6  ;;  %18615 = vst [vmem:[#allocation58_spill] sm:$0xff] %v14410_v45 }
 0x407   :  { %v4082_v54 = vsel %vm3888_vm5, %v18605_v11, %v4081_v8  ;;  %v3009_v29 = vadd.f32 %v2820_v41, %v2378_v4  ;;  %v4863_v57 = vrot.slane %v2496_v1, 7  ;;  %v5398_v43 = vadd.f32 %v5266_v37, %v5128_v46  ;;  %v18614_v41 = vld [vmem:[#allocation9_spill] sm:$0xff]  ;;  %v18618_v4 = vld [vmem:[#allocation51_spill] sm:$0xff] }
 0x408   :  { %v4084_v44 = vsel %vm3888_vm5, %v4081_v8, %v18606_v27  ;;  %v5399_v62 = vadd.f32 %v18607_v21, %v5129_v23  ;;  %v3641_v16 = vadd.f32 %v3453_v12, %v3010_v48  ;;  %v5172_v53 = vadd.f32 %v14297_v25, %v14161_v42 }
 0x409   :  { %v18608_v19 = vrot.slane %v14289_v51, 1  ;;  %v18609_v15 = vrot.slane %v14269_v6, 2  ;;  %v3640_v33 = vadd.f32 %v3451_v30, %v3009_v29  ;;  %v18610_v8 = vrot.slane %v14169_v20, 6 }
 0x40a   :  { %v18611_v2 = vrot.slane %v14276_v40, 6  ;;  %v5848_v1 = vadd.f32 %v5635_v13, %v5398_v43  ;;  %v4272_v63 = vadd.f32 %v4084_v44, %v3641_v16  ;;  %v18612_v42 = vrot.slane %v14166_v17, 7  ;;  %v18616_v13 = vld [vmem:[#allocation10_spill] sm:$0xff]  ;;  %v18617_v17 = vld [vmem:[#allocation55_spill] sm:$0xff] }
 0x40b   :  { %v5296_v60 = vsel %vm1544_vm1, %v1683_v49, %v18608_v19  ;;  %v5849_v50 = vadd.f32 %v18609_v15, %v5399_v62  ;;  %v4473_v28 = vsel %vm4279_vm6, %v18610_v8, %v4472_v22  ;;  %v18613_v49 = vrot.slane %v14273_v24, 7  ;;  %v18619_v24 = vld [vmem:[#allocation60_spill] sm:$0xff]  ;;  %v18626_v19 = vld [vmem:[#allocation31_spill] sm:$0xff] }
 0x40c   :  { %v4475_v37 = vsel %vm4279_vm6, %v4472_v22, %v18611_v2  ;;  %v4864_v25 = vsel %vm4670_vm7, %v18612_v42, %v4863_v57  ;;  %v4271_v47 = vadd.f32 %v4082_v54, %v3640_v33  ;;  %v5442_v20 = vadd.f32 %v5172_v53, %v1684_v10  ;;  %v18624_v54 = vld [vmem:[#allocation62_spill] sm:$0xff]  ;;  %v18628_v33 = vld [vmem:[#allocation19_spill] sm:$0xff] }
 0x40d   :  { %v4866_v6 = vsel %vm4670_vm7, %v4863_v57, %v18613_v49  ;;  %v5957_v26 = vsub.f32 %v5849_v50, %v18614_v41  ;;  %v5707_v35 = vrot.slane %v14345_v0, 2  ;;  %v5088_v40 = vmul.f32 1.1979456e-08, %v18582_v34  ;;  %v18623_v34 = vld [vmem:[#allocation52_spill] sm:$0xff] }
 0x40e   :  { %v5956_v3 = vsub.f32 %v5848_v1, %v18616_v13  ;;  %v4663_v30 = vadd.f32 %v4475_v37, %v4272_v63  ;;  %v14415_v23 = vmul.f32 9.961262e-15, %v18617_v17  ;;  %v18620_v59 = vsub.f32 %v18618_v4, %v18619_v24  ;;  %v18633_v24 = vld [vmem:[#allocation54_spill] sm:$0xff] }
 0x40f   :  { %v4662_v46 = vadd.f32 %v4473_v28, %v4271_v47  ;;  %v18621_v48 = vrot.slane %v14177_v5, 2  ;;  %v18622_v0 = vrot.slane %v14292_v38, 2  ;;  %v18625_v27 = vsub.f32 %v18623_v34, %v18624_v54  ;;  %v9551_v22 = vpop.eup %9550 }
 0x410   :  { %v6047_v12 = vadd.f32 %v18620_v59, %v5957_v26  ;;  %v5054_v21 = vadd.f32 %v4866_v6, %v4663_v30  ;;  %v14430_v29 = vmul.f32 1.5170982e-22, %v18617_v17  ;;  %v14433_v5 = vmul.f32 1.1979456e-08, %v18617_v17 }
 0x411   :  { %v5708_v10 = vsel %vm2055_vm2, %v18621_v48, %v5707_v35  ;;  %v5710_v11 = vsel %vm2055_vm2, %v5707_v35, %v18622_v0  ;;  %v6046_v44 = vadd.f32 %v18625_v27, %v5956_v3  ;;  %v5053_v43 = vadd.f32 %v4864_v25, %v4662_v46  ;;  %v18631_v3 = vld [vmem:[#allocation67_spill] sm:$0xff]  ;;  %v18635_v46 = vld [vmem:[#allocation25_spill] sm:$0xff] }
 0x412   :  { %v5892_v62 = vadd.f32 %v5708_v10, %v5442_v20  ;;  %v6065_v57 = vadd.f32 0.0009, %v6047_v12  ;;  %v14436_v16 = vmul.f32 0.00026386508, %v18617_v17  ;;  %v14439_v15 = vmul.f32 %v9551_v22, %v18626_v19 }
 0x413   :  { %v6064_v53 = vadd.f32 0.0009, %v6046_v44  ;;  %v5174_v50 = vadd.f32 %v5088_v40, %v5054_v21  ;;  %v5173_v28 = vadd.f32 %v5053_v43, %v14349_v31  ;;  %v17819_v2 = vrot.slane %v14415_v23, 1 }
 0x414   :  { %18627 = vst [vmem:[#allocation65_spill] sm:$0xff] %v14439_v15  ;;  %v6000_v8 = vsub.f32 %v5892_v62, %v18628_v33  ;;  %9552 = vrcp.f32 %v6065_v57  ;;  %v17818_v37 = vrot.slane %v14433_v5, 2  ;;  %v18629_v1 = vrot.slane %v14289_v51, 1  ;;  %v18646_v51 = vld [vmem:[#allocation7_spill] sm:$0xff] }
 0x415   :  { %9554 = vrcp.f32 %v6064_v53  ;;  %v14448_v25 = vmul.f32 0.10645077, %v18617_v17  ;;  %v5443_v49 = vadd.f32 %v5296_v60, %v5173_v28  ;;  %v17809_v6 = vrot.slane %v14436_v16, 3 }
 0x416   :  { %v5444_v63 = vadd.f32 %v18629_v1, %v5174_v50  ;;  %v6018_v42 = vmul.f32 2.0, %v6000_v8  ;;  %v14452_v41 = vmul.f32 0.7865707, %v18617_v17  ;;  %v17807_v31 = vrot.slane %v14436_v16, 7  ;;  %v18632_v17 = vld [vmem:[#allocation22_spill] sm:$0xff]  ;;  %v18636_v50 = vld [vmem:[#allocation112_spill] sm:$0xff] }
 0x417   :  { %v18630_v26 = vmov %v18622_v0  ;;  %v17808_v35 = vrot.slane %v14448_v25, 4  ;;  %v5893_v40 = vadd.f32 %v5710_v11, %v5443_v49  ;;  %v17806_v60 = vrot.slane %v14448_v25, 6  ;;  %v18637_v49 = vld [vmem:[#allocation66_spill] sm:$0xff] }
 0x418   :  { %v5894_v47 = vadd.f32 %v18630_v26, %v5444_v63  ;;  %v6036_v20 = vadd.f32 0.0009, %v6018_v42  ;;  %v17810_v13 = vrot.slane %v14452_v41, 5  ;;  %v14462_v30 = vmul.f32 9.961262e-15, %v18631_v3 }
 0x419   :  { %v14469_v38 = vmul.f32 1.1979456e-08, %v18631_v3  ;;  %v14472_v12 = vmul.f32 0.00026386508, %v18631_v3  ;;  %v6001_v48 = vsub.f32 %v5893_v40, %v18635_v46  ;;  %v14476_v10 = vmul.f32 1.5170982e-22, %v18631_v3 }
 0x41a   :  { %v6002_v4 = vsub.f32 %v5894_v47, %v18632_v17  ;;  %v14466_v59 = vmul.f32 %v18633_v24, %v6036_v20  ;;  %v14479_v0 = vmul.f32 0.10645077, %v18631_v3  ;;  %v14482_v11 = vmul.f32 0.7865707, %v18631_v3  ;;  %v18639_v47 = vld [vmem:[#allocation107_spill] sm:$0xff]  ;;  %v18641_v17 = vld [vmem:[#allocation32_spill] sm:$0xff] }
 0x41b   :  { %v17817_v54 = vrot.slane %v14462_v30, 1  ;;  %v17816_v27 = vrot.slane %v14469_v38, 2  ;;  %v17815_v44 = vrot.slane %v14472_v12, 3  ;;  %v6019_v21 = vmul.f32 2.0, %v6001_v48 }
 0x41c   :  { %18634 = vst [vmem:[#allocation35_spill] sm:$0xff] %v14466_v59  ;;  %v6020_v34 = vmul.f32 2.0, %v6002_v4  ;;  %v17814_v62 = vrot.slane %v14479_v0, 4  ;;  %v17813_v22 = vrot.slane %v14482_v11, 5  ;;  %v17812_v57 = vrot.slane %v14472_v12, 7 }
 0x41d   :  { %v17811_v53 = vrot.slane %v14479_v0, 6  ;;  %v1313_v33 = vmul.f32 1.5170982e-22, %v18636_v50  ;;  %9556 = vrcp.f32 %v14116_v58  ;;  %v6037_v28 = vadd.f32 0.0009, %v6019_v21  ;;  %v18643_v58 = vld [vmem:[#allocation108_spill] sm:$0xff] }
 0x41e   :  { %v6038_v43 = vadd.f32 0.0009, %v6020_v34  ;;  %v9553_v8 = vpop.eup %9552  ;;  %v1403_v1 = vmul.f32 9.961262e-15, %v18636_v50  ;;  %v1914_v63 = vmul.f32 1.1979456e-08, %v18636_v50 }
 0x41f   :  { %v9555_v42 = vpop.eup %9554  ;;  %v14497_v26 = vmul.f32 %v9553_v8, %v18637_v49  ;;  %v2438_v40 = vmul.f32 0.00026386508, %v18636_v50  ;;  %v3069_v3 = vmul.f32 0.10645077, %v18636_v50  ;;  %v14508_v24 = vmul.f32 %v18643_v58, %v6037_v28 }
 0x420   :  { %v14500_v20 = vmul.f32 %v18639_v47, %v6038_v43  ;;  %v14505_v4 = vmul.f32 %v9555_v42, %v18641_v17  ;;  %v1610_v46 = vrot.slane %v1403_v1, 1  ;;  %v2121_v48 = vrot.slane %v1914_v63, 2  ;;  %v18645_v17 = vld [vmem:[#allocation74_spill] sm:$0xff] }
 0x421   :  { %18638 = vst [vmem:[#allocation68_spill] sm:$0xff] %v14497_v26  ;;  %18644 = vst [vmem:[#allocation71_spill] sm:$0xff] %v14508_v24  ;;  %v2718_v34 = vrot.slane %v2438_v40, 3  ;;  %v3349_v21 = vrot.slane %v3069_v3, 4  ;;  %v3700_v8 = vmul.f32 0.7865707, %v18636_v50 }
 0x422   :  { %18640 = vst [vmem:[#allocation110_spill] sm:$0xff] %v14500_v20  ;;  %18642 = vst [vmem:[#allocation111_spill] sm:$0xff] %v14505_v4  ;;  %v4371_v49 = vrot.slane %v3069_v3, 6  ;;  %v1612_v43 = vsel %vm1544_vm1, %v1610_v46, %v17819_v2  ;;  %v2123_v47 = vsel %vm2055_vm2, %v2121_v48, %v17818_v37  ;;  %v4762_v42 = vrot.slane %v2438_v40, 7 }
 0x423   :  { %v1358_v19 = vmul.f32 1.5170982e-22, %v18645_v17  ;;  %v1824_v28 = vadd.f32 %v1612_v43, %v1313_v33  ;;  %v2720_v1 = vsel %vm2626_vm3, %v2718_v34, %v17809_v6  ;;  %v3351_v50 = vsel %vm3257_vm4, %v3349_v21, %v17808_v35 }
 0x424   :  { %v3980_v63 = vrot.slane %v3700_v8, 5  ;;  %v4373_v3 = vsel %vm4279_vm6, %v4371_v49, %v17806_v60  ;;  %v4764_v40 = vsel %vm4670_vm7, %v4762_v42, %v17807_v31  ;;  %v1448_v58 = vmul.f32 9.961262e-15, %v18645_v17 }
 0x425   :  { %v1959_v33 = vmul.f32 1.1979456e-08, %v18645_v17  ;;  %v2335_v46 = vadd.f32 %v2123_v47, %v1824_v28  ;;  %v2498_v34 = vmul.f32 0.00026386508, %v18645_v17  ;;  %v3129_v21 = vmul.f32 0.10645077, %v18645_v17 }
 0x426   :  { %v3982_v48 = vsel %vm3888_vm5, %v3980_v63, %v17810_v13  ;;  %v1685_v8 = vrot.slane %v1448_v58, 1  ;;  %v3760_v49 = vmul.f32 0.7865707, %v18645_v17  ;;  %v14539_v60 = vmul.f32 0.00026386508, %v18646_v51 }
 0x427   :  { %v2196_v43 = vrot.slane %v1959_v33, 2  ;;  %v2966_v42 = vadd.f32 %v2720_v1, %v2335_v46  ;;  %v2823_v31 = vrot.slane %v2498_v34, 3  ;;  %v3454_v35 = vrot.slane %v3129_v21, 4  ;;  %v14541_v47 = vpop.eup %9556 }
 0x428   :  { %v4476_v6 = vrot.slane %v3129_v21, 6  ;;  %18647 = vst [vmem:[#allocation103_spill] sm:$0xff] %v14541_v47  ;;  %v1687_v28 = vsel %vm1544_vm1, %v1685_v8, %v17817_v54  ;;  %v4085_v58 = vrot.slane %v3760_v49, 5  ;;  %v4867_v33 = vrot.slane %v2498_v34, 7 }
 0x429   :  { %v2198_v63 = vsel %vm2055_vm2, %v2196_v43, %v17816_v27  ;;  %v3597_v17 = vadd.f32 %v3351_v50, %v2966_v42  ;;  %v1869_v13 = vadd.f32 %v1687_v28, %v1358_v19  ;;  %v2825_v1 = vsel %vm2626_vm3, %v2823_v31, %v17815_v44 }
 0x42a   :  { %v3456_v46 = vsel %vm3257_vm4, %v3454_v35, %v17814_v62  ;;  %v4087_v21 = vsel %vm3888_vm5, %v4085_v58, %v17813_v22  ;;  %v4478_v8 = vsel %vm4279_vm6, %v4476_v6, %v17811_v53  ;;  %v4869_v19 = vsel %vm4670_vm7, %v4867_v33, %v17812_v57 }
 0x42b   :  { %v2723_v50 = vrot.slane %v14539_v60, 3  ;;  %v4228_v34 = vadd.f32 %v3982_v48, %v3597_v17  ;;  %v2380_v31 = vadd.f32 %v2198_v63, %v1869_v13  ;;  %v3072_v43 = vmul.f32 0.10645077, %v18646_v51 }
 0x42c   :  { %v3703_v35 = vmul.f32 0.7865707, %v18646_v51  ;;  %v4767_v49 = vrot.slane %v14539_v60, 7  ;;  %v14569_v42 = vmul.f32 1.1979456e-08, %v18646_v51  ;;  %v18650_v60 = vld [vmem:[#allocation6_spill] sm:$0xff] }
 0x42d   :  { %v14572_v28 = vmul.f32 9.961262e-15, %v18646_v51  ;;  %v4619_v33 = vadd.f32 %v4373_v3, %v4228_v34  ;;  %v3011_v57 = vadd.f32 %v2825_v1, %v2380_v31  ;;  %v3354_v22 = vrot.slane %v3072_v43, 4 }
 0x42e   :  { %v3985_v48 = vrot.slane %v3703_v35, 5  ;;  %v4376_v13 = vrot.slane %v3072_v43, 6  ;;  %v14578_v17 = vmul.f32 1.5170982e-22, %v18646_v51  ;;  %v14581_v62 = vmul.f32 0.00026386508, %v18650_v60 }
 0x42f   :  { %v5010_v44 = vadd.f32 %v4764_v40, %v4619_v33  ;;  %v3642_v27 = vadd.f32 %v3456_v46, %v3011_v57  ;;  %v14584_v54 = vmul.f32 0.10645077, %v18650_v60  ;;  %v14587_v53 = vmul.f32 0.7865707, %v18650_v60  ;;  %v18651_v33 = vld [vmem:[#allocation79_spill] sm:$0xff] }
 0x430   :  { %v14593_v51 = vmul.f32 1.1979456e-08, %v18650_v60  ;;  %v14599_v46 = vmul.f32 9.961262e-15, %v18650_v60  ;;  %v14602_v35 = vmul.f32 1.5170982e-22, %v18650_v60 }
 0x431   :  { %v4273_v31 = vadd.f32 %v4087_v21, %v3642_v27  ;;  %v1315_v1 = vmul.f32 1.5170982e-22, %v18651_v33  ;;  %v5130_v34 = vadd.f32 %v5010_v44, %v14433_v5  ;;  %v1405_v63 = vmul.f32 9.961262e-15, %v18651_v33 }
 0x432   :  { %v14608_v27 = vmul.f32 1.1979456e-08, %v18651_v33  ;;  %v2440_v21 = vmul.f32 0.00026386508, %v18651_v33  ;;  %v3071_v43 = vmul.f32 0.10645077, %v18651_v33 }
 0x433   :  { %v4664_v3 = vadd.f32 %v4478_v8, %v4273_v31  ;;  %v3702_v60 = vmul.f32 0.7865707, %v18651_v33  ;;  %v1613_v2 = vrot.slane %v1405_v63, 1  ;;  %v18652_v20 = vrot.slane %v14415_v23, 1 }
 0x434   :  { %v2124_v44 = vrot.slane %v14608_v27, 2  ;;  %v2721_v8 = vrot.slane %v2440_v21, 3  ;;  %v3352_v31 = vrot.slane %v3071_v43, 4  ;;  %v4374_v15 = vrot.slane %v3071_v43, 6 }
 0x435   :  { %v14615_v37 = vadd.f32 %v4869_v19, %v4664_v3  ;;  %v3983_v26 = vrot.slane %v3702_v60, 5  ;;  %v4765_v4 = vrot.slane %v2440_v21, 7  ;;  %v1614_v40 = vsel %vm1544_vm1, %v18652_v20, %v1613_v2 }
 0x436   :  { %v1826_v59 = vadd.f32 %v1613_v2, %v1315_v1  ;;  %v18653_v57 = vrot.slane %v14433_v5, 2  ;;  %v18654_v19 = vrot.slane %v14436_v16, 3  ;;  %v1825_v3 = vadd.f32 %v1614_v40, %v14430_v29 }
 0x437   :  { %v2724_v33 = vsel %vm2626_vm3, %v2721_v8, %v2723_v50  ;;  %v18655_v43 = vrot.slane %v14448_v25, 4  ;;  %v3355_v23 = vsel %vm3257_vm4, %v3352_v31, %v3354_v22  ;;  %v18656_v60 = vrot.slane %v14452_v41, 5 }
 0x438   :  { %v2125_v24 = vsel %vm2055_vm2, %v18653_v57, %v2124_v44  ;;  %v2722_v63 = vsel %vm2626_vm3, %v18654_v19, %v2721_v8  ;;  %v2337_v20 = vadd.f32 %v2124_v44, %v1826_v59  ;;  %v3986_v57 = vsel %vm3888_vm5, %v3983_v26, %v3985_v48 }
 0x439   :  { %v3353_v21 = vsel %vm3257_vm4, %v18655_v43, %v3352_v31  ;;  %v3984_v5 = vsel %vm3888_vm5, %v18656_v60, %v3983_v26  ;;  %v18657_v47 = vrot.slane %v14448_v25, 6  ;;  %v2336_v58 = vadd.f32 %v2125_v24, %v1825_v3  ;;  %v18660_v25 = vld [vmem:[#allocation93_spill] sm:$0xff] }
 0x43a   :  { %v4377_v50 = vsel %vm4279_vm6, %v4374_v15, %v4376_v13  ;;  %v18658_v8 = vrot.slane %v14436_v16, 7  ;;  %v4768_v22 = vsel %vm4670_vm7, %v4765_v4, %v4767_v49  ;;  %v2968_v59 = vadd.f32 %v2724_v33, %v2337_v20  ;;  %v18663_v20 = vld [vmem:[#allocation11_spill] sm:$0xff] }
 0x43b   :  { %v4375_v19 = vsel %vm4279_vm6, %v18657_v47, %v4374_v15  ;;  %v18659_v41 = vrot.slane %v14572_v28, 1  ;;  %v5400_v31 = vadd.f32 %v5130_v34, %v1614_v40  ;;  %v5637_v26 = vrot.slane %v1315_v1, 2 }
 0x43c   :  { %v4766_v43 = vsel %vm4670_vm7, %v18658_v8, %v4765_v4  ;;  %v2967_v48 = vadd.f32 %v2722_v63, %v2336_v58  ;;  %v14649_v60 = vmul.f32 1.5170982e-22, %v18660_v25  ;;  %v1450_v24 = vmul.f32 9.961262e-15, %v18660_v25 }
 0x43d   :  { %v5268_v44 = vsel %vm1544_vm1, %v1613_v2, %v18659_v41  ;;  %v14653_v15 = vmul.f32 1.1979456e-08, %v18660_v25  ;;  %v3599_v16 = vadd.f32 %v3355_v23, %v2968_v59  ;;  %v18661_v47 = vrot.slane %v14430_v29, 2 }
 0x43e   :  { %v18662_v49 = vrot.slane %v14578_v17, 2  ;;  %v2500_v13 = vmul.f32 0.00026386508, %v18660_v25  ;;  %v3598_v58 = vadd.f32 %v3353_v21, %v2967_v48  ;;  %v1688_v34 = vrot.slane %v1450_v24, 1 }
 0x43f   :  { %v5638_v4 = vsel %vm2055_vm2, %v18661_v47, %v5637_v26  ;;  %v2199_v40 = vrot.slane %v14653_v15, 2  ;;  %v4230_v63 = vadd.f32 %v3986_v57, %v3599_v16  ;;  %v3131_v33 = vmul.f32 0.10645077, %v18660_v25  ;;  %v18667_v16 = vld [vmem:[#allocation69_spill] sm:$0xff] }
 0x440   :  { %v5640_v2 = vsel %vm2055_vm2, %v5637_v26, %v18662_v49  ;;  %v5850_v1 = vadd.f32 %v5638_v4, %v5400_v31  ;;  %v2826_v3 = vrot.slane %v2500_v13, 3  ;;  %v3762_v23 = vmul.f32 0.7865707, %v18660_v25  ;;  %v18668_v47 = vld [vmem:[#allocation17_spill] sm:$0xff] }
 0x441   :  { %v4229_v29 = vadd.f32 %v3984_v5, %v3598_v58  ;;  %v18664_v59 = vrot.slane %v14462_v30, 1  ;;  %v1871_v26 = vadd.f32 %v1688_v34, %v14649_v60  ;;  %v4621_v21 = vadd.f32 %v4377_v50, %v4230_v63 }
 0x442   :  { %v5958_v8 = vsub.f32 %v5850_v1, %v18663_v20  ;;  %v18665_v48 = vrot.slane %v14469_v38, 2  ;;  %v18666_v24 = vrot.slane %v14472_v12, 3  ;;  %v18669_v4 = vsub.f32 %v18667_v16, %v18668_v47 }
 0x443   :  { %v1689_v41 = vsel %vm1544_vm1, %v18664_v59, %v1688_v34  ;;  %v4620_v5 = vadd.f32 %v4375_v19, %v4229_v29  ;;  %v2382_v49 = vadd.f32 %v2199_v40, %v1871_v26  ;;  %v18670_v58 = vrot.slane %v14581_v62, 3 }
 0x444   :  { %v1870_v31 = vadd.f32 %v1689_v41, %v14476_v10  ;;  %v2200_v57 = vsel %vm2055_vm2, %v18665_v48, %v2199_v40  ;;  %v2827_v25 = vsel %vm2626_vm3, %v18666_v24, %v2826_v3  ;;  %v6048_v30 = vadd.f32 %v18669_v4, %v5958_v8 }
 0x445   :  { %v2829_v50 = vsel %vm2626_vm3, %v2826_v3, %v18670_v58  ;;  %v5012_v1 = vadd.f32 %v4768_v22, %v4621_v21  ;;  %v3457_v20 = vrot.slane %v3131_v33, 4  ;;  %v4088_v59 = vrot.slane %v3762_v23, 5 }
 0x446   :  { %v2381_v63 = vadd.f32 %v2200_v57, %v1870_v31  ;;  %v5011_v45 = vadd.f32 %v4766_v43, %v4620_v5  ;;  %v6066_v48 = vadd.f32 0.0009, %v6048_v30  ;;  %v3013_v6 = vadd.f32 %v2829_v50, %v2382_v49 }
 0x447   :  { %v4479_v7 = vrot.slane %v3131_v33, 6  ;;  %v5132_v24 = vadd.f32 %v14569_v42, %v5012_v1  ;;  %v18671_v29 = vrot.slane %v14479_v0, 4  ;;  %v18672_v40 = vrot.slane %v14584_v54, 4 }
 0x448   :  { %v3012_v19 = vadd.f32 %v2827_v25, %v2381_v63  ;;  %v5131_v22 = vadd.f32 %v5011_v45, %v14608_v27  ;;  %9558 = vrcp.f32 %v6066_v48  ;;  %v18673_v43 = vrot.slane %v14482_v11, 5 }
 0x449   :  { %v3458_v8 = vsel %vm3257_vm4, %v18671_v29, %v3457_v20  ;;  %v3460_v26 = vsel %vm3257_vm4, %v3457_v20, %v18672_v40  ;;  %v18674_v33 = vrot.slane %v14572_v28, 1  ;;  %v18675_v31 = vrot.slane %v14587_v53, 5 }
 0x44a   :  { %v3644_v3 = vadd.f32 %v3460_v26, %v3013_v6  ;;  %v4089_v23 = vsel %vm3888_vm5, %v18673_v43, %v4088_v59  ;;  %v3643_v21 = vadd.f32 %v3458_v8, %v3012_v19  ;;  %v18676_v25 = vrot.slane %v14479_v0, 6  ;;  %v18691_v26 = vld [vmem:[#allocation86_spill] sm:$0xff] }
 0x44b   :  { %v5402_v42 = vadd.f32 %v18674_v33, %v5132_v24  ;;  %v4091_v57 = vsel %vm3888_vm5, %v4088_v59, %v18675_v31  ;;  %v5401_v16 = vadd.f32 %v5268_v44, %v5131_v22  ;;  %v18677_v6 = vrot.slane %v14584_v54, 6  ;;  %v18686_v24 = vld [vmem:[#allocation75_spill] sm:$0xff]  ;;  %v18693_v22 = vld [vmem:[#allocation45_spill] sm:$0xff] }
 0x44c   :  { %v4480_v5 = vsel %vm4279_vm6, %v18676_v25, %v4479_v7  ;;  %v4275_v45 = vadd.f32 %v4091_v57, %v3644_v3  ;;  %v4870_v27 = vrot.slane %v2500_v13, 7  ;;  %v18678_v47 = vrot.slane %v14578_v17, 2  ;;  %v18682_v17 = vld [vmem:[#allocation12_spill] sm:$0xff] }
 0x44d   :  { %v4482_v11 = vsel %vm4279_vm6, %v4479_v7, %v18677_v6  ;;  %v4274_v4 = vadd.f32 %v4089_v23, %v3643_v21  ;;  %v5175_v53 = vadd.f32 %v14615_v37, %v14469_v38  ;;  %v18679_v30 = vrot.slane %v14599_v46, 1  ;;  %v18683_v38 = vld [vmem:[#allocation72_spill] sm:$0xff] }
 0x44e   :  { %v5852_v28 = vadd.f32 %v18678_v47, %v5402_v42  ;;  %v5851_v49 = vadd.f32 %v5640_v2, %v5401_v16  ;;  %v4666_v58 = vadd.f32 %v4482_v11, %v4275_v45  ;;  %v18680_v44 = vrot.slane %v14472_v12, 7  ;;  %v18685_v12 = vld [vmem:[#allocation13_spill] sm:$0xff]  ;;  %v18697_v45 = vld [vmem:[#allocation30_spill] sm:$0xff] }
 0x44f   :  { %v5298_v0 = vsel %vm1544_vm1, %v1688_v34, %v18679_v30  ;;  %v18681_v7 = vrot.slane %v14581_v62, 7  ;;  %v4665_v1 = vadd.f32 %v4480_v5, %v4274_v4  ;;  %v5445_v63 = vadd.f32 %v5175_v53, %v1689_v41  ;;  %v18687_v62 = vld [vmem:[#allocation78_spill] sm:$0xff] }
 0x450   :  { %v4871_v54 = vsel %vm4670_vm7, %v18680_v44, %v4870_v27  ;;  %v5960_v50 = vsub.f32 %v5852_v28, %v18682_v17  ;;  %v5712_v37 = vrot.slane %v14649_v60, 2  ;;  %v5999_v20 = vsub.f32 %v14083_v55, %v18683_v38 }
 0x451   :  { %v4873_v13 = vsel %vm4670_vm7, %v4870_v27, %v18681_v7  ;;  %v18684_v2 = vsub.f32 %v14068_v9, %v18565_v56  ;;  %v5959_v59 = vsub.f32 %v5851_v49, %v18685_v12  ;;  %v18688_v19 = vsub.f32 %v18686_v24, %v18687_v62  ;;  %v18692_v56 = vld [vmem:[#allocation36_spill] sm:$0xff] }
 0x452   :  { %v5057_v48 = vadd.f32 %v4873_v13, %v4666_v58  ;;  %v5056_v8 = vadd.f32 %v4871_v54, %v4665_v1  ;;  %v18689_v40 = vrot.slane %v14476_v10, 2  ;;  %v18690_v60 = vrot.slane %v14602_v35, 2  ;;  %v18695_v10 = vld [vmem:[#allocation97_spill] sm:$0xff]  ;;  %v9559_v25 = vpop.eup %9558  ;;  %v18701_v13 = vld [vmem:[#allocation64_spill] sm:$0xff] }
 0x453   :  { %v6015_v34 = vmul.f32 2.0, %v18684_v2  ;;  %v6050_v29 = vadd.f32 %v18688_v19, %v5960_v50  ;;  %v5998_v9 = vsub.f32 %v14091_v52, %v18691_v26  ;;  %v18694_v3 = vsub.f32 %v18692_v56, %v18693_v22  ;;  %v18700_v58 = vld [vmem:[#allocation33_spill] sm:$0xff] }
 0x454   :  { %v5713_v41 = vsel %vm2055_vm2, %v18689_v40, %v5712_v37  ;;  %v5715_v55 = vsel %vm2055_vm2, %v5712_v37, %v18690_v60  ;;  %v5177_v23 = vadd.f32 %v14593_v51, %v5057_v48  ;;  %v5176_v21 = vadd.f32 %v5056_v8, %v14653_v15  ;;  %v18702_v37 = vld [vmem:[#allocation89_spill] sm:$0xff] }
 0x455   :  { %v6049_v43 = vadd.f32 %v18694_v3, %v5959_v59  ;;  %v5895_v33 = vadd.f32 %v5713_v41, %v5445_v63  ;;  %v6068_v42 = vadd.f32 0.0009, %v6050_v29  ;;  %v14743_v31 = vmul.f32 9.961262e-15, %v18695_v10 }
 0x456   :  { %v14746_v57 = vmul.f32 1.1979456e-08, %v18695_v10  ;;  %v18696_v52 = vmov %v18679_v30  ;;  %v14752_v11 = vmul.f32 0.00026386508, %v18695_v10  ;;  %v14755_v51 = vmul.f32 %v9559_v25, %v14074_v61 }
 0x457   :  { %v6067_v5 = vadd.f32 0.0009, %v6049_v43  ;;  %v5447_v16 = vadd.f32 %v18696_v52, %v5177_v23  ;;  %v6003_v6 = vsub.f32 %v5895_v33, %v18697_v45  ;;  %9560 = vrcp.f32 %v6068_v42  ;;  %v18708_v45 = vld [vmem:[#allocation18_spill] sm:$0xff] }
 0x458   :  { %18698 = vst [vmem:[#allocation104_spill] sm:$0xff] %v14755_v51  ;;  %v5446_v15 = vadd.f32 %v5298_v0, %v5176_v21  ;;  %v14758_v27 = vmul.f32 0.10645077, %v18695_v10  ;;  %v14760_v47 = vadd.f32 0.0009, %v6015_v34  ;;  %v18699_v28 = vmov %v18690_v60 }
 0x459   :  { %9562 = vrcp.f32 %v6067_v5  ;;  %v5897_v46 = vadd.f32 %v18699_v28, %v5447_v16  ;;  %v6021_v4 = vmul.f32 2.0, %v6003_v6  ;;  %v14764_v53 = vmul.f32 2.0, %v5998_v9 }
 0x45a   :  { %v14766_v30 = vmul.f32 2.0, %v5999_v20  ;;  %v5896_v49 = vadd.f32 %v5715_v55, %v5446_v15  ;;  %v1616_v61 = vrot.slane %v14743_v31, 1  ;;  %v17839_v54 = vrot.slane %v14746_v57, 2  ;;  %v18704_v55 = vld [vmem:[#allocation92_spill] sm:$0xff] }
 0x45b   :  { %v6005_v44 = vsub.f32 %v5897_v46, %v18700_v58  ;;  %v6039_v0 = vadd.f32 0.0009, %v6021_v4  ;;  %v14772_v7 = vmul.f32 0.7865707, %v18695_v10  ;;  %v17838_v35 = vrot.slane %v14752_v11, 3 }
 0x45c   :  { %v6004_v17 = vsub.f32 %v5896_v49, %v18701_v13  ;;  %v17837_v50 = vrot.slane %v14758_v27, 4  ;;  %v14778_v1 = vmul.f32 9.961262e-15, %v14045_v39  ;;  %v14784_v20 = vmul.f32 1.1979456e-08, %v14045_v39 }
 0x45d   :  { %v6023_v63 = vmul.f32 2.0, %v6005_v44  ;;  %v14781_v38 = vmul.f32 %v18702_v37, %v6039_v0  ;;  %v14787_v2 = vmul.f32 0.00026386508, %v14045_v39  ;;  %v17835_v12 = vrot.slane %v14758_v27, 6 }
 0x45e   :  { %v6022_v34 = vmul.f32 2.0, %v6004_v17  ;;  %v17834_v59 = vrot.slane %v14752_v11, 7  ;;  %v14792_v48 = vmul.f32 0.10645077, %v14045_v39  ;;  %v17836_v62 = vrot.slane %v14772_v7, 5 }
 0x45f   :  { %18703 = vst [vmem:[#allocation8_spill] sm:$0xff] %v14781_v38  ;;  %v6041_v24 = vadd.f32 0.0009, %v6023_v63  ;;  %v17833_v19 = vrot.slane %v14778_v1, 1  ;;  %v14797_v29 = vmul.f32 0.7865707, %v14045_v39 }
 0x460   :  { %v6040_v8 = vadd.f32 0.0009, %v6022_v34  ;;  %v17832_v40 = vrot.slane %v14784_v20, 2  ;;  %v17831_v41 = vrot.slane %v14787_v2, 3  ;;  %v17827_v60 = vrot.slane %v14787_v2, 7 }
 0x461   :  { %v14803_v26 = vmul.f32 %v18704_v55, %v6041_v24  ;;  %v17830_v9 = vrot.slane %v14792_v48, 4  ;;  %v1316_v56 = vmul.f32 1.5170982e-22, %v14096_v32  ;;  %v1406_v22 = vmul.f32 9.961262e-15, %v14096_v32  ;;  %v9561_v3 = vpop.eup %9560 }
 0x462   :  { %v14809_v43 = vmul.f32 %v14125_v18, %v6040_v8  ;;  %v1917_v23 = vmul.f32 1.1979456e-08, %v14096_v32  ;;  %v2442_v33 = vmul.f32 0.00026386508, %v14096_v32  ;;  %v3073_v42 = vmul.f32 0.10645077, %v14096_v32 }
 0x463   :  { %18705 = vst [vmem:[#allocation63_spill] sm:$0xff] %v14803_v26  ;;  %v9563_v21 = vpop.eup %9562  ;;  %v14815_v25 = vmul.f32 %v9561_v3, %v14111_v14  ;;  %v1615_v5 = vrot.slane %v1406_v22, 1  ;;  %v3704_v52 = vmul.f32 0.7865707, %v14096_v32  ;;  %v1361_v16 = vmul.f32 1.5170982e-22, %v14142_v36 }
 0x464   :  { %18706 = vst [vmem:[#allocation61_spill] sm:$0xff] %v14809_v43  ;;  %v14820_v6 = vmul.f32 %v9563_v21, %v18708_v45  ;;  %v2126_v18 = vrot.slane %v1917_v23, 2  ;;  %v2725_v15 = vrot.slane %v2442_v33, 3  ;;  %v3356_v28 = vrot.slane %v3073_v42, 4 }
 0x465   :  { %18707 = vst [vmem:[#allocation106_spill] sm:$0xff] %v14815_v25  ;;  %v1617_v46 = vsel %vm1544_vm1, %v1615_v5, %v1616_v61  ;;  %v3987_v4 = vrot.slane %v3704_v52, 5  ;;  %v4378_v49 = vrot.slane %v3073_v42, 6  ;;  %v4769_v58 = vrot.slane %v2442_v33, 7 }
 0x466   :  { %18709 = vst [vmem:[#allocation57_spill] sm:$0xff] %v14820_v6  ;;  %v1827_v14 = vadd.f32 %v1617_v46, %v1316_v56  ;;  %v2128_v32 = vsel %vm2055_vm2, %v2126_v18, %v17839_v54  ;;  %v2727_v44 = vsel %vm2626_vm3, %v2725_v15, %v17838_v35  ;;  %v3358_v0 = vsel %vm3257_vm4, %v3356_v28, %v17837_v50 }
 0x467   :  { %v3989_v13 = vsel %vm3888_vm5, %v3987_v4, %v17836_v62  ;;  %v4380_v17 = vsel %vm4279_vm6, %v4378_v49, %v17835_v12  ;;  %v14843_v63 = vsel %vm4670_vm7, %v4769_v58, %v17834_v59  ;;  %v1451_v37 = vmul.f32 9.961262e-15, %v14142_v36 }
 0x468   :  { %v2338_v34 = vadd.f32 %v2128_v32, %v1827_v14  ;;  %v1962_v24 = vmul.f32 1.1979456e-08, %v14142_v36  ;;  %v2502_v8 = vmul.f32 0.00026386508, %v14142_v36  ;;  %v3133_v55 = vmul.f32 0.10645077, %v14142_v36 }
 0x469   :  { %v17828_v56 = vrot.slane %v14797_v29, 5  ;;  %v17829_v22 = vrot.slane %v14792_v48, 6  ;;  %v1690_v3 = vrot.slane %v1451_v37, 1  ;;  %v3764_v23 = vmul.f32 0.7865707, %v14142_v36 }
 0x46a   :  { %v2969_v33 = vadd.f32 %v2727_v44, %v2338_v34  ;;  %v2201_v42 = vrot.slane %v1962_v24, 2  ;;  %v2830_v21 = vrot.slane %v2502_v8, 3  ;;  %v3461_v5 = vrot.slane %v3133_v55, 4  ;;  %v18711_v34 = vld [vmem:[#allocation16_spill] sm:$0xff] }
 0x46b   :  { %v1692_v52 = vsel %vm1544_vm1, %v1690_v3, %v17833_v19  ;;  %v4092_v45 = vrot.slane %v3764_v23, 5  ;;  %v4483_v18 = vrot.slane %v3133_v55, 6  ;;  %v4874_v15 = vrot.slane %v2502_v8, 7  ;;  %v18712_v55 = vld [vmem:[#allocation48_spill] sm:$0xff] }
 0x46c   :  { %v3600_v28 = vadd.f32 %v3358_v0, %v2969_v33  ;;  %v1872_v46 = vadd.f32 %v1692_v52, %v1361_v16  ;;  %v2203_v4 = vsel %vm2055_vm2, %v2201_v42, %v17832_v40  ;;  %v2832_v36 = vsel %vm2626_vm3, %v2830_v21, %v17831_v41  ;;  %v18710_v0 = vld [vmem:[#allocation14_spill] sm:$0xff]  ;;  %v18713_v33 = vld [vmem:[#allocation15_spill] sm:$0xff]  ;;  %v18719_v40 = vld [vmem:[#allocation76_spill] sm:$0xff] }
 0x46d   :  { %v3463_v49 = vsel %vm3257_vm4, %v3461_v5, %v17830_v9  ;;  %v4094_v58 = vsel %vm3888_vm5, %v4092_v45, %v17828_v56  ;;  %v4485_v16 = vsel %vm4279_vm6, %v4483_v18, %v17829_v22  ;;  %v14873_v14 = vsel %vm4670_vm7, %v4874_v15, %v17827_v60  ;;  %v18714_v18 = vld [vmem:[#allocation29_spill] sm:$0xff]  ;;  %v18715_v15 = vld [vmem:[#allocation38_spill] sm:$0xff] }
 0x46e   :  { %v4231_v32 = vadd.f32 %v3989_v13, %v3600_v28  ;;  %v2383_v44 = vadd.f32 %v2203_v4, %v1872_v46  ;;  %v14877_v37 = vmul.f32 %v18710_v0, %v18710_v0  ;;  %v14881_v24 = vmul.f32 %v18711_v34, %v18711_v34  ;;  %v18716_v46 = vld [vmem:[#allocation99_spill] sm:$0xff] }
 0x46f   :  { %v14884_v8 = vmul.f32 1.5170982e-22, %v18695_v10  ;;  %v2445_v3 = vmul.f32 0.00026386508, %v18712_v55  ;;  %v3076_v23 = vmul.f32 0.10645077, %v18712_v55  ;;  %v14890_v42 = vmul.f32 %v18713_v33, %v18713_v33 }
 0x470   :  { %v14893_v13 = vmul.f32 1.5170982e-22, %v14045_v39  ;;  %v4622_v21 = vadd.f32 %v4380_v17, %v4231_v32  ;;  %v3014_v5 = vadd.f32 %v2832_v36, %v2383_v44  ;;  %v3707_v52 = vmul.f32 0.7865707, %v18712_v55  ;;  %v18717_v32 = vld [vmem:[#allocation83_spill] sm:$0xff]  ;;  %v18718_v44 = vld [vmem:[#allocation40_spill] sm:$0xff] }
 0x471   :  { %v14897_v45 = vmul.f32 9.961262e-15, %v18712_v55  ;;  %v14900_v10 = vmul.f32 1.5170982e-22, %v18712_v55  ;;  %v14906_v4 = vadd.f32 %v18716_v46, %v14890_v42  ;;  %v5641_v39 = vrot.slane %v14884_v8, 2 }
 0x472   :  { %v3645_v36 = vadd.f32 %v3463_v49, %v3014_v5  ;;  %v2730_v34 = vrot.slane %v2445_v3, 3  ;;  %v3361_v33 = vrot.slane %v3076_v23, 4  ;;  %v4774_v60 = vrot.slane %v2445_v3, 7 }
 0x473   :  { %v14913_v56 = vmul.f32 1.1979456e-08, %v18712_v55  ;;  %v3992_v9 = vrot.slane %v3707_v52, 5  ;;  %v4383_v41 = vrot.slane %v3076_v23, 6  ;;  %v14916_v28 = vmul.f32 0.00026386508, %v18719_v40 }
 0x474   :  { %v4276_v22 = vadd.f32 %v4094_v58, %v3645_v36  ;;  %v14921_v49 = vmul.f32 0.10645077, %v18719_v40  ;;  %v14924_v5 = vmul.f32 0.7865707, %v18719_v40  ;;  %v18720_v55 = vld [vmem:[#allocation5_spill] sm:$0xff]  ;;  %v5013_v19 = vadd.f32 %v14843_v63, %v4622_v21 }
 0x475   :  { %v1318_v0 = vmul.f32 1.5170982e-22, %v18720_v55  ;;  %v1408_v58 = vmul.f32 9.961262e-15, %v18720_v55  ;;  %v14931_v23 = vmul.f32 1.1979456e-08, %v18720_v55 }
 0x476   :  { %v14926_v3 = vadd.f32 %v4485_v16, %v4276_v22  ;;  %v14934_v52 = vmul.f32 1.1979456e-08, %v18719_v40  ;;  %v2444_v36 = vmul.f32 0.00026386508, %v18720_v55  ;;  %v3075_v17 = vmul.f32 0.10645077, %v18720_v55 }
 0x477   :  { %v1618_v59 = vrot.slane %v1408_v58, 1  ;;  %v2129_v22 = vrot.slane %v14931_v23, 2  ;;  %v3706_v16 = vmul.f32 0.7865707, %v18720_v55  ;;  %v5642_v12 = vrot.slane %v1318_v0, 2 }
 0x478   :  { %v2728_v62 = vrot.slane %v2444_v36, 3  ;;  %v3359_v50 = vrot.slane %v3075_v17, 4  ;;  %v4381_v35 = vrot.slane %v3075_v17, 6  ;;  %v4772_v54 = vrot.slane %v2444_v36, 7 }
 0x479   :  { %v1619_v25 = vsel %vm1544_vm1, %v1616_v61, %v1618_v59  ;;  %v1829_v51 = vadd.f32 %v1618_v59, %v1318_v0  ;;  %v18721_v6 = vrot.slane %v14746_v57, 2  ;;  %v3990_v63 = vrot.slane %v3706_v16, 5 }
 0x47a   :  { %v1828_v21 = vadd.f32 %v1619_v25, %v14884_v8  ;;  %v18722_v58 = vrot.slane %v14752_v11, 3  ;;  %v2731_v26 = vsel %vm2626_vm3, %v2728_v62, %v2730_v34  ;;  %v18723_v17 = vrot.slane %v14758_v27, 4 }
 0x47b   :  { %v2130_v38 = vsel %vm2055_vm2, %v18721_v6, %v2129_v22  ;;  %v2340_v36 = vadd.f32 %v2129_v22, %v1829_v51  ;;  %v3362_v61 = vsel %vm3257_vm4, %v3359_v50, %v3361_v33  ;;  %v18724_v0 = vrot.slane %v14772_v7, 5 }
 0x47c   :  { %v2729_v55 = vsel %vm2626_vm3, %v18722_v58, %v2728_v62  ;;  %v3360_v31 = vsel %vm3257_vm4, %v18723_v17, %v3359_v50  ;;  %v3993_v16 = vsel %vm3888_vm5, %v3990_v63, %v3992_v9  ;;  %v2339_v8 = vadd.f32 %v2130_v38, %v1828_v21 }
 0x47d   :  { %v3991_v6 = vsel %vm3888_vm5, %v18724_v0, %v3990_v63  ;;  %v18725_v43 = vrot.slane %v14758_v27, 6  ;;  %v4384_v62 = vsel %vm4279_vm6, %v4381_v35, %v4383_v41  ;;  %v18726_v34 = vrot.slane %v14752_v11, 7 }
 0x47e   :  { %v2971_v51 = vadd.f32 %v2731_v26, %v2340_v36  ;;  %v4775_v50 = vsel %vm4670_vm7, %v4772_v54, %v4774_v60  ;;  %v5133_v7 = vadd.f32 %v5013_v19, %v14746_v57  ;;  %v18727_v33 = vrot.slane %v14897_v45, 1 }
 0x47f   :  { %v4382_v58 = vsel %vm4279_vm6, %v18725_v43, %v4381_v35  ;;  %v4773_v17 = vsel %vm4670_vm7, %v18726_v34, %v4772_v54  ;;  %v14973_v38 = vmul.f32 9.961262e-15, %v18719_v40  ;;  %v2970_v27 = vadd.f32 %v2729_v55, %v2339_v8 }
 0x480   :  { %v5270_v9 = vsel %vm1544_vm1, %v1618_v59, %v18727_v33  ;;  %v5643_v43 = vsel %vm2055_vm2, %v5641_v39, %v5642_v12  ;;  %v18728_v35 = vrot.slane %v14900_v10, 2  ;;  %v2835_v41 = vrot.slane %v14916_v28, 3  ;;  %v18729_v59 = vld [vmem:[#allocation58_spill] sm:$0xff] }
 0x481   :  { %v3466_v54 = vrot.slane %v14921_v49, 4  ;;  %v3602_v60 = vadd.f32 %v3362_v61, %v2971_v51  ;;  %v5403_v57 = vadd.f32 %v5133_v7, %v1619_v25  ;;  %v4097_v19 = vrot.slane %v14924_v5, 5 }
 0x482   :  { %v5645_v11 = vsel %vm2055_vm2, %v5642_v12, %v18728_v35  ;;  %v3601_v26 = vadd.f32 %v3360_v31, %v2970_v27  ;;  %v14983_v22 = vmul.f32 1.5170982e-22, %v18729_v59  ;;  %v1453_v63 = vmul.f32 9.961262e-15, %v18729_v59 }
 0x483   :  { %v4488_v39 = vrot.slane %v14921_v49, 6  ;;  %v4233_v21 = vadd.f32 %v3993_v16, %v3602_v60  ;;  %v5853_v55 = vadd.f32 %v5643_v43, %v5403_v57  ;;  %v14988_v12 = vmul.f32 1.1979456e-08, %v18729_v59 }
 0x484   :  { %v14991_v36 = vmul.f32 1.5170982e-22, %v18719_v40  ;;  %v4232_v61 = vadd.f32 %v3991_v6, %v3601_v26  ;;  %v1693_v25 = vrot.slane %v1453_v63, 1  ;;  %v2504_v5 = vmul.f32 0.00026386508, %v18729_v59 }
 0x485   :  { %v4624_v31 = vadd.f32 %v4384_v62, %v4233_v21  ;;  %v5961_v0 = vsub.f32 %v5853_v55, %v14877_v37  ;;  %v2204_v8 = vrot.slane %v14988_v12, 2  ;;  %v3135_v34 = vmul.f32 0.10645077, %v18729_v59 }
 0x486   :  { %v4623_v49 = vadd.f32 %v4382_v58, %v4232_v61  ;;  %v18730_v16 = vrot.slane %v14778_v1, 1  ;;  %v1874_v7 = vadd.f32 %v1693_v25, %v14983_v22  ;;  %v2833_v40 = vrot.slane %v2504_v5, 3 }
 0x487   :  { %v5015_v33 = vadd.f32 %v4775_v50, %v4624_v31  ;;  %v18731_v6 = vsub.f32 %v18715_v15, %v18714_v18  ;;  %v18732_v43 = vrot.slane %v14784_v20, 2  ;;  %v18733_v1 = vrot.slane %v14787_v2, 3 }
 0x488   :  { %v1694_v51 = vsel %vm1544_vm1, %v18730_v16, %v1693_v25  ;;  %v5014_v60 = vadd.f32 %v4773_v17, %v4623_v49  ;;  %v2385_v58 = vadd.f32 %v2204_v8, %v1874_v7  ;;  %v2836_v26 = vsel %vm2626_vm3, %v2833_v40, %v2835_v41 }
 0x489   :  { %v6051_v27 = vadd.f32 %v18731_v6, %v5961_v0  ;;  %v1873_v62 = vadd.f32 %v1694_v51, %v14893_v13  ;;  %v2205_v35 = vsel %vm2055_vm2, %v18732_v43, %v2204_v8  ;;  %v2834_v57 = vsel %vm2626_vm3, %v18733_v1, %v2833_v40 }
 0x48a   :  { %v5135_v50 = vadd.f32 %v14913_v56, %v5015_v33  ;;  %v3464_v15 = vrot.slane %v3135_v34, 4  ;;  %v5134_v55 = vadd.f32 %v5014_v60, %v14931_v23  ;;  %v3016_v61 = vadd.f32 %v2836_v26, %v2385_v58 }
 0x48b   :  { %v6069_v63 = vadd.f32 0.0009, %v6051_v27  ;;  %v2384_v21 = vadd.f32 %v2205_v35, %v1873_v62  ;;  %v3766_v31 = vmul.f32 0.7865707, %v18729_v59  ;;  %v4486_v0 = vrot.slane %v3135_v34, 6 }
 0x48c   :  { %v18734_v17 = vrot.slane %v14897_v45, 1  ;;  %v18735_v16 = vrot.slane %v14792_v48, 4  ;;  %v5404_v7 = vadd.f32 %v5270_v9, %v5134_v55  ;;  %v3467_v56 = vsel %vm3257_vm4, %v3464_v15, %v3466_v54 }
 0x48d   :  { %9564 = vrcp.f32 %v6069_v63  ;;  %v3015_v49 = vadd.f32 %v2834_v57, %v2384_v21  ;;  %v4095_v40 = vrot.slane %v3766_v31, 5  ;;  %v18736_v33 = vrot.slane %v14792_v48, 6 }
 0x48e   :  { %v5405_v8 = vadd.f32 %v18734_v17, %v5135_v50  ;;  %v3465_v41 = vsel %vm3257_vm4, %v18735_v16, %v3464_v15  ;;  %v5299_v59 = vrot.slane %v14973_v38, 1  ;;  %v18737_v34 = vrot.slane %v14900_v10, 2 }
 0x48f   :  { %v4487_v23 = vsel %vm4279_vm6, %v18736_v33, %v4486_v0  ;;  %v3646_v6 = vadd.f32 %v3465_v41, %v3015_v49  ;;  %v3647_v27 = vadd.f32 %v3467_v56, %v3016_v61  ;;  %v4879_v62 = vrot.slane %v14916_v28, 7 }
 0x490   :  { %v5855_v45 = vadd.f32 %v18737_v34, %v5405_v8  ;;  %v5854_v43 = vadd.f32 %v5645_v11, %v5404_v7  ;;  %v18738_v35 = vrot.slane %v14797_v29, 5  ;;  %v4098_v54 = vsel %vm3888_vm5, %v4095_v40, %v4097_v19  ;;  %v18739_v11 = vld [vmem:[#allocation39_spill] sm:$0xff]  ;;  %v18749_v34 = vld [vmem:[#allocation98_spill] sm:$0xff] }
 0x491   :  { %v5719_v48 = vrot.slane %v14991_v36, 2  ;;  %v4278_v38 = vadd.f32 %v4098_v54, %v3647_v27  ;;  %v4489_v1 = vsel %vm4279_vm6, %v4486_v0, %v4488_v39  ;;  %v4877_v57 = vrot.slane %v2504_v5, 7  ;;  %v18744_v0 = vld [vmem:[#allocation94_spill] sm:$0xff]  ;;  %v18746_v8 = vld [vmem:[#allocation87_spill] sm:$0xff] }
 0x492   :  { %v4096_v9 = vsel %vm3888_vm5, %v18738_v35, %v4095_v40  ;;  %v5963_v60 = vsub.f32 %v5855_v45, %v14890_v42  ;;  %v5962_v10 = vsub.f32 %v5854_v43, %v14881_v24  ;;  %v5058_v28 = vadd.f32 %v14873_v14, %v14926_v3 }
 0x493   :  { %v4277_v58 = vadd.f32 %v4096_v9, %v3646_v6  ;;  %v18740_v29 = vsub.f32 %v18739_v11, %v18716_v46  ;;  %v4669_v19 = vadd.f32 %v4489_v1, %v4278_v38  ;;  %v5300_v36 = vsel %vm1544_vm1, %v1693_v25, %v5299_v59  ;;  %v18743_v25 = vld [vmem:[#allocation41_spill] sm:$0xff] }
 0x494   :  { %v18741_v42 = vsub.f32 %v18718_v44, %v18717_v32  ;;  %v18742_v21 = vrot.slane %v14787_v2, 7  ;;  %v4880_v5 = vsel %vm4670_vm7, %v4877_v57, %v4879_v62  ;;  %v5178_v14 = vadd.f32 %v5058_v28, %v14784_v20  ;;  %v18745_v44 = vld [vmem:[#allocation43_spill] sm:$0xff]  ;;  %v18752_v28 = vld [vmem:[#allocation70_spill] sm:$0xff] }
 0x495   :  { %v6053_v26 = vadd.f32 %v18740_v29, %v5963_v60  ;;  %v4668_v50 = vadd.f32 %v4487_v23, %v4277_v58  ;;  %v5060_v46 = vadd.f32 %v4880_v5, %v4669_v19  ;;  %v5717_v55 = vrot.slane %v14983_v22, 2  ;;  %v18748_v23 = vld [vmem:[#allocation42_spill] sm:$0xff] }
 0x496   :  { %v6052_v63 = vadd.f32 %v18741_v42, %v5962_v10  ;;  %v4878_v39 = vsel %vm4670_vm7, %v18742_v21, %v4877_v57  ;;  %v5448_v31 = vadd.f32 %v5178_v14, %v1694_v51  ;;  %v5952_v17 = vmul.f32 %v18744_v0, %v18743_v25  ;;  %v18754_v42 = vld [vmem:[#allocation91_spill] sm:$0xff]  ;;  %v18758_v25 = vld [vmem:[#allocation113_spill] sm:$0xff] }
 0x497   :  { %v6071_v3 = vadd.f32 0.0009, %v6053_v26  ;;  %v5059_v15 = vadd.f32 %v4878_v39, %v4668_v50  ;;  %v5953_v49 = vmul.f32 %v18746_v8, %v18745_v44  ;;  %v9565_v2 = vpop.eup %9564  ;;  %v5180_v41 = vadd.f32 %v14934_v52, %v5060_v46  ;;  %v18750_v52 = vld [vmem:[#allocation49_spill] sm:$0xff]  ;;  %v18755_v39 = vld [vmem:[#allocation90_spill] sm:$0xff] }
 0x498   :  { %v6070_v61 = vadd.f32 0.0009, %v6052_v63  ;;  %v18747_v20 = vrot.slane %v14893_v13, 2  ;;  %v15061_v22 = vmul.f32 %v9565_v2, %v14760_v47  ;;  %v5720_v51 = vsel %vm2055_vm2, %v5717_v55, %v5719_v48  ;;  %v18751_v13 = vld [vmem:[#allocation85_spill] sm:$0xff]  ;;  %v18757_v46 = vld [vmem:[#allocation102_spill] sm:$0xff] }
 0x499   :  { %9566 = vrcp.f32 %v6071_v3  ;;  %v5179_v16 = vadd.f32 %v5059_v15, %v14988_v12  ;;  %v5450_v33 = vadd.f32 %v5299_v59, %v5180_v41  ;;  %v5954_v45 = vmul.f32 %v18749_v34, %v18748_v23  ;;  %v18756_v15 = vld [vmem:[#allocation88_spill] sm:$0xff]  ;;  %v18760_v2 = vld [vmem:[#allocation109_spill] sm:$0xff] }
 0x49a   :  { %v5718_v7 = vsel %vm2055_vm2, %v18747_v20, %v5717_v55  ;;  %9568 = vrcp.f32 %v6070_v61  ;;  %v6132_v6 = vmul.f32 2.0, %v5952_v17  ;;  %v6133_v27 = vmul.f32 2.0, %v5953_v49 }
 0x49b   :  { %v5898_v56 = vadd.f32 %v5718_v7, %v5448_v31  ;;  %v5449_v40 = vadd.f32 %v5300_v36, %v5179_v16  ;;  %v15067_v62 = vmul.f32 0.08066656, %v18750_v52  ;;  %v15070_v43 = vrot.slane %v18751_v13, 1  ;;  %v18761_v16 = vld [vmem:[#allocation44_spill] sm:$0xff]  ;;  %v18762_v7 = vld [vmem:[#allocation103_spill] sm:$0xff]  ;;  %v18767_v13 = vld [vmem:[#allocation81_spill] sm:$0xff] }
 0x49c   :  { %v5900_v35 = vadd.f32 %v5719_v48, %v5450_v33  ;;  %v6134_v9 = vmul.f32 2.0, %v5954_v45  ;;  %v6150_v54 = vadd.f32 0.0001, %v6132_v6  ;;  %v6160_v60 = vadd.f32 %v18717_v32, %v14881_v24  ;;  %v18753_v48 = vld [vmem:[#allocation46_spill] sm:$0xff] }
 0x49d   :  { %v6006_v12 = vsub.f32 %v5898_v56, %v5952_v17  ;;  %v5899_v47 = vadd.f32 %v5720_v51, %v5449_v40  ;;  %v6151_v58 = vadd.f32 0.0001, %v6133_v27  ;;  %v15075_v38 = vmul.f32 0.09140719, %v18750_v52  ;;  %v18759_v17 = vld [vmem:[#allocation73_spill] sm:$0xff]  ;;  %v18765_v40 = vld [vmem:[#allocation80_spill] sm:$0xff] }
 0x49e   :  { %v6008_v1 = vsub.f32 %v5900_v35, %v5954_v45  ;;  %v6152_v57 = vadd.f32 0.0001, %v6134_v9  ;;  %v15078_v11 = vmul.f32 %v18752_v28, %v6150_v54  ;;  %v6035_v29 = vadd.f32 0.0009, %v14766_v30 }
 0x49f   :  { %v6024_v59 = vmul.f32 2.0, %v6006_v12  ;;  %v6007_v10 = vsub.f32 %v5899_v47, %v5953_v49  ;;  %v15082_v50 = vmul.f32 %v18753_v48, %v6151_v58  ;;  %v6621_v24 = vadd.f32 %v15070_v43, %v15067_v62  ;;  %v18766_v12 = vld [vmem:[#allocation82_spill] sm:$0xff] }
 0x4a0   :  { %v6159_v32 = vadd.f32 %v18714_v18, %v14877_v37  ;;  %v6026_v36 = vmul.f32 2.0, %v6008_v1  ;;  %v15089_v63 = vmul.f32 %v18754_v42, %v6152_v57  ;;  %v6178_v21 = vadd.f32 0.0001, %v6160_v60 }
 0x4a1   :  { %v6042_v26 = vadd.f32 0.0009, %v6024_v59  ;;  %v6025_v19 = vmul.f32 2.0, %v6007_v10  ;;  %v6699_v30 = vrot.slane %v15075_v38, 2  ;;  %v15096_v14 = vmul.f32 0.095048435, %v18750_v52 }
 0x4a2   :  { %v15100_v55 = vmul.f32 %v18757_v46, %v18756_v15  ;;  %v6034_v37 = vadd.f32 0.0009, %v14764_v53  ;;  %v6044_v61 = vadd.f32 0.0009, %v6026_v36  ;;  %v6148_v0 = vadd.f32 0.0001, %v18758_v25 }
 0x4a3   :  { %v15092_v5 = vmul.f32 %v18755_v39, %v6042_v26  ;;  %v9567_v3 = vpop.eup %9566  ;;  %v6043_v18 = vadd.f32 0.0009, %v6025_v19  ;;  %v15105_v44 = vadd.f32 0.0001, %v18759_v17  ;;  %v6753_v49 = vadd.f32 %v6699_v30, %v6621_v24  ;;  %v18764_v53 = vld [vmem:[#allocation37_spill] sm:$0xff] }
 0x4a4   :  { %v9569_v31 = vpop.eup %9568  ;;  %v15107_v8 = vmul.f32 %v9567_v3, %v6035_v29  ;;  %v15111_v41 = vmul.f32 %v18761_v16, %v18760_v2  ;;  %v15119_v56 = vmul.f32 %v18764_v53, %v6044_v61  ;;  %v15122_v33 = vmul.f32 %v18765_v40, %v6148_v0  ;;  %v18769_v19 = vld [vmem:[#allocation77_spill] sm:$0xff] }
 0x4a5   :  { %v15113_v20 = vmul.f32 %v9569_v31, %v6034_v37  ;;  %v15116_v51 = vmul.f32 %v18762_v7, %v6043_v18  ;;  %v15124_v23 = vadd.f32 0.0001, %v6159_v32  ;;  %9570 = vrcp.f32 %v6178_v21 }
 0x4a6   :  { %v6831_v34 = vrot.slane %v15096_v14, 3  ;;  %v6909_v45 = vmul.f32 0.097302444, %v18750_v52  ;;  %v7047_v6 = vmul.f32 0.09806559, %v18750_v52  ;;  %v18768_v47 = vrot.slane %v18767_v13, 1 }
 0x4a7   :  { %18763 = vst [vmem:[#allocation84_spill] sm:$0xff] %v15116_v51  ;;  %v7048_v27 = vmul.f32 0.09806559, %v18766_v12  ;;  %v7214_v54 = vmul.f32 0.097302444, %v18766_v12  ;;  %v7395_v59 = vrot.slane %v15096_v14, 7 }
 0x4a8   :  { %v6568_v35 = vsel %vm1544_vm1, %v18768_v47, %v15070_v43  ;;  %v6885_v9 = vadd.f32 %v6831_v34, %v6753_v49  ;;  %v7346_v60 = vmul.f32 0.095048435, %v18766_v12  ;;  %v6963_v58 = vrot.slane %v6909_v45, 4  ;;  %v18770_v14 = vld [vmem:[#allocation47_spill] sm:$0xff]  ;;  %v18771_v13 = vld [vmem:[#allocation96_spill] sm:$0xff] }
 0x4a9   :  { %v7131_v10 = vrot.slane %v7047_v6, 5  ;;  %v7133_v1 = vrot.slane %v7048_v27, 5  ;;  %v7263_v57 = vrot.slane %v6909_v45, 6  ;;  %v7265_v28 = vrot.slane %v7214_v54, 6 }
 0x4aa   :  { %v7397_v52 = vrot.slane %v7346_v60, 7  ;;  %v7478_v29 = vmul.f32 0.09140719, %v18766_v12  ;;  %v7514_v26 = vmul.f32 0.086542584, %v18766_v12  ;;  %v7017_v48 = vadd.f32 %v6963_v58, %v6885_v9 }
 0x4ab   :  { %v7134_v24 = vsel %vm3888_vm5, %v7131_v10, %v7133_v1  ;;  %v7610_v32 = vmul.f32 0.08066656, %v18766_v12  ;;  %v6488_v36 = vmul.f32 0.08066656, %v18769_v19  ;;  %v7266_v42 = vsel %vm4279_vm6, %v7263_v57, %v7265_v28 }
 0x4ac   :  { %v7398_v21 = vsel %vm4670_vm7, %v7395_v59, %v7397_v52  ;;  %v7544_v39 = vrot.slane %v7514_v26, 1  ;;  %v6698_v3 = vrot.slane %v18770_v14, 2  ;;  %v7197_v15 = vadd.f32 %v7134_v24, %v7017_v48 }
 0x4ad   :  { %v7659_v46 = vrot.slane %v7610_v32, 2  ;;  %v6620_v37 = vadd.f32 %v6568_v35, %v6488_v36  ;;  %v6776_v18 = vmul.f32 0.095048435, %v18769_v19  ;;  %v6908_v31 = vmul.f32 0.097302444, %v18769_v19 }
 0x4ae   :  { %v6700_v61 = vsel %vm2055_vm2, %v6698_v3, %v6699_v30  ;;  %v7046_v25 = vmul.f32 0.09806559, %v18769_v19  ;;  %v15151_v0 = vsel %vm1544_vm1, %v15070_v43, %v7544_v39  ;;  %v7329_v17 = vadd.f32 %v7266_v42, %v7197_v15 }
 0x4af   :  { %v6752_v49 = vadd.f32 %v6700_v61, %v6620_v37  ;;  %v6830_v2 = vrot.slane %v6776_v18, 3  ;;  %v7394_v16 = vrot.slane %v6776_v18, 7  ;;  %v15153_v7 = vpop.eup %9570  ;;  %v6962_v53 = vrot.slane %v6908_v31, 4 }
 0x4b0   :  { %v7130_v40 = vrot.slane %v7046_v25, 5  ;;  %v7262_v45 = vrot.slane %v6908_v31, 6  ;;  %v7658_v6 = vrot.slane %v15067_v62, 2  ;;  %v7461_v30 = vadd.f32 %v7398_v21, %v7329_v17  ;;  %v18772_v62 = vld [vmem:[#allocation23_spill] sm:$0xff] }
 0x4b1   :  { %v6832_v12 = vsel %vm2626_vm3, %v6830_v2, %v6831_v34  ;;  %v7396_v27 = vsel %vm4670_vm7, %v7394_v16, %v7395_v59  ;;  %v15159_v47 = vmul.f32 0.08066656, %v18771_v13  ;;  %v6964_v35 = vsel %vm3257_vm4, %v6962_v53, %v6963_v58 }
 0x4b2   :  { %v6884_v43 = vadd.f32 %v6832_v12, %v6752_v49  ;;  %v7132_v9 = vsel %vm3888_vm5, %v7130_v40, %v7131_v10  ;;  %v7264_v54 = vsel %vm4279_vm6, %v7262_v45, %v7263_v57  ;;  %v7497_v60 = vadd.f32 %v7478_v29, %v7461_v30 }
 0x4b3   :  { %v7660_v1 = vsel %vm2055_vm2, %v7658_v6, %v7659_v46  ;;  %v6623_v28 = vadd.f32 %v18772_v62, %v15159_v47  ;;  %v15168_v34 = vmul.f32 0.09140719, %v18771_v13  ;;  %v15171_v52 = vmul.f32 0.095048435, %v18771_v13 }
 0x4b4   :  { %v7016_v59 = vadd.f32 %v6964_v35, %v6884_v43  ;;  %v15174_v26 = vmul.f32 0.097302444, %v18771_v13  ;;  %v15177_v58 = vmul.f32 0.09806559, %v18771_v13  ;;  %v7593_v10 = vadd.f32 %v7544_v39, %v7497_v60  ;;  %v18773_v13 = vld [vmem:[#allocation95_spill] sm:$0xff]  ;;  %v18774_v35 = vld [vmem:[#allocation20_spill] sm:$0xff] }
 0x4b5   :  { %v6702_v57 = vrot.slane %v15168_v34, 2  ;;  %v7051_v29 = vmul.f32 0.09806559, %v15100_v55  ;;  %v7215_v48 = vmul.f32 0.097302444, %v15100_v55  ;;  %v6834_v19 = vrot.slane %v15171_v52, 3 }
 0x4b6   :  { %v6179_v24 = vadd.f32 0.0001, %v14906_v4  ;;  %v7196_v32 = vadd.f32 %v7132_v9, %v7016_v59  ;;  %v7136_v36 = vrot.slane %v15177_v58, 5  ;;  %v15185_v42 = vadd.f32 %v7659_v46, %v7593_v10  ;;  %v18781_v58 = vld [vmem:[#allocation27_spill] sm:$0xff] }
 0x4b7   :  { %v6755_v21 = vadd.f32 %v6702_v57, %v6623_v28  ;;  %v7138_v14 = vrot.slane %v7051_v29, 5  ;;  %v7268_v3 = vrot.slane %v15174_v26, 6  ;;  %v6966_v15 = vrot.slane %v15174_v26, 4 }
 0x4b8   :  { %v7328_v39 = vadd.f32 %v7264_v54, %v7196_v32  ;;  %v7270_v37 = vrot.slane %v7215_v48, 6  ;;  %v7347_v18 = vmul.f32 0.095048435, %v15100_v55  ;;  %v8049_v61 = vmul.f32 0.095048435, %v15185_v42 }
 0x4b9   :  { %v7761_v4 = vmul.f32 0.086542584, %v15185_v42  ;;  %v6887_v31 = vadd.f32 %v6834_v19, %v6755_v21  ;;  %v7400_v46 = vrot.slane %v15171_v52, 7  ;;  %v15196_v25 = vmul.f32 0.086542584, %v15111_v41 }
 0x4ba   :  { %v6521_v17 = vmul.f32 0.086542584, %v15122_v33  ;;  %9572 = vrcp.f32 %v6179_v24  ;;  %v7460_v49 = vadd.f32 %v7396_v27, %v7328_v39  ;;  %8590 = vrot.lane.b32.xlu1 %v8049_v61, %s9610_s0  ;;  %v7139_v16 = vsel %vm3888_vm5, %v7136_v36, %v7138_v14  ;;  %v18777_v39 = vld [vmem:[#allocation26_spill] sm:$0xff] }
 0x4bb   :  { %7822 = vrot.lane.b32.xlu0 %v7761_v4, %s9611_s1  ;;  %v7019_v2 = vadd.f32 %v6966_v15, %v6887_v31  ;;  %v7271_v53 = vsel %vm4279_vm6, %v7268_v3, %v7270_v37  ;;  %v7402_v40 = vrot.slane %v7347_v18, 7  ;;  %9574 = vrcp.f32 %v15124_v23 }
 0x4bc   :  { %v15209_v45 = vmul.f32 0.09140719, %v15185_v42  ;;  %v7496_v6 = vadd.f32 %v7460_v49, %v15075_v38  ;;  %v7515_v30 = vmul.f32 0.086542584, %v15100_v55  ;;  %v6490_v43 = vmul.f32 0.08066656, %v18773_v13 }
 0x4bd   :  { %v7199_v12 = vadd.f32 %v7139_v16, %v7019_v2  ;;  %v7403_v27 = vsel %vm4670_vm7, %v7400_v46, %v7402_v40  ;;  %v18775_v9 = vrot.slane %v18774_v35, 1  ;;  %v7611_v28 = vmul.f32 0.08066656, %v15100_v55  ;;  %v18776_v38 = vld [vmem:[#allocation28_spill] sm:$0xff]  ;;  %v18778_v16 = vld [vmem:[#allocation34_spill] sm:$0xff] }
 0x4be   :  { %v7592_v23 = vadd.f32 %v15151_v0, %v7496_v6  ;;  %v7546_v60 = vrot.slane %v7515_v30, 1  ;;  %v6701_v59 = vrot.slane %v18776_v38, 2  ;;  %8782 = vrot.lane.b32.xlu1 %v7761_v4, %s9612_s20  ;;  %v6778_v48 = vmul.f32 0.095048435, %v18773_v13 }
 0x4bf   :  { %v6571_v54 = vsel %vm1544_vm1, %v18775_v9, %v18772_v62  ;;  %7966 = vrot.lane.b32.xlu0 %v15209_v45, %s9613_s21  ;;  %v7331_v10 = vadd.f32 %v7271_v53, %v7199_v12  ;;  %v6910_v24 = vmul.f32 0.097302444, %v18773_v13  ;;  %v7049_v21 = vmul.f32 0.09806559, %v18773_v13 }
 0x4c0   :  { %v6622_v29 = vadd.f32 %v6571_v54, %v6490_v43  ;;  %v15229_v32 = vadd.f32 %v7660_v1, %v7592_v23  ;;  %v6703_v0 = vsel %vm2055_vm2, %v6701_v59, %v6702_v57  ;;  %v15235_v14 = vsel %vm1544_vm1, %v18772_v62, %v7546_v60  ;;  %v18779_v57 = vld [vmem:[#allocation101_spill] sm:$0xff] }
 0x4c1   :  { %v6204_v37 = vmul.f32 %v15153_v7, %v18777_v39  ;;  %v7463_v18 = vadd.f32 %v7403_v27, %v7331_v10  ;;  %v7479_v4 = vmul.f32 0.09140719, %v15100_v55  ;;  %v6833_v1 = vrot.slane %v6778_v48, 3 }
 0x4c2   :  { %v6754_v31 = vadd.f32 %v6703_v0, %v6622_v29  ;;  %v15241_v49 = vmul.f32 0.086542584, %v15229_v32  ;;  %v6965_v2 = vrot.slane %v6910_v24, 4  ;;  %v18780_v53 = vrot.slane %v18779_v57, 1 }
 0x4c3   :  { %v15249_v62 = vrot.slane %v6521_v17, 1  ;;  %8110 = vrot.lane.b32.xlu0 %v8049_v61, %s9614_s22  ;;  %v8193_v7 = vmul.f32 0.097302444, %v15185_v42  ;;  %v7499_v55 = vadd.f32 %v7479_v4, %v7463_v18  ;;  %v7662_v6 = vrot.slane %v7611_v28, 2 }
 0x4c4   :  { %v15247_v40 = vsel %vm1544_vm1, %v18780_v53, %v18778_v16  ;;  %v9573_v30 = vpop.eup %9572  ;;  %7820 = vrot.lane.b32.xlu1 %v15241_v49, %s9611_s1  ;;  %v6835_v12 = vsel %vm2626_vm3, %v6833_v1, %v6834_v19  ;;  %v6967_v27 = vsel %vm3257_vm4, %v6965_v2, %v6966_v15  ;;  %v7135_v13 = vrot.slane %v7049_v21, 5 }
 0x4c5   :  { %v7267_v17 = vrot.slane %v6910_v24, 6  ;;  %v7595_v43 = vadd.f32 %v7546_v60, %v7499_v55  ;;  %v6886_v35 = vadd.f32 %v6835_v12, %v6754_v31  ;;  %v7399_v9 = vrot.slane %v6778_v48, 7  ;;  %v9575_v54 = vpop.eup %9574  ;;  %v18782_v24 = vld [vmem:[#allocation24_spill] sm:$0xff] }
 0x4c6   :  { %v7661_v61 = vrot.slane %v15159_v47, 2  ;;  %v15261_v23 = vmul.f32 0.09140719, %v15229_v32  ;;  %v7137_v28 = vsel %vm3888_vm5, %v7135_v13, %v7136_v36  ;;  %v6517_v15 = vmul.f32 0.086542584, %v6204_v37 }
 0x4c7   :  { %v7269_v19 = vsel %vm4279_vm6, %v7267_v17, %v7268_v3  ;;  %8254 = vrot.lane.b32.xlu0 %v8193_v7, %s9615_s23  ;;  %v15270_v60 = vadd.f32 %v7662_v6, %v7595_v43  ;;  %v7018_v38 = vadd.f32 %v6967_v27, %v6886_v35  ;;  %v7401_v47 = vsel %vm4670_vm7, %v7399_v9, %v7400_v46 }
 0x4c8   :  { %v7663_v59 = vsel %vm2055_vm2, %v7661_v61, %v7662_v6  ;;  %v15277_v10 = vmul.f32 %v9573_v30, %v18781_v58  ;;  %7964 = vrot.lane.b32.xlu1 %v15261_v23, %s9613_s21  ;;  %v15281_v26 = vmul.f32 0.08066656, %v6204_v37  ;;  %v15283_v36 = vrot.slane %v6517_v15, 1 }
 0x4c9   :  { %v15285_v3 = vmul.f32 0.09140719, %v6204_v37  ;;  %9576 = vrcp.f32 %v15105_v44  ;;  %v8337_v52 = vmul.f32 0.09806559, %v15185_v42  ;;  %v7198_v29 = vadd.f32 %v7137_v28, %v7018_v38 }
 0x4ca   :  { %v15289_v46 = vmul.f32 0.095048435, %v6204_v37  ;;  %v6578_v48 = vrot.slane %v15196_v25, 1  ;;  %v6202_v0 = vmul.f32 %v9575_v54, %v18782_v24  ;;  %v15294_v21 = vmul.f32 0.095048435, %v15229_v32 }
 0x4cb   :  { %v6625_v39 = vadd.f32 %v15283_v36, %v15281_v26  ;;  %8398 = vrot.lane.b32.xlu0 %v8337_v52, %s9616_s24  ;;  %v8192_v44 = vmul.f32 0.097302444, %v15229_v32  ;;  %v7330_v18 = vadd.f32 %v7269_v19, %v7198_v29  ;;  %v6705_v4 = vrot.slane %v15285_v3, 2 }
 0x4cc   :  { %v15301_v31 = vmul.f32 0.097302444, %v6204_v37  ;;  %8108 = vrot.lane.b32.xlu1 %v15294_v21, %s9614_s22  ;;  %v15305_v25 = vmul.f32 0.09806559, %v6204_v37  ;;  %v7054_v1 = vmul.f32 0.09806559, %v15277_v10  ;;  %v15311_v57 = vsel %vm1544_vm1, %v6578_v48, %v15249_v62 }
 0x4cd   :  { %v7216_v2 = vmul.f32 0.097302444, %v15277_v10  ;;  %v7462_v53 = vadd.f32 %v7401_v47, %v7330_v18  ;;  %v6757_v55 = vadd.f32 %v6705_v4, %v6625_v39  ;;  %v6837_v6 = vrot.slane %v15289_v46, 3 }
 0x4ce   :  { %v7273_v30 = vrot.slane %v15301_v31, 6  ;;  %v7141_v12 = vrot.slane %v15305_v25, 5  ;;  %v7143_v27 = vrot.slane %v7054_v1, 5  ;;  %v7348_v37 = vmul.f32 0.095048435, %v15277_v10 }
 0x4cf   :  { %v7275_v13 = vrot.slane %v7216_v2, 6  ;;  %8494 = vrot.lane.b32.xlu0 %v8193_v7, %s9617_s25  ;;  %v7498_v17 = vadd.f32 %v7462_v53, %v15168_v34  ;;  %v6889_v43 = vadd.f32 %v6837_v6, %v6757_v55  ;;  %v6969_v35 = vrot.slane %v15301_v31, 4 }
 0x4d0   :  { %v7405_v9 = vrot.slane %v15289_v46, 7  ;;  %v15322_v61 = vmul.f32 0.086542584, %v15078_v11  ;;  %8252 = vrot.lane.b32.xlu1 %v8192_v44, %s9615_s23  ;;  %v7144_v54 = vsel %vm3888_vm5, %v7141_v12, %v7143_v27  ;;  %v7407_v19 = vrot.slane %v7348_v37, 7 }
 0x4d1   :  { %v7276_v28 = vsel %vm4279_vm6, %v7273_v30, %v7275_v13  ;;  %v8336_v15 = vmul.f32 0.09806559, %v15229_v32  ;;  %v7594_v7 = vadd.f32 %v15235_v14, %v7498_v17  ;;  %v7021_v34 = vadd.f32 %v6969_v35, %v6889_v43 }
 0x4d2   :  { %v7516_v38 = vmul.f32 0.086542584, %v15277_v10  ;;  %v7408_v47 = vsel %vm4670_vm7, %v7405_v9, %v7407_v19  ;;  %v7612_v58 = vmul.f32 0.08066656, %v15277_v10  ;;  %v6516_v52 = vmul.f32 0.086542584, %v6202_v0 }
 0x4d3   :  { %v6648_v29 = vmul.f32 0.09140719, %v6202_v0  ;;  %v9577_v46 = vpop.eup %9576  ;;  %8686 = vrot.lane.b32.xlu0 %v15209_v45, %s9618_s26  ;;  %v15335_v48 = vmul.f32 0.08066656, %v15185_v42  ;;  %v15337_v24 = vadd.f32 %v7663_v59, %v7594_v7  ;;  %v7201_v14 = vadd.f32 %v7144_v54, %v7021_v34 }
 0x4d4   :  { %v6780_v39 = vmul.f32 0.095048435, %v6202_v0  ;;  %8396 = vrot.lane.b32.xlu1 %v8336_v15, %s9616_s24  ;;  %v6572_v18 = vrot.slane %v6516_v52, 1  ;;  %v6912_v31 = vmul.f32 0.097302444, %v6202_v0  ;;  %v7548_v2 = vrot.slane %v7516_v38, 1 }
 0x4d5   :  { %18783 = vst [vmem:[#allocation59_spill] sm:$0xff] %v15335_v48  ;;  %v7052_v25 = vmul.f32 0.09806559, %v6202_v0  ;;  %v7333_v1 = vadd.f32 %v7276_v28, %v7201_v14  ;;  %v6492_v53 = vmul.f32 0.08066656, %v6202_v0  ;;  %v6704_v55 = vrot.slane %v6648_v29, 2 }
 0x4d6   :  { %v7480_v27 = vmul.f32 0.09140719, %v15277_v10  ;;  %v7665_v13 = vrot.slane %v7612_v58, 2  ;;  %v6574_v42 = vsel %vm1544_vm1, %v6572_v18, %v15283_v36  ;;  %v7664_v45 = vrot.slane %v15281_v26, 2 }
 0x4d7   :  { %8902 = vrot.lane.b32.xlu0 %v15335_v48, %s9619_s27  ;;  %v7465_v59 = vadd.f32 %v7408_v47, %v7333_v1  ;;  %v6624_v37 = vadd.f32 %v6574_v42, %v6492_v53  ;;  %v6706_v17 = vsel %vm2055_vm2, %v6704_v55, %v6705_v4  ;;  %v6836_v43 = vrot.slane %v6780_v39, 3 }
 0x4d8   :  { %8492 = vrot.lane.b32.xlu1 %v8192_v44, %s9617_s25  ;;  %v6968_v0 = vrot.slane %v6912_v31, 4  ;;  %v7140_v54 = vrot.slane %v7052_v25, 5  ;;  %v7272_v10 = vrot.slane %v6912_v31, 6  ;;  %v7404_v28 = vrot.slane %v6780_v39, 7 }
 0x4d9   :  { %v7501_v19 = vadd.f32 %v7480_v27, %v7465_v59  ;;  %v6756_v15 = vadd.f32 %v6706_v17, %v6624_v37  ;;  %v6838_v7 = vsel %vm2626_vm3, %v6836_v43, %v6837_v6  ;;  %v7549_v26 = vsel %vm1544_vm1, %v15283_v36, %v7548_v2  ;;  %v18784_v36 = vld [vmem:[#allocation53_spill] sm:$0xff] }
 0x4da   :  { %v6970_v34 = vsel %vm3257_vm4, %v6968_v0, %v6969_v35  ;;  %v7142_v38 = vsel %vm3888_vm5, %v7140_v54, %v7141_v12  ;;  %v7274_v4 = vsel %vm4279_vm6, %v7272_v10, %v7273_v30  ;;  %v7406_v47 = vsel %vm4670_vm7, %v7404_v28, %v7405_v9  ;;  %v18785_v9 = vld [vmem:[#allocation114_spill] sm:$0xff] }
 0x4db   :  { %v6523_v44 = vmul.f32 0.086542584, %v15082_v50  ;;  %8588 = vrot.lane.b32.xlu0 %v15294_v21, %s9610_s0  ;;  %v7597_v58 = vadd.f32 %v7548_v2, %v7501_v19  ;;  %v6888_v52 = vadd.f32 %v6838_v7, %v6756_v15  ;;  %v7666_v6 = vsel %vm2055_vm2, %v7664_v45, %v7665_v13  ;;  %v18788_v45 = vld [vmem:[#allocation100_spill] sm:$0xff]  ;;  %v163_v19 = vpop.xlane.xlu0 %162 }
 0x4dc   :  { %8684 = vrot.lane.b32.xlu1 %v15261_v23, %s9618_s26  ;;  %v15362_v35 = vmul.f32 0.08066656, %v18784_v36  ;;  %v15365_v12 = vmul.f32 0.09140719, %v18784_v36  ;;  %v15368_v30 = vmul.f32 0.095048435, %v18784_v36  ;;  %v15371_v29 = vmul.f32 %v9577_v46, %v18785_v9 }
 0x4dd   :  { %v15373_v21 = vadd.f32 %v7665_v13, %v7597_v58  ;;  %v7020_v14 = vadd.f32 %v6970_v34, %v6888_v52  ;;  %v15376_v39 = vmul.f32 0.097302444, %v18784_v36  ;;  %v15379_v23 = vmul.f32 0.08066656, %v15229_v32 }
 0x4de   :  { %v6627_v18 = vadd.f32 %v18778_v16, %v15362_v35  ;;  %v6708_v31 = vrot.slane %v15365_v12, 2  ;;  %v15385_v25 = vmul.f32 0.09806559, %v18784_v36  ;;  %v6581_v46 = vrot.slane %v15322_v61, 1 }
 0x4df   :  { %18786 = vst [vmem:[#allocation50_spill] sm:$0xff] %v15373_v21  ;;  %18787 = vst [vmem:[#allocation56_spill] sm:$0xff] %v15379_v23  ;;  %v15388_v1 = vrot.slane %v6523_v44, 1  ;;  %8780 = vrot.lane.b32.xlu0 %v15241_v49, %s9612_s20  ;;  %v8051_v2 = vmul.f32 0.095048435, %v15270_v60  ;;  %v7200_v53 = vadd.f32 %v7142_v38, %v7020_v14  ;;  %v6840_v27 = vrot.slane %v15368_v30, 3 }
 0x4e0   :  { %8900 = vrot.lane.b32.xlu1 %v15379_v23, %s9619_s27  ;;  %v7763_v32 = vmul.f32 0.086542584, %v15270_v60  ;;  %v6759_v55 = vadd.f32 %v6708_v31, %v6627_v18  ;;  %v6972_v13 = vrot.slane %v15376_v39, 4  ;;  %v7057_v59 = vmul.f32 0.09806559, %v18788_v45 }
 0x4e1   :  { %v7332_v42 = vadd.f32 %v7274_v4, %v7200_v53  ;;  %v7146_v37 = vrot.slane %v15385_v25, 5  ;;  %v7217_v49 = vmul.f32 0.097302444, %v18788_v45  ;;  %v7278_v43 = vrot.slane %v15376_v39, 6 }
 0x4e2   :  { %v6891_v17 = vadd.f32 %v6840_v27, %v6759_v55  ;;  %v7349_v0 = vmul.f32 0.095048435, %v18788_v45  ;;  %v7410_v54 = vrot.slane %v15368_v30, 7  ;;  %v15406_v10 = vmul.f32 0.09140719, %v15270_v60  ;;  %v18789_v30 = vld [vmem:[#allocation21_spill] sm:$0xff] }
 0x4e3   :  { %7826 = vrot.lane.b32.xlu0 %v7763_v32, %s9611_s1  ;;  %v7464_v28 = vadd.f32 %v7406_v47, %v7332_v42  ;;  %v7148_v15 = vrot.slane %v7057_v59, 5  ;;  %v7280_v7 = vrot.slane %v7217_v49, 6  ;;  %v164_v34 = vrot.slane %v163_v19, 4  ;;  %v18790_v55 = vld [vmem:[#allocation105_spill] sm:$0xff] }
 0x4e4   :  { %8594 = vrot.lane.b32.xlu1 %v8051_v2, %s9610_s0  ;;  %v7023_v38 = vadd.f32 %v6972_v13, %v6891_v17  ;;  %v7412_v4 = vrot.slane %v7349_v0, 7  ;;  %v7517_v44 = vmul.f32 0.086542584, %v18788_v45  ;;  %v6494_v9 = vmul.f32 0.08066656, %v18789_v30 }
 0x4e5   :  { %v7500_v58 = vadd.f32 %v7464_v28, %v15285_v3  ;;  %v7149_v52 = vsel %vm3888_vm5, %v7146_v37, %v7148_v15  ;;  %v7281_v36 = vsel %vm4279_vm6, %v7278_v43, %v7280_v7  ;;  %v7613_v18 = vmul.f32 0.08066656, %v18788_v45 }
 0x4e6   :  { %v7203_v14 = vadd.f32 %v7149_v52, %v7023_v38  ;;  %v7413_v47 = vsel %vm4670_vm7, %v7410_v54, %v7412_v4  ;;  %v7550_v39 = vrot.slane %v7517_v44, 1  ;;  %v6626_v53 = vadd.f32 %v15247_v40, %v6494_v9 }
 0x4e7   :  { %7970 = vrot.lane.b32.xlu0 %v15406_v10, %s9613_s21  ;;  %v7596_v25 = vadd.f32 %v7549_v26, %v7500_v58  ;;  %v6707_v3 = vrot.slane %v18790_v55, 2  ;;  %v6782_v42 = vmul.f32 0.095048435, %v18789_v30  ;;  %v6914_v49 = vmul.f32 0.097302444, %v18789_v30 }
 0x4e8   :  { %8786 = vrot.lane.b32.xlu1 %v7763_v32, %s9612_s20  ;;  %v7335_v59 = vadd.f32 %v7281_v36, %v7203_v14  ;;  %v7055_v17 = vmul.f32 0.09806559, %v18789_v30  ;;  %v15426_v0 = vsel %vm1544_vm1, %v18778_v16, %v7550_v39  ;;  %v15429_v28 = vmul.f32 0.086542584, %v15337_v24 }
 0x4e9   :  { %v15431_v26 = vadd.f32 %v7666_v6, %v7596_v25  ;;  %v6709_v40 = vsel %vm2055_vm2, %v6707_v3, %v6708_v31  ;;  %v6839_v15 = vrot.slane %v6782_v42, 3  ;;  %v165_v7 = vadd.f32 %v164_v34, %v163_v19 }
 0x4ea   :  { %v7467_v38 = vadd.f32 %v7413_v47, %v7335_v59  ;;  %v7481_v32 = vmul.f32 0.09140719, %v18788_v45  ;;  %v6758_v4 = vadd.f32 %v6709_v40, %v6626_v53  ;;  %v8195_v44 = vmul.f32 0.097302444, %v15270_v60 }
 0x4eb   :  { %8114 = vrot.lane.b32.xlu0 %v8051_v2, %s9614_s22  ;;  %v6841_v16 = vsel %vm2626_vm3, %v6839_v15, %v6840_v27  ;;  %v6971_v58 = vrot.slane %v6914_v49, 4  ;;  %v7145_v52 = vrot.slane %v7055_v17, 5  ;;  %v15441_v6 = vmul.f32 0.09140719, %v15337_v24 }
 0x4ec   :  { %7824 = vrot.lane.b32.xlu1 %v15429_v28, %s9611_s1  ;;  %v7503_v31 = vadd.f32 %v7481_v32, %v7467_v38  ;;  %v7668_v19 = vrot.slane %v7613_v18, 2  ;;  %v7409_v34 = vrot.slane %v6782_v42, 7  ;;  %v6890_v36 = vadd.f32 %v6841_v16, %v6758_v4 }
 0x4ed   :  { %v6973_v45 = vsel %vm3257_vm4, %v6971_v58, %v6972_v13  ;;  %v7147_v2 = vsel %vm3888_vm5, %v7145_v52, %v7146_v37  ;;  %v7277_v30 = vrot.slane %v6914_v49, 6  ;;  %v7667_v14 = vrot.slane %v15362_v35, 2 }
 0x4ee   :  { %v7599_v9 = vadd.f32 %v7550_v39, %v7503_v31  ;;  %v7411_v27 = vsel %vm4670_vm7, %v7409_v34, %v7410_v54  ;;  %v166_v47 = vrot.slane %v165_v7, 2  ;;  %v7022_v25 = vadd.f32 %v6973_v45, %v6890_v36 }
 0x4ef   :  { %8258 = vrot.lane.b32.xlu0 %v8195_v44, %s9615_s23  ;;  %v7279_v53 = vsel %vm4279_vm6, %v7277_v30, %v7278_v43  ;;  %v15450_v18 = vmul.f32 0.08066656, %v15122_v33  ;;  %v15453_v55 = vmul.f32 0.09140719, %v15122_v33  ;;  %v7669_v37 = vsel %vm2055_vm2, %v7667_v14, %v7668_v19 }
 0x4f0   :  { %7968 = vrot.lane.b32.xlu1 %v15441_v6, %s9613_s21  ;;  %v15457_v13 = vadd.f32 %v7668_v19, %v7599_v9  ;;  %v167_v35 = vadd.f32 %v166_v47, %v165_v7  ;;  %v15461_v54 = vmul.f32 0.095048435, %v15122_v33  ;;  %v8339_v39 = vmul.f32 0.09806559, %v15270_v60 }
 0x4f1   :  { %v7202_v43 = vadd.f32 %v7147_v2, %v7022_v25  ;;  %v6629_v3 = vadd.f32 %v15249_v62, %v15450_v18  ;;  %v15467_v42 = vmul.f32 0.097302444, %v15122_v33  ;;  %v15470_v59 = vmul.f32 0.095048435, %v15337_v24 }
 0x4f2   :  { %18791 = vst [vmem:[#allocation9_spill] sm:$0xff] %v15457_v13  ;;  %v6711_v49 = vrot.slane %v15453_v55, 2  ;;  %v15477_v17 = vsel %vm1544_vm1, %v6581_v46, %v15388_v1  ;;  %v6652_v40 = vmul.f32 0.09140719, %v15111_v41  ;;  %v8194_v15 = vmul.f32 0.097302444, %v15337_v24 }
 0x4f3   :  { %8402 = vrot.lane.b32.xlu0 %v8339_v39, %s9616_s24  ;;  %v7334_v7 = vadd.f32 %v7279_v53, %v7202_v43  ;;  %v168_v38 = vrot.slane %v167_v35, 1  ;;  %v6843_v4 = vrot.slane %v15461_v54, 3  ;;  %v6975_v16 = vrot.slane %v15467_v42, 4 }
 0x4f4   :  { %8112 = vrot.lane.b32.xlu1 %v15470_v59, %s9614_s22  ;;  %v6761_v32 = vadd.f32 %v6711_v49, %v6629_v3  ;;  %v7059_v61 = vmul.f32 0.09806559, %v15122_v33  ;;  %v7060_v52 = vmul.f32 0.09806559, %v15371_v29  ;;  %v7218_v31 = vmul.f32 0.097302444, %v15371_v29 }
 0x4f5   :  { %v7466_v46 = vadd.f32 %v7411_v27, %v7334_v7  ;;  %v169_v58 = vadd.f32 %v168_v38, %v167_v35  ;;  %v7283_v36 = vrot.slane %v15467_v42, 6  ;;  %v7350_v45 = vmul.f32 0.095048435, %v15371_v29 }
 0x4f6   :  { %v6893_v19 = vadd.f32 %v6843_v4, %v6761_v32  ;;  %v7151_v34 = vrot.slane %v7059_v61, 5  ;;  %v7153_v30 = vrot.slane %v7060_v52, 5  ;;  %v7285_v9 = vrot.slane %v7218_v31, 6 }
 0x4f7   :  { %8498 = vrot.lane.b32.xlu0 %v8195_v44, %s9617_s25  ;;  %v7502_v2 = vadd.f32 %v7466_v46, %v15365_v12  ;;  %9483 = vpush %v169_v58  ;;  %v7415_v33 = vrot.slane %v15461_v54, 7  ;;  %v7417_v14 = vrot.slane %v7350_v45, 7  ;;  %v7518_v47 = vmul.f32 0.086542584, %v15371_v29 }
 0x4f8   :  { %8256 = vrot.lane.b32.xlu1 %v8194_v15, %s9615_s23  ;;  %v7025_v27 = vadd.f32 %v6975_v16, %v6893_v19  ;;  %v8338_v25 = vmul.f32 0.09806559, %v15337_v24  ;;  %v7154_v35 = vsel %vm3888_vm5, %v7151_v34, %v7153_v30  ;;  %v7286_v44 = vsel %vm4279_vm6, %v7283_v36, %v7285_v9 }
 0x4f9   :  { %v7598_v53 = vadd.f32 %v15426_v0, %v7502_v2  ;;  %v7418_v39 = vsel %vm4670_vm7, %v7415_v33, %v7417_v14  ;;  %v7614_v43 = vmul.f32 0.08066656, %v15371_v29  ;;  %v6496_v54 = vmul.f32 0.08066656, %v15111_v41 }
 0x4fa   :  { %v7205_v12 = vadd.f32 %v7154_v35, %v7025_v27  ;;  %v7552_v42 = vrot.slane %v7518_v47, 1  ;;  %v6710_v7 = vrot.slane %v6652_v40, 2  ;;  %v6784_v0 = vmul.f32 0.095048435, %v15111_v41 }
 0x4fb   :  { %8690 = vrot.lane.b32.xlu0 %v15406_v10, %s9618_s26  ;;  %v15505_v3 = vadd.f32 %v7669_v37, %v7598_v53  ;;  %v6628_v32 = vadd.f32 %v15311_v57, %v6496_v54  ;;  %v6916_v61 = vmul.f32 0.097302444, %v15111_v41  ;;  %v7058_v46 = vmul.f32 0.09806559, %v15111_v41 }
 0x4fc   :  { %8400 = vrot.lane.b32.xlu1 %v8338_v25, %s9616_s24  ;;  %v7337_v38 = vadd.f32 %v7286_v44, %v7205_v12  ;;  %v6498_v58 = vmul.f32 0.08066656, %v15078_v11  ;;  %v15514_v52 = vmul.f32 0.08066656, %v15270_v60  ;;  %v6712_v10 = vsel %vm2055_vm2, %v6710_v7, %v6711_v49 }
 0x4fd   :  { %18792 = vst [vmem:[#allocation10_spill] sm:$0xff] %v15505_v3  ;;  %v7482_v40 = vmul.f32 0.09140719, %v15371_v29  ;;  %v7671_v31 = vrot.slane %v7614_v43, 2  ;;  %v6760_v19 = vadd.f32 %v6712_v10, %v6628_v32  ;;  %v6842_v57 = vrot.slane %v6784_v0, 3 }
 0x4fe   :  { %18793 = vst [vmem:[#allocation55_spill] sm:$0xff] %v15514_v52  ;;  %v7469_v37 = vadd.f32 %v7418_v39, %v7337_v38  ;;  %v6974_v45 = vrot.slane %v6916_v61, 4  ;;  %v7150_v2 = vrot.slane %v7058_v46, 5  ;;  %v7282_v30 = vrot.slane %v6916_v61, 6 }
 0x4ff   :  { %8906 = vrot.lane.b32.xlu0 %v15514_v52, %s9619_s27  ;;  %v7414_v9 = vrot.slane %v6784_v0, 7  ;;  %v7553_v60 = vsel %vm1544_vm1, %v15249_v62, %v7552_v42  ;;  %v7670_v49 = vrot.slane %v15450_v18, 2  ;;  %v6844_v29 = vsel %vm2626_vm3, %v6842_v57, %v6843_v4 }
 0x500   :  { %8496 = vrot.lane.b32.xlu1 %v8194_v15, %s9617_s25  ;;  %v7505_v41 = vadd.f32 %v7482_v40, %v7469_v37  ;;  %v6976_v27 = vsel %vm3257_vm4, %v6974_v45, %v6975_v16  ;;  %v7152_v14 = vsel %vm3888_vm5, %v7150_v2, %v7151_v34  ;;  %v7284_v47 = vsel %vm4279_vm6, %v7282_v30, %v7283_v36 }
 0x501   :  { %v6892_v53 = vadd.f32 %v6844_v29, %v6760_v19  ;;  %v7416_v35 = vsel %vm4670_vm7, %v7414_v9, %v7415_v33  ;;  %v7672_v15 = vsel %vm2055_vm2, %v7670_v49, %v7671_v31  ;;  %v15533_v62 = vadd.f32 %v15477_v17, %v6498_v58 }
 0x502   :  { %v7601_v25 = vadd.f32 %v7552_v42, %v7505_v41  ;;  %v15540_v16 = vmul.f32 0.08066656, %v15337_v24  ;;  %v7765_v17 = vmul.f32 0.086542584, %v15373_v21  ;;  %v8053_v36 = vmul.f32 0.095048435, %v15373_v21 }
 0x503   :  { %8592 = vrot.lane.b32.xlu0 %v15470_v59, %s9610_s0  ;;  %v7024_v4 = vadd.f32 %v6976_v27, %v6892_v53  ;;  %v15557_v12 = vmul.f32 0.09140719, %v15082_v50  ;;  %v15570_v42 = vmul.f32 0.09806559, %v15082_v50  ;;  %v8197_v7 = vmul.f32 0.097302444, %v15373_v21 }
 0x504   :  { %8688 = vrot.lane.b32.xlu1 %v15441_v6, %s9618_s26  ;;  %v15537_v18 = vadd.f32 %v7671_v31, %v7601_v25  ;;  %18795 = vst [vmem:[#allocation60_spill] sm:$0xff] %v15540_v16  ;;  %v7909_v6 = vmul.f32 0.09140719, %v15373_v21  ;;  %v15576_v0 = vmul.f32 0.09140719, %v15431_v26 }
 0x505   :  { %v7204_v34 = vadd.f32 %v7152_v14, %v7024_v4  ;;  %v6714_v54 = vrot.slane %v15557_v12, 2  ;;  %v15579_v32 = vmul.f32 0.095048435, %v15082_v50  ;;  %v6654_v61 = vmul.f32 0.09140719, %v15078_v11 }
 0x506   :  { %18794 = vst [vmem:[#allocation51_spill] sm:$0xff] %v15537_v18  ;;  %v6919_v58 = vmul.f32 0.097302444, %v15082_v50  ;;  %v7063_v10 = vmul.f32 0.09806559, %v15089_v63  ;;  %v7156_v37 = vrot.slane %v15570_v42, 5 }
 0x507   :  { %8784 = vrot.lane.b32.xlu0 %v15429_v28, %s9612_s20  ;;  %v7336_v59 = vadd.f32 %v7284_v47, %v7204_v34  ;;  %v15554_v28 = vmul.f32 0.08066656, %v15082_v50  ;;  %v6846_v46 = vrot.slane %v15579_v32, 3  ;;  %v8341_v40 = vmul.f32 0.09806559, %v15373_v21 }
 0x508   :  { %8904 = vrot.lane.b32.xlu1 %v15540_v16, %s9619_s27  ;;  %v7219_v31 = vmul.f32 0.097302444, %v15089_v63  ;;  %v7351_v19 = vmul.f32 0.095048435, %v15089_v63  ;;  %v8052_v57 = vmul.f32 0.095048435, %v15431_v26 }
 0x509   :  { %v7468_v33 = vadd.f32 %v7416_v35, %v7336_v59  ;;  %v6631_v43 = vadd.f32 %v15388_v1, %v15554_v28  ;;  %v6978_v2 = vrot.slane %v6919_v58, 4  ;;  %v7158_v30 = vrot.slane %v7063_v10, 5 }
 0x50a   :  { %v7288_v41 = vrot.slane %v6919_v58, 6  ;;  %v7290_v49 = vrot.slane %v7219_v31, 6  ;;  %v7420_v29 = vrot.slane %v15579_v32, 7  ;;  %v7422_v27 = vrot.slane %v7351_v19, 7 }
 0x50b   :  { %7830 = vrot.lane.b32.xlu0 %v7765_v17, %s9611_s1  ;;  %v7504_v24 = vadd.f32 %v7468_v33, %v15453_v55  ;;  %v15565_v55 = vmul.f32 0.086542584, %v15431_v26  ;;  %v6763_v38 = vadd.f32 %v6714_v54, %v6631_v43  ;;  %v7159_v9 = vsel %vm3888_vm5, %v7156_v37, %v7158_v30 }
 0x50c   :  { %8598 = vrot.lane.b32.xlu1 %v8053_v36, %s9610_s0  ;;  %v8196_v14 = vmul.f32 0.097302444, %v15431_v26  ;;  %v7519_v25 = vmul.f32 0.086542584, %v15089_v63  ;;  %v7615_v53 = vmul.f32 0.08066656, %v15089_v63  ;;  %v7423_v4 = vsel %vm4670_vm7, %v7420_v29, %v7422_v27 }
 0x50d   :  { %v7600_v44 = vadd.f32 %v7553_v60, %v7504_v24  ;;  %v6895_v45 = vadd.f32 %v6846_v46, %v6763_v38  ;;  %v6713_v60 = vrot.slane %v6654_v61, 2  ;;  %v8340_v35 = vmul.f32 0.09806559, %v15431_v26  ;;  %v18805_v27 = vld [vmem:[#allocation71_spill] sm:$0xff] }
 0x50e   :  { %v6786_v24 = vmul.f32 0.095048435, %v15078_v11  ;;  %v7061_v43 = vmul.f32 0.09806559, %v15078_v11 }
 0x50f   :  { %7974 = vrot.lane.b32.xlu0 %v7909_v6, %s9613_s21  ;;  %v15560_v39 = vadd.f32 %v7672_v15, %v7600_v44  ;;  %v7027_v50 = vadd.f32 %v6978_v2, %v6895_v45  ;;  %v7291_v15 = vsel %vm4279_vm6, %v7288_v41, %v7290_v49  ;;  %v6715_v34 = vsel %vm2055_vm2, %v6713_v60, %v6714_v54 }
 0x510   :  { %8790 = vrot.lane.b32.xlu1 %v7765_v17, %s9612_s20  ;;  %v7554_v17 = vrot.slane %v7519_v25, 1  ;;  %v6762_v33 = vadd.f32 %v6715_v34, %v15533_v62  ;;  %v6918_v44 = vmul.f32 0.097302444, %v15078_v11  ;;  %v7673_v54 = vrot.slane %v15554_v28, 2 }
 0x511   :  { %18796 = vst [vmem:[#allocation52_spill] sm:$0xff] %v15560_v39  ;;  %v7207_v47 = vadd.f32 %v7159_v9, %v7027_v50  ;;  %v6845_v32 = vrot.slane %v6786_v24, 3  ;;  %v7155_v11 = vrot.slane %v7061_v43, 5  ;;  %v7419_v31 = vrot.slane %v6786_v24, 7 }
 0x512   :  { %v7555_v38 = vsel %vm1544_vm1, %v15388_v1, %v7554_v17  ;;  %v6977_v61 = vrot.slane %v6918_v44, 4  ;;  %v15638_v9 = vmul.f32 0.08066656, %v15431_v26  ;;  %v8055_v26 = vmul.f32 0.095048435, %v15457_v13 }
 0x513   :  { %8118 = vrot.lane.b32.xlu0 %v8053_v36, %s9614_s22  ;;  %v7339_v59 = vadd.f32 %v7291_v15, %v7207_v47  ;;  %v7674_v36 = vrot.slane %v7615_v53, 2  ;;  %v6847_v10 = vsel %vm2626_vm3, %v6845_v32, %v6846_v46  ;;  %v7421_v45 = vsel %vm4670_vm7, %v7419_v31, %v7420_v29 }
 0x514   :  { %7828 = vrot.lane.b32.xlu1 %v15565_v55, %s9611_s1  ;;  %v6894_v19 = vadd.f32 %v6847_v10, %v6762_v33  ;;  %v6979_v1 = vsel %vm3257_vm4, %v6977_v61, %v6978_v2  ;;  %18801 = vst [vmem:[#allocation22_spill] sm:$0xff] %v15638_v9  ;;  %v15650_v29 = vmul.f32 0.09140719, %v15457_v13  ;;  %v15666_v15 = vmul.f32 0.086542584, %v15505_v3 }
 0x515   :  { %v7471_v42 = vadd.f32 %v7423_v4, %v7339_v59  ;;  %v7675_v58 = vsel %vm2055_vm2, %v7673_v54, %v7674_v36  ;;  %v15670_v4 = vmul.f32 0.08066656, %v18805_v27  ;;  %v15673_v34 = vmul.f32 0.09140719, %v18805_v27  ;;  %v18810_v59 = vld [vmem:[#allocation35_spill] sm:$0xff] }
 0x516   :  { %v7026_v46 = vadd.f32 %v6979_v1, %v6894_v19  ;;  %18804 = vst [vmem:[#allocation112_spill] sm:$0xff] %v15650_v29  ;;  %18809 = vst [vmem:[#allocation108_spill] sm:$0xff] %v15666_v15  ;;  %v8199_v33 = vmul.f32 0.097302444, %v15457_v13  ;;  %v15686_v43 = vmul.f32 0.09140719, %v15505_v3 }
 0x517   :  { %8262 = vrot.lane.b32.xlu0 %v8197_v7, %s9615_s23  ;;  %v8343_v32 = vmul.f32 0.09806559, %v15457_v13  ;;  %v15707_v31 = vmul.f32 0.097302444, %v18805_v27  ;;  %v7038_v19 = vmul.f32 0.09806559, %v18805_v27 }
 0x518   :  { %7972 = vrot.lane.b32.xlu1 %v15576_v0, %s9613_s21  ;;  %v18815_v1 = vld [vmem:[#allocation110_spill] sm:$0xff] }
 0x51b   :  { %8406 = vrot.lane.b32.xlu0 %v8341_v40, %s9616_s24  ;;  %v7287_v40 = vrot.slane %v6918_v44, 6 }
 0x51c   :  { %8116 = vrot.lane.b32.xlu1 %v8052_v57, %s9614_s22 }
 0x51d   :  { %v7289_v28 = vsel %vm4279_vm6, %v7287_v40, %v7288_v41  ;;  %v15635_v41 = vmul.f32 0.086542584, %v15457_v13  ;;  %v15743_v13 = vmul.f32 0.086542584, %v15537_v18 }
 0x51f   :  { %8502 = vrot.lane.b32.xlu0 %v8197_v7, %s9617_s25  ;;  %v7483_v7 = vmul.f32 0.09140719, %v15089_v63  ;;  %18800 = vst [vmem:[#allocation67_spill] sm:$0xff] %v15635_v41  ;;  %18822 = vst [vmem:[#allocation72_spill] sm:$0xff] %v15743_v13 }
 0x520   :  { %8260 = vrot.lane.b32.xlu1 %v8196_v14, %s9615_s23 }
 0x521   :  { %v7507_v62 = vadd.f32 %v7483_v7, %v7471_v42  ;;  %v6690_v42 = vrot.slane %v15673_v34, 2  ;;  %v15691_v7 = vmul.f32 0.095048435, %v18805_v27 }
 0x523   :  { %8694 = vrot.lane.b32.xlu0 %v7909_v6, %s9618_s26  ;;  %v7603_v63 = vadd.f32 %v7554_v17, %v7507_v62  ;;  %v7157_v6 = vsel %vm3888_vm5, %v7155_v11, %v7156_v37  ;;  %v6506_v17 = vmul.f32 0.086542584, %v18810_v59  ;;  %v6638_v11 = vmul.f32 0.09140719, %v18810_v59 }
 0x524   :  { %8404 = vrot.lane.b32.xlu1 %v8340_v35, %s9616_s24  ;;  %v7206_v50 = vadd.f32 %v7157_v6, %v7026_v46  ;;  %v6822_v40 = vrot.slane %v15691_v7, 3  ;;  %v7039_v6 = vmul.f32 0.09806559, %v18815_v1 }
 0x525   :  { %v15624_v30 = vadd.f32 %v7674_v36, %v7603_v63  ;;  %v6482_v63 = vmul.f32 0.08066656, %v18810_v59 }
 0x527   :  { %8596 = vrot.lane.b32.xlu0 %v8052_v57, %s9610_s0  ;;  %18797 = vst [vmem:[#allocation62_spill] sm:$0xff] %v15624_v30  ;;  %v7338_v57 = vadd.f32 %v7289_v28, %v7206_v50 }
 0x528   :  { %8500 = vrot.lane.b32.xlu1 %v8196_v14, %s9617_s25  ;;  %s9484_s28 = spop %9483  ;;  %v6507_v14 = vmul.f32 0.086542584, %v18805_v27 }
 0x529   :  { %172 = sst [smem:[#allocation2 + $0x1]] %s9484_s28  ;;  %v7470_v60 = vadd.f32 %v7421_v45, %v7338_v57  ;;  %v8198_v57 = vmul.f32 0.097302444, %v15505_v3 }
 0x52a   :  { %v15661_v53 = vrot.slane %v6507_v14, 1  ;;  %v6954_v14 = vrot.slane %v15707_v31, 4 }
 0x52b   :  { %8788 = vrot.lane.b32.xlu0 %v15565_v55, %s9612_s20  ;;  %v7506_v55 = vadd.f32 %v7470_v60, %v15557_v12  ;;  %v6689_v60 = vrot.slane %v6638_v11, 2  ;;  %v8342_v11 = vmul.f32 0.09806559, %v15505_v3 }
 0x52c   :  { %8692 = vrot.lane.b32.xlu1 %v15576_v0, %s9618_s26  ;;  %v15630_v37 = vpop.permute.xlu1 %8590  ;;  %v6615_v24 = vadd.f32 %v15661_v53, %v15670_v4 }
 0x52d   :  { %18798 = vst [vmem:[#allocation31_spill] sm:$0xff] %v15630_v37  ;;  %v15632_v2 = vpop.permute.xlu0 %7822  ;;  %v7602_v47 = vadd.f32 %v7555_v38, %v7506_v55  ;;  %v6557_v38 = vrot.slane %v6506_v17, 1  ;;  %v15719_v55 = vmul.f32 0.095048435, %v18810_v59  ;;  %v7211_v17 = vmul.f32 0.097302444, %v18815_v1 }
 0x52e   :  { %18799 = vst [vmem:[#allocation19_spill] sm:$0xff] %v15632_v2  ;;  %v6747_v62 = vadd.f32 %v6690_v42, %v6615_v24  ;;  %v6691_v24 = vsel %vm2055_vm2, %v6689_v60, %v6690_v42  ;;  %v18820_v60 = vld [vmem:[#allocation61_spill] sm:$0xff] }
 0x52f   :  { %7834 = vrot.lane.b32.xlu0 %v15635_v41, %s9611_s1  ;;  %v15657_v25 = vadd.f32 %v7675_v58, %v7602_v47  ;;  %v8054_v58 = vmul.f32 0.095048435, %v15505_v3  ;;  %v6559_v10 = vsel %vm1544_vm1, %v6557_v38, %v15661_v53  ;;  %v7118_v47 = vrot.slane %v7039_v6, 5 }
 0x530   :  { %8908 = vrot.lane.b32.xlu1 %v15638_v9, %s9619_s27  ;;  %v15645_v0 = vpop.permute.xlu1 %8782  ;;  %v6879_v45 = vadd.f32 %v6822_v40, %v6747_v62  ;;  %v6614_v46 = vadd.f32 %v6559_v10, %v6482_v63  ;;  %v6902_v63 = vmul.f32 0.097302444, %v18810_v59  ;;  %v7343_v6 = vmul.f32 0.095048435, %v18815_v1 }
 0x531   :  { %18802 = vst [vmem:[#allocation54_spill] sm:$0xff] %v15645_v0  ;;  %v15647_v49 = vpop.permute.xlu0 %7966  ;;  %18806 = vst [vmem:[#allocation66_spill] sm:$0xff] %v15657_v25  ;;  %v7037_v0 = vmul.f32 0.09806559, %v18810_v59  ;;  %v15997_v16 = vmul.f32 0.086542584, %v15657_v25 }
 0x532   :  { %18803 = vst [vmem:[#allocation25_spill] sm:$0xff] %v15647_v49  ;;  %v6746_v62 = vadd.f32 %v6691_v24, %v6614_v46  ;;  %v6509_v24 = vmul.f32 0.086542584, %v18820_v60 }
 0x533   :  { %7978 = vrot.lane.b32.xlu0 %v15650_v29, %s9613_s21  ;;  %18870 = vst [vmem:[#allocation90_spill] sm:$0xff] %v15997_v16 }
 0x534   :  { %8602 = vrot.lane.b32.xlu1 %v8055_v26, %s9610_s0 }
 0x535   :  { %v15659_v12 = vpop.permute.xlu0 %8110 }
 0x536   :  { %18807 = vst [vmem:[#allocation107_spill] sm:$0xff] %v15659_v12  ;;  %v15663_v35 = vpop.permute.xlu1 %7820 }
 0x537   :  { %18808 = vst [vmem:[#allocation32_spill] sm:$0xff] %v15663_v35  ;;  %8122 = vrot.lane.b32.xlu0 %v8055_v26, %s9614_s22  ;;  %v7116_v26 = vrot.slane %v7038_v19, 5  ;;  %v7248_v19 = vrot.slane %v15707_v31, 6  ;;  %v6953_v31 = vrot.slane %v6902_v63, 4 }
 0x538   :  { %7832 = vrot.lane.b32.xlu1 %v15666_v15, %s9611_s1 }
 0x539   :  { %v15678_v36 = vpop.permute.xlu0 %8254  ;;  %v7119_v42 = vsel %vm3888_vm5, %v7116_v26, %v7118_v47  ;;  %v7380_v47 = vrot.slane %v15691_v7, 7  ;;  %v15764_v7 = vmul.f32 0.08066656, %v18820_v60 }
 0x53a   :  { %18811 = vst [vmem:[#allocation74_spill] sm:$0xff] %v15678_v36  ;;  %v15683_v44 = vpop.permute.xlu1 %7964 }
 0x53b   :  { %18812 = vst [vmem:[#allocation7_spill] sm:$0xff] %v15683_v44  ;;  %8266 = vrot.lane.b32.xlu0 %v8199_v33, %s9615_s23  ;;  %v18884_v44 = vld [vmem:[#allocation57_spill] sm:$0xff] }
 0x53c   :  { %7976 = vrot.lane.b32.xlu1 %v15686_v43, %s9613_s21  ;;  %v6503_v49 = vmul.f32 0.086542584, %v18884_v44 }
 0x53d   :  { %v15695_v54 = vpop.permute.xlu0 %8398 }
 0x53e   :  { %18813 = vst [vmem:[#allocation6_spill] sm:$0xff] %v15695_v54  ;;  %v15698_v61 = vpop.permute.xlu1 %8108 }
 0x53f   :  { %18814 = vst [vmem:[#allocation79_spill] sm:$0xff] %v15698_v61  ;;  %8410 = vrot.lane.b32.xlu0 %v8343_v32, %s9616_s24  ;;  %v7011_v32 = vadd.f32 %v6954_v14, %v6879_v45  ;;  %v7250_v45 = vrot.slane %v7211_v17, 6  ;;  %v7382_v17 = vrot.slane %v7343_v6, 7 }
 0x540   :  { %8120 = vrot.lane.b32.xlu1 %v8054_v58, %s9614_s22 }
 0x541   :  { %v15713_v28 = vpop.permute.xlu0 %8494  ;;  %v7191_v3 = vadd.f32 %v7119_v42, %v7011_v32 }
 0x542   :  { %18816 = vst [vmem:[#allocation93_spill] sm:$0xff] %v15713_v28  ;;  %v15715_v50 = vpop.permute.xlu1 %8252 }
 0x543   :  { %18817 = vst [vmem:[#allocation11_spill] sm:$0xff] %v15715_v50  ;;  %8506 = vrot.lane.b32.xlu0 %v8199_v33, %s9617_s25  ;;  %v6821_v33 = vrot.slane %v15719_v55, 3 }
 0x544   :  { %8264 = vrot.lane.b32.xlu1 %v8198_v57, %s9615_s23 }
 0x545   :  { %v15726_v38 = vpop.permute.xlu0 %8686  ;;  %v6823_v46 = vsel %vm2626_vm3, %v6821_v33, %v6822_v40  ;;  %v7251_v40 = vsel %vm4279_vm6, %v7248_v19, %v7250_v45  ;;  %v15754_v33 = vrot.slane %v6509_v24, 1  ;;  %v15780_v45 = vmul.f32 0.095048435, %v15537_v18 }
 0x546   :  { %18818 = vst [vmem:[#allocation69_spill] sm:$0xff] %v15726_v38  ;;  %v15728_v10 = vpop.permute.xlu1 %8396  ;;  %v7323_v42 = vadd.f32 %v7251_v40, %v7191_v3  ;;  %v15785_v40 = vmul.f32 0.086542584, %v15560_v39 }
 0x547   :  { %18819 = vst [vmem:[#allocation17_spill] sm:$0xff] %v15728_v10  ;;  %8600 = vrot.lane.b32.xlu0 %v8054_v58, %s9610_s0  ;;  %v6878_v58 = vadd.f32 %v6823_v46, %v6746_v62  ;;  %v15759_v62 = vmul.f32 0.09140719, %v15537_v18  ;;  %v6617_v6 = vadd.f32 %v15754_v33, %v15764_v7  ;;  %18828 = vst [vmem:[#allocation45_spill] sm:$0xff] %v15780_v45 }
 0x548   :  { %8408 = vrot.lane.b32.xlu1 %v8342_v11, %s9616_s24  ;;  %v6955_v11 = vsel %vm3257_vm4, %v6953_v31, %v6954_v14  ;;  %v7383_v14 = vsel %vm4670_vm7, %v7380_v47, %v7382_v17  ;;  %18830 = vst [vmem:[#allocation30_spill] sm:$0xff] %v15785_v40 }
 0x549   :  { %v15740_v9 = vpop.permute.xlu0 %8902  ;;  %18825 = vst [vmem:[#allocation78_spill] sm:$0xff] %v15759_v62  ;;  %v7010_v46 = vadd.f32 %v6955_v11, %v6878_v58  ;;  %v7455_v24 = vadd.f32 %v7383_v14, %v7323_v42  ;;  %v7511_v11 = vmul.f32 0.086542584, %v18815_v1  ;;  %v8201_v14 = vmul.f32 0.097302444, %v15537_v18 }
 0x54a   :  { %18821 = vst [vmem:[#allocation12_spill] sm:$0xff] %v15740_v9  ;;  %v15745_v41 = vpop.permute.xlu1 %8492 }
 0x54b   :  { %18823 = vst [vmem:[#allocation13_spill] sm:$0xff] %v15745_v41  ;;  %7838 = vrot.lane.b32.xlu0 %v15743_v13, %s9611_s1  ;;  %v7115_v13 = vrot.slane %v7037_v0, 5  ;;  %v15831_v41 = vmul.f32 0.095048435, %v15560_v39 }
 0x54c   :  { %8504 = vrot.lane.b32.xlu1 %v8198_v57, %s9617_s25  ;;  %v15767_v57 = vmul.f32 0.09140719, %v18820_v60 }
 0x54d   :  { %v15756_v32 = vpop.permute.xlu0 %8588  ;;  %v7117_v3 = vsel %vm3888_vm5, %v7115_v13, %v7116_v26  ;;  %v15789_v13 = vmul.f32 0.095048435, %v18820_v60  ;;  %v7475_v26 = vmul.f32 0.09140719, %v18815_v1  ;;  %18838 = vst [vmem:[#allocation14_spill] sm:$0xff] %v15831_v41 }
 0x54e   :  { %18824 = vst [vmem:[#allocation75_spill] sm:$0xff] %v15756_v32  ;;  %v15761_v9 = vpop.permute.xlu1 %8684  ;;  %v7190_v58 = vadd.f32 %v7117_v3, %v7010_v46  ;;  %v17854_v17 = vrot.slane %v15767_v57, 2  ;;  %v18850_v21 = vrot.slane %v15767_v57, 2 }
 0x54f   :  { %18826 = vst [vmem:[#allocation86_spill] sm:$0xff] %v15761_v9  ;;  %7982 = vrot.lane.b32.xlu0 %v15759_v62, %s9613_s21  ;;  %v7491_v3 = vadd.f32 %v7475_v26, %v7455_v24  ;;  %v7607_v62 = vmul.f32 0.08066656, %v18815_v1  ;;  %v15816_v24 = vmul.f32 0.09806559, %v18820_v60  ;;  %v18834_v26 = vld [vmem:[#allocation63_spill] sm:$0xff] }
 0x550   :  { %8696 = vrot.lane.b32.xlu1 %v15686_v43, %s9618_s26  ;;  %v7247_v43 = vrot.slane %v6902_v63, 6  ;;  %v6749_v63 = vadd.f32 %v17854_v17, %v6617_v6  ;;  %v7538_v6 = vrot.slane %v7511_v11, 1  ;;  %v18836_v11 = vld [vmem:[#allocation8_spill] sm:$0xff]  ;;  %v18881_v52 = vrot.slane %v15789_v13, 7 }
 0x551   :  { %v15777_v0 = vpop.permute.xlu0 %8780  ;;  %v6508_v37 = vmul.f32 0.086542584, %v18836_v11  ;;  %v18842_v28 = vrot.slane %v15816_v24, 5 }
 0x552   :  { %18827 = vst [vmem:[#allocation36_spill] sm:$0xff] %v15777_v0  ;;  %v15782_v31 = vpop.permute.xlu1 %8900  ;;  %v7249_v42 = vsel %vm4279_vm6, %v7247_v43, %v7248_v19  ;;  %v15807_v0 = vmul.f32 0.09140719, %v15560_v39  ;;  %v17856_v19 = vrot.slane %v15789_v13, 3  ;;  %v15812_v43 = vmul.f32 0.097302444, %v18820_v60 }
 0x553   :  { %18829 = vst [vmem:[#allocation97_spill] sm:$0xff] %v15782_v31  ;;  %8126 = vrot.lane.b32.xlu0 %v15780_v45, %s9614_s22  ;;  %v7322_v45 = vadd.f32 %v7249_v42, %v7190_v58  ;;  %v7042_v58 = vmul.f32 0.09806559, %v18834_v26  ;;  %v7587_v38 = vadd.f32 %v7538_v6, %v7491_v3 }
 0x554   :  { %7836 = vrot.lane.b32.xlu1 %v15785_v40, %s9611_s1  ;;  %18833 = vst [vmem:[#allocation89_spill] sm:$0xff] %v15807_v0  ;;  %v7379_v40 = vrot.slane %v15719_v55, 7  ;;  %v6881_v55 = vadd.f32 %v17856_v19, %v6749_v63  ;;  %v7212_v19 = vmul.f32 0.097302444, %v18834_v26 }
 0x555   :  { %v15800_v46 = vpop.permute.xlu0 %7826  ;;  %v7123_v63 = vrot.slane %v7042_v58, 5 }
 0x556   :  { %18831 = vst [vmem:[#allocation33_spill] sm:$0xff] %v15800_v46  ;;  %v15804_v31 = vpop.permute.xlu1 %8594  ;;  %v7381_v42 = vsel %vm4670_vm7, %v7379_v40, %v7380_v47  ;;  %v7650_v47 = vrot.slane %v7607_v62, 2  ;;  %v8200_v62 = vmul.f32 0.097302444, %v15560_v39  ;;  %v7344_v40 = vmul.f32 0.095048435, %v18834_v26 }
 0x557   :  { %18832 = vst [vmem:[#allocation64_spill] sm:$0xff] %v15804_v31  ;;  %8270 = vrot.lane.b32.xlu0 %v8201_v14, %s9615_s23  ;;  %v8345_v31 = vmul.f32 0.09806559, %v15537_v18  ;;  %v7454_v9 = vadd.f32 %v7381_v42, %v7322_v45  ;;  %v16021_v46 = vld [vmem:[%s17551_s3 + $0x30] sm:$0xff] }
 0x558   :  { %7980 = vrot.lane.b32.xlu1 %v15807_v0, %s9613_s21  ;;  %v17858_v0 = vrot.slane %v15812_v43, 4  ;;  %v15843_v42 = vadd.f32 %v7650_v47, %v7587_v38 }
 0x559   :  { %v15824_v17 = vpop.permute.xlu0 %7970  ;;  %v7490_v18 = vadd.f32 %v7454_v9, %v15673_v34  ;;  %v7539_v9 = vsel %vm1544_vm1, %v15661_v53, %v7538_v6  ;;  %v7649_v34 = vrot.slane %v15670_v4, 2  ;;  %v18846_v53 = vrot.slane %v15812_v43, 6 }
 0x55a   :  { %18835 = vst [vmem:[#allocation92_spill] sm:$0xff] %v15824_v17  ;;  %v15828_v32 = vpop.permute.xlu1 %8786  ;;  %v7013_v45 = vadd.f32 %v17858_v0, %v6881_v55  ;;  %18840 = vst [vmem:[#allocation48_spill] sm:$0xff] %v15843_v42  ;;  %v7124_v55 = vsel %vm3888_vm5, %v18842_v28, %v7123_v63  ;;  %v7255_v0 = vrot.slane %v7212_v19, 6  ;;  %v15866_v28 = vmul.f32 0.086542584, %v15843_v42 }
 0x55b   :  { %18837 = vst [vmem:[#allocation18_spill] sm:$0xff] %v15828_v32  ;;  %8414 = vrot.lane.b32.xlu0 %v8345_v31, %s9616_s24  ;;  %v6560_v32 = vrot.slane %v6508_v37, 1  ;;  %v6640_v37 = vmul.f32 0.09140719, %v18836_v11  ;;  %v7586_v19 = vadd.f32 %v7539_v9, %v7490_v18  ;;  %v7387_v6 = vrot.slane %v7344_v40, 7 }
 0x55c   :  { %8124 = vrot.lane.b32.xlu1 %v15831_v41, %s9614_s22  ;;  %v7193_v58 = vadd.f32 %v7124_v55, %v7013_v45  ;;  %18844 = vst [vmem:[#allocation38_spill] sm:$0xff] %v15866_v28  ;;  %v7256_v4 = vsel %vm4279_vm6, %v18846_v53, %v7255_v0  ;;  %v15878_v55 = vmul.f32 0.095048435, %v18836_v11  ;;  %v7651_v18 = vsel %vm2055_vm2, %v7649_v34, %v7650_v47 }
 0x55d   :  { %v15841_v3 = vpop.permute.xlu0 %8114  ;;  %v6562_v38 = vsel %vm1544_vm1, %v6560_v32, %v15754_v33  ;;  %v8344_v32 = vmul.f32 0.09806559, %v15560_v39  ;;  %v6692_v45 = vrot.slane %v6640_v37, 2  ;;  %v18852_v47 = vrot.slane %v15789_v13, 7 }
 0x55e   :  { %18839 = vst [vmem:[#allocation16_spill] sm:$0xff] %v15841_v3  ;;  %v15846_v31 = vpop.permute.xlu1 %7824  ;;  %v7325_v9 = vadd.f32 %v7256_v4, %v7193_v58  ;;  %v6824_v34 = vrot.slane %v15878_v55, 3  ;;  %v18855_v4 = vrot.slane %v15789_v13, 3 }
 0x55f   :  { %18841 = vst [vmem:[#allocation15_spill] sm:$0xff] %v15846_v31  ;;  %8510 = vrot.lane.b32.xlu0 %v8201_v14, %s9617_s25  ;;  %v6484_v14 = vmul.f32 0.08066656, %v18836_v11  ;;  %v6694_v0 = vsel %vm2055_vm2, %v6692_v45, %v18850_v21  ;;  %v7388_v58 = vsel %vm4670_vm7, %v18852_v47, %v7387_v6 }
 0x560   :  { %8268 = vrot.lane.b32.xlu1 %v8200_v62, %s9615_s23  ;;  %v6826_v45 = vsel %vm2626_vm3, %v6824_v34, %v18855_v4 }
 0x561   :  { %v15863_v3 = vpop.permute.xlu0 %8258  ;;  %v6616_v10 = vadd.f32 %v6562_v38, %v6484_v14  ;;  %v15885_v38 = vmul.f32 0.09140719, %v15843_v42  ;;  %v15887_v14 = vadd.f32 %v7651_v18, %v7586_v19  ;;  %v7457_v19 = vadd.f32 %v7388_v58, %v7325_v9  ;;  %v18857_v9 = vld [vmem:[#allocation111_spill] sm:$0xff] }
 0x562   :  { %18843 = vst [vmem:[#allocation29_spill] sm:$0xff] %v15863_v3  ;;  %v15868_v63 = vpop.permute.xlu1 %7968  ;;  %v7476_v18 = vmul.f32 0.09140719, %v18834_v26  ;;  %v6501_v47 = vmul.f32 0.086542584, %v18857_v9 }
 0x563   :  { %18845 = vst [vmem:[#allocation99_spill] sm:$0xff] %v15868_v63  ;;  %7810 = vrot.lane.b32.xlu0 %v15866_v28, %s9611_s1  ;;  %18848 = vst [vmem:[#allocation40_spill] sm:$0xff] %v15885_v38  ;;  %v6748_v37 = vadd.f32 %v6694_v0, %v6616_v10  ;;  %v15905_v21 = vmul.f32 0.086542584, %v15887_v14  ;;  %v15908_v10 = vmul.f32 0.095048435, %v15843_v42 }
 0x564   :  { %8412 = vrot.lane.b32.xlu1 %v8344_v32, %s9616_s24  ;;  %18849 = vst [vmem:[#allocation76_spill] sm:$0xff] %v15887_v14  ;;  %v6904_v32 = vmul.f32 0.097302444, %v18836_v11  ;;  %v15917_v0 = vmul.f32 0.086542584, %v18834_v26  ;;  %v7493_v34 = vadd.f32 %v7476_v18, %v7457_v19  ;;  %v15940_v19 = vrot.slane %v6501_v47, 1 }
 0x565   :  { %v15882_v39 = vpop.permute.xlu0 %8402  ;;  %18854 = vst [vmem:[#allocation39_spill] sm:$0xff] %v15905_v21  ;;  %v7040_v28 = vmul.f32 0.09806559, %v18836_v11  ;;  %v8331_v18 = vmul.f32 0.09806559, %v15843_v42 }
 0x566   :  { %18847 = vst [vmem:[#allocation83_spill] sm:$0xff] %v15882_v39  ;;  %v15892_v40 = vpop.permute.xlu1 %8112  ;;  %v6956_v58 = vrot.slane %v6904_v32, 4  ;;  %v15958_v47 = vmul.f32 0.097302444, %v15887_v14  ;;  %v15970_v63 = vmul.f32 0.09140719, %v15624_v30 }
 0x567   :  { %18851 = vst [vmem:[#allocation5_spill] sm:$0xff] %v15892_v40  ;;  %7954 = vrot.lane.b32.xlu0 %v15885_v38, %s9613_s21  ;;  %v7540_v38 = vrot.slane %v15917_v0, 1  ;;  %v15938_v40 = vmul.f32 0.08066656, %v18834_v26  ;;  %v15950_v0 = vmul.f32 0.08066656, %v18857_v9 }
 0x568   :  { %8508 = vrot.lane.b32.xlu1 %v8200_v62, %s9617_s25  ;;  %v6880_v62 = vadd.f32 %v6826_v45, %v6748_v37  ;;  %v18859_v37 = vrot.slane %v15812_v43, 4  ;;  %18865 = vst [vmem:[#allocation49_spill] sm:$0xff] %v15970_v63 }
 0x569   :  { %v15902_v53 = vpop.permute.xlu0 %8498  ;;  %v7653_v54 = vrot.slane %v15938_v40, 2  ;;  %v6609_v31 = vadd.f32 %v15940_v19, %v15950_v0  ;;  %v15986_v40 = vmul.f32 0.09806559, %v15624_v30 }
 0x56a   :  { %18853 = vst [vmem:[#allocation58_spill] sm:$0xff] %v15902_v53  ;;  %v15913_v6 = vpop.permute.xlu1 %8256  ;;  %v15928_v53 = vmul.f32 0.09140719, %v15887_v14  ;;  %v6958_v45 = vsel %vm3257_vm4, %v6956_v58, %v18859_v37  ;;  %v15947_v58 = vmul.f32 0.095048435, %v15887_v14  ;;  %v7589_v37 = vadd.f32 %v7540_v38, %v7493_v34 }
 0x56b   :  { %18856 = vst [vmem:[#allocation41_spill] sm:$0xff] %v15913_v6  ;;  %8098 = vrot.lane.b32.xlu0 %v15908_v10, %s9614_s22  ;;  %v8187_v6 = vmul.f32 0.097302444, %v15843_v42  ;;  %v18863_v42 = vrot.slane %v15816_v24, 5  ;;  %v15980_v24 = vmul.f32 0.097302444, %v15624_v30 }
 0x56c   :  { %7808 = vrot.lane.b32.xlu1 %v15905_v21, %s9611_s1  ;;  %v7012_v21 = vadd.f32 %v6958_v45, %v6880_v62  ;;  %v15962_v45 = vmul.f32 0.086542584, %v15624_v30 }
 0x56d   :  { %v15925_v4 = vpop.permute.xlu0 %8690  ;;  %18867 = vst [vmem:[#allocation70_spill] sm:$0xff] %v15980_v24 }
 0x56e   :  { %18858 = vst [vmem:[#allocation94_spill] sm:$0xff] %v15925_v4  ;;  %v15934_v39 = vpop.permute.xlu1 %8400  ;;  %v7120_v4 = vrot.slane %v7040_v28, 5  ;;  %v8330_v28 = vmul.f32 0.09806559, %v15887_v14  ;;  %18862 = vst [vmem:[#allocation42_spill] sm:$0xff] %v15962_v45 }
 0x56f   :  { %18860 = vst [vmem:[#allocation43_spill] sm:$0xff] %v15934_v39  ;;  %8242 = vrot.lane.b32.xlu0 %v8187_v6, %s9615_s23  ;;  %v15953_v39 = vmul.f32 0.09140719, %v18857_v9  ;;  %v15977_v14 = vmul.f32 0.095048435, %v15624_v30  ;;  %v18873_v30 = vrot.slane %v15812_v43, 6 }
 0x570   :  { %7952 = vrot.lane.b32.xlu1 %v15928_v53, %s9613_s21  ;;  %v7122_v34 = vsel %vm3888_vm5, %v7120_v4, %v18863_v42  ;;  %v7252_v42 = vrot.slane %v6904_v32, 6  ;;  %v7652_v4 = vrot.slane %v15764_v7, 2  ;;  %v16000_v7 = vmul.f32 0.09140719, %v15657_v25 }
 0x571   :  { %v15955_v62 = vpop.permute.xlu0 %8906  ;;  %18866 = vst [vmem:[#allocation85_spill] sm:$0xff] %v15977_v14  ;;  %v16003_v32 = vmul.f32 0.095048435, %v15657_v25  ;;  %v18876_v50 = vrot.slane %v15953_v39, 2  ;;  %v16026_v43 = vmul.f32 0.097302444, %v18857_v9 }
 0x572   :  { %18861 = vst [vmem:[#allocation87_spill] sm:$0xff] %v15955_v62  ;;  %v15967_v3 = vpop.permute.xlu1 %8496  ;;  %v7192_v62 = vadd.f32 %v7122_v34, %v7012_v21  ;;  %v15988_v21 = vadd.f32 %v7653_v54, %v7589_v37  ;;  %18871 = vst [vmem:[#allocation88_spill] sm:$0xff] %v16000_v7  ;;  %v7254_v37 = vsel %vm4279_vm6, %v7252_v42, %v18873_v30  ;;  %v16011_v34 = vmul.f32 0.097302444, %v15657_v25 }
 0x573   :  { %18864 = vst [vmem:[#allocation98_spill] sm:$0xff] %v15967_v3  ;;  %8386 = vrot.lane.b32.xlu0 %v8331_v18, %s9616_s24  ;;  %v15992_v18 = vmul.f32 0.095048435, %v18857_v9  ;;  %18872 = vst [vmem:[#allocation102_spill] sm:$0xff] %v16003_v32  ;;  %v6741_v36 = vadd.f32 %v18876_v50, %v6609_v31  ;;  %v7384_v30 = vrot.slane %v15878_v55, 7  ;;  %v7541_v31 = vsel %vm1544_vm1, %v15754_v33, %v7540_v38 }
 0x574   :  { %8096 = vrot.lane.b32.xlu1 %v15947_v58, %s9614_s22  ;;  %18868 = vst [vmem:[#allocation46_spill] sm:$0xff] %v15988_v21  ;;  %18875 = vst [vmem:[#allocation73_spill] sm:$0xff] %v16011_v34  ;;  %v7324_v15 = vadd.f32 %v7254_v37, %v7192_v62  ;;  %v16029_v42 = vmul.f32 0.09806559, %v18857_v9  ;;  %v16038_v50 = vmul.f32 0.086542584, %v15988_v21 }
 0x575   :  { %v15994_v3 = vpop.permute.xlu0 %8592  ;;  %v17872_v55 = vrot.slane %v15992_v18, 3  ;;  %v7386_v61 = vsel %vm4670_vm7, %v7384_v30, %v18881_v52  ;;  %v16050_v12 = vmul.f32 0.09140719, %v15988_v21  ;;  %v16053_v29 = vmul.f32 0.095048435, %v15988_v21 }
 0x576   :  { %18869 = vst [vmem:[#allocation91_spill] sm:$0xff] %v15994_v3  ;;  %v16008_v17 = vpop.permute.xlu1 %8688  ;;  %v16014_v3 = vmul.f32 0.09806559, %v15657_v25  ;;  %v18877_v25 = vld [vmem:[#allocation65_spill] sm:$0xff]  ;;  %18878 = vst [vmem:[#allocation109_spill] sm:$0xff] %v16038_v50  ;;  %v7456_v33 = vadd.f32 %v7386_v61, %v7324_v15  ;;  %v16067_v52 = vsel %vm2055_vm2, %v7652_v4, %v7653_v54  ;;  %v16083_v4 = vrot.slane %v6503_v49, 1 }
 0x577   :  { %18874 = vst [vmem:[#allocation113_spill] sm:$0xff] %v16008_v17  ;;  %8482 = vrot.lane.b32.xlu0 %v8187_v6, %s9617_s25  ;;  %v16033_v62 = vmul.f32 %v16021_v46, %v18877_v25  ;;  %v18879_v6 = vld [vmem:[#allocation68_spill] sm:$0xff]  ;;  %18882 = vst [vmem:[#allocation103_spill] sm:$0xff] %v16050_v12  ;;  %v16059_v38 = vmul.f32 0.097302444, %v15988_v21 }
 0x578   :  { %8240 = vrot.lane.b32.xlu1 %v15958_v47, %s9615_s23  ;;  %v7030_v37 = vmul.f32 0.09806559, %v18879_v6  ;;  %18883 = vst [vmem:[#allocation37_spill] sm:$0xff] %v16053_v29  ;;  %v7208_v13 = vmul.f32 0.097302444, %v18879_v6 }
 0x579   :  { %v16044_v17 = vpop.permute.xlu0 %8784  ;;  %v16070_v30 = vmul.f32 0.09806559, %v15988_v21  ;;  %v16074_v15 = vmul.f32 0.09140719, %v18884_v44  ;;  %v18888_v21 = vld [vmem:[#allocation104_spill] sm:$0xff] }
 0x57a   :  { %18880 = vst [vmem:[#allocation44_spill] sm:$0xff] %v16044_v17  ;;  %v16056_v35 = vpop.permute.xlu1 %8904  ;;  %v6873_v17 = vadd.f32 %v17872_v55, %v6741_v36  ;;  %v7103_v61 = vrot.slane %v7030_v37, 5  ;;  %v6502_v2 = vmul.f32 0.086542584, %v18888_v21  ;;  %v18890_v37 = vrot.slane %v16026_v43, 4 }
 0x57b   :  { %18885 = vst [vmem:[#allocation80_spill] sm:$0xff] %v16056_v35  ;;  %8578 = vrot.lane.b32.xlu0 %v15908_v10, %s9610_s0  ;;  %18886 = vst [vmem:[#allocation82_spill] sm:$0xff] %v16070_v30  ;;  %v7340_v10 = vmul.f32 0.095048435, %v18879_v6  ;;  %v16086_v35 = vmul.f32 0.095048435, %v18884_v44 }
 0x57c   :  { %8384 = vrot.lane.b32.xlu1 %v8330_v28, %s9616_s24  ;;  %v7492_v28 = vadd.f32 %v7456_v33, %v15767_v57  ;;  %v7005_v55 = vadd.f32 %v18890_v37, %v6873_v17  ;;  %v7235_v36 = vrot.slane %v7208_v13, 6  ;;  %v6634_v41 = vmul.f32 0.09140719, %v18888_v21 }
 0x57d   :  { %v16080_v23 = vpop.permute.xlu0 %7830  ;;  %v16099_v54 = vmul.f32 0.097302444, %v18884_v44  ;;  %v16102_v26 = vmul.f32 0.095048435, %v18888_v21  ;;  %v18891_v57 = vrot.slane %v16029_v42, 5  ;;  %v7367_v33 = vrot.slane %v7340_v10, 7 }
 0x57e   :  { %18887 = vst [vmem:[#allocation81_spill] sm:$0xff] %v16080_v23  ;;  %v16089_v48 = vpop.permute.xlu1 %8598  ;;  %v6551_v23 = vrot.slane %v6502_v2, 1  ;;  %v16110_v13 = vmul.f32 0.09140719, %v18879_v6  ;;  %v7588_v11 = vadd.f32 %v7541_v31, %v7492_v28 }
 0x57f   :  { %18889 = vst [vmem:[#allocation77_spill] sm:$0xff] %v16089_v48  ;;  %8672 = vrot.lane.b32.xlu0 %v15928_v53, %s9618_s26  ;;  %v7104_v17 = vsel %vm3888_vm5, %v18891_v57, %v7103_v61  ;;  %v6478_v53 = vmul.f32 0.08066656, %v18888_v21  ;;  %v6683_v48 = vrot.slane %v6634_v41, 2  ;;  %v18894_v61 = vrot.slane %v16026_v43, 6 }
 0x580   :  { %8480 = vrot.lane.b32.xlu1 %v15958_v47, %s9617_s25  ;;  %v6553_v49 = vsel %vm1544_vm1, %v6551_v23, %v16083_v4  ;;  %v6898_v47 = vmul.f32 0.097302444, %v18888_v21  ;;  %v16125_v57 = vmul.f32 0.09806559, %v18884_v44  ;;  %v7185_v2 = vadd.f32 %v7104_v17, %v7005_v55 }
 0x581   :  { %v16113_v37 = vpop.permute.xlu0 %7974  ;;  %v7236_v10 = vsel %vm4279_vm6, %v18894_v61, %v7235_v36  ;;  %v6610_v1 = vadd.f32 %v6553_v49, %v6478_v53  ;;  %v18895_v41 = vrot.slane %v16074_v15, 2  ;;  %v6815_v31 = vrot.slane %v16102_v26, 3 }
 0x582   :  { %18892 = vst [vmem:[#allocation47_spill] sm:$0xff] %v16113_v37  ;;  %v16119_v60 = vpop.permute.xlu1 %8790  ;;  %v18896_v36 = vrot.slane %v15992_v18, 7  ;;  %v16140_v49 = vmul.f32 0.086542584, %v18879_v6  ;;  %v7031_v55 = vmul.f32 0.09806559, %v18888_v21 }
 0x583   :  { %18893 = vst [vmem:[#allocation96_spill] sm:$0xff] %v16119_v60  ;;  %7842 = vrot.lane.b32.xlu0 %v15962_v45, %s9611_s1  ;;  %v6685_v37 = vsel %vm2055_vm2, %v6683_v48, %v18895_v41  ;;  %v16146_v61 = vmul.f32 0.08066656, %v18879_v6  ;;  %v6500_v48 = vmul.f32 0.086542584, %v18877_v25  ;;  %v18898_v41 = vrot.slane %v16086_v35, 3 }
 0x584   :  { %8576 = vrot.lane.b32.xlu1 %v15947_v58, %s9610_s0  ;;  %v7368_v28 = vsel %vm4670_vm7, %v18896_v36, %v7367_v33  ;;  %v6742_v53 = vadd.f32 %v6685_v37, %v6610_v1  ;;  %v6947_v23 = vrot.slane %v6898_v47, 4  ;;  %v6476_v33 = vmul.f32 0.08066656, %v18877_v25 }
 0x585   :  { %v16143_v17 = vpop.permute.xlu0 %8118  ;;  %v6817_v58 = vsel %vm2626_vm3, %v6815_v31, %v18898_v41  ;;  %v7317_v36 = vadd.f32 %v7236_v10, %v7185_v2  ;;  %v6226_v31 = vsel %vm6225_vm8, %v18877_v25, 0.0  ;;  %v6227_v41 = vsel %vm6225_vm8, %v18857_v9, 0.0 }
 0x586   :  { %18897 = vst [vmem:[#allocation23_spill] sm:$0xff] %v16143_v17  ;;  %v16152_v60 = vpop.permute.xlu1 %7828  ;;  %v6874_v37 = vadd.f32 %v6817_v58, %v6742_v53  ;;  %v18900_v17 = vrot.slane %v16099_v54, 4  ;;  %v17886_v53 = vrot.slane %v16099_v54, 6  ;;  %v7105_v1 = vrot.slane %v7031_v55, 5 }
 0x587   :  { %18899 = vst [vmem:[#allocation95_spill] sm:$0xff] %v16152_v60  ;;  %7986 = vrot.lane.b32.xlu0 %v15970_v63, %s9613_s21  ;;  %v6228_v60 = vadd.f32 %v6227_v41, %v6226_v31  ;;  %v6548_v2 = vrot.slane %v6500_v48, 1  ;;  %v18904_v59 = vrot.slane %v16125_v57, 5  ;;  %v7237_v30 = vrot.slane %v6898_v47, 6 }
 0x588   :  { %v6949_v45 = vsel %vm3257_vm4, %v6947_v23, %v18900_v17  ;;  %7840 = vrot.lane.b32.xlu1 %v15997_v16, %s9611_s1  ;;  %v18902_v23 = vld [vmem:[#allocation106_spill] sm:$0xff]  ;;  %v6232_v55 = vsel %vm6225_vm8, %v18888_v21, 0.0 }
 0x589   :  { %v7006_v58 = vadd.f32 %v6949_v45, %v6874_v37  ;;  %v16168_v63 = vpop.permute.xlu0 %8262  ;;  %v16172_v17 = vmul.f32 0.086542584, %v18902_v23  ;;  %v7107_v16 = vsel %vm3888_vm5, %v7105_v1, %v18904_v59  ;;  %v6230_v45 = vsel %vm6229_vm9, %v18879_v6, 0.0 }
 0x58a   :  { %18901 = vst [vmem:[#allocation20_spill] sm:$0xff] %v16168_v63  ;;  %v16174_v27 = vpop.permute.xlu1 %7972  ;;  %v6550_v48 = vsel %vm1544_vm1, %v6548_v2, %v15940_v19  ;;  %v16188_v37 = vmul.f32 0.08066656, %v18884_v44  ;;  %v6231_v41 = vadd.f32 %v6230_v45, %v6228_v60  ;;  %v16193_v59 = vmul.f32 0.08066656, %v18902_v23 }
 0x58b   :  { %18903 = vst [vmem:[#allocation28_spill] sm:$0xff] %v16174_v27  ;;  %8130 = vrot.lane.b32.xlu0 %v15977_v14, %s9614_s22  ;;  %v7186_v31 = vadd.f32 %v7107_v16, %v7006_v58  ;;  %v7239_v47 = vsel %vm4279_vm6, %v7237_v30, %v17886_v53  ;;  %v7369_v1 = vrot.slane %v16102_v26, 7  ;;  %v6234_v2 = vsel %vm6225_vm8, %v18884_v44, 0.0 }
 0x58c   :  { %7984 = vrot.lane.b32.xlu1 %v16000_v7, %s9613_s21  ;;  %v16204_v16 = vadd.f32 %v16067_v52, %v7588_v11  ;;  %v6632_v60 = vmul.f32 0.09140719, %v18877_v25  ;;  %v6233_v45 = vadd.f32 %v6232_v55, %v6231_v41  ;;  %v7532_v27 = vrot.slane %v16140_v49, 1 }
 0x58d   :  { %v16201_v10 = vpop.permute.xlu0 %8406  ;;  %v7318_v58 = vadd.f32 %v7239_v47, %v7186_v31  ;;  %v17888_v26 = vrot.slane %v16172_v17, 1  ;;  %v18908_v53 = vrot.slane %v16086_v35, 7  ;;  %v7449_v11 = vadd.f32 %v7368_v28, %v7317_v36  ;;  %v16234_v36 = vld [vmem:[%s17551_s3 + $0x38] sm:$0xff] }
 0x58e   :  { %18905 = vst [vmem:[#allocation26_spill] sm:$0xff] %v16201_v10  ;;  %18906 = vst [vmem:[#allocation34_spill] sm:$0xff] %v16204_v16  ;;  %v16207_v63 = vpop.permute.xlu1 %8116  ;;  %v6608_v52 = vadd.f32 %v6550_v48, %v6476_v33  ;;  %v6235_v31 = vadd.f32 %v6234_v2, %v6233_v45  ;;  %v7643_v55 = vrot.slane %v16188_v37, 2  ;;  %v6236_v41 = vsel %vm6229_vm9, %v18902_v23, 0.0 }
 0x58f   :  { %18907 = vst [vmem:[#allocation101_spill] sm:$0xff] %v16207_v63  ;;  %v7371_v7 = vsel %vm4670_vm7, %v7369_v1, %v18908_v53  ;;  %8274 = vrot.lane.b32.xlu0 %v15980_v24, %s9615_s23  ;;  %v6238_v53 = vsel %vm6225_vm8, %v15061_v22, 0.0  ;;  %v6680_v1 = vrot.slane %v6632_v60, 2  ;;  %v16228_v28 = vmul.f32 0.095048435, %v18877_v25  ;;  %18910 = vst [vmem:[#allocation24_spill] sm:$0xff] %v16234_v36 }
 0x590   :  { %v7450_v10 = vadd.f32 %v7371_v7, %v7318_v58  ;;  %8128 = vrot.lane.b32.xlu1 %v16003_v32, %s9614_s22  ;;  %v6237_v33 = vadd.f32 %v6236_v41, %v6235_v31  ;;  %v16239_v2 = vmul.f32 0.097302444, %v18877_v25  ;;  %v7535_v60 = vsel %vm1544_vm1, %v16083_v4, %v17888_v26 }
 0x591   :  { %v16225_v47 = vpop.permute.xlu0 %8502  ;;  %v6240_v58 = vsel %vm6225_vm8, %v15113_v20, 0.0  ;;  %v7485_v45 = vadd.f32 %v16110_v13, %v7449_v11  ;;  %v18912_v31 = vrot.slane %v15953_v39, 2  ;;  %v16258_v26 = vmul.f32 0.086542584, %v16204_v16 }
 0x592   :  { %18909 = vst [vmem:[#allocation27_spill] sm:$0xff] %v16225_v47  ;;  %v7486_v7 = vadd.f32 %v7450_v10, %v16074_v15  ;;  %v16236_v48 = vpop.permute.xlu1 %8260  ;;  %v6413_v10 = vmul.f32 %v16234_v36, %v18857_v9  ;;  %v6239_v49 = vadd.f32 %v6238_v53, %v6237_v33  ;;  %v16261_v47 = vmul.f32 0.09140719, %v16204_v16 }
 0x593   :  { %18911 = vst [vmem:[#allocation53_spill] sm:$0xff] %v16236_v48  ;;  %8418 = vrot.lane.b32.xlu0 %v15986_v40, %s9616_s24  ;;  %v6682_v41 = vsel %vm2055_vm2, %v6680_v1, %v18912_v31  ;;  %18913 = vst [vmem:[#allocation114_spill] sm:$0xff] %v16258_v26  ;;  %v18915_v40 = vrot.slane %v16193_v59, 2  ;;  %v6812_v1 = vrot.slane %v16228_v28, 3  ;;  %v7028_v53 = vmul.f32 0.09806559, %v18877_v25 }
 0x594   :  { %v7582_v30 = vadd.f32 %v7535_v60, %v7486_v7  ;;  %8272 = vrot.lane.b32.xlu1 %v16011_v34, %s9615_s23  ;;  %18914 = vst [vmem:[#allocation100_spill] sm:$0xff] %v16261_v47  ;;  %v6740_v48 = vadd.f32 %v6682_v41, %v6608_v52  ;;  %v6241_v33 = vadd.f32 %v6240_v58, %v6239_v49  ;;  %v16275_v60 = vld [vmem:[%s17551_s3 + $0x40] sm:$0x3f]  ;;  %v16280_v52 = vmul.f32 0.095048435, %v16204_v16 }
 0x595   :  { %v7645_v13 = vsel %vm2055_vm2, %v7643_v55, %v18915_v40  ;;  %v16266_v11 = vpop.permute.xlu0 %8694  ;;  %18917 = vst [vmem:[#allocation105_spill] sm:$0xff] %v16275_v60  ;;  %v6414_v55 = vmul.f32 %v16275_v60, %v18879_v6  ;;  %v6415_v41 = vmul.f32 %v16021_v46, %v18888_v21  ;;  %v7581_v49 = vadd.f32 %v7532_v27, %v7485_v45 }
 0x596   :  { %18916 = vst [vmem:[#allocation21_spill] sm:$0xff] %v16266_v11  ;;  %v16270_v7 = vadd.f32 %v7645_v13, %v7582_v30  ;;  %v16277_v31 = vpop.permute.xlu1 %8404  ;;  %18919 = vst [vmem:[#allocation65_spill] sm:$0xff] %v16280_v52  ;;  %v6431_v30 = vsel %vm6225_vm8, %v6413_v10, 0.0  ;;  %v18920_v58 = vrot.slane %v15992_v18, 3  ;;  %v6944_v13 = vrot.slane %v16239_v2, 4 }
 0x597   :  { %18918 = vst [vmem:[#allocation111_spill] sm:$0xff] %v16277_v31  ;;  %7814 = vrot.lane.b32.xlu0 %v16038_v50, %s9611_s1  ;;  %v6242_v11 = vsel %vm6229_vm9, %v15107_v8, 0.0  ;;  %v6416_v10 = vmul.f32 %v16234_v36, %v18884_v44  ;;  %v6430_v45 = vsel %vm6225_vm8, %v16033_v62, 0.0  ;;  %v16308_v14 = vsel %vm1544_vm1, %v15940_v19, %v7532_v27 }
 0x598   :  { %v6814_v40 = vsel %vm2626_vm3, %v6812_v1, %v18920_v58  ;;  %8416 = vrot.lane.b32.xlu1 %v16014_v3, %s9616_s24  ;;  %v16297_v63 = vadd.f32 %v6242_v11, %v6241_v33  ;;  %v7100_v1 = vrot.slane %v7028_v53, 5  ;;  %v7364_v58 = vrot.slane %v16228_v28, 7 }
 0x599   :  { %v6872_v31 = vadd.f32 %v6814_v40, %v6740_v48  ;;  %v16303_v50 = vpop.permute.xlu0 %8596  ;;  %v6432_v32 = vadd.f32 %v6431_v30, %v6430_v45  ;;  %v18924_v48 = vrot.slane %v16026_v43, 4  ;;  %v7640_v33 = vrot.slane %v15950_v0, 2 }
 0x59a   :  { %18921 = vst [vmem:[#allocation68_spill] sm:$0xff] %v16297_v63  ;;  %18922 = vst [vmem:[#allocation57_spill] sm:$0xff] %v16303_v50  ;;  %v16310_v3 = vpop.permute.xlu1 %8500  ;;  %v6433_v62 = vsel %vm6229_vm9, %v6414_v55, 0.0  ;;  %v6435_v40 = vsel %vm6225_vm8, %v6415_v41, 0.0  ;;  %v18925_v28 = vrot.slane %v16146_v61, 2  ;;  %v7232_v19 = vrot.slane %v16239_v2, 6 }
 0x59b   :  { %18923 = vst [vmem:[#allocation104_spill] sm:$0xff] %v16310_v3  ;;  %v6946_v11 = vsel %vm3257_vm4, %v6944_v13, %v18924_v48  ;;  %7958 = vrot.lane.b32.xlu0 %v16050_v12, %s9613_s21  ;;  %v6511_v53 = vmul.f32 0.086542584, %v15116_v51  ;;  %v6434_v30 = vadd.f32 %v6433_v62, %v6432_v32  ;;  %v6417_v55 = vmul.f32 %v16275_v60, %v18902_v23 }
 0x59c   :  { %v16322_v27 = vadd.f32 %v18925_v28, %v7581_v49  ;;  %7812 = vrot.lane.b32.xlu1 %v16258_v26, %s9611_s1  ;;  %v7004_v0 = vadd.f32 %v6946_v11, %v6872_v31  ;;  %v6418_v41 = vmul.f32 %v16021_v46, %v15061_v22  ;;  %v6437_v13 = vsel %vm6225_vm8, %v6416_v10, 0.0 }
 0x59d   :  { %v16333_v45 = vpop.permute.xlu0 %8788  ;;  %v16336_v49 = vmul.f32 0.097302444, %v16204_v16  ;;  %v16339_v2 = vmul.f32 0.09806559, %v16204_v16  ;;  %v18927_v32 = vrot.slane %v15992_v18, 7  ;;  %v6436_v48 = vadd.f32 %v6435_v40, %v6434_v30  ;;  %v16379_v30 = vld [vmem:[%s17551_s3] sm:$0xff] }
 0x59e   :  { %18926 = vst [vmem:[#allocation106_spill] sm:$0xff] %v16333_v45  ;;  %v16344_v11 = vpop.permute.xlu1 %8692  ;;  %v18929_v62 = vrot.slane %v16029_v42, 5  ;;  %v18930_v10 = vrot.slane %v16026_v43, 6  ;;  %v18931_v45 = vrot.slane %v16146_v61, 2  ;;  %v6419_v18 = vmul.f32 %v16234_v36, %v15113_v20 }
 0x59f   :  { %v7366_v31 = vsel %vm4670_vm7, %v7364_v58, %v18927_v32  ;;  %18928 = vst [vmem:[#allocation115_spill] sm:$0xff] %v16344_v11  ;;  %8102 = vrot.lane.b32.xlu0 %v16053_v29, %s9614_s22  ;;  %v16362_v58 = vmul.f32 0.086542584, %v16322_v27  ;;  %v16365_v42 = vmul.f32 0.095048435, %v16322_v27  ;;  %v6439_v40 = vsel %vm6229_vm9, %v6417_v55, 0.0 }
 0x5a0   :  { %v7102_v46 = vsel %vm3888_vm5, %v7100_v1, %v18929_v62  ;;  %v7234_v28 = vsel %vm4279_vm6, %v7232_v19, %v18930_v10  ;;  %v16355_v50 = vsel %vm2055_vm2, %v7640_v33, %v18931_v45  ;;  %v16368_v43 = vmul.f32 0.09140719, %v16322_v27  ;;  %7956 = vrot.lane.b32.xlu1 %v16261_v47, %s9613_s21  ;;  %v16406_v10 = vld [vmem:[%s17551_s3 + $0x8] sm:$0xff] }
 0x5a1   :  { %v6438_v1 = vadd.f32 %v6437_v13, %v6436_v48  ;;  %v7184_v61 = vadd.f32 %v7102_v46, %v7004_v0  ;;  %v16372_v33 = vrot.slane %v6511_v53, 1  ;;  %v6441_v19 = vsel %vm6225_vm8, %v6418_v41, 0.0  ;;  %v16381_v45 = vpop.permute.xlu0 %7834 }
 0x5a2   :  { %18932 = vst [vmem:[#allocation116_spill] sm:$0xff] %v16381_v45  ;;  %v16384_v32 = vmul.f32 0.097302444, %v16322_v27  ;;  %v16387_v13 = vmul.f32 0.08066656, %v15116_v51  ;;  %v16392_v55 = vpop.permute.xlu1 %8908  ;;  %v6420_v62 = vmul.f32 %v16275_v60, %v15107_v8  ;;  %v6443_v46 = vsel %vm6225_vm8, %v6419_v18, 0.0 }
 0x5a3   :  { %v16390_v53 = vmul.f32 0.09140719, %v15116_v51  ;;  %v6440_v0 = vadd.f32 %v6439_v40, %v6438_v1  ;;  %18933 = vst [vmem:[#allocation117_spill] sm:$0xff] %v16392_v55  ;;  %v16395_v41 = vmul.f32 0.095048435, %v15116_v51  ;;  %8246 = vrot.lane.b32.xlu0 %v16059_v38, %s9615_s23  ;;  %v6276_v45 = vmul.f32 %v16379_v30, %v18877_v25 }
 0x5a4   :  { %v16398_v48 = vmul.f32 0.097302444, %v15116_v51  ;;  %v16411_v1 = vmul.f32 0.09806559, %v16322_v27  ;;  %v6277_v55 = vmul.f32 %v16406_v10, %v18857_v9  ;;  %8100 = vrot.lane.b32.xlu1 %v16280_v52, %s9614_s22  ;;  %v7316_v18 = vadd.f32 %v7234_v28, %v7184_v61 }
 0x5a5   :  { %v6442_v40 = vadd.f32 %v6441_v19, %v6440_v0  ;;  %v6619_v11 = vadd.f32 %v16372_v33, %v16387_v13  ;;  %v16422_v3 = vmul.f32 0.09806559, %v15116_v51  ;;  %v7045_v16 = vmul.f32 0.09806559, %v15119_v56  ;;  %v16428_v19 = vld [vmem:[%s17551_s3 + $0x10] sm:$0x3f]  ;;  %v16430_v0 = vpop.permute.xlu0 %7978 }
 0x5a6   :  { %18934 = vst [vmem:[#allocation118_spill] sm:$0xff] %v16430_v0  ;;  %v6510_v26 = vmul.f32 0.086542584, %v15092_v5  ;;  %v6278_v28 = vmul.f32 %v16428_v19, %v18879_v6  ;;  %v6279_v61 = vmul.f32 %v16379_v30, %v18888_v21  ;;  %v16437_v24 = vpop.permute.xlu1 %8602  ;;  %v6696_v34 = vrot.slane %v16390_v53, 2  ;;  %v18936_v0 = vld [vmem:[#allocation82_spill] sm:$0xff] }
 0x5a7   :  { %v6444_v12 = vadd.f32 %v6443_v46, %v6442_v40  ;;  %18935 = vst [vmem:[#allocation119_spill] sm:$0xff] %v16437_v24  ;;  %v6445_v52 = vsel %vm6229_vm9, %v6420_v62, 0.0  ;;  %8390 = vrot.lane.b32.xlu0 %v18936_v0, %s9616_s24  ;;  %v6280_v40 = vmul.f32 %v16406_v10, %v18884_v44  ;;  %v6294_v51 = vsel %vm6225_vm8, %v6276_v45, 0.0 }
 0x5a8   :  { %v6295_v24 = vsel %vm6225_vm8, %v6277_v55, 0.0  ;;  %8244 = vrot.lane.b32.xlu1 %v16336_v49, %s9615_s23  ;;  %v6751_v47 = vadd.f32 %v6696_v34, %v6619_v11  ;;  %v7128_v60 = vrot.slane %v7045_v16, 5  ;;  %v7448_v0 = vadd.f32 %v7366_v31, %v7316_v18 }
 0x5a9   :  { %v16445_v46 = vadd.f32 %v6445_v52, %v6444_v12  ;;  %v6296_v62 = vadd.f32 %v6295_v24, %v6294_v51  ;;  %v16454_v36 = vpop.permute.xlu0 %8122  ;;  %v6563_v12 = vrot.slane %v6510_v26, 1  ;;  %v6297_v52 = vsel %vm6229_vm9, %v6278_v28, 0.0 }
 0x5aa   :  { %18938 = vst [vmem:[#allocation120_spill] sm:$0xff] %v16454_v36  ;;  %v16458_v63 = vpop.permute.xlu1 %7832  ;;  %v7213_v45 = vmul.f32 0.097302444, %v15119_v56  ;;  %v16462_v55 = vmul.f32 0.095048435, %v15119_v56  ;;  %v6281_v24 = vmul.f32 %v16428_v19, %v18902_v23  ;;  %v6282_v16 = vmul.f32 %v16379_v30, %v15061_v22 }
 0x5ab   :  { %18937 = vst [vmem:[#allocation82_spill] sm:$0xff] %v16445_v46  ;;  %v6299_v46 = vsel %vm6225_vm8, %v6279_v61, 0.0  ;;  %18939 = vst [vmem:[#allocation121_spill] sm:$0xff] %v16458_v63  ;;  %v6642_v11 = vmul.f32 0.09140719, %v15092_v5  ;;  %v6298_v29 = vadd.f32 %v6297_v52, %v6296_v62  ;;  %8486 = vrot.lane.b32.xlu0 %v16059_v38, %s9617_s25  ;;  %v6565_v51 = vsel %vm1544_vm1, %v6563_v12, %v16372_v33 }
 0x5ac   :  { %v6301_v26 = vsel %vm6225_vm8, %v6280_v40, 0.0  ;;  %8388 = vrot.lane.b32.xlu1 %v16339_v2, %s9616_s24  ;;  %v18940_v31 = vrot.slane %v16395_v41, 3  ;;  %v6486_v38 = vmul.f32 0.08066656, %v15092_v5  ;;  %v7484_v12 = vadd.f32 %v7448_v0, %v15953_v39  ;;  %v16533_v40 = vld [vmem:[%s17551_s3 + $0x28] sm:$0x3f] }
 0x5ad   :  { %v6300_v61 = vadd.f32 %v6299_v46, %v6298_v29  ;;  %v16480_v62 = vpop.permute.xlu0 %8266  ;;  %v18942_v52 = vrot.slane %v16422_v3, 5  ;;  %v6283_v2 = vmul.f32 %v16406_v10, %v15113_v20  ;;  %v16492_v28 = vmul.f32 0.095048435, %v15092_v5 }
 0x5ae   :  { %v6883_v18 = vadd.f32 %v18940_v31, %v6751_v47  ;;  %18941 = vst [vmem:[#allocation122_spill] sm:$0xff] %v16480_v62  ;;  %v16489_v63 = vpop.permute.xlu1 %7976  ;;  %v6618_v47 = vadd.f32 %v6565_v51, %v6486_v38  ;;  %v6695_v31 = vrot.slane %v6642_v11, 2  ;;  %v7260_v39 = vrot.slane %v7213_v45, 6  ;;  %v16510_v45 = vld [vmem:[%s17551_s3 + $0x18] sm:$0xff] }
 0x5af   :  { %v7129_v36 = vsel %vm3888_vm5, %v18942_v52, %v7128_v60  ;;  %18943 = vst [vmem:[#allocation123_spill] sm:$0xff] %v16489_v63  ;;  %v6302_v29 = vadd.f32 %v6301_v26, %v6300_v61  ;;  %7798 = vrot.lane.b32.xlu0 %v16362_v58, %s9611_s1  ;;  %v7392_v46 = vrot.slane %v16462_v55, 7  ;;  %v6303_v60 = vsel %vm6229_vm9, %v6281_v24, 0.0  ;;  %v16515_v55 = vld [vmem:[%s17551_s3 + $0x20] sm:$0xff] }
 0x5b0   :  { %v6305_v0 = vsel %vm6225_vm8, %v6282_v16, 0.0  ;;  %8484 = vrot.lane.b32.xlu1 %v16336_v49, %s9617_s25  ;;  %v18944_v51 = vrot.slane %v16398_v48, 4  ;;  %v16504_v38 = vmul.f32 0.09140719, %v15119_v56  ;;  %v6697_v26 = vsel %vm2055_vm2, %v6695_v31, %v6696_v34 }
 0x5b1   :  { %v6304_v61 = vadd.f32 %v6303_v60, %v6302_v29  ;;  %v16517_v49 = vpop.permute.xlu0 %8410  ;;  %v6284_v24 = vmul.f32 %v16428_v19, %v15107_v8  ;;  %v6307_v16 = vsel %vm6225_vm8, %v6283_v2, 0.0  ;;  %v6344_v34 = vmul.f32 %v16510_v45, %v18877_v25 }
 0x5b2   :  { %v7015_v11 = vadd.f32 %v18944_v51, %v6883_v18  ;;  %18945 = vst [vmem:[#allocation124_spill] sm:$0xff] %v16517_v49  ;;  %v6345_v18 = vmul.f32 %v16515_v55, %v18857_v9  ;;  %v16526_v52 = vpop.permute.xlu1 %8120  ;;  %v7580_v31 = vadd.f32 %v16308_v14, %v7484_v12  ;;  %v6750_v29 = vadd.f32 %v6697_v26, %v6618_v47 }
 0x5b3   :  { %18946 = vst [vmem:[#allocation125_spill] sm:$0xff] %v16526_v52  ;;  %v6827_v60 = vrot.slane %v16492_v28, 3  ;;  %v6306_v51 = vadd.f32 %v6305_v0, %v6304_v61  ;;  %7942 = vrot.lane.b32.xlu0 %v16368_v43, %s9613_s21  ;;  %v18947_v25 = vrot.slane %v16398_v48, 6  ;;  %v16541_v2 = vmul.f32 0.097302444, %v15092_v5 }
 0x5b4   :  { %v6346_v14 = vmul.f32 %v16533_v40, %v18879_v6  ;;  %v6347_v12 = vmul.f32 %v16510_v45, %v18888_v21  ;;  %8566 = vrot.lane.b32.xlu1 %v16365_v42, %s9610_s0  ;;  %v7195_v47 = vadd.f32 %v7129_v36, %v7015_v11  ;;  %v16550_v0 = vmul.f32 0.086542584, %v15119_v56 }
 0x5b5   :  { %v7261_v9 = vsel %vm4279_vm6, %v18947_v25, %v7260_v39  ;;  %v18948_v26 = vrot.slane %v16395_v41, 3  ;;  %v6308_v61 = vadd.f32 %v6307_v16, %v6306_v51  ;;  %v16555_v25 = vpop.permute.xlu0 %8506  ;;  %v6309_v49 = vsel %vm6229_vm9, %v6284_v24, 0.0 }
 0x5b6   :  { %18949 = vst [vmem:[#allocation126_spill] sm:$0xff] %v16555_v25  ;;  %v6348_v6 = vmul.f32 %v16515_v55, %v18884_v44  ;;  %v6362_v21 = vsel %vm6225_vm8, %v6344_v34, 0.0  ;;  %v6363_v62 = vsel %vm6225_vm8, %v6345_v18, 0.0  ;;  %v16562_v36 = vpop.permute.xlu1 %8264  ;;  %v16565_v11 = vadd.f32 %v16355_v50, %v7580_v31 }
 0x5b7   :  { %v6829_v39 = vsel %vm2626_vm3, %v6827_v60, %v18948_v26  ;;  %v16567_v63 = vadd.f32 %v6309_v49, %v6308_v61  ;;  %v6364_v16 = vadd.f32 %v6363_v62, %v6362_v21  ;;  %8086 = vrot.lane.b32.xlu0 %v16365_v42, %s9614_s22  ;;  %v6959_v24 = vrot.slane %v16541_v2, 4 }
 0x5b8   :  { %v6882_v52 = vadd.f32 %v6829_v39, %v6750_v29  ;;  %v7043_v44 = vmul.f32 0.09806559, %v15092_v5  ;;  %v6365_v34 = vsel %vm6229_vm9, %v6346_v14, 0.0  ;;  %v6367_v18 = vsel %vm6225_vm8, %v6347_v12, 0.0  ;;  %8758 = vrot.lane.b32.xlu1 %v16362_v58, %s9612_s20 }
 0x5b9   :  { %v7327_v50 = vadd.f32 %v7261_v9, %v7195_v47  ;;  %v18950_v31 = vrot.slane %v16395_v41, 7  ;;  %v16581_v62 = vmul.f32 0.08066656, %v15119_v56  ;;  %v6366_v42 = vadd.f32 %v6365_v34, %v6364_v16  ;;  %v16583_v29 = vpop.permute.xlu0 %8600 }
 0x5ba   :  { %18951 = vst [vmem:[#allocation127_spill] sm:$0xff] %v16583_v29  ;;  %v18952_v60 = vrot.slane %v16398_v48, 4  ;;  %v6349_v14 = vmul.f32 %v16533_v40, %v18902_v23  ;;  %v6350_v58 = vmul.f32 %v16510_v45, %v15061_v22  ;;  %v6369_v9 = vsel %vm6225_vm8, %v6348_v6, 0.0  ;;  %v16593_v12 = vpop.permute.xlu1 %8408 }
 0x5bb   :  { %v7393_v49 = vsel %vm4670_vm7, %v18950_v31, %v7392_v46  ;;  %v16596_v46 = vmul.f32 0.086542584, %v16565_v11  ;;  %v6368_v39 = vadd.f32 %v6367_v18, %v6366_v42  ;;  %8230 = vrot.lane.b32.xlu0 %v16384_v32, %s9615_s23  ;;  %v16602_v61 = vmul.f32 0.09140719, %v16565_v11 }
 0x5bc   :  { %v6961_v51 = vsel %vm3257_vm4, %v6959_v24, %v18952_v60  ;;  %v16605_v21 = vmul.f32 0.095048435, %v16565_v11  ;;  %v7125_v16 = vrot.slane %v7043_v44, 5  ;;  %v6351_v6 = vmul.f32 %v16515_v55, %v15113_v20 }
 0x5bd   :  { %v7014_v26 = vadd.f32 %v6961_v51, %v6882_v52  ;;  %7796 = vrot.lane.b32.xlu1 %v16596_v46, %s9611_s1  ;;  %v16612_v24 = vmul.f32 0.097302444, %v16565_v11  ;;  %v7459_v52 = vadd.f32 %v7393_v49, %v7327_v50  ;;  %v7257_v34 = vrot.slane %v16541_v2, 6  ;;  %v16615_v31 = vpop.permute.xlu0 %7838 }
 0x5be   :  { %v6370_v18 = vadd.f32 %v6369_v9, %v6368_v39  ;;  %18953 = vst [vmem:[#allocation128_spill] sm:$0xff] %v16615_v31  ;;  %v18954_v42 = vrot.slane %v16422_v3, 5  ;;  %v6371_v44 = vsel %vm6229_vm9, %v6349_v14, 0.0  ;;  %v6373_v51 = vsel %vm6225_vm8, %v6350_v58, 0.0  ;;  %v16623_v25 = vpop.permute.xlu1 %8504 }
 0x5bf   :  { %v6505_v47 = vmul.f32 0.086542584, %v15113_v20  ;;  %v6352_v50 = vmul.f32 %v16533_v40, %v15107_v8  ;;  %v16628_v49 = vmul.f32 0.09140719, %v15113_v20  ;;  %8374 = vrot.lane.b32.xlu0 %v16411_v1, %s9616_s24  ;;  %v6375_v3 = vsel %vm6225_vm8, %v6351_v6, 0.0 }
 0x5c0   :  { %v7127_v60 = vsel %vm3888_vm5, %v7125_v16, %v18954_v42  ;;  %v6372_v2 = vadd.f32 %v6371_v44, %v6370_v18  ;;  %v16634_v14 = vmul.f32 0.08066656, %v15113_v20  ;;  %v16639_v9 = vmul.f32 0.095048435, %v15113_v20 }
 0x5c1   :  { %v7194_v29 = vadd.f32 %v7127_v60, %v7014_v26  ;;  %v16636_v58 = vrot.slane %v6505_v47, 1  ;;  %7940 = vrot.lane.b32.xlu1 %v16602_v61, %s9613_s21  ;;  %v7495_v26 = vadd.f32 %v16504_v38, %v7459_v52  ;;  %v7389_v39 = vrot.slane %v16492_v28, 7  ;;  %v16648_v6 = vpop.permute.xlu0 %7982 }
 0x5c2   :  { %v6374_v16 = vadd.f32 %v6373_v51, %v6372_v2  ;;  %v16646_v1 = vmul.f32 0.097302444, %v15113_v20  ;;  %18955 = vst [vmem:[#allocation129_spill] sm:$0xff] %v16648_v6  ;;  %v18956_v18 = vrot.slane %v16398_v48, 6  ;;  %v17906_v60 = vrot.slane %v16628_v49, 2  ;;  %v16659_v38 = vpop.permute.xlu1 %8696 }
 0x5c3   :  { %v6613_v42 = vadd.f32 %v16636_v58, %v16634_v14  ;;  %v16657_v44 = vmul.f32 0.09806559, %v15113_v20  ;;  %18957 = vst [vmem:[#allocation130_spill] sm:$0xff] %v16659_v38  ;;  %v6611_v52 = vadd.f32 %v16083_v4, %v16188_v37  ;;  %v6377_v2 = vsel %vm6229_vm9, %v6352_v50, 0.0  ;;  %8470 = vrot.lane.b32.xlu0 %v16384_v32, %s9617_s25 }
 0x5c4   :  { %v7259_v47 = vsel %vm4279_vm6, %v7257_v34, %v18956_v18  ;;  %v6376_v51 = vadd.f32 %v6375_v3, %v6374_v16  ;;  %v17907_v34 = vrot.slane %v16639_v9, 3  ;;  %v7036_v20 = vmul.f32 0.09806559, %v15107_v8 }
 0x5c5   :  { %v7326_v28 = vadd.f32 %v7259_v47, %v7194_v29  ;;  %v6745_v48 = vadd.f32 %v17906_v60, %v6613_v42  ;;  %8084 = vrot.lane.b32.xlu1 %v16605_v21, %s9614_s22  ;;  %v7210_v37 = vmul.f32 0.097302444, %v15107_v8  ;;  %v16678_v50 = vpop.permute.xlu0 %8126  ;;  %v7342_v47 = vmul.f32 0.095048435, %v15107_v8 }
 0x5c6   :  { %v16673_v29 = vadd.f32 %v6377_v2, %v6376_v51  ;;  %18958 = vst [vmem:[#allocation131_spill] sm:$0xff] %v16678_v50  ;;  %v7113_v16 = vrot.slane %v7036_v20, 5  ;;  %v16684_v60 = vpop.permute.xlu1 %7836  ;;  %v18960_v51 = vrot.slane %v16550_v0, 1  ;;  %v18961_v18 = vrot.slane %v16395_v41, 7 }
 0x5c7   :  { %v6877_v3 = vadd.f32 %v17907_v34, %v6745_v48  ;;  %18959 = vst [vmem:[#allocation132_spill] sm:$0xff] %v16684_v60  ;;  %v18962_v32 = vrot.slane %v16074_v15, 2  ;;  %v7245_v6 = vrot.slane %v7210_v37, 6  ;;  %8662 = vrot.lane.b32.xlu0 %v16368_v43, %s9618_s26  ;;  %v16696_v48 = vmul.f32 0.09806559, %v18902_v23  ;;  %v19018_v60 = vld [vmem:[#allocation105_spill] sm:$0xff] }
 0x5c8   :  { %v7591_v2 = vadd.f32 %v18960_v51, %v7495_v26  ;;  %v7391_v4 = vsel %vm4670_vm7, %v7389_v39, %v18961_v18  ;;  %v18963_v20 = vrot.slane %v16646_v1, 4  ;;  %v18964_v42 = vrot.slane %v16657_v44, 5 }
 0x5c9   :  { %v6743_v50 = vadd.f32 %v18962_v32, %v6611_v52  ;;  %v7377_v41 = vrot.slane %v7342_v47, 7  ;;  %8228 = vrot.lane.b32.xlu1 %v16612_v24, %s9615_s23  ;;  %v16706_v15 = vmul.f32 0.08066656, %v16322_v27  ;;  %v7458_v39 = vadd.f32 %v7391_v4, %v7326_v28  ;;  %v16711_v18 = vpop.permute.xlu0 %8270 }
 0x5ca   :  { %v7009_v34 = vadd.f32 %v18963_v20, %v6877_v3  ;;  %v7114_v26 = vsel %vm3888_vm5, %v18964_v42, %v7113_v16  ;;  %v18965_v43 = vrot.slane %v16646_v1, 6  ;;  %18966 = vst [vmem:[#allocation133_spill] sm:$0xff] %v16711_v18  ;;  %v7656_v37 = vrot.slane %v16581_v62, 2  ;;  %v16721_v42 = vpop.permute.xlu1 %7980 }
 0x5cb   :  { %v18967_v32 = vmov %v18960_v51  ;;  %v18968_v47 = vrot.slane %v16639_v9, 7  ;;  %18969 = vst [vmem:[#allocation134_spill] sm:$0xff] %v16721_v42  ;;  %v8324_v28 = vmul.f32 0.09806559, %v16565_v11  ;;  %v18970_v4 = vrot.slane %v16086_v35, 3  ;;  %8878 = vrot.lane.b32.xlu0 %v16706_v15, %s9619_s27 }
 0x5cc   :  { %v7246_v52 = vsel %vm4279_vm6, %v18965_v43, %v7245_v6  ;;  %v7543_v3 = vsel %vm1544_vm1, %v16372_v33, %v18967_v32  ;;  %v7189_v16 = vadd.f32 %v7114_v26, %v7009_v34  ;;  %v7655_v6 = vrot.slane %v16387_v13, 2 }
 0x5cd   :  { %v7378_v27 = vsel %vm4670_vm7, %v18968_v47, %v7377_v41  ;;  %v6875_v51 = vadd.f32 %v18970_v4, %v6743_v50  ;;  %v7510_v62 = vmul.f32 0.086542584, %v15107_v8  ;;  %v16730_v33 = vadd.f32 %v7656_v37, %v7591_v2  ;;  %8372 = vrot.lane.b32.xlu1 %v8324_v28, %s9616_s24  ;;  %v16741_v43 = vpop.permute.xlu0 %8414 }
 0x5ce   :  { %v7108_v0 = vrot.slane %v16696_v48, 5  ;;  %v16734_v34 = vmul.f32 0.097302444, %v18902_v23  ;;  %v7321_v20 = vadd.f32 %v7246_v52, %v7189_v16  ;;  %v7494_v13 = vadd.f32 %v7458_v39, %v16390_v53  ;;  %18971 = vst [vmem:[#allocation135_spill] sm:$0xff] %v16741_v43  ;;  %v16746_v52 = vpop.permute.xlu1 %8124 }
 0x5cf   :  { %v7474_v26 = vmul.f32 0.09140719, %v15107_v8  ;;  %v7606_v50 = vmul.f32 0.08066656, %v15107_v8  ;;  %v6504_v41 = vmul.f32 0.086542584, %v15061_v22  ;;  %8564 = vrot.lane.b32.xlu0 %v16605_v21, %s9610_s0 }
 0x5d0   :  { %v7453_v2 = vadd.f32 %v7378_v27, %v7321_v20  ;;  %v6636_v32 = vmul.f32 0.09140719, %v15061_v22  ;;  %v6768_v48 = vmul.f32 0.095048435, %v15061_v22  ;;  %v6900_v47 = vmul.f32 0.097302444, %v15061_v22 }
 0x5d1   :  { %18972 = vst [vmem:[#allocation136_spill] sm:$0xff] %v16746_v52  ;;  %v18973_v16 = vrot.slane %v16099_v54, 4  ;;  %v7536_v39 = vrot.slane %v7510_v62, 1  ;;  %v6554_v28 = vrot.slane %v6504_v41, 1  ;;  %v7034_v8 = vmul.f32 0.09806559, %v15061_v22  ;;  %8468 = vrot.lane.b32.xlu1 %v16612_v24, %s9617_s25  ;;  %v16758_v41 = vpop.permute.xlu0 %8510 }
 0x5d2   :  { %v7489_v4 = vadd.f32 %v7474_v26, %v7453_v2  ;;  %v6480_v27 = vmul.f32 0.08066656, %v15061_v22  ;;  %v6686_v20 = vrot.slane %v6636_v32, 2  ;;  %v6818_v43 = vrot.slane %v6768_v48, 3  ;;  %18974 = vst [vmem:[#allocation137_spill] sm:$0xff] %v16758_v41  ;;  %v16766_v32 = vpop.permute.xlu1 %8268 }
 0x5d3   :  { %v7007_v53 = vadd.f32 %v18973_v16, %v6875_v51  ;;  %v7647_v18 = vrot.slane %v7606_v50, 2  ;;  %v6556_v31 = vsel %vm1544_vm1, %v6554_v28, %v16636_v58  ;;  %v6950_v51 = vrot.slane %v6900_v47, 4  ;;  %18977 = vst [vmem:[#allocation138_spill] sm:$0xff] %v16766_v32  ;;  %8756 = vrot.lane.b32.xlu0 %v16596_v46, %s9612_s20 }
 0x5d4   :  { %v7110_v62 = vrot.slane %v7034_v8, 5  ;;  %v7585_v16 = vadd.f32 %v7536_v39, %v7489_v4  ;;  %v6612_v52 = vadd.f32 %v6556_v31, %v6480_v27  ;;  %v18975_v21 = vrot.slane %v16628_v49, 2 }
 0x5d5   :  { %v18976_v22 = vrot.slane %v16639_v9, 3  ;;  %v7590_v24 = vadd.f32 %v7543_v3, %v7494_v13  ;;  %v7657_v50 = vsel %vm2055_vm2, %v7655_v6, %v7656_v37  ;;  %v18978_v28 = vrot.slane %v16646_v1, 4  ;;  %8660 = vrot.lane.b32.xlu1 %v16602_v61, %s9618_s26 }
 0x5d6   :  { %v6688_v26 = vsel %vm2055_vm2, %v6686_v20, %v18975_v21  ;;  %v18979_v4 = vrot.slane %v16657_v44, 5  ;;  %v7240_v27 = vrot.slane %v16734_v34, 6  ;;  %v16779_v20 = vadd.f32 %v7647_v18, %v7585_v16  ;;  %v16794_v21 = vpop.permute.xlu1 %8412 }
 0x5d7   :  { %v6820_v2 = vsel %vm2626_vm3, %v6818_v43, %v18976_v22  ;;  %v6952_v8 = vsel %vm3257_vm4, %v6950_v51, %v18978_v28  ;;  %v7341_v43 = vmul.f32 0.095048435, %v18902_v23  ;;  %v6744_v3 = vadd.f32 %v6688_v26, %v6612_v52  ;;  %v16789_v51 = vpop.permute.xlu0 %7810  ;;  %18982 = vst [vmem:[#allocation140_spill] sm:$0xff] %v16794_v21 }
 0x5d8   :  { %v7112_v31 = vsel %vm3888_vm5, %v7110_v62, %v18979_v4  ;;  %v18980_v37 = vrot.slane %v16125_v57, 5  ;;  %v7242_v44 = vrot.slane %v6900_v47, 6  ;;  %v7537_v13 = vsel %vm1544_vm1, %v16636_v58, %v7536_v39  ;;  %18981 = vst [vmem:[#allocation139_spill] sm:$0xff] %v16789_v51 }
 0x5d9   :  { %v7646_v46 = vrot.slane %v16634_v14, 2  ;;  %v16792_v34 = vmul.f32 0.086542584, %v16730_v33  ;;  %v6876_v52 = vadd.f32 %v6820_v2, %v6744_v3  ;;  %v7374_v16 = vrot.slane %v6768_v48, 7 }
 0x5da   :  { %v7109_v6 = vsel %vm3888_vm5, %v18980_v37, %v7108_v0  ;;  %v16797_v57 = vmul.f32 0.08066656, %v16565_v11  ;;  %v16799_v61 = vadd.f32 %v7657_v50, %v7590_v24  ;;  %v18983_v0 = vrot.slane %v16646_v1, 6 }
 0x5db   :  { %v7187_v62 = vadd.f32 %v7109_v6, %v7007_v53  ;;  %7818 = vrot.lane.b32.xlu0 %v16792_v34, %s9611_s1  ;;  %v7008_v14 = vadd.f32 %v6952_v8, %v6876_v52  ;;  %v18984_v47 = vrot.slane %v16639_v9, 7  ;;  %v7648_v48 = vsel %vm2055_vm2, %v7646_v46, %v7647_v18  ;;  %v16815_v26 = vpop.permute.xlu0 %7954  ;;  %v16820_v9 = vpop.permute.xlu1 %8508 }
 0x5dc   :  { %v7244_v58 = vsel %vm4279_vm6, %v7242_v44, %v18983_v0  ;;  %8876 = vrot.lane.b32.xlu1 %v16797_v57, %s9619_s27  ;;  %v18985_v11 = vrot.slane %v16099_v54, 6  ;;  %v7372_v1 = vrot.slane %v7341_v43, 7  ;;  %18986 = vst [vmem:[#allocation141_spill] sm:$0xff] %v16815_v26  ;;  %v16818_v22 = vmul.f32 0.09140719, %v16730_v33  ;;  %18987 = vst [vmem:[#allocation142_spill] sm:$0xff] %v16820_v9 }
 0x5dd   :  { %v7376_v53 = vsel %vm4670_vm7, %v7374_v16, %v18984_v47  ;;  %v7188_v24 = vadd.f32 %v7112_v31, %v7008_v14  ;;  %v16823_v50 = vmul.f32 0.086542584, %v16799_v61  ;;  %v18988_v54 = vrot.slane %v16086_v35, 7 }
 0x5de   :  { %v7241_v39 = vsel %vm4279_vm6, %v18985_v11, %v7240_v27  ;;  %v16835_v4 = vmul.f32 0.095048435, %v16730_v33  ;;  %v16840_v3 = vmul.f32 0.09140719, %v16799_v61  ;;  %v7473_v37 = vmul.f32 0.09140719, %v18902_v23 }
 0x5df   :  { %v7319_v2 = vadd.f32 %v7241_v39, %v7187_v62  ;;  %7962 = vrot.lane.b32.xlu0 %v16818_v22, %s9613_s21  ;;  %v7320_v18 = vadd.f32 %v7244_v58, %v7188_v24  ;;  %v7373_v28 = vsel %vm4670_vm7, %v18988_v54, %v7372_v1  ;;  %v16832_v8 = vpop.permute.xlu0 %8098  ;;  %v16837_v43 = vpop.permute.xlu1 %7808  ;;  %v8191_v44 = vmul.f32 0.097302444, %v16730_v33 }
 0x5e0   :  { %7816 = vrot.lane.b32.xlu1 %v16823_v50, %s9611_s1  ;;  %18989 = vst [vmem:[#allocation143_spill] sm:$0xff] %v16832_v8  ;;  %v16854_v16 = vmul.f32 0.095048435, %v16799_v61  ;;  %v18992_v58 = vrot.slane %v16172_v17, 1  ;;  %v8190_v47 = vmul.f32 0.097302444, %v16799_v61 }
 0x5e1   :  { %v7451_v31 = vadd.f32 %v7373_v28, %v7319_v2  ;;  %v7452_v27 = vadd.f32 %v7376_v53, %v7320_v18  ;;  %v8334_v1 = vmul.f32 0.09806559, %v16799_v61 }
 0x5e3   :  { %8106 = vrot.lane.b32.xlu0 %v16835_v4, %s9614_s22  ;;  %v7488_v35 = vadd.f32 %v7452_v27, %v16628_v49  ;;  %v16848_v6 = vpop.permute.xlu0 %8242  ;;  %v7487_v46 = vadd.f32 %v7473_v37, %v7451_v31  ;;  %v16851_v52 = vpop.permute.xlu1 %7952  ;;  %v8335_v49 = vmul.f32 0.09806559, %v16730_v33 }
 0x5e4   :  { %7960 = vrot.lane.b32.xlu1 %v16840_v3, %s9613_s21  ;;  %18990 = vst [vmem:[#allocation144_spill] sm:$0xff] %v16848_v6 }
 0x5e5   :  { %v7584_v62 = vadd.f32 %v7537_v13, %v7488_v35  ;;  %v7583_v14 = vadd.f32 %v18992_v58, %v7487_v46 }
 0x5e7   :  { %8250 = vrot.lane.b32.xlu0 %v8191_v44, %s9615_s23  ;;  %v16857_v0 = vadd.f32 %v7648_v48, %v7584_v62  ;;  %v16861_v23 = vpop.permute.xlu0 %8386  ;;  %v16866_v13 = vpop.permute.xlu1 %8096  ;;  %v18994_v48 = vrot.slane %v16193_v59, 2 }
 0x5e8   :  { %8104 = vrot.lane.b32.xlu1 %v16854_v16, %s9614_s22  ;;  %18991 = vst [vmem:[#allocation145_spill] sm:$0xff] %v16861_v23 }
 0x5e9   :  { %v7703_v11 = vadd.f32 %v18994_v48, %v7583_v14  ;;  %v7750_v14 = vmul.f32 0.086542584, %v16270_v7 }
 0x5eb   :  { %8394 = vrot.lane.b32.xlu0 %v8335_v49, %s9616_s24  ;;  %v16871_v53 = vpop.permute.xlu0 %8482  ;;  %v16875_v39 = vpop.permute.xlu1 %8240  ;;  %v7895_v2 = vmul.f32 0.09140719, %v7703_v11  ;;  %v8039_v59 = vmul.f32 0.095048435, %v7703_v11  ;;  %v7751_v28 = vmul.f32 0.086542584, %v7703_v11 }
 0x5ec   :  { %8248 = vrot.lane.b32.xlu1 %v8190_v47, %s9615_s23  ;;  %18993 = vst [vmem:[#allocation146_spill] sm:$0xff] %v16871_v53  ;;  %v8183_v27 = vmul.f32 0.097302444, %v7703_v11  ;;  %v16902_v62 = vmul.f32 0.08066656, %v7703_v11 }
 0x5ef   :  { %8490 = vrot.lane.b32.xlu0 %v8191_v44, %s9617_s25  ;;  %v16880_v17 = vpop.permute.xlu0 %8578  ;;  %v16882_v24 = vpop.permute.xlu1 %8384  ;;  %v8327_v44 = vmul.f32 0.09806559, %v7703_v11  ;;  %v7894_v11 = vmul.f32 0.09140719, %v16270_v7 }
 0x5f0   :  { %8392 = vrot.lane.b32.xlu1 %v8334_v1, %s9616_s24  ;;  %18995 = vst [vmem:[#allocation147_spill] sm:$0xff] %v16880_v17 }
 0x5f3   :  { %7946 = vrot.lane.b32.xlu0 %v7895_v2, %s9613_s21  ;;  %v16886_v18 = vpop.permute.xlu0 %8672  ;;  %v16888_v54 = vpop.permute.xlu1 %8480 }
 0x5f4   :  { %8488 = vrot.lane.b32.xlu1 %v8190_v47, %s9617_s25  ;;  %18996 = vst [vmem:[#allocation148_spill] sm:$0xff] %v16886_v18 }
 0x5f7   :  { %8090 = vrot.lane.b32.xlu0 %v8039_v59, %s9614_s22  ;;  %v16892_v31 = vpop.permute.xlu0 %7842  ;;  %v16894_v37 = vpop.permute.xlu1 %8576 }
 0x5f8   :  { %7802 = vrot.lane.b32.xlu1 %v7751_v28, %s9611_s1  ;;  %18997 = vst [vmem:[#allocation149_spill] sm:$0xff] %v16892_v31 }
 0x5fb   :  { %8234 = vrot.lane.b32.xlu0 %v8183_v27, %s9615_s23  ;;  %v16898_v35 = vpop.permute.xlu0 %7986  ;;  %v16900_v46 = vpop.permute.xlu1 %7840 }
 0x5fc   :  { %8666 = vrot.lane.b32.xlu1 %v7895_v2, %s9618_s26  ;;  %18998 = vst [vmem:[#allocation150_spill] sm:$0xff] %v16898_v35  ;;  %18999 = vst [vmem:[#allocation151_spill] sm:$0xff] %v16900_v46 }
 0x5ff   :  { %8378 = vrot.lane.b32.xlu0 %v8327_v44, %s9616_s24  ;;  %v16907_v49 = vpop.permute.xlu0 %8130  ;;  %v16909_v58 = vpop.permute.xlu1 %7984  ;;  %v8038_v44 = vmul.f32 0.095048435, %v16270_v7 }
 0x600   :  { %8882 = vrot.lane.b32.xlu1 %v16902_v62, %s9619_s27  ;;  %19000 = vst [vmem:[#allocation152_spill] sm:$0xff] %v16907_v49  ;;  %19001 = vst [vmem:[#allocation153_spill] sm:$0xff] %v16909_v58  ;;  %v8182_v49 = vmul.f32 0.097302444, %v16270_v7  ;;  %v19012_v58 = vld [vmem:[#allocation71_spill] sm:$0xff] }
 0x601   :  { %v6246_v46 = vsel %vm6225_vm8, %v19012_v58, 0.0 }
 0x603   :  { %8474 = vrot.lane.b32.xlu0 %v8183_v27, %s9617_s25  ;;  %v16914_v47 = vpop.permute.xlu0 %8274  ;;  %v16916_v48 = vpop.permute.xlu1 %8128 }
 0x604   :  { %7800 = vrot.lane.b32.xlu1 %v7750_v14, %s9611_s1  ;;  %19002 = vst [vmem:[#allocation154_spill] sm:$0xff] %v16914_v47  ;;  %19003 = vst [vmem:[#allocation155_spill] sm:$0xff] %v16916_v48 }
 0x607   :  { %8570 = vrot.lane.b32.xlu0 %v8039_v59, %s9610_s0  ;;  %v16921_v1 = vpop.permute.xlu0 %8418  ;;  %v16923_v2 = vpop.permute.xlu1 %8272  ;;  %v19008_v59 = vld [vmem:[#allocation35_spill] sm:$0xff] }
 0x608   :  { %7944 = vrot.lane.b32.xlu1 %v7894_v11, %s9613_s21  ;;  %19004 = vst [vmem:[#allocation156_spill] sm:$0xff] %v16921_v1  ;;  %19005 = vst [vmem:[#allocation157_spill] sm:$0xff] %v16923_v2  ;;  %v6244_v35 = vsel %vm6225_vm8, %v19008_v59, 0.0  ;;  %v9596_v1 = vld [vmem:[%s17551_s3 + $0x30] sm:$0xff] }
 0x609   :  { %v6421_v2 = vmul.f32 %v9596_v1, %v19008_v59 }
 0x60b   :  { %8762 = vrot.lane.b32.xlu0 %v7751_v28, %s9612_s20  ;;  %v16928_v27 = vpop.permute.xlu0 %7814  ;;  %v16930_v47 = vpop.permute.xlu1 %8416  ;;  %v19009_v28 = vld [vmem:[#allocation68_spill] sm:$0xff] }
 0x60c   :  { %8088 = vrot.lane.b32.xlu1 %v8038_v44, %s9614_s22  ;;  %19006 = vst [vmem:[#allocation158_spill] sm:$0xff] %v16928_v27  ;;  %19007 = vst [vmem:[#allocation159_spill] sm:$0xff] %v16930_v47  ;;  %v6245_v48 = vadd.f32 %v6244_v35, %v19009_v28  ;;  %v16945_v47 = vmul.f32 0.08066656, %v16270_v7  ;;  %v19013_v27 = vld [vmem:[#allocation24_spill] sm:$0xff]  ;;  %v6447_v35 = vsel %vm6225_vm8, %v6421_v2, 0.0 }
 0x60d   :  { %v6422_v9 = vmul.f32 %v19013_v27, %v19012_v58 }
 0x60e   :  { %v6247_v28 = vadd.f32 %v6246_v46, %v6245_v48 }
 0x60f   :  { %8664 = vrot.lane.b32.xlu0 %v7894_v11, %s9618_s26  ;;  %v16942_v41 = vpop.permute.xlu0 %7958  ;;  %v16947_v31 = vpop.permute.xlu1 %7812  ;;  %v8326_v11 = vmul.f32 0.09806559, %v16270_v7  ;;  %v19017_v7 = vld [vmem:[#allocation110_spill] sm:$0xff]  ;;  %v6449_v53 = vsel %vm6225_vm8, %v6422_v9, 0.0 }
 0x610   :  { %8232 = vrot.lane.b32.xlu1 %v8182_v49, %s9615_s23  ;;  %19010 = vst [vmem:[#allocation35_spill] sm:$0xff] %v16942_v41  ;;  %19011 = vst [vmem:[#allocation68_spill] sm:$0xff] %v16947_v31  ;;  %v19014_v41 = vld [vmem:[#allocation82_spill] sm:$0xff]  ;;  %v6248_v31 = vsel %vm6229_vm9, %v19017_v7, 0.0  ;;  %v6423_v17 = vmul.f32 %v19018_v60, %v19017_v7 }
 0x611   :  { %v6448_v21 = vadd.f32 %v6447_v35, %v19014_v41  ;;  %v6249_v2 = vadd.f32 %v6248_v31, %v6247_v28  ;;  %v19021_v41 = vld [vmem:[#allocation8_spill] sm:$0xff]  ;;  %v19024_v31 = vld [vmem:[#allocation61_spill] sm:$0xff] }
 0x612   :  { %v6250_v48 = vsel %vm6225_vm8, %v19021_v41, 0.0  ;;  %v6424_v35 = vmul.f32 %v9596_v1, %v19021_v41  ;;  %v6425_v28 = vmul.f32 %v19013_v27, %v19024_v31 }
 0x613   :  { %8880 = vrot.lane.b32.xlu0 %v16945_v47, %s9619_s27  ;;  %v16959_v32 = vpop.permute.xlu0 %8102  ;;  %v16961_v42 = vpop.permute.xlu1 %7956  ;;  %v6450_v23 = vadd.f32 %v6449_v53, %v6448_v21  ;;  %v6285_v21 = vmul.f32 %v16379_v30, %v19008_v59 }
 0x614   :  { %8376 = vrot.lane.b32.xlu1 %v8326_v11, %s9616_s24  ;;  %19015 = vst [vmem:[#allocation71_spill] sm:$0xff] %v16959_v32  ;;  %19016 = vst [vmem:[#allocation24_spill] sm:$0xff] %v16961_v42  ;;  %v6451_v32 = vsel %vm6229_vm9, %v6423_v17, 0.0  ;;  %v6251_v42 = vadd.f32 %v6250_v48, %v6249_v2  ;;  %v6353_v48 = vmul.f32 %v16510_v45, %v19008_v59 }
 0x615   :  { %v6452_v6 = vadd.f32 %v6451_v32, %v6450_v23  ;;  %v6286_v23 = vmul.f32 %v16406_v10, %v19012_v58  ;;  %v6311_v2 = vsel %vm6225_vm8, %v6285_v21, 0.0  ;;  %v6287_v21 = vmul.f32 %v16428_v19, %v19017_v7 }
 0x616   :  { %v6312_v27 = vadd.f32 %v6311_v2, %v16567_v63  ;;  %v6354_v63 = vmul.f32 %v16515_v55, %v19012_v58  ;;  %v6379_v2 = vsel %vm6225_vm8, %v6353_v48, 0.0  ;;  %v6288_v58 = vmul.f32 %v16379_v30, %v19021_v41 }
 0x617   :  { %v16969_v11 = vpop.permute.xlu0 %8246  ;;  %v16971_v46 = vpop.permute.xlu1 %8100  ;;  %v6313_v59 = vsel %vm6225_vm8, %v6286_v23, 0.0  ;;  %v6315_v48 = vsel %vm6229_vm9, %v6287_v21, 0.0 }
 0x618   :  { %8472 = vrot.lane.b32.xlu1 %v8182_v49, %s9617_s25  ;;  %19019 = vst [vmem:[#allocation82_spill] sm:$0xff] %v16969_v11  ;;  %19020 = vst [vmem:[#allocation110_spill] sm:$0xff] %v16971_v46  ;;  %v6252_v49 = vsel %vm6225_vm8, %v19024_v31, 0.0  ;;  %v6453_v11 = vsel %vm6225_vm8, %v6424_v35, 0.0  ;;  %v6380_v46 = vadd.f32 %v6379_v2, %v16673_v29  ;;  %v6381_v29 = vsel %vm6225_vm8, %v6354_v63, 0.0 }
 0x619   :  { %v6253_v17 = vadd.f32 %v6252_v49, %v6251_v42  ;;  %v6289_v63 = vmul.f32 %v16406_v10, %v19024_v31 }
 0x61b   :  { %v16978_v9 = vpop.permute.xlu0 %8390  ;;  %v16982_v53 = vpop.permute.xlu1 %8244 }
 0x61c   :  { %8568 = vrot.lane.b32.xlu1 %v8038_v44, %s9610_s0  ;;  %19022 = vst [vmem:[#allocation105_spill] sm:$0xff] %v16978_v9  ;;  %19023 = vst [vmem:[#allocation8_spill] sm:$0xff] %v16982_v53  ;;  %v6454_v44 = vadd.f32 %v6453_v11, %v6452_v6  ;;  %v19027_v53 = vld [vmem:[#allocation63_spill] sm:$0xff]  ;;  %v6455_v6 = vsel %vm6225_vm8, %v6425_v28, 0.0  ;;  %v6256_v28 = vsel %vm6225_vm8, %v15092_v5, 0.0 }
 0x61d   :  { %v6254_v35 = vsel %vm6229_vm9, %v19027_v53, 0.0  ;;  %v6426_v42 = vmul.f32 %v19018_v60, %v19027_v53 }
 0x61e   :  { %v6456_v11 = vadd.f32 %v6455_v6, %v6454_v44 }
 0x61f   :  { %v16990_v32 = vpop.permute.xlu0 %8486  ;;  %v16997_v9 = vpop.permute.xlu1 %8388  ;;  %v6457_v44 = vsel %vm6229_vm9, %v6426_v42, 0.0 }
 0x620   :  { %8760 = vrot.lane.b32.xlu1 %v7750_v14, %s9612_s20  ;;  %19025 = vst [vmem:[#allocation61_spill] sm:$0xff] %v16990_v32  ;;  %19026 = vst [vmem:[#allocation160_spill] sm:$0xff] %v16997_v9  ;;  %v6255_v14 = vadd.f32 %v6254_v35, %v6253_v17  ;;  %v6314_v9 = vadd.f32 %v6313_v59, %v6312_v27  ;;  %v6427_v17 = vmul.f32 %v9596_v1, %v15092_v5 }
 0x621   :  { %v6458_v6 = vadd.f32 %v6457_v44, %v6456_v11  ;;  %v6355_v27 = vmul.f32 %v16533_v40, %v19017_v7  ;;  %v6382_v1 = vadd.f32 %v6381_v29, %v6380_v46  ;;  %v6317_v46 = vsel %vm6225_vm8, %v6288_v58, 0.0 }
 0x622   :  { %v6257_v35 = vadd.f32 %v6256_v28, %v6255_v14  ;;  %v6316_v2 = vadd.f32 %v6315_v48, %v6314_v9  ;;  %v9597_v14 = vld [vmem:[%s17551_s3 + $0x38] sm:$0xff]  ;;  %v6459_v21 = vsel %vm6225_vm8, %v6427_v17, 0.0  ;;  %v6356_v9 = vmul.f32 %v16510_v45, %v19021_v41 }
 0x623   :  { %v17005_v49 = vpop.permute.xlu0 %7798  ;;  %v17013_v32 = vpop.permute.xlu1 %8484  ;;  %v6460_v44 = vadd.f32 %v6459_v21, %v6458_v6  ;;  %v6383_v48 = vsel %vm6229_vm9, %v6355_v27, 0.0  ;;  %v6260_v17 = vsel %vm6229_vm9, %v15119_v56, 0.0  ;;  %v6290_v41 = vmul.f32 %v16428_v19, %v19027_v53 }
 0x624   :  { %19028 = vst [vmem:[#allocation63_spill] sm:$0xff] %v17013_v32  ;;  %v19029_v32 = vld [vmem:[#allocation84_spill] sm:$0xff]  ;;  %v6318_v8 = vadd.f32 %v6317_v46, %v6316_v2  ;;  %v6319_v27 = vsel %vm6225_vm8, %v6289_v63, 0.0  ;;  %v6357_v2 = vmul.f32 %v16515_v55, %v19024_v31  ;;  %v6358_v31 = vmul.f32 %v16533_v40, %v19027_v53 }
 0x625   :  { %v6258_v42 = vsel %vm6225_vm8, %v19029_v32, 0.0  ;;  %v6428_v11 = vmul.f32 %v9597_v14, %v19029_v32  ;;  %v6384_v14 = vadd.f32 %v6383_v48, %v6382_v1  ;;  %v6385_v1 = vsel %vm6225_vm8, %v6356_v9, 0.0 }
 0x626   :  { %v6259_v28 = vadd.f32 %v6258_v42, %v6257_v35  ;;  %v6429_v35 = vmul.f32 %v19018_v60, %v15119_v56  ;;  %v6320_v60 = vadd.f32 %v6319_v27, %v6318_v8  ;;  %v6321_v63 = vsel %vm6229_vm9, %v6290_v41, 0.0 }
 0x627   :  { %v17020_v23 = vpop.permute.xlu0 %7942  ;;  %v17028_v59 = vpop.permute.xlu1 %8566  ;;  %v6461_v6 = vsel %vm6225_vm8, %v6428_v11, 0.0  ;;  %v6386_v48 = vadd.f32 %v6385_v1, %v6384_v14  ;;  %v6387_v9 = vsel %vm6225_vm8, %v6357_v2, 0.0  ;;  %v6389_v41 = vsel %vm6229_vm9, %v6358_v31, 0.0 }
 0x628   :  { %v6261_v42 = vadd.f32 %v6260_v17, %v6259_v28  ;;  %v6462_v21 = vadd.f32 %v6461_v6, %v6460_v44  ;;  %v6463_v11 = vsel %vm6229_vm9, %v6429_v35, 0.0  ;;  %v6291_v17 = vmul.f32 %v16379_v30, %v15092_v5 }
 0x629   :  { %v6322_v8 = vadd.f32 %v6321_v63, %v6320_v60  ;;  %v6388_v14 = vadd.f32 %v6387_v9, %v6386_v48  ;;  %v6292_v35 = vmul.f32 %v16406_v10, %v19029_v32  ;;  %v6359_v30 = vmul.f32 %v16510_v45, %v15092_v5 }
 0x62a   :  { %v6464_v28 = vadd.f32 %v6463_v11, %v6462_v21  ;;  %v6323_v21 = vsel %vm6225_vm8, %v6291_v17, 0.0  ;;  %v6293_v60 = vmul.f32 %v16428_v19, %v15119_v56  ;;  %v6360_v10 = vmul.f32 %v16515_v55, %v19029_v32 }
 0x62b   :  { %v17037_v7 = vpop.permute.xlu0 %8086  ;;  %v17045_v29 = vpop.permute.xlu1 %8758  ;;  %v6324_v27 = vadd.f32 %v6323_v21, %v6322_v8  ;;  %v6390_v2 = vadd.f32 %v6389_v41, %v6388_v14  ;;  %v6325_v48 = vsel %vm6225_vm8, %v6292_v35, 0.0  ;;  %v6391_v11 = vsel %vm6225_vm8, %v6359_v30, 0.0 }
 0x62c   :  { %v6327_v63 = vsel %vm6229_vm9, %v6293_v60, 0.0  ;;  %v6361_v31 = vmul.f32 %v16533_v40, %v15119_v56  ;;  %v6393_v19 = vsel %vm6225_vm8, %v6360_v10, 0.0  ;;  %v7753_v56 = vmul.f32 0.086542584, %v16779_v20 }
 0x62d   :  { %v6326_v5 = vadd.f32 %v6325_v48, %v6324_v27  ;;  %v6392_v45 = vadd.f32 %v6391_v11, %v6390_v2  ;;  %v7897_v2 = vmul.f32 0.09140719, %v16779_v20  ;;  %v17116_v60 = vmul.f32 0.08066656, %v16730_v33 }
 0x62e   :  { %v6395_v32 = vsel %vm6229_vm9, %v6361_v31, 0.0  ;;  %v17125_v33 = vmul.f32 0.08066656, %v16799_v61 }
 0x62f   :  { %v17052_v58 = vpop.permute.xlu0 %8230  ;;  %v17060_v46 = vpop.permute.xlu1 %7796  ;;  %v6328_v8 = vadd.f32 %v6327_v63, %v6326_v5  ;;  %v6394_v14 = vadd.f32 %v6393_v19, %v6392_v45  ;;  %v8041_v5 = vmul.f32 0.095048435, %v16779_v20 }
 0x631   :  { %v6396_v21 = vadd.f32 %v6395_v32, %v6394_v14 }
 0x632   :  { %6262 = vadd.xlane.f32.xlu0 %v6261_v42 }
 0x633   :  { %v17063_v44 = vpop.permute.xlu0 %8374  ;;  %v17071_v6 = vpop.permute.xlu1 %7940 }
 0x636   :  { %6465 = vadd.xlane.f32.xlu0 %v6464_v28 }
 0x637   :  { %v17073_v42 = vpop.permute.xlu0 %8470  ;;  %v17081_v53 = vpop.permute.xlu1 %8084 }
 0x63b   :  { %v17083_v1 = vpop.permute.xlu0 %8662  ;;  %v17091_v28 = vpop.permute.xlu1 %8228 }
 0x63f   :  { %v17093_v17 = vpop.permute.xlu0 %8878  ;;  %v17099_v9 = vpop.permute.xlu1 %8372 }
 0x643   :  { %v17101_v55 = vpop.permute.xlu0 %8564  ;;  %v17104_v35 = vpop.permute.xlu1 %8468 }
 0x644   :  { %6329 = vadd.xlane.f32.xlu1 %v6328_v8  ;;  %v8185_v8 = vmul.f32 0.097302444, %v16779_v20 }
 0x647   :  { %v17106_v30 = vpop.permute.xlu0 %8756  ;;  %v17108_v41 = vpop.permute.xlu1 %8660 }
 0x648   :  { %6397 = vadd.xlane.f32.xlu1 %v6396_v21 }
 0x64c   :  { %7806 = vrot.lane.b32.xlu0 %v7753_v56, %s9611_s1 }
 0x64d   :  { %v7819_v40 = vpop.permute.xlu0 %7818 }
 0x64e   :  { %v17112_v27 = vpop.permute.xlu1 %8876  ;;  %v7879_v10 = vadd.f32 %v7819_v40, %v17116_v60  ;;  %v8329_v40 = vmul.f32 0.09806559, %v16779_v20 }
 0x650   :  { %7950 = vrot.lane.b32.xlu0 %v7897_v2, %s9613_s21 }
 0x651   :  { %v7963_v48 = vpop.permute.xlu0 %7962 }
 0x652   :  { %v7817_v11 = vpop.permute.xlu1 %7816  ;;  %v8023_v45 = vadd.f32 %v7963_v48, %v7879_v10  ;;  %v7752_v10 = vmul.f32 0.086542584, %v16857_v0 }
 0x653   :  { %v7878_v48 = vadd.f32 %v7817_v11, %v17125_v33 }
 0x654   :  { %8094 = vrot.lane.b32.xlu0 %v8041_v5, %s9614_s22 }
 0x655   :  { %v8107_v63 = vpop.permute.xlu0 %8106 }
 0x656   :  { %v7961_v31 = vpop.permute.xlu1 %7960  ;;  %v8167_v19 = vadd.f32 %v8107_v63, %v8023_v45 }
 0x657   :  { %v8022_v45 = vadd.f32 %v7961_v31, %v7878_v48  ;;  %v8040_v31 = vmul.f32 0.095048435, %v16857_v0 }
 0x658   :  { %8238 = vrot.lane.b32.xlu0 %v8185_v8, %s9615_s23 }
 0x659   :  { %8670 = vrot.lane.b32.xlu1 %v7897_v2, %s9618_s26  ;;  %v8251_v14 = vpop.permute.xlu0 %8250  ;;  %v7896_v2 = vmul.f32 0.09140719, %v16857_v0 }
 0x65a   :  { %v8105_v32 = vpop.permute.xlu1 %8104  ;;  %v8311_v21 = vadd.f32 %v8251_v14, %v8167_v19 }
 0x65b   :  { %v8166_v51 = vadd.f32 %v8105_v32, %v8022_v45  ;;  %v8328_v45 = vmul.f32 0.09806559, %v16857_v0 }
 0x65c   :  { %8382 = vrot.lane.b32.xlu0 %v8329_v40, %s9616_s24 }
 0x65d   :  { %7804 = vrot.lane.b32.xlu1 %v7752_v10, %s9611_s1  ;;  %v8395_v63 = vpop.permute.xlu0 %8394 }
 0x65e   :  { %v8249_v26 = vpop.permute.xlu1 %8248  ;;  %v8455_v61 = vadd.f32 %v8395_v63, %v8311_v21 }
 0x65f   :  { %v8310_v19 = vadd.f32 %v8249_v26, %v8166_v51 }
 0x660   :  { %8478 = vrot.lane.b32.xlu0 %v8185_v8, %s9617_s25  ;;  %v8184_v8 = vmul.f32 0.097302444, %v16857_v0 }
 0x661   :  { %7948 = vrot.lane.b32.xlu1 %v7896_v2, %s9613_s21  ;;  %v8491_v14 = vpop.permute.xlu0 %8490 }
 0x662   :  { %v8393_v11 = vpop.permute.xlu1 %8392  ;;  %v17136_v18 = vadd.f32 %v8491_v14, %v8455_v61  ;;  %v17151_v61 = vmul.f32 0.08066656, %v16857_v0  ;;  %v7869_v0 = vadd.f32 %v17005_v49, %v16706_v15  ;;  %v19036_v15 = vld [vmem:[#allocation7_spill] sm:$0xff] }
 0x663   :  { %v8454_v38 = vadd.f32 %v8393_v11, %v8310_v19 }
 0x664   :  { %8574 = vrot.lane.b32.xlu0 %v8041_v5, %s9610_s0 }
 0x665   :  { %8092 = vrot.lane.b32.xlu1 %v8040_v31, %s9614_s22  ;;  %v7947_v21 = vpop.permute.xlu0 %7946 }
 0x666   :  { %v8489_v32 = vpop.permute.xlu1 %8488 }
 0x667   :  { %v17141_v40 = vadd.f32 %v8489_v32, %v8454_v38 }
 0x668   :  { %8766 = vrot.lane.b32.xlu0 %v7753_v56, %s9612_s20 }
 0x669   :  { %8236 = vrot.lane.b32.xlu1 %v8184_v8, %s9615_s23  ;;  %v8091_v51 = vpop.permute.xlu0 %8090 }
 0x66a   :  { %v7803_v26 = vpop.permute.xlu1 %7802 }
 0x66b   :  { %v7871_v48 = vadd.f32 %v7803_v26, %v16902_v62  ;;  %v19031_v26 = vld [vmem:[#allocation59_spill] sm:$0xff] }
 0x66c   :  { %8668 = vrot.lane.b32.xlu0 %v7896_v2, %s9618_s26  ;;  %v7868_v2 = vadd.f32 %v17060_v46, %v16797_v57  ;;  %v8013_v46 = vadd.f32 %v17020_v23, %v7869_v0  ;;  %v19039_v0 = vld [vmem:[#allocation79_spill] sm:$0xff] }
 0x66d   :  { %v8015_v5 = vadd.f32 %v7947_v21, %v7871_v48  ;;  %8380 = vrot.lane.b32.xlu1 %v8328_v45, %s9616_s24  ;;  %v8235_v63 = vpop.permute.xlu0 %8234  ;;  %v19030_v21 = vld [vmem:[#allocation14_spill] sm:$0xff]  ;;  %v19032_v48 = vld [vmem:[#allocation19_spill] sm:$0xff]  ;;  %v19033_v45 = vld [vmem:[#allocation56_spill] sm:$0xff]  ;;  %s9598_s24 = scalar_lea.hbm %s17552_s4, 16 }
 0x66e   :  { %v8667_v38 = vpop.permute.xlu1 %8666  ;;  %v8012_v32 = vadd.f32 %v17071_v6, %v7868_v2  ;;  %v19037_v6 = vld [vmem:[#allocation112_spill] sm:$0xff]  ;;  %p9599_p0 = scmp.ne.s32.totalorder %s17552_s4, %s9598_s24  ;;  %p9602_p1 = scmp.lt.u32.totalorder %s9598_s24, %s17552_s4 }
 0x66f   :  { %v8159_v19 = vadd.f32 %v8091_v51, %v8015_v5  ;;  %v19034_v5 = vld [vmem:[#allocation32_spill] sm:$0xff] }
 0x670   :  { %8884 = vrot.lane.b32.xlu0 %v17151_v61, %s9619_s27  ;;  %p9604_p2 = pnand %p9602_p1, %p9599_p0 }
 0x671   :  { %v8303_v56 = vadd.f32 %v8235_v63, %v8159_v19  ;;  %8476 = vrot.lane.b32.xlu1 %v8184_v8, %s9617_s25  ;;  %v8379_v62 = vpop.permute.xlu0 %8378  ;;  %v7881_v8 = vadd.f32 %v19032_v48, %v19031_v26  ;;  %v7880_v63 = vadd.f32 %v19034_v5, %v19033_v45  ;;  %v19041_v45 = vld [vmem:[#allocation33_spill] sm:$0xff] }
 0x672   :  { %v8883_v14 = vpop.permute.xlu1 %8882 }
 0x673   :  { %v8447_v11 = vadd.f32 %v8379_v62, %v8303_v56  ;;  %v8156_v56 = vadd.f32 %v17081_v53, %v8012_v32  ;;  %v19035_v62 = vld [vmem:[#allocation25_spill] sm:$0xff]  ;;  %v8024_v49 = vadd.f32 %v19036_v15, %v7880_v63 }
 0x674   :  { %8604 = vrot.lane.b32.xlu0 %v19030_v21, %s9610_s0  ;;  %v8025_v21 = vadd.f32 %v19035_v62, %v7881_v8  ;;  %v19040_v8 = vld [vmem:[#allocation55_spill] sm:$0xff] }
 0x675   :  { %8572 = vrot.lane.b32.xlu1 %v8040_v31, %s9610_s0  ;;  %v8475_v51 = vpop.permute.xlu0 %8474  ;;  %v8157_v31 = vadd.f32 %v17037_v7, %v8013_v46  ;;  %v8300_v2 = vadd.f32 %v17091_v28, %v8156_v56  ;;  %v8168_v53 = vadd.f32 %v19039_v0, %v8024_v49  ;;  %v7883_v5 = vadd.f32 %v19041_v45, %v19040_v8  ;;  %v19042_v28 = vld [vmem:[#allocation74_spill] sm:$0xff]  ;;  %v19046_v49 = vld [vmem:[#allocation60_spill] sm:$0xff]  ;;  %v19053_v45 = vld [vmem:[#allocation99_spill] sm:$0xff] }
 0x676   :  { %v7801_v19 = vpop.permute.xlu1 %7800  ;;  %v8543_v57 = vadd.f32 %v8475_v51, %v8447_v11  ;;  %v19038_v51 = vld [vmem:[#allocation107_spill] sm:$0xff]  ;;  %v19051_v0 = vld [vmem:[#allocation50_spill] sm:$0xff] }
 0x677   :  { %v7870_v26 = vadd.f32 %v7801_v19, %v16945_v47  ;;  %v8169_v23 = vadd.f32 %v19038_v51, %v8025_v21  ;;  %v8301_v63 = vadd.f32 %v17052_v58, %v8157_v31  ;;  %v8444_v7 = vadd.f32 %v17099_v9, %v8300_v2  ;;  %v19043_v47 = vld [vmem:[#allocation11_spill] sm:$0xff]  ;;  %v19045_v21 = vld [vmem:[#allocation92_spill] sm:$0xff]  ;;  %v19048_v9 = vld [vmem:[#allocation65_spill] sm:$0xff] }
 0x678   :  { %8698 = vrot.lane.b32.xlu0 %v19037_v6, %s9618_s26  ;;  %v8312_v19 = vadd.f32 %v19043_v47, %v8168_v53  ;;  %v8027_v15 = vadd.f32 %v19045_v21, %v7883_v5  ;;  %v19049_v2 = vld [vmem:[#allocation6_spill] sm:$0xff]  ;;  %v19050_v51 = vld [vmem:[#allocation17_spill] sm:$0xff]  ;;  %v17198_v53 = vmul.f32 0.08066656, %v19051_v0 }
 0x679   :  { %8764 = vrot.lane.b32.xlu1 %v7752_v10, %s9612_s20  ;;  %v8571_v11 = vpop.permute.xlu0 %8570  ;;  %v8313_v56 = vadd.f32 %v19042_v28, %v8169_v23  ;;  %v19044_v10 = vld [vmem:[#allocation108_spill] sm:$0xff]  ;;  %v8540_v58 = vadd.f32 %v17104_v35, %v8444_v7  ;;  %v19055_v28 = vld [vmem:[#allocation13_spill] sm:$0xff]  ;;  %v19064_v0 = vld [vmem:[#allocation58_spill] sm:$0xff] }
 0x67a   :  { %v7945_v32 = vpop.permute.xlu1 %7944  ;;  %v8639_v48 = vadd.f32 %v8571_v11, %v8543_v57  ;;  %v19047_v57 = vld [vmem:[#allocation15_spill] sm:$0xff]  ;;  %v8445_v11 = vadd.f32 %v17063_v44, %v8301_v63  ;;  %v8456_v23 = vadd.f32 %v19050_v51, %v8312_v19  ;;  %v19054_v63 = vld [vmem:[#allocation93_spill] sm:$0xff] }
 0x67b   :  { %v8014_v46 = vadd.f32 %v7945_v32, %v7870_v26  ;;  %v7882_v6 = vadd.f32 %v19047_v57, %v19046_v49  ;;  %v8457_v26 = vadd.f32 %v19049_v2, %v8313_v56  ;;  %v19056_v56 = vld [vmem:[#allocation29_spill] sm:$0xff]  ;;  %v19058_v49 = vld [vmem:[#allocation40_spill] sm:$0xff] }
 0x67c   :  { %8792 = vrot.lane.b32.xlu0 %v19044_v10, %s9612_s20  ;;  %v8735_v62 = vadd.f32 %v8667_v38, %v8639_v48  ;;  %v19052_v48 = vld [vmem:[#allocation16_spill] sm:$0xff]  ;;  %v8541_v44 = vadd.f32 %v17073_v42, %v8445_v11  ;;  %v8552_v47 = vadd.f32 %v19055_v28, %v8456_v23  ;;  %v19057_v21 = vld [vmem:[#allocation5_spill] sm:$0xff]  ;;  %v19059_v42 = vld [vmem:[#allocation75_spill] sm:$0xff] }
 0x67d   :  { %8580 = vrot.lane.b32.xlu1 %v19048_v9, %s9610_s0  ;;  %v8763_v31 = vpop.permute.xlu0 %8762  ;;  %v8171_v8 = vadd.f32 %v19052_v48, %v8027_v15  ;;  %v8026_v5 = vadd.f32 %v19053_v45, %v7882_v6  ;;  %v8553_v7 = vadd.f32 %v19054_v63, %v8457_v26  ;;  %v8636_v15 = vadd.f32 %v17101_v55, %v8540_v58  ;;  %v19060_v6 = vld [vmem:[#allocation83_spill] sm:$0xff]  ;;  %v19061_v9 = vld [vmem:[#allocation41_spill] sm:$0xff]  ;;  %v19068_v63 = vld [vmem:[#allocation98_spill] sm:$0xff] }
 0x67e   :  { %v8089_v38 = vpop.permute.xlu1 %8088  ;;  %v8831_v32 = vadd.f32 %v8763_v31, %v8735_v62  ;;  %v8637_v31 = vadd.f32 %v17028_v59, %v8541_v44  ;;  %v19062_v26 = vld [vmem:[#allocation31_spill] sm:$0xff]  ;;  %v19063_v23 = vld [vmem:[#allocation37_spill] sm:$0xff] }
 0x67f   :  { %v8158_v35 = vadd.f32 %v8089_v38, %v8014_v46  ;;  %v8315_v19 = vadd.f32 %v19056_v56, %v8171_v8  ;;  %v8170_v62 = vadd.f32 %v19057_v21, %v8026_v5  ;;  %v8648_v46 = vadd.f32 %v19059_v42, %v8552_v47  ;;  %v19065_v58 = vld [vmem:[#allocation43_spill] sm:$0xff]  ;;  %v19067_v8 = vld [vmem:[#allocation86_spill] sm:$0xff]  ;;  %v19069_v28 = vld [vmem:[#allocation69_spill] sm:$0xff] }
 0x680   :  { %v17205_v10 = vadd.f32 %v8883_v14, %v8831_v32  ;;  %8910 = vrot.lane.b32.xlu0 %v17198_v53, %s9619_s27  ;;  %v8649_v51 = vadd.f32 %v19062_v26, %v8553_v7  ;;  %v8732_v32 = vadd.f32 %v17108_v41, %v8636_v15  ;;  %v19066_v48 = vld [vmem:[#allocation39_spill] sm:$0xff]  ;;  %v8733_v44 = vadd.f32 %v17083_v1, %v8637_v31  ;;  %v19070_v56 = vld [vmem:[#allocation100_spill] sm:$0xff]  ;;  %v19077_v31 = vld [vmem:[#allocation113_spill] sm:$0xff] }
 0x681   :  { %8674 = vrot.lane.b32.xlu1 %v19058_v49, %s9618_s26  ;;  %v8459_v11 = vadd.f32 %v19060_v6, %v8315_v19  ;;  %v8314_v14 = vadd.f32 %v19061_v9, %v8170_v62  ;;  %v8744_v45 = vadd.f32 %v19067_v8, %v8648_v46  ;;  %v17230_v7 = vmul.f32 0.08066656, %v16779_v20  ;;  %v19071_v41 = vld [vmem:[#allocation64_spill] sm:$0xff]  ;;  %v19072_v21 = vld [vmem:[#allocation91_spill] sm:$0xff]  ;;  %v19076_v9 = vld [vmem:[#allocation94_spill] sm:$0xff] }
 0x682   :  { %v8233_v57 = vpop.permute.xlu1 %8232  ;;  %v8745_v47 = vadd.f32 %v19069_v28, %v8649_v51  ;;  %v8828_v15 = vadd.f32 %v17106_v30, %v8732_v32  ;;  %v19073_v1 = vld [vmem:[#allocation36_spill] sm:$0xff]  ;;  %v8829_v20 = vadd.f32 %v17045_v29, %v8733_v44  ;;  %v19078_v26 = vld [vmem:[#allocation73_spill] sm:$0xff] }
 0x683   :  { %v8302_v2 = vadd.f32 %v8233_v57, %v8158_v35  ;;  %v8555_v55 = vadd.f32 %v19064_v0, %v8459_v11  ;;  %v8458_v38 = vadd.f32 %v19065_v58, %v8314_v14  ;;  %v8840_v42 = vadd.f32 %v19073_v1, %v8744_v45  ;;  %v19074_v57 = vld [vmem:[#allocation54_spill] sm:$0xff]  ;;  %v19079_v51 = vld [vmem:[#allocation76_spill] sm:$0xff]  ;;  %v8665_v0 = vpop.permute.xlu0 %8664  ;;  %v19084_v44 = vld [vmem:[#allocation45_spill] sm:$0xff] }
 0x684   :  { %8582 = vrot.lane.b32.xlu0 %v19063_v23, %s9610_s0  ;;  %v8841_v6 = vadd.f32 %v19074_v57, %v8745_v47  ;;  %v19075_v11 = vld [vmem:[#allocation38_spill] sm:$0xff]  ;;  %v8948_v30 = vadd.f32 %v17112_v27, %v8828_v15  ;;  %v17251_v23 = vmul.f32 0.08066656, %v19079_v51 }
 0x685   :  { %8768 = vrot.lane.b32.xlu1 %v19066_v48, %s9612_s20  ;;  %v8554_v59 = vadd.f32 %v19068_v63, %v8458_v38  ;;  %v8651_v19 = vadd.f32 %v19071_v41, %v8555_v55  ;;  %v19080_v55 = vld [vmem:[#allocation97_spill] sm:$0xff]  ;;  %v8949_v38 = vadd.f32 %v17093_v17, %v8829_v20  ;;  %v19081_v48 = vld [vmem:[#allocation12_spill] sm:$0xff]  ;;  %v19082_v45 = vld [vmem:[#allocation18_spill] sm:$0xff] }
 0x686   :  { %v8377_v5 = vpop.permute.xlu1 %8376  ;;  %v8960_v58 = vadd.f32 %v19080_v55, %v8840_v42  ;;  %v8961_v8 = vadd.f32 %v19081_v48, %v8841_v6  ;;  %v19085_v41 = vld [vmem:[#allocation70_spill] sm:$0xff]  ;;  %v19088_v42 = vld [vmem:[#allocation89_spill] sm:$0xff]  ;;  %v19098_v48 = vld [vmem:[#allocation48_spill] sm:$0xff] }
 0x687   :  { %v8446_v35 = vadd.f32 %v8377_v5, %v8302_v2  ;;  %v8650_v62 = vadd.f32 %v19072_v21, %v8554_v59  ;;  %v8747_v14 = vadd.f32 %v19076_v9, %v8651_v19  ;;  %v19083_v5 = vld [vmem:[#allocation44_spill] sm:$0xff]  ;;  %v8881_v17 = vpop.permute.xlu0 %8880  ;;  %v19086_v19 = vld [vmem:[#allocation87_spill] sm:$0xff]  ;;  %v19092_v51 = vld [vmem:[#allocation78_spill] sm:$0xff] }
 0x688   :  { %8676 = vrot.lane.b32.xlu0 %v19070_v56, %s9618_s26  ;;  %v8972_v59 = vmul.f32 %v8960_v58, %v8948_v30  ;;  %v8973_v47 = vmul.f32 %v8961_v8, %v8949_v38  ;;  %v19095_v58 = vld [vmem:[#allocation103_spill] sm:$0xff]  ;;  %v19096_v38 = vld [vmem:[#allocation85_spill] sm:$0xff]  ;;  %v17302_v8 = vmul.f32 0.08066656, %v19098_v48 }
 0x689   :  { %8886 = vrot.lane.b32.xlu1 %v17230_v7, %s9619_s27  ;;  %v8746_v2 = vadd.f32 %v19077_v31, %v8650_v62  ;;  %v8843_v27 = vadd.f32 %v19082_v45, %v8747_v14  ;;  %v19087_v62 = vld [vmem:[#allocation80_spill] sm:$0xff]  ;;  %v19090_v14 = vld [vmem:[#allocation67_spill] sm:$0xff] }
 0x68a   :  { %v8473_v49 = vpop.permute.xlu1 %8472  ;;  %v8987_v20 = vsel %vm8986_vm11, %v8973_v47, 0.0  ;;  %v19100_v45 = vld [vmem:[#allocation72_spill] sm:$0xff] }
 0x68b   :  { %v8542_v46 = vadd.f32 %v8473_v49, %v8446_v35  ;;  %v8842_v63 = vadd.f32 %v19083_v5, %v8746_v2  ;;  %v8963_v21 = vadd.f32 %v19086_v19, %v8843_v27  ;;  %v8985_v49 = vsel %vm8984_vm10, %v8972_v59, 0.0  ;;  %v19091_v2 = vld [vmem:[#allocation10_spill] sm:$0xff]  ;;  %v19101_v27 = vld [vmem:[#allocation52_spill] sm:$0xff]  ;;  %v19103_v59 = vld [vmem:[#allocation109_spill] sm:$0xff] }
 0x68c   :  { %8770 = vrot.lane.b32.xlu0 %v19075_v11, %s9612_s20  ;;  %v8988_v6 = vadd.f32 %v8987_v20, %v8985_v49  ;;  %v19089_v11 = vld [vmem:[#allocation102_spill] sm:$0xff]  ;;  %v17277_v30 = vmul.f32 0.08066656, %v19091_v2  ;;  %v17313_v5 = vmul.f32 0.08066656, %v19101_v27 }
 0x68d   :  { %8512 = vrot.lane.b32.xlu1 %v19078_v26, %s9617_s25  ;;  %v8962_v15 = vadd.f32 %v19087_v62, %v8842_v63  ;;  %v19102_v63 = vld [vmem:[#allocation49_spill] sm:$0xff]  ;;  %v19108_v62 = vld [vmem:[#allocation66_spill] sm:$0xff] }
 0x68e   :  { %v8569_v29 = vpop.permute.xlu1 %8568 }
 0x68f   :  { %v8638_v32 = vadd.f32 %v8569_v29, %v8542_v46  ;;  %v8975_v46 = vmul.f32 %v8963_v21, %v17205_v10  ;;  %v19094_v29 = vld [vmem:[#allocation9_spill] sm:$0xff]  ;;  %v19107_v21 = vld [vmem:[#allocation42_spill] sm:$0xff] }
 0x690   :  { %8888 = vrot.lane.b32.xlu0 %v17251_v23, %s9619_s27  ;;  %v17291_v55 = vmul.f32 0.08066656, %v19094_v29 }
 0x691   :  { %8606 = vrot.lane.b32.xlu1 %v19084_v44, %s9610_s0  ;;  %v8734_v35 = vadd.f32 %v8665_v0, %v8638_v32  ;;  %v8991_v26 = vsel %vm8986_vm11, %v8975_v46, 0.0  ;;  %v19093_v0 = vld [vmem:[#allocation30_spill] sm:$0xff] }
 0x692   :  { %v8761_v28 = vpop.permute.xlu1 %8760  ;;  %v19097_v32 = vld [vmem:[#allocation114_spill] sm:$0xff] }
 0x693   :  { %v8830_v56 = vadd.f32 %v8761_v28, %v8734_v35  ;;  %v19104_v44 = vld [vmem:[#allocation34_spill] sm:$0xff]  ;;  %v19106_v28 = vld [vmem:[#allocation51_spill] sm:$0xff] }
 0x694   :  { %8514 = vrot.lane.b32.xlu0 %v19085_v41, %s9617_s25  ;;  %v17324_v35 = vmul.f32 0.08066656, %v19104_v44  ;;  %v17331_v47 = vmul.f32 0.08066656, %v19106_v28 }
 0x695   :  { %v8950_v1 = vadd.f32 %v8881_v17, %v8830_v56  ;;  %8700 = vrot.lane.b32.xlu1 %v19088_v42, %s9618_s26 }
 0x697   :  { %v8974_v57 = vmul.f32 %v8962_v15, %v8950_v1  ;;  %v17342_v15 = vmul.f32 0.08066656, %v19108_v62  ;;  %v19109_v1 = vld [vmem:[#allocation46_spill] sm:$0xff] }
 0x698   :  { %8608 = vrot.lane.b32.xlu0 %v19089_v11, %s9610_s0  ;;  %v17345_v42 = vmul.f32 0.08066656, %v19109_v1 }
 0x699   :  { %v8989_v9 = vsel %vm8984_vm10, %v8974_v57, 0.0  ;;  %8794 = vrot.lane.b32.xlu1 %v19090_v14, %s9612_s20  ;;  %v19110_v57 = vld [vmem:[#allocation62_spill] sm:$0xff] }
 0x69a   :  { %v8990_v31 = vadd.f32 %v8989_v9, %v8988_v6  ;;  %v17353_v6 = vmul.f32 0.08066656, %v19110_v57  ;;  %v19112_v57 = vld [vmem:[#allocation95_spill] sm:$0xff] }
 0x69c   :  { %8702 = vrot.lane.b32.xlu0 %v19092_v51, %s9618_s26  ;;  %v17282_v10 = vadd.f32 %v8991_v26, %v8990_v31 }
 0x69d   :  { %8912 = vrot.lane.b32.xlu1 %v17277_v30, %s9619_s27 }
 0x6a0   :  { %8796 = vrot.lane.b32.xlu0 %v19093_v0, %s9612_s20 }
 0x6a1   :  { %8584 = vrot.lane.b32.xlu1 %v16854_v16, %s9610_s0  ;;  %v19099_v16 = vld [vmem:[#allocation88_spill] sm:$0xff] }
 0x6a4   :  { %8914 = vrot.lane.b32.xlu0 %v17291_v55, %s9619_s27 }
 0x6a5   :  { %8678 = vrot.lane.b32.xlu1 %v19095_v58, %s9618_s26 }
 0x6a8   :  { %8610 = vrot.lane.b32.xlu0 %v19096_v38, %s9610_s0 }
 0x6a9   :  { %8772 = vrot.lane.b32.xlu1 %v19097_v32, %s9612_s20 }
 0x6ac   :  { %8704 = vrot.lane.b32.xlu0 %v19099_v16, %s9618_s26 }
 0x6ad   :  { %8890 = vrot.lane.b32.xlu1 %v17302_v8, %s9619_s27 }
 0x6b0   :  { %8798 = vrot.lane.b32.xlu0 %v19100_v45, %s9612_s20 }
 0x6b1   :  { %8586 = vrot.lane.b32.xlu1 %v16835_v4, %s9610_s0  ;;  %v19105_v4 = vld [vmem:[#allocation90_spill] sm:$0xff] }
 0x6b4   :  { %8916 = vrot.lane.b32.xlu0 %v17313_v5, %s9619_s27 }
 0x6b5   :  { %8680 = vrot.lane.b32.xlu1 %v16840_v3, %s9618_s26 }
 0x6b8   :  { %8706 = vrot.lane.b32.xlu0 %v19102_v63, %s9618_s26 }
 0x6b9   :  { %8774 = vrot.lane.b32.xlu1 %v19103_v59, %s9612_s20 }
 0x6bc   :  { %8800 = vrot.lane.b32.xlu0 %v19105_v4, %s9612_s20 }
 0x6bd   :  { %8892 = vrot.lane.b32.xlu1 %v17324_v35, %s9619_s27 }
 0x6bf   :  { %v6263_v56 = vpop.xlane.xlu0 %6262 }
 0x6c0   :  { %v6264_v3 = vrot.slane %v6263_v56, 4  ;;  %8918 = vrot.lane.b32.xlu0 %v17331_v47, %s9619_s27 }
 0x6c1   :  { %8682 = vrot.lane.b32.xlu1 %v16818_v22, %s9618_s26 }
 0x6c2   :  { %v6265_v17 = vadd.f32 %v6264_v3, %v6263_v56 }
 0x6c3   :  { %v6466_v41 = vpop.xlane.xlu0 %6465 }
 0x6c4   :  { %v6266_v19 = vrot.slane %v6265_v17, 2  ;;  %8802 = vrot.lane.b32.xlu0 %v19107_v21, %s9612_s20  ;;  %v6467_v14 = vrot.slane %v6466_v41, 4 }
 0x6c5   :  { %8776 = vrot.lane.b32.xlu1 %v16823_v50, %s9612_s20 }
 0x6c6   :  { %v6267_v49 = vadd.f32 %v6266_v19, %v6265_v17  ;;  %v6468_v2 = vadd.f32 %v6467_v14, %v6466_v41 }
 0x6c7   :  { %v7807_v20 = vpop.permute.xlu0 %7806 }
 0x6c8   :  { %v7873_v46 = vadd.f32 %v7807_v20, %v17230_v7  ;;  %8920 = vrot.lane.b32.xlu0 %v17342_v15, %s9619_s27  ;;  %v6268_v22 = vrot.slane %v6267_v49, 1  ;;  %v6469_v38 = vrot.slane %v6468_v2, 2 }
 0x6c9   :  { %8894 = vrot.lane.b32.xlu1 %v17345_v42, %s9619_s27 }
 0x6ca   :  { %v6269_v50 = vadd.f32 %v6268_v22, %v6267_v49  ;;  %v6470_v44 = vadd.f32 %v6469_v38, %v6468_v2  ;;  %v19111_v22 = vld [vmem:[#allocation22_spill] sm:$0xff] }
 0x6cb   :  { %v7951_v11 = vpop.permute.xlu0 %7950 }
 0x6cc   :  { %v8017_v9 = vadd.f32 %v7951_v11, %v7873_v46  ;;  %8922 = vrot.lane.b32.xlu0 %v17353_v6, %s9619_s27  ;;  %9485 = vpush %v6269_v50  ;;  %v6471_v19 = vrot.slane %v6470_v44, 1  ;;  %v7884_v50 = vadd.f32 %v19112_v57, %v19111_v22 }
 0x6cd   :  { %8778 = vrot.lane.b32.xlu1 %v16792_v34, %s9612_s20 }
 0x6ce   :  { %v6472_v46 = vadd.f32 %v6471_v19, %v6470_v44 }
 0x6cf   :  { %v8095_v7 = vpop.permute.xlu0 %8094 }
 0x6d0   :  { %v8161_v31 = vadd.f32 %v8095_v7, %v8017_v9  ;;  %v19113_v7 = vld [vmem:[#allocation28_spill] sm:$0xff] }
 0x6d1   :  { %8896 = vrot.lane.b32.xlu1 %v17125_v33, %s9619_s27  ;;  %v6330_v26 = vpop.xlane.xlu1 %6329 }
 0x6d2   :  { %v6331_v51 = vrot.slane %v6330_v26, 4 }
 0x6d3   :  { %v8239_v0 = vpop.permute.xlu0 %8238 }
 0x6d4   :  { %v6332_v29 = vadd.f32 %v6331_v51, %v6330_v26  ;;  %v8305_v58 = vadd.f32 %v8239_v0, %v8161_v31  ;;  %v8028_v31 = vadd.f32 %v19113_v7, %v7884_v50  ;;  %v19114_v51 = vld [vmem:[#allocation101_spill] sm:$0xff]  ;;  %v19123_v50 = vld [vmem:[#allocation20_spill] sm:$0xff] }
 0x6d5   :  { %8898 = vrot.lane.b32.xlu1 %v17116_v60, %s9619_s27  ;;  %v6398_v32 = vpop.xlane.xlu1 %6397 }
 0x6d6   :  { %v6333_v48 = vrot.slane %v6332_v29, 2  ;;  %v6399_v16 = vrot.slane %v6398_v32, 4  ;;  %v8172_v0 = vadd.f32 %v19114_v51, %v8028_v31 }
 0x6d7   :  { %v8383_v45 = vpop.permute.xlu0 %8382 }
 0x6d8   :  { %v6400_v34 = vadd.f32 %v6399_v16, %v6398_v32  ;;  %v8449_v27 = vadd.f32 %v8383_v45, %v8305_v58  ;;  %v6334_v63 = vadd.f32 %v6333_v48, %v6332_v29  ;;  %v19115_v58 = vld [vmem:[#allocation53_spill] sm:$0xff]  ;;  %v19116_v48 = vld [vmem:[#allocation111_spill] sm:$0xff] }
 0x6d9   :  { %v8671_v59 = vpop.permute.xlu1 %8670  ;;  %v8316_v38 = vadd.f32 %v19115_v58, %v8172_v0 }
 0x6da   :  { %v6401_v4 = vrot.slane %v6400_v34, 2  ;;  %v6335_v33 = vrot.slane %v6334_v63, 1 }
 0x6db   :  { %v8479_v28 = vpop.permute.xlu0 %8478  ;;  %v8460_v16 = vadd.f32 %v19116_v48, %v8316_v38  ;;  %v19127_v38 = vld [vmem:[#allocation117_spill] sm:$0xff] }
 0x6dc   :  { %v8545_v56 = vadd.f32 %v8479_v28, %v8449_v27  ;;  %v6336_v3 = vadd.f32 %v6335_v33, %v6334_v63  ;;  %v6402_v17 = vadd.f32 %v6401_v4, %v6400_v34  ;;  %v19117_v27 = vld [vmem:[#allocation104_spill] sm:$0xff]  ;;  %v19118_v33 = vld [vmem:[#allocation57_spill] sm:$0xff] }
 0x6dd   :  { %v7805_v41 = vpop.permute.xlu1 %7804  ;;  %v8556_v63 = vadd.f32 %v19117_v27, %v8460_v16 }
 0x6de   :  { %9487 = vpush %v6336_v3  ;;  %v6403_v21 = vrot.slane %v6402_v17, 1  ;;  %v7872_v62 = vadd.f32 %v7805_v41, %v17151_v61  ;;  %v19119_v3 = vld [vmem:[#allocation81_spill] sm:$0xff] }
 0x6df   :  { %v8575_v60 = vpop.permute.xlu0 %8574  ;;  %v8652_v28 = vadd.f32 %v19118_v33, %v8556_v63  ;;  %v19128_v63 = vld [vmem:[#allocation77_spill] sm:$0xff] }
 0x6e0   :  { %v8641_v49 = vadd.f32 %v8575_v60, %v8545_v56  ;;  %v6404_v1 = vadd.f32 %v6403_v21, %v6402_v17  ;;  %v7885_v17 = vadd.f32 %v19119_v3, %v17198_v53  ;;  %v19120_v21 = vld [vmem:[#allocation47_spill] sm:$0xff]  ;;  %v19125_v53 = vld [vmem:[#allocation26_spill] sm:$0xff] }
 0x6e1   :  { %v7949_v20 = vpop.permute.xlu1 %7948 }
 0x6e2   :  { %v8016_v11 = vadd.f32 %v7949_v20, %v7872_v62  ;;  %9489 = vpush %v6404_v1  ;;  %v8737_v9 = vadd.f32 %v8671_v59, %v8641_v49  ;;  %v8029_v60 = vadd.f32 %v19120_v21, %v7885_v17  ;;  %v19121_v62 = vld [vmem:[#allocation115_spill] sm:$0xff] }
 0x6e3   :  { %9491 = vpush %v6472_v46  ;;  %v8767_v14 = vpop.permute.xlu0 %8766  ;;  %v8748_v49 = vadd.f32 %v19121_v62, %v8652_v28  ;;  %v19122_v20 = vld [vmem:[#allocation23_spill] sm:$0xff] }
 0x6e4   :  { %v8833_v2 = vadd.f32 %v8767_v14, %v8737_v9  ;;  %v8173_v46 = vadd.f32 %v19122_v20, %v8029_v60  ;;  %v19124_v9 = vld [vmem:[#allocation106_spill] sm:$0xff]  ;;  %v19131_v60 = vld [vmem:[#allocation96_spill] sm:$0xff] }
 0x6e5   :  { %v8093_v26 = vpop.permute.xlu1 %8092  ;;  %v8844_v14 = vadd.f32 %v19124_v9, %v8748_v49 }
 0x6e6   :  { %v8160_v29 = vadd.f32 %v8093_v26, %v8016_v11  ;;  %v8317_v11 = vadd.f32 %v19123_v50, %v8173_v46  ;;  %v7874_v46 = vadd.f32 %v16837_v43, %v17251_v23 }
 0x6e7   :  { %v8669_v61 = vpop.permute.xlu0 %8668 }
 0x6e8   :  { %v8461_v26 = vadd.f32 %v19125_v53, %v8317_v11  ;;  %v19133_v11 = vld [vmem:[#allocation125_spill] sm:$0xff] }
 0x6e9   :  { %v8237_v32 = vpop.permute.xlu1 %8236 }
 0x6ea   :  { %v8304_v45 = vadd.f32 %v8237_v32, %v8160_v29  ;;  %v19126_v29 = vld [vmem:[#allocation27_spill] sm:$0xff]  ;;  %v8964_v32 = vadd.f32 %v19127_v38, %v8844_v14  ;;  %v8018_v14 = vadd.f32 %v16851_v52, %v7874_v46 }
 0x6eb   :  { %v8885_v34 = vpop.permute.xlu0 %8884  ;;  %v8557_v58 = vadd.f32 %v19126_v29, %v8461_v26 }
 0x6ec   :  { %v8162_v53 = vadd.f32 %v16866_v13, %v8018_v14 }
 0x6ed   :  { %v8381_v59 = vpop.permute.xlu1 %8380 }
 0x6ee   :  { %v8448_v44 = vadd.f32 %v8381_v59, %v8304_v45  ;;  %v8653_v59 = vadd.f32 %v19128_v63, %v8557_v58  ;;  %v8306_v23 = vadd.f32 %v16875_v39, %v8162_v53  ;;  %v19144_v53 = vld [vmem:[#allocation124_spill] sm:$0xff] }
 0x6ef   :  { %v17371_v4 = vpop.permute.xlu0 %8604 }
 0x6f1   :  { %v8477_v56 = vpop.permute.xlu1 %8476 }
 0x6f2   :  { %v8544_v41 = vadd.f32 %v8477_v56, %v8448_v44  ;;  %v19129_v56 = vld [vmem:[#allocation21_spill] sm:$0xff] }
 0x6f3   :  { %v17376_v19 = vpop.permute.xlu0 %8698  ;;  %v8749_v3 = vadd.f32 %v19129_v56, %v8653_v59  ;;  %v19137_v59 = vld [vmem:[#allocation148_spill] sm:$0xff] }
 0x6f5   :  { %v8573_v1 = vpop.permute.xlu1 %8572  ;;  %v8845_v62 = vadd.f32 %v19131_v60, %v8749_v3  ;;  %v19139_v3 = vld [vmem:[#allocation139_spill] sm:$0xff] }
 0x6f6   :  { %v8640_v22 = vadd.f32 %v8573_v1, %v8544_v41  ;;  %v19130_v41 = vld [vmem:[#allocation121_spill] sm:$0xff]  ;;  %v19132_v1 = vld [vmem:[#allocation123_spill] sm:$0xff] }
 0x6f7   :  { %v17381_v57 = vpop.permute.xlu0 %8792  ;;  %v7886_v21 = vadd.f32 %v19130_v41, %v17277_v30  ;;  %v7875_v41 = vadd.f32 %v19139_v3, %v17302_v8  ;;  %v19151_v3 = vld [vmem:[#allocation132_spill] sm:$0xff] }
 0x6f8   :  { %v8736_v7 = vadd.f32 %v8669_v61, %v8640_v22 }
 0x6f9   :  { %v8765_v31 = vpop.permute.xlu1 %8764  ;;  %v8030_v20 = vadd.f32 %v19132_v1, %v7886_v21  ;;  %v19141_v1 = vld [vmem:[#allocation141_spill] sm:$0xff] }
 0x6fa   :  { %v8832_v51 = vadd.f32 %v8765_v31, %v8736_v7 }
 0x6fb   :  { %v8911_v0 = vpop.permute.xlu0 %8910  ;;  %v8174_v9 = vadd.f32 %v19133_v11, %v8030_v20  ;;  %v8019_v20 = vadd.f32 %v19141_v1, %v7875_v41  ;;  %v7888_v41 = vadd.f32 %v19151_v3, %v17313_v5  ;;  %v19153_v1 = vld [vmem:[#allocation134_spill] sm:$0xff] }
 0x6fc   :  { %v8952_v48 = vadd.f32 %v8885_v34, %v8832_v51  ;;  %v8965_v22 = vadd.f32 %v8911_v0, %v8845_v62  ;;  %v8450_v0 = vadd.f32 %v16882_v24, %v8306_v23  ;;  %v19140_v62 = vld [vmem:[#allocation120_spill] sm:$0xff] }
 0x6fd   :  { %v17388_v16 = vpop.permute.xlu1 %8580  ;;  %s9486_s3 = spop %9485  ;;  %v8318_v30 = vadd.f32 %v16562_v36, %v8174_v9  ;;  %v19143_v9 = vld [vmem:[#allocation143_spill] sm:$0xff] }
 0x6fe   :  { %v8976_v45 = vmul.f32 %v8964_v32, %v8952_v48  ;;  %6272 = sst [smem:[#allocation2]] %s9486_s3  ;;  %v8546_v13 = vadd.f32 %v16888_v54, %v8450_v0  ;;  %v8163_v14 = vadd.f32 %v19143_v9, %v8019_v20  ;;  %v19147_v0 = vld [vmem:[#allocation145_spill] sm:$0xff]  ;;  %v8032_v20 = vadd.f32 %v19153_v1, %v7888_v41 }
 0x6ff   :  { %v17390_v27 = vpop.permute.xlu0 %8582  ;;  %v8462_v43 = vadd.f32 %v16593_v12, %v8318_v30  ;;  %v19134_v12 = vld [vmem:[#allocation127_spill] sm:$0xff]  ;;  %v19166_v1 = vld [vmem:[#allocation129_spill] sm:$0xff] }
 0x700   :  { %v8993_v61 = vsel %vm8984_vm10, %v8976_v45, 0.0  ;;  %v8642_v39 = vadd.f32 %v16894_v37, %v8546_v13  ;;  %v19136_v45 = vld [vmem:[#allocation130_spill] sm:$0xff] }
 0x701   :  { %v17394_v44 = vpop.permute.xlu1 %8674  ;;  %v8994_v33 = vadd.f32 %v8993_v61, %v17282_v10  ;;  %v8558_v52 = vadd.f32 %v16623_v25, %v8462_v43  ;;  %v19135_v25 = vld [vmem:[#allocation116_spill] sm:$0xff] }
 0x702   :  { %v7887_v24 = vadd.f32 %v19135_v25, %v17291_v55  ;;  %v8738_v61 = vadd.f32 %v19137_v59, %v8642_v39 }
 0x703   :  { %v17397_v28 = vpop.permute.xlu0 %8676  ;;  %v8654_v38 = vadd.f32 %v19134_v12, %v8558_v52  ;;  %v19146_v52 = vld [vmem:[#allocation126_spill] sm:$0xff] }
 0x705   :  { %v8769_v34 = vpop.permute.xlu1 %8768  ;;  %v8750_v63 = vadd.f32 %v19136_v45, %v8654_v38  ;;  %v19148_v38 = vld [vmem:[#allocation146_spill] sm:$0xff] }
 0x706   :  { %v8834_v37 = vadd.f32 %v8769_v34, %v8738_v61 }
 0x707   :  { %v17400_v17 = vpop.permute.xlu0 %8770  ;;  %v8846_v21 = vadd.f32 %v17381_v57, %v8750_v63  ;;  %v19150_v63 = vld [vmem:[#allocation119_spill] sm:$0xff] }
 0x709   :  { %v8887_v49 = vpop.permute.xlu1 %8886 }
 0x70a   :  { %v8953_v10 = vadd.f32 %v8887_v49, %v8833_v2 }
 0x70b   :  { %v8889_v50 = vpop.permute.xlu0 %8888 }
 0x70c   :  { %v8977_v7 = vmul.f32 %v8965_v22, %v8953_v10  ;;  %v8954_v55 = vadd.f32 %v8889_v50, %v8834_v37  ;;  %v19142_v10 = vld [vmem:[#allocation122_spill] sm:$0xff] }
 0x70d   :  { %v17410_v31 = vpop.permute.xlu1 %8512 }
 0x70e   :  { %v8995_v26 = vsel %vm8986_vm11, %v8977_v7, 0.0 }
 0x70f   :  { %v8996_v51 = vadd.f32 %v8995_v26, %v8994_v33  ;;  %s9488_s0 = spop %9487  ;;  %v17415_v29 = vpop.permute.xlu0 %8514  ;;  %v19138_v33 = vld [vmem:[#allocation118_spill] sm:$0xff]  ;;  %v19145_v26 = vld [vmem:[#allocation144_spill] sm:$0xff] }
 0x710   :  { %6339 = sst [smem:[#allocation2 + $0x2]] %s9488_s0  ;;  %v8031_v56 = vadd.f32 %v19138_v33, %v7887_v24  ;;  %v8307_v57 = vadd.f32 %v19145_v26, %v8163_v14  ;;  %v19149_v24 = vld [vmem:[#allocation147_spill] sm:$0xff]  ;;  %v19156_v14 = vld [vmem:[#allocation110_spill] sm:$0xff]  ;;  %v19158_v26 = vld [vmem:[#allocation8_spill] sm:$0xff] }
 0x711   :  { %v17419_v2 = vpop.permute.xlu1 %8606 }
 0x712   :  { %v8175_v49 = vadd.f32 %v19140_v62, %v8031_v56  ;;  %v8451_v13 = vadd.f32 %v19147_v0, %v8307_v57 }
 0x713   :  { %s9490_s1 = spop %9489  ;;  %v17423_v36 = vpop.permute.xlu0 %8608 }
 0x714   :  { %6407 = sst [smem:[#allocation2 + $0x3]] %s9490_s1  ;;  %s9492_s20 = spop %9491  ;;  %v8319_v11 = vadd.f32 %v19142_v10, %v8175_v49  ;;  %v8547_v39 = vadd.f32 %v19148_v38, %v8451_v13  ;;  %v19161_v38 = vld [vmem:[#allocation142_spill] sm:$0xff] }
 0x715   :  { %6475 = sst [smem:[#allocation2 + $0x4]] %s9492_s20  ;;  %v17426_v58 = vpop.permute.xlu1 %8700 }
 0x716   :  { %v8463_v8 = vadd.f32 %v19144_v53, %v8319_v11  ;;  %v8643_v45 = vadd.f32 %v19149_v24, %v8547_v39  ;;  %v19162_v24 = vld [vmem:[#allocation63_spill] sm:$0xff] }
 0x717   :  { %v17430_v32 = vpop.permute.xlu0 %8702 }
 0x718   :  { %v8559_v50 = vadd.f32 %v19146_v52, %v8463_v8  ;;  %v19157_v8 = vld [vmem:[#allocation138_spill] sm:$0xff] }
 0x719   :  { %v8795_v48 = vpop.permute.xlu1 %8794 }
 0x71a   :  { %v8655_v59 = vadd.f32 %v19150_v63, %v8559_v50  ;;  %v19160_v50 = vld [vmem:[#allocation160_spill] sm:$0xff]  ;;  %v19163_v63 = vld [vmem:[#allocation158_spill] sm:$0xff] }
 0x71b   :  { %v17436_v54 = vpop.permute.xlu0 %8796 }
 0x71c   :  { %v8751_v33 = vadd.f32 %v17376_v19, %v8655_v59  ;;  %v7877_v59 = vadd.f32 %v19163_v63, %v17345_v42 }
 0x71d   :  { %v8913_v60 = vpop.permute.xlu1 %8912 }
 0x71e   :  { %v8966_v46 = vadd.f32 %v8913_v60, %v8846_v21  ;;  %v19152_v21 = vld [vmem:[#allocation68_spill] sm:$0xff]  ;;  %v8847_v62 = vadd.f32 %v8795_v48, %v8751_v33 }
 0x71f   :  { %v8915_v22 = vpop.permute.xlu0 %8914  ;;  %v7876_v37 = vadd.f32 %v19152_v21, %v17324_v35  ;;  %v19165_v21 = vld [vmem:[#allocation35_spill] sm:$0xff] }
 0x720   :  { %v8978_v7 = vmul.f32 %v8966_v46, %v8954_v55  ;;  %v19154_v55 = vld [vmem:[#allocation24_spill] sm:$0xff]  ;;  %v8967_v10 = vadd.f32 %v8915_v22, %v8847_v62 }
 0x721   :  { %v17446_v30 = vpop.permute.xlu1 %8584  ;;  %v8020_v46 = vadd.f32 %v19154_v55, %v7876_v37  ;;  %v8021_v37 = vadd.f32 %v19165_v21, %v7877_v59  ;;  %v19167_v55 = vld [vmem:[#allocation71_spill] sm:$0xff]  ;;  %v19180_v21 = vld [vmem:[#allocation157_spill] sm:$0xff] }
 0x722   :  { %v8997_v34 = vsel %vm8984_vm10, %v8978_v7, 0.0 }
 0x723   :  { %v8998_v43 = vadd.f32 %v8997_v34, %v8996_v51  ;;  %v17451_v23 = vpop.permute.xlu0 %8610  ;;  %v8739_v51 = vadd.f32 %v17394_v44, %v8643_v45  ;;  %v19155_v44 = vld [vmem:[#allocation136_spill] sm:$0xff]  ;;  %v8164_v7 = vadd.f32 %v19156_v14, %v8020_v46  ;;  %v8165_v46 = vadd.f32 %v19167_v55, %v8021_v37 }
 0x724   :  { %v8176_v9 = vadd.f32 %v19155_v44, %v8032_v20  ;;  %v19159_v34 = vld [vmem:[#allocation140_spill] sm:$0xff]  ;;  %v19169_v44 = vld [vmem:[#allocation82_spill] sm:$0xff] }
 0x725   :  { %v17455_v12 = vpop.permute.xlu1 %8678  ;;  %v8835_v60 = vadd.f32 %v17400_v17, %v8739_v51  ;;  %v8308_v17 = vadd.f32 %v19158_v26, %v8164_v7  ;;  %v19170_v7 = vld [vmem:[#allocation133_spill] sm:$0xff] }
 0x726   :  { %v8320_v35 = vadd.f32 %v19157_v8, %v8176_v9  ;;  %v8309_v9 = vadd.f32 %v19169_v44, %v8165_v46  ;;  %v19172_v8 = vld [vmem:[#allocation105_spill] sm:$0xff] }
 0x727   :  { %v17458_v25 = vpop.permute.xlu0 %8704  ;;  %v8452_v22 = vadd.f32 %v19160_v50, %v8308_v17  ;;  %v19175_v50 = vld [vmem:[#allocation61_spill] sm:$0xff] }
 0x728   :  { %v8464_v52 = vadd.f32 %v19159_v34, %v8320_v35  ;;  %v8453_v35 = vadd.f32 %v19172_v8, %v8309_v9  ;;  %v19173_v34 = vld [vmem:[#allocation135_spill] sm:$0xff]  ;;  %v19184_v9 = vld [vmem:[#allocation156_spill] sm:$0xff] }
 0x729   :  { %v8773_v61 = vpop.permute.xlu1 %8772  ;;  %v8548_v45 = vadd.f32 %v19162_v24, %v8452_v22 }
 0x72a   :  { %v8560_v39 = vadd.f32 %v19161_v38, %v8464_v52  ;;  %v8549_v22 = vadd.f32 %v19175_v50, %v8453_v35 }
 0x72b   :  { %v17464_v56 = vpop.permute.xlu0 %8798  ;;  %v8644_v51 = vadd.f32 %v17388_v16, %v8548_v45  ;;  %v19168_v16 = vld [vmem:[#allocation131_spill] sm:$0xff]  ;;  %v19177_v45 = vld [vmem:[#allocation137_spill] sm:$0xff] }
 0x72c   :  { %v8656_v33 = vadd.f32 %v17371_v4, %v8560_v39 }
 0x72d   :  { %v8891_v49 = vpop.permute.xlu1 %8890 }
 0x72e   :  { %v8955_v19 = vadd.f32 %v8891_v49, %v8835_v60  ;;  %v8740_v60 = vadd.f32 %v17397_v28, %v8644_v51  ;;  %v8752_v62 = vadd.f32 %v17426_v58, %v8656_v33  ;;  %v19171_v28 = vld [vmem:[#allocation151_spill] sm:$0xff]  ;;  %v8645_v33 = vadd.f32 %v17390_v27, %v8549_v22  ;;  %v19179_v51 = vld [vmem:[#allocation150_spill] sm:$0xff] }
 0x72f   :  { %v8917_v11 = vpop.permute.xlu0 %8916  ;;  %v7890_v58 = vadd.f32 %v19171_v28, %v17342_v15  ;;  %v19178_v15 = vld [vmem:[#allocation155_spill] sm:$0xff] }
 0x730   :  { %v8979_v53 = vmul.f32 %v8967_v10, %v8955_v19  ;;  %v8848_v42 = vadd.f32 %v17436_v54, %v8752_v62  ;;  %v8836_v4 = vadd.f32 %v8773_v61, %v8740_v60  ;;  %v19174_v61 = vld [vmem:[#allocation153_spill] sm:$0xff]  ;;  %v8741_v62 = vadd.f32 %v17455_v12, %v8645_v33 }
 0x731   :  { %v17475_v5 = vpop.permute.xlu1 %8586  ;;  %v8034_v52 = vadd.f32 %v19174_v61, %v7890_v58 }
 0x732   :  { %v8999_v48 = vsel %vm8986_vm11, %v8979_v53, 0.0 }
 0x733   :  { %v9000_v57 = vadd.f32 %v8999_v48, %v8998_v43  ;;  %v17482_v0 = vpop.permute.xlu0 %8706  ;;  %v19164_v43 = vld [vmem:[#allocation128_spill] sm:$0xff]  ;;  %v8178_v59 = vadd.f32 %v19178_v15, %v8034_v52 }
 0x734   :  { %v7889_v41 = vadd.f32 %v19164_v43, %v17331_v47  ;;  %v8968_v47 = vadd.f32 %v8917_v11, %v8848_v42  ;;  %v19176_v11 = vld [vmem:[#allocation149_spill] sm:$0xff] }
 0x735   :  { %v8681_v13 = vpop.permute.xlu1 %8680  ;;  %v7891_v39 = vadd.f32 %v19176_v11, %v17353_v6  ;;  %v8322_v37 = vadd.f32 %v19180_v21, %v8178_v59  ;;  %v19182_v6 = vld [vmem:[#allocation159_spill] sm:$0xff] }
 0x736   :  { %v8033_v20 = vadd.f32 %v19166_v1, %v7889_v41  ;;  %v19181_v1 = vld [vmem:[#allocation152_spill] sm:$0xff] }
 0x737   :  { %v8801_v49 = vpop.permute.xlu0 %8800  ;;  %v8035_v43 = vadd.f32 %v19179_v51, %v7891_v39 }
 0x738   :  { %v8177_v19 = vadd.f32 %v19168_v16, %v8033_v20 }
 0x739   :  { %v8775_v3 = vpop.permute.xlu1 %8774  ;;  %v8179_v20 = vadd.f32 %v19181_v1, %v8035_v43 }
 0x73a   :  { %v8321_v53 = vadd.f32 %v19170_v7, %v8177_v19  ;;  %v8837_v42 = vadd.f32 %v8775_v3, %v8741_v62 }
 0x73b   :  { %v8919_v17 = vpop.permute.xlu0 %8918 }
 0x73c   :  { %v8465_v54 = vadd.f32 %v19173_v34, %v8321_v53 }
 0x73d   :  { %v8893_v10 = vpop.permute.xlu1 %8892 }
 0x73e   :  { %v8956_v14 = vadd.f32 %v8893_v10, %v8836_v4  ;;  %v8561_v63 = vadd.f32 %v19177_v45, %v8465_v54  ;;  %v19183_v4 = vld [vmem:[#allocation154_spill] sm:$0xff] }
 0x73f   :  { %v8803_v55 = vpop.permute.xlu0 %8802  ;;  %v8323_v10 = vadd.f32 %v19183_v4, %v8179_v20 }
 0x740   :  { %v8980_v26 = vmul.f32 %v8968_v47, %v8956_v14  ;;  %v8657_v60 = vadd.f32 %v17419_v2, %v8561_v63  ;;  %v8646_v47 = vadd.f32 %v17446_v30, %v17141_v40 }
 0x741   :  { %v8683_v48 = vpop.permute.xlu1 %8682  ;;  %v8467_v2 = vadd.f32 %v19184_v9, %v8323_v10 }
 0x742   :  { %v9001_v38 = vsel %vm8984_vm10, %v8980_v26, 0.0  ;;  %v8753_v46 = vadd.f32 %v17430_v32, %v8657_v60  ;;  %v8742_v28 = vadd.f32 %v8681_v13, %v8646_v47 }
 0x743   :  { %v9002_v24 = vadd.f32 %v9001_v38, %v9000_v57  ;;  %v8466_v57 = vadd.f32 %v19182_v6, %v8322_v37  ;;  %v8563_v7 = vadd.f32 %v17415_v29, %v8467_v2  ;;  %v8921_v32 = vpop.permute.xlu0 %8920 }
 0x744   :  { %v8849_v19 = vadd.f32 %v17464_v56, %v8753_v46  ;;  %v8647_v56 = vadd.f32 %v17475_v5, %v17136_v18 }
 0x745   :  { %v8777_v41 = vpop.permute.xlu1 %8776  ;;  %v8562_v16 = vadd.f32 %v17410_v31, %v8466_v57  ;;  %v8659_v31 = vadd.f32 %v17451_v23, %v8563_v7 }
 0x746   :  { %v8969_v14 = vadd.f32 %v8919_v17, %v8849_v19  ;;  %v8838_v35 = vadd.f32 %v8777_v41, %v8742_v28  ;;  %v8743_v40 = vadd.f32 %v8683_v48, %v8647_v56 }
 0x747   :  { %v8658_v12 = vadd.f32 %v17423_v36, %v8562_v16  ;;  %v8755_v36 = vadd.f32 %v17482_v0, %v8659_v31  ;;  %v8923_v34 = vpop.permute.xlu0 %8922 }
 0x749   :  { %v8895_v27 = vpop.permute.xlu1 %8894  ;;  %v8754_v53 = vadd.f32 %v17458_v25, %v8658_v12  ;;  %v8851_v54 = vadd.f32 %v8803_v55, %v8755_v36 }
 0x74a   :  { %v8957_v44 = vadd.f32 %v8895_v27, %v8837_v42 }
 0x74b   :  { %v8850_v8 = vadd.f32 %v8801_v49, %v8754_v53  ;;  %v8971_v23 = vadd.f32 %v8923_v34, %v8851_v54 }
 0x74c   :  { %v8981_v58 = vmul.f32 %v8969_v14, %v8957_v44 }
 0x74d   :  { %v8779_v3 = vpop.permute.xlu1 %8778  ;;  %v8970_v30 = vadd.f32 %v8921_v32, %v8850_v8 }
 0x74e   :  { %v9003_v29 = vsel %vm8986_vm11, %v8981_v58, 0.0  ;;  %v8839_v25 = vadd.f32 %v8779_v3, %v8743_v40 }
 0x74f   :  { %v9004_v61 = vadd.f32 %v9003_v29, %v9002_v24 }
 0x751   :  { %v8897_v26 = vpop.permute.xlu1 %8896 }
 0x752   :  { %v8958_v17 = vadd.f32 %v8897_v26, %v8838_v35 }
 0x754   :  { %v8982_v13 = vmul.f32 %v8970_v30, %v8958_v17 }
 0x755   :  { %v8899_v52 = vpop.permute.xlu1 %8898 }
 0x756   :  { %v9005_v50 = vsel %vm8984_vm10, %v8982_v13, 0.0  ;;  %v8959_v18 = vadd.f32 %v8899_v52, %v8839_v25 }
 0x757   :  { %v9006_v5 = vadd.f32 %v9005_v50, %v9004_v61 }
 0x758   :  { %v8983_v49 = vmul.f32 %v8971_v23, %v8959_v18 }
 0x75a   :  { %v9007_v0 = vsel %vm8986_vm11, %v8983_v49, 0.0 }
 0x75b   :  { %v9008_v22 = vadd.f32 %v9007_v0, %v9006_v5 }
 0x75d   :  { %9009 = vadd.xlane.f32.xlu1 %v9008_v22 }
 0x7ea   :  { %v9010_v48 = vpop.xlane.xlu1 %9009 }
 0x7eb   :  { %v9011_v38 = vrot.slane %v9010_v48, 4 }
 0x7ed   :  { %v9012_v11 = vadd.f32 %v9011_v38, %v9010_v48 }
 0x7ef   :  { %v9013_v39 = vrot.slane %v9012_v11, 2 }
 0x7f1   :  { %v9014_v45 = vadd.f32 %v9013_v39, %v9012_v11 }
 0x7f3   :  { %v9015_v63 = vrot.slane %v9014_v45, 1 }
 0x7f5   :  { %v9016_v15 = vadd.f32 %v9015_v63, %v9014_v45 }
 0x7f7   :  { %9493 = vpush %v9016_v15 }
 0x828   :  { %s9494_s21 = spop %9493 }
 0x829   :  { %9019 = sst [smem:[#allocation2 + $0x5]] %s9494_s21 }
 0x82a   :  { %9607 = shalt.err (!%p9604_p2)
}
 0x82b   :  { %s9620_s6 = smov [#allocation2]  }
 0x82c   :  { %9027 = dma.smem_to_hbm %s9620_s6, 16, %s17552_s4, [#allocation3]  }
 0x82d   :  { %9608 = dma.done.wait [#allocation3], 16  }
 0x82e   :  { %9609 = vsyncadd [#allocation3], 4294967280 }
 0x82f   :  { %9031 = sfence }
 0x830   :  { %9032 = vsyncpa [#allocation3], 1 }

</bundles_post_ra>
